<compile_context>
chip_gen: v7x
topology: tpu7x:2x2x1
jax: 0.10.0
libtpu: 0.0.40
codegen_flags: <defaults>
</compile_context>

<pallas_src>
import functools

import numpy as np
import jax
import jax.numpy as jnp
from jax.experimental import pallas as pl
from jax.experimental.pallas import tpu as pltpu

# ----------------------------------------------------------------------------
# Scaled VGG16 configuration (layer sequence identical to torchvision vgg16)
# ----------------------------------------------------------------------------
VGG16_CFG = (64, 64, "M", 128, 128, "M", 256, 256, 256, "M",
             512, 512, 512, "M", 512, 512, 512, "M")
WIDTH_DIV = 16      # scale VGG channel widths (64..512 -> 4..32)
FC_DIM = 64         # scaled stand-in for VGG's 4096-wide FC layers
IN_SPATIAL = 32     # scaled stand-in for 224 (5 maxpools: 32 -> 1)
IN_CH = 3
IN_CH_PAD = 4       # pad input channels 3->4 so the input block is 128 lanes
N_CLASS = 2
HEAD_PAD = 128      # pad the classifier head to 128 lanes (lane-dense store)
B_TILE = 8          # images per grid step (batched MXU rows; grid >= 2 for v7x)


def _build_plan(in_ch=IN_CH_PAD, spatial=IN_SPATIAL):
    """Static per-layer shape plan consumed by the fused kernel."""
    plan = []
    c, s = in_ch, spatial
    for v in VGG16_CFG:
        if v == "M":
            plan.append(("pool", s, c))
            s //= 2
        else:
            cout = max(v // WIDTH_DIV, 1)
            plan.append(("conv", s, c, cout))
            c = cout
    return tuple(plan), c, s


PLAN, FINAL_C, FINAL_S = _build_plan()
# The in-kernel Flatten() relies on the conv output being 1x1 spatially
# (then NCHW C,H,W flatten order == the channel vector we already hold).
assert FINAL_S == 1, "IN_SPATIAL must reduce to 1 after 5 maxpools"


# ----------------------------------------------------------------------------
# The single fused kernel: features -> Flatten -> fc1 -> fc2 -> head
# Activations: lane-dense (B_TILE * H, W * C), f32.
# ----------------------------------------------------------------------------
def _vgg_fused_kernel(*refs, plan, b_tile):
    x_ref, o_ref = refs[0], refs[-1]
    params = refs[1:-1]

    a = x_ref[...]                       # (B*H0, W0*C0) f32, lane-dense
    idx = 0
    mask_cache = {}                      # per spatial size: boundary-row masks
    for op in plan:
        if op[0] == "conv":
            _, s, _cin, _cout = op
            band_ref, bias_ref = params[idx], params[idx + 1]
            idx += 2
            bh = b_tile * s
            if s not in mask_cache:      # tiny (B*H,1) masks, built once per size
                r = jax.lax.broadcasted_iota(jnp.int32, (bh, 1), 0)
                mask_cache[s] = ((r % s != 0).astype(jnp.float32),
                                 (r % s != s - 1).astype(jnp.float32))
            top, bot = mask_cache[s]
            # Row shifts on the XLU (sublane roll) + zero masks at image boundaries.
            a_prev = pltpu.roll(a, 1, 0) * top        # row i-1 (0 at top of each image)
            a_next = pltpu.roll(a, bh - 1, 0) * bot   # row i+1 (0 at bottom)
            # Fuse the 3 kh taps into ONE MXU matmul against the stacked band weight.
            a_cat = jnp.concatenate([a_prev, a, a_next], axis=-1).astype(jnp.bfloat16)
            y = jnp.dot(a_cat, band_ref[...], preferred_element_type=jnp.float32)
            a = jnp.maximum(y + bias_ref[...], jnp.float32(0.0))
        else:  # 2x2 stride-2 maxpool
            _, s, c = op
            srow_ref = params[idx]        # (B*H/2, B*H)  precomputed even-row selector
            geven_ref = params[idx + 1]   # (W*C, W/2*C)  precomputed even-col selector
            godd_ref = params[idx + 2]    # (W*C, W/2*C)  precomputed odd-col selector
            idx += 3
            bh = b_tile * s
            # pool along H: pair row i with row i+1 via sublane roll, then select even rows
            rows_max = jnp.maximum(a, pltpu.roll(a, bh - 1, 0))
            rows = jnp.dot(srow_ref[...], rows_max, preferred_element_type=jnp.float32)
            # pool along W: max of the even/odd C-wide lane blocks (exact f32 selection)
            a = jnp.maximum(
                jnp.dot(rows, geven_ref[...], preferred_element_type=jnp.float32),
                jnp.dot(rows, godd_ref[...], preferred_element_type=jnp.float32))

    fc1_w, fc1_b, fc2_w, fc2_b, head_w, head_b = params[idx:idx + 6]
    # Flatten(): conv output is 1x1 spatially -> the (B, C) slab we hold already equals
    # torch's NCHW C,H,W flatten order, one row per image.
    h1 = jnp.maximum(
        jnp.dot(a.astype(jnp.bfloat16), fc1_w[...],
                preferred_element_type=jnp.float32) + fc1_b[...], jnp.float32(0.0))
    h2 = jnp.maximum(
        jnp.dot(h1.astype(jnp.bfloat16), fc2_w[...],
                preferred_element_type=jnp.float32) + fc2_b[...], jnp.float32(0.0))
    # TODO(synk): Dropout layers are identity (eval mode) -- no stochastic kernel.
    logits = jnp.dot(h2.astype(jnp.bfloat16), head_w[...],
                     preferred_element_type=jnp.float32) + head_b[...]
    o_ref[...] = logits.astype(o_ref.dtype)


# ----------------------------------------------------------------------------
# Parameters (deterministic synthetic init; conv weights pre-banded + kh-stacked,
# pool selection matrices precomputed on the host)
# ----------------------------------------------------------------------------
def _banded_conv_weight(w, width):
    """Fold the kw taps + W-direction zero padding of a 3x3 'same' conv and stack
    the 3 kh taps along K -> single (3*W*Cin, W*Cout) matrix.
    stacked[kh*W*Cin + w_in*Cin + ci, w_out*Cout + co] = w[kh, w_in-w_out+1, ci, co]
    when |w_in - w_out| <= 1, else 0."""
    _, _, cin, cout = w.shape
    win = jnp.arange(width)[:, None]
    wout = jnp.arange(width)[None, :]
    kw = win - wout + 1                                  # outside [0,2] == zero pad
    valid = ((kw >= 0) & (kw <= 2)).astype(w.dtype)
    band = w[:, jnp.clip(kw, 0, 2), :, :]                # (3, W, W, cin, cout)
    band = band * valid[None, :, :, None, None]
    band = jnp.transpose(band, (0, 1, 3, 2, 4))          # (3, W, cin, W, cout)
    return band.reshape(3 * width * cin, width * cout)


def _pool_row_select(b, s):
    """(b*s/2, b*s) block-diagonal matrix selecting the even rows of each image."""
    h2 = s // 2
    m = np.zeros((b * h2, b * s), np.float32)
    j = np.arange(b * h2)
    m[j, (j // h2) * s + 2 * (j % h2)] = 1.0
    return jnp.asarray(m)


def _pool_lane_select(s, c, odd):
    """(s*c, s/2*c) matrix selecting the even (odd=0) / odd (odd=1) W positions."""
    w2 = s // 2
    m = np.zeros((s * c, w2 * c), np.float32)
    col = np.arange(w2 * c)
    m[(2 * (col // c) + odd) * c + (col % c), col] = 1.0
    return jnp.asarray(m)


def init_params(key):
    keys = iter(jax.random.split(key, 32))
    layers = []
    first_conv = True
    for op in PLAN:
        if op[0] == "conv":
            _, s, cin, cout = op
            draw_cin = IN_CH if first_conv else cin
            fan_in = 9 * draw_cin
            w = jax.random.normal(next(keys), (3, 3, draw_cin, cout), jnp.float32) \
                * (2.0 / fan_in) ** 0.5
            if first_conv and cin != draw_cin:            # zero-pad channel 3 -> 4
                w = jnp.pad(w, ((0, 0), (0, 0), (0, cin - draw_cin), (0, 0)))
            first_conv = False
            band = _banded_conv_weight(w, s).astype(jnp.bfloat16)
            bias = jnp.zeros((1, s * cout), jnp.float32)
            layers.append((band, bias))
        else:
            _, s, c = op
            layers.append((_pool_row_select(B_TILE, s),
                           _pool_lane_select(s, c, 0),
                           _pool_lane_select(s, c, 1)))

    flat_dim = FINAL_C        # torch Flatten of the 1x1 NCHW conv output
    params = {"layers": layers}
    params["fc1_w"] = (jax.random.normal(next(keys), (flat_dim, FC_DIM), jnp.float32)
                       * (2.0 / flat_dim) ** 0.5).astype(jnp.bfloat16)
    params["fc1_b"] = jnp.zeros((1, FC_DIM), jnp.float32)
    params["fc2_w"] = (jax.random.normal(next(keys), (FC_DIM, FC_DIM), jnp.float32)
                       * (2.0 / FC_DIM) ** 0.5).astype(jnp.bfloat16)
    params["fc2_b"] = jnp.zeros((1, FC_DIM), jnp.float32)
    head_w = jax.random.normal(next(keys), (FC_DIM, N_CLASS), jnp.float32) \
        * (1.0 / FC_DIM) ** 0.5
    params["head_w"] = jnp.zeros((FC_DIM, HEAD_PAD), jnp.float32) \
        .at[:, :N_CLASS].set(head_w).astype(jnp.bfloat16)
    params["head_b"] = jnp.zeros((1, HEAD_PAD), jnp.float32)
    return params


# ----------------------------------------------------------------------------
# Forward pass = VGGClassifier.forward  (one pallas_call for the whole network)
# ----------------------------------------------------------------------------
def _const_spec(shape):
    nd = len(shape)
    return pl.BlockSpec(tuple(shape), lambda i, _nd=nd: (0,) * _nd)


def vgg_classifier_forward(x_nchw, params):
    n, c, h, w = x_nchw.shape
    # NCHW -> NHWC -> lane-dense (N*H, W*C) once in the wrapper; all layer math
    # (conv/relu/pool/flatten/fc) happens inside the single fused kernel.
    x = jnp.transpose(x_nchw, (0, 2, 3, 1)).astype(jnp.float32)
    if c < IN_CH_PAD:
        x = jnp.pad(x, ((0, 0), (0, 0), (0, 0), (0, IN_CH_PAD - c)))
    n_pad = ((n + B_TILE - 1) // B_TILE) * B_TILE
    if n_pad != n:
        x = jnp.pad(x, ((0, n_pad - n), (0, 0), (0, 0), (0, 0)))
    x2d = x.reshape(n_pad * h, w * IN_CH_PAD)            # (N*H, W*C), 128 lanes

    inputs = [x2d]
    in_specs = [pl.BlockSpec((B_TILE * h, w * IN_CH_PAD), lambda i: (i, 0))]
    for group in params["layers"]:
        for arr in group:
            inputs.append(arr)
            in_specs.append(_const_spec(arr.shape))      # constant block -> DMA'd once
    for name in ("fc1_w", "fc1_b", "fc2_w", "fc2_b", "head_w", "head_b"):
        inputs.append(params[name])
        in_specs.append(_const_spec(params[name].shape))

    out = pl.pallas_call(
        functools.partial(_vgg_fused_kernel, plan=PLAN, b_tile=B_TILE),
        out_shape=jax.ShapeDtypeStruct((n_pad, HEAD_PAD), jnp.float32),
        grid=(n_pad // B_TILE,),
        in_specs=in_specs,
        out_specs=pl.BlockSpec((B_TILE, HEAD_PAD), lambda i: (i, 0)),
        compiler_params=pltpu.CompilerParams(
            dimension_semantics=("parallel",)),          # v7x: grid steps across TCs
    )(*inputs)
    return out[:n, :N_CLASS]


def predict_proba(x_nchw, params):
    return jax.nn.softmax(vgg_classifier_forward(x_nchw, params), axis=1)


# ----------------------------------------------------------------------------
if __name__ == "__main__":
    key = jax.random.PRNGKey(0)
    kx, kp = jax.random.split(key)
    # NCHW input, like the PyTorch module expects (scaled-down resolution).
    # batch=16 -> 2 grid steps of B_TILE=8 images each.
    x = jax.random.normal(kx, (16, IN_CH, IN_SPATIAL, IN_SPATIAL), dtype=jnp.float32)
    params = init_params(kp)

    fwd = jax.jit(vgg_classifier_forward)
    logits = jax.block_until_ready(fwd(x, params))

    assert logits.shape == (16, N_CLASS), logits.shape
    assert bool(jnp.all(jnp.isfinite(logits)))
    print("KERNEL_OK")
</pallas_src>

<mosaic_0001>
module attributes {stable_mosaic.version = 11 : i64} {
  func.func @_vgg_fused_kernel(%arg0: i32, %arg1: memref<256x128xf32, #tpu.memory_space<vmem>>, %arg2: memref<384x128xbf16, #tpu.memory_space<vmem>>, %arg3: memref<1x128xf32, #tpu.memory_space<vmem>>, %arg4: memref<384x128xbf16, #tpu.memory_space<vmem>>, %arg5: memref<1x128xf32, #tpu.memory_space<vmem>>, %arg6: memref<128x256xf32, #tpu.memory_space<vmem>>, %arg7: memref<128x64xf32, #tpu.memory_space<vmem>>, %arg8: memref<128x64xf32, #tpu.memory_space<vmem>>, %arg9: memref<192x128xbf16, #tpu.memory_space<vmem>>, %arg10: memref<1x128xf32, #tpu.memory_space<vmem>>, %arg11: memref<384x128xbf16, #tpu.memory_space<vmem>>, %arg12: memref<1x128xf32, #tpu.memory_space<vmem>>, %arg13: memref<64x128xf32, #tpu.memory_space<vmem>>, %arg14: memref<128x64xf32, #tpu.memory_space<vmem>>, %arg15: memref<128x64xf32, #tpu.memory_space<vmem>>, %arg16: memref<192x128xbf16, #tpu.memory_space<vmem>>, %arg17: memref<1x128xf32, #tpu.memory_space<vmem>>, %arg18: memref<384x128xbf16, #tpu.memory_space<vmem>>, %arg19: memref<1x128xf32, #tpu.memory_space<vmem>>, %arg20: memref<384x128xbf16, #tpu.memory_space<vmem>>, %arg21: memref<1x128xf32, #tpu.memory_space<vmem>>, %arg22: memref<32x64xf32, #tpu.memory_space<vmem>>, %arg23: memref<128x64xf32, #tpu.memory_space<vmem>>, %arg24: memref<128x64xf32, #tpu.memory_space<vmem>>, %arg25: memref<192x128xbf16, #tpu.memory_space<vmem>>, %arg26: memref<1x128xf32, #tpu.memory_space<vmem>>, %arg27: memref<384x128xbf16, #tpu.memory_space<vmem>>, %arg28: memref<1x128xf32, #tpu.memory_space<vmem>>, %arg29: memref<384x128xbf16, #tpu.memory_space<vmem>>, %arg30: memref<1x128xf32, #tpu.memory_space<vmem>>, %arg31: memref<16x32xf32, #tpu.memory_space<vmem>>, %arg32: memref<128x64xf32, #tpu.memory_space<vmem>>, %arg33: memref<128x64xf32, #tpu.memory_space<vmem>>, %arg34: memref<192x64xbf16, #tpu.memory_space<vmem>>, %arg35: memref<1x64xf32, #tpu.memory_space<vmem>>, %arg36: memref<192x64xbf16, #tpu.memory_space<vmem>>, %arg37: memref<1x64xf32, #tpu.memory_space<vmem>>, %arg38: memref<192x64xbf16, #tpu.memory_space<vmem>>, %arg39: memref<1x64xf32, #tpu.memory_space<vmem>>, %arg40: memref<8x16xf32, #tpu.memory_space<vmem>>, %arg41: memref<64x32xf32, #tpu.memory_space<vmem>>, %arg42: memref<64x32xf32, #tpu.memory_space<vmem>>, %arg43: memref<32x64xbf16, #tpu.memory_space<vmem>>, %arg44: memref<1x64xf32, #tpu.memory_space<vmem>>, %arg45: memref<64x64xbf16, #tpu.memory_space<vmem>>, %arg46: memref<1x64xf32, #tpu.memory_space<vmem>>, %arg47: memref<64x128xbf16, #tpu.memory_space<vmem>>, %arg48: memref<1x128xf32, #tpu.memory_space<vmem>>, %arg49: memref<8x128xf32, #tpu.memory_space<vmem>>) attributes {dimension_semantics = [#tpu.dimension_semantics<parallel>], iteration_bounds = array<i64: 2>, scalar_prefetch = 0 : i64, scratch_operands = 0 : i64, tpu.core_type = #tpu.core_type<tc>, window_params = [{transform_indices = @transform_0, window_bounds = array<i64: 256, 128>}, {pipeline_mode = #tpu.pipeline_mode<synchronous>, transform_indices = @transform_1, window_bounds = array<i64: 384, 128>}, {pipeline_mode = #tpu.pipeline_mode<synchronous>, transform_indices = @transform_2, window_bounds = array<i64: 1, 128>}, {pipeline_mode = #tpu.pipeline_mode<synchronous>, transform_indices = @transform_3, window_bounds = array<i64: 384, 128>}, {pipeline_mode = #tpu.pipeline_mode<synchronous>, transform_indices = @transform_4, window_bounds = array<i64: 1, 128>}, {pipeline_mode = #tpu.pipeline_mode<synchronous>, transform_indices = @transform_5, window_bounds = array<i64: 128, 256>}, {pipeline_mode = #tpu.pipeline_mode<synchronous>, transform_indices = @transform_6, window_bounds = array<i64: 128, 64>}, {pipeline_mode = #tpu.pipeline_mode<synchronous>, transform_indices = @transform_7, window_bounds = array<i64: 128, 64>}, {pipeline_mode = #tpu.pipeline_mode<synchronous>, transform_indices = @transform_8, window_bounds = array<i64: 192, 128>}, {pipeline_mode = #tpu.pipeline_mode<synchronous>, transform_indices = @transform_9, window_bounds = array<i64: 1, 128>}, {pipeline_mode = #tpu.pipeline_mode<synchronous>, transform_indices = @transform_10, window_bounds = array<i64: 384, 128>}, {pipeline_mode = #tpu.pipeline_mode<synchronous>, transform_indices = @transform_11, window_bounds = array<i64: 1, 128>}, {pipeline_mode = #tpu.pipeline_mode<synchronous>, transform_indices = @transform_12, window_bounds = array<i64: 64, 128>}, {pipeline_mode = #tpu.pipeline_mode<synchronous>, transform_indices = @transform_13, window_bounds = array<i64: 128, 64>}, {pipeline_mode = #tpu.pipeline_mode<synchronous>, transform_indices = @transform_14, window_bounds = array<i64: 128, 64>}, {pipeline_mode = #tpu.pipeline_mode<synchronous>, transform_indices = @transform_15, window_bounds = array<i64: 192, 128>}, {pipeline_mode = #tpu.pipeline_mode<synchronous>, transform_indices = @transform_16, window_bounds = array<i64: 1, 128>}, {pipeline_mode = #tpu.pipeline_mode<synchronous>, transform_indices = @transform_17, window_bounds = array<i64: 384, 128>}, {pipeline_mode = #tpu.pipeline_mode<synchronous>, transform_indices = @transform_18, window_bounds = array<i64: 1, 128>}, {pipeline_mode = #tpu.pipeline_mode<synchronous>, transform_indices = @transform_19, window_bounds = array<i64: 384, 128>}, {pipeline_mode = #tpu.pipeline_mode<synchronous>, transform_indices = @transform_20, window_bounds = array<i64: 1, 128>}, {pipeline_mode = #tpu.pipeline_mode<synchronous>, transform_indices = @transform_21, window_bounds = array<i64: 32, 64>}, {pipeline_mode = #tpu.pipeline_mode<synchronous>, transform_indices = @transform_22, window_bounds = array<i64: 128, 64>}, {pipeline_mode = #tpu.pipeline_mode<synchronous>, transform_indices = @transform_23, window_bounds = array<i64: 128, 64>}, {pipeline_mode = #tpu.pipeline_mode<synchronous>, transform_indices = @transform_24, window_bounds = array<i64: 192, 128>}, {pipeline_mode = #tpu.pipeline_mode<synchronous>, transform_indices = @transform_25, window_bounds = array<i64: 1, 128>}, {pipeline_mode = #tpu.pipeline_mode<synchronous>, transform_indices = @transform_26, window_bounds = array<i64: 384, 128>}, {pipeline_mode = #tpu.pipeline_mode<synchronous>, transform_indices = @transform_27, window_bounds = array<i64: 1, 128>}, {pipeline_mode = #tpu.pipeline_mode<synchronous>, transform_indices = @transform_28, window_bounds = array<i64: 384, 128>}, {pipeline_mode = #tpu.pipeline_mode<synchronous>, transform_indices = @transform_29, window_bounds = array<i64: 1, 128>}, {pipeline_mode = #tpu.pipeline_mode<synchronous>, transform_indices = @transform_30, window_bounds = array<i64: 16, 32>}, {pipeline_mode = #tpu.pipeline_mode<synchronous>, transform_indices = @transform_31, window_bounds = array<i64: 128, 64>}, {pipeline_mode = #tpu.pipeline_mode<synchronous>, transform_indices = @transform_32, window_bounds = array<i64: 128, 64>}, {pipeline_mode = #tpu.pipeline_mode<synchronous>, transform_indices = @transform_33, window_bounds = array<i64: 192, 64>}, {pipeline_mode = #tpu.pipeline_mode<synchronous>, transform_indices = @transform_34, window_bounds = array<i64: 1, 64>}, {pipeline_mode = #tpu.pipeline_mode<synchronous>, transform_indices = @transform_35, window_bounds = array<i64: 192, 64>}, {pipeline_mode = #tpu.pipeline_mode<synchronous>, transform_indices = @transform_36, window_bounds = array<i64: 1, 64>}, {pipeline_mode = #tpu.pipeline_mode<synchronous>, transform_indices = @transform_37, window_bounds = array<i64: 192, 64>}, {pipeline_mode = #tpu.pipeline_mode<synchronous>, transform_indices = @transform_38, window_bounds = array<i64: 1, 64>}, {pipeline_mode = #tpu.pipeline_mode<synchronous>, transform_indices = @transform_39, window_bounds = array<i64: 8, 16>}, {pipeline_mode = #tpu.pipeline_mode<synchronous>, transform_indices = @transform_40, window_bounds = array<i64: 64, 32>}, {pipeline_mode = #tpu.pipeline_mode<synchronous>, transform_indices = @transform_41, window_bounds = array<i64: 64, 32>}, {pipeline_mode = #tpu.pipeline_mode<synchronous>, transform_indices = @transform_42, window_bounds = array<i64: 32, 64>}, {pipeline_mode = #tpu.pipeline_mode<synchronous>, transform_indices = @transform_43, window_bounds = array<i64: 1, 64>}, {pipeline_mode = #tpu.pipeline_mode<synchronous>, transform_indices = @transform_44, window_bounds = array<i64: 64, 64>}, {pipeline_mode = #tpu.pipeline_mode<synchronous>, transform_indices = @transform_45, window_bounds = array<i64: 1, 64>}, {pipeline_mode = #tpu.pipeline_mode<synchronous>, transform_indices = @transform_46, window_bounds = array<i64: 64, 128>}, {pipeline_mode = #tpu.pipeline_mode<synchronous>, transform_indices = @transform_47, window_bounds = array<i64: 1, 128>}, {transform_indices = @transform_48, window_bounds = array<i64: 8, 128>}]} {
    %c0 = arith.constant 0 : index
    %c0_0 = arith.constant 0 : index
    %0 = vector.load %arg1[%c0, %c0_0] : memref<256x128xf32, #tpu.memory_space<vmem>>, vector<256x128xf32>
    %1 = tpu.iota {dimensions = array<i32: 0>} : vector<256x1xi32>
    %c32_i32 = arith.constant 32 : i32
    %c0_i32 = arith.constant 0 : i32
    %2 = arith.cmpi eq, %c32_i32, %c0_i32 : i32
    %c1_i32 = arith.constant 1 : i32
    %3 = arith.select %2, %c1_i32, %c32_i32 : i32
    %4 = vector.broadcast %3 : i32 to vector<256x1xi32>
    %5 = arith.remsi %1, %4 : vector<256x1xi32>
    %c0_i32_1 = arith.constant 0 : i32
    %6 = vector.broadcast %c0_i32_1 : i32 to vector<256x1xi32>
    %7 = arith.cmpi ne, %5, %6 : vector<256x1xi32>
    %c0_i32_2 = arith.constant 0 : i32
    %8 = vector.broadcast %c0_i32_2 : i32 to vector<256x1xi32>
    %9 = arith.cmpi slt, %5, %8 : vector<256x1xi32>
    %c0_i32_3 = arith.constant 0 : i32
    %10 = arith.cmpi slt, %3, %c0_i32_3 : i32
    %11 = vector.broadcast %10 : i1 to vector<256x1xi1>
    %12 = vector.broadcast %11 : vector<256x1xi1> to vector<256x1xi1>
    %13 = arith.xori %9, %12 : vector<256x1xi1>
    %14 = arith.andi %13, %7 : vector<256x1xi1>
    %15 = vector.broadcast %3 : i32 to vector<256x1xi32>
    %16 = arith.addi %5, %15 : vector<256x1xi32>
    %17 = arith.select %14, %16, %5 : vector<256x1xi1>, vector<256x1xi32>
    %c0_i32_4 = arith.constant 0 : i32
    %18 = vector.broadcast %c0_i32_4 : i32 to vector<256x1xi32>
    %19 = arith.cmpi ne, %17, %18 : vector<256x1xi32>
    %20 = arith.extui %19 : vector<256x1xi1> to vector<256x1xi32>
    %21 = arith.sitofp %20 : vector<256x1xi32> to vector<256x1xf32>
    %c32_i32_5 = arith.constant 32 : i32
    %c0_i32_6 = arith.constant 0 : i32
    %22 = arith.cmpi eq, %c32_i32_5, %c0_i32_6 : i32
    %c1_i32_7 = arith.constant 1 : i32
    %23 = arith.select %22, %c1_i32_7, %c32_i32_5 : i32
    %24 = vector.broadcast %23 : i32 to vector<256x1xi32>
    %25 = arith.remsi %1, %24 : vector<256x1xi32>
    %c0_i32_8 = arith.constant 0 : i32
    %26 = vector.broadcast %c0_i32_8 : i32 to vector<256x1xi32>
    %27 = arith.cmpi ne, %25, %26 : vector<256x1xi32>
    %c0_i32_9 = arith.constant 0 : i32
    %28 = vector.broadcast %c0_i32_9 : i32 to vector<256x1xi32>
    %29 = arith.cmpi slt, %25, %28 : vector<256x1xi32>
    %c0_i32_10 = arith.constant 0 : i32
    %30 = arith.cmpi slt, %23, %c0_i32_10 : i32
    %31 = vector.broadcast %30 : i1 to vector<256x1xi1>
    %32 = vector.broadcast %31 : vector<256x1xi1> to vector<256x1xi1>
    %33 = arith.xori %29, %32 : vector<256x1xi1>
    %34 = arith.andi %33, %27 : vector<256x1xi1>
    %35 = vector.broadcast %23 : i32 to vector<256x1xi32>
    %36 = arith.addi %25, %35 : vector<256x1xi32>
    %37 = arith.select %34, %36, %25 : vector<256x1xi1>, vector<256x1xi32>
    %c31_i32 = arith.constant 31 : i32
    %38 = vector.broadcast %c31_i32 : i32 to vector<256x1xi32>
    %39 = arith.cmpi ne, %37, %38 : vector<256x1xi32>
    %40 = arith.extui %39 : vector<256x1xi1> to vector<256x1xi32>
    %41 = arith.sitofp %40 : vector<256x1xi32> to vector<256x1xf32>
    %c1_i32_11 = arith.constant 1 : i32
    %42 = tpu.dynamic_rotate %0 by %c1_i32_11 dim 0 : vector<256x128xf32>, i32 -> vector<256x128xf32>
    %43 = vector.broadcast %21 : vector<256x1xf32> to vector<256x128xf32>
    %44 = arith.mulf %42, %43 : vector<256x128xf32>
    %c255_i32 = arith.constant 255 : i32
    %45 = tpu.dynamic_rotate %0 by %c255_i32 dim 0 : vector<256x128xf32>, i32 -> vector<256x128xf32>
    %46 = vector.broadcast %41 : vector<256x1xf32> to vector<256x128xf32>
    %47 = arith.mulf %45, %46 : vector<256x128xf32>
    %48 = tpu.concatenate %44, %0, %47 in 1 : vector<256x128xf32>, vector<256x128xf32>, vector<256x128xf32> -> vector<256x384xf32>
    %49 = arith.truncf %48 : vector<256x384xf32> to vector<256x384xbf16>
    %c0_12 = arith.constant 0 : index
    %c0_13 = arith.constant 0 : index
    %50 = vector.load %arg2[%c0_12, %c0_13] : memref<384x128xbf16, #tpu.memory_space<vmem>>, vector<384x128xbf16>
    %cst = arith.constant dense<0.000000e+00> : vector<256x128xf32>
    %51 = tpu.matmul %49, %50, %cst {dimension_numbers = #tpu.dot_dimension_numbers<[1], [0], [0], [1], [0, 0, 1, 1], [], []>} : vector<256x384xbf16>, vector<384x128xbf16>, vector<256x128xf32> -> vector<256x128xf32>
    %c0_14 = arith.constant 0 : index
    %c0_15 = arith.constant 0 : index
    %52 = vector.load %arg3[%c0_14, %c0_15] : memref<1x128xf32, #tpu.memory_space<vmem>>, vector<1x128xf32>
    %53 = vector.broadcast %52 : vector<1x128xf32> to vector<256x128xf32>
    %54 = arith.addf %51, %53 : vector<256x128xf32>
    %cst_16 = arith.constant 0.000000e+00 : f32
    %55 = vector.broadcast %cst_16 : f32 to vector<256x128xf32>
    %56 = arith.maximumf %54, %55 : vector<256x128xf32>
    %c1_i32_17 = arith.constant 1 : i32
    %57 = tpu.dynamic_rotate %56 by %c1_i32_17 dim 0 : vector<256x128xf32>, i32 -> vector<256x128xf32>
    %58 = vector.broadcast %21 : vector<256x1xf32> to vector<256x128xf32>
    %59 = arith.mulf %57, %58 : vector<256x128xf32>
    %c255_i32_18 = arith.constant 255 : i32
    %60 = tpu.dynamic_rotate %56 by %c255_i32_18 dim 0 : vector<256x128xf32>, i32 -> vector<256x128xf32>
    %61 = vector.broadcast %41 : vector<256x1xf32> to vector<256x128xf32>
    %62 = arith.mulf %60, %61 : vector<256x128xf32>
    %63 = tpu.concatenate %59, %56, %62 in 1 : vector<256x128xf32>, vector<256x128xf32>, vector<256x128xf32> -> vector<256x384xf32>
    %64 = arith.truncf %63 : vector<256x384xf32> to vector<256x384xbf16>
    %c0_19 = arith.constant 0 : index
    %c0_20 = arith.constant 0 : index
    %65 = vector.load %arg4[%c0_19, %c0_20] : memref<384x128xbf16, #tpu.memory_space<vmem>>, vector<384x128xbf16>
    %cst_21 = arith.constant dense<0.000000e+00> : vector<256x128xf32>
    %66 = tpu.matmul %64, %65, %cst_21 {dimension_numbers = #tpu.dot_dimension_numbers<[1], [0], [0], [1], [0, 0, 1, 1], [], []>} : vector<256x384xbf16>, vector<384x128xbf16>, vector<256x128xf32> -> vector<256x128xf32>
    %c0_22 = arith.constant 0 : index
    %c0_23 = arith.constant 0 : index
    %67 = vector.load %arg5[%c0_22, %c0_23] : memref<1x128xf32, #tpu.memory_space<vmem>>, vector<1x128xf32>
    %68 = vector.broadcast %67 : vector<1x128xf32> to vector<256x128xf32>
    %69 = arith.addf %66, %68 : vector<256x128xf32>
    %cst_24 = arith.constant 0.000000e+00 : f32
    %70 = vector.broadcast %cst_24 : f32 to vector<256x128xf32>
    %71 = arith.maximumf %69, %70 : vector<256x128xf32>
    %c255_i32_25 = arith.constant 255 : i32
    %72 = tpu.dynamic_rotate %71 by %c255_i32_25 dim 0 : vector<256x128xf32>, i32 -> vector<256x128xf32>
    %73 = arith.maximumf %71, %72 : vector<256x128xf32>
    %c0_26 = arith.constant 0 : index
    %c0_27 = arith.constant 0 : index
    %74 = vector.load %arg6[%c0_26, %c0_27] : memref<128x256xf32, #tpu.memory_space<vmem>>, vector<128x256xf32>
    %cst_28 = arith.constant dense<0.000000e+00> : vector<128x128xf32>
    %75 = tpu.matmul %74, %73, %cst_28 {dimension_numbers = #tpu.dot_dimension_numbers<[1], [0], [0], [1], [0, 0, 1, 1], [], []>} : vector<128x256xf32>, vector<256x128xf32>, vector<128x128xf32> -> vector<128x128xf32>
    %c0_29 = arith.constant 0 : index
    %c0_30 = arith.constant 0 : index
    %76 = vector.load %arg7[%c0_29, %c0_30] : memref<128x64xf32, #tpu.memory_space<vmem>>, vector<128x64xf32>
    %cst_31 = arith.constant dense<0.000000e+00> : vector<128x64xf32>
    %77 = tpu.matmul %75, %76, %cst_31 {dimension_numbers = #tpu.dot_dimension_numbers<[1], [0], [0], [1], [0, 0, 1, 1], [], []>} : vector<128x128xf32>, vector<128x64xf32>, vector<128x64xf32> -> vector<128x64xf32>
    %c0_32 = arith.constant 0 : index
    %c0_33 = arith.constant 0 : index
    %78 = vector.load %arg8[%c0_32, %c0_33] : memref<128x64xf32, #tpu.memory_space<vmem>>, vector<128x64xf32>
    %cst_34 = arith.constant dense<0.000000e+00> : vector<128x64xf32>
    %79 = tpu.matmul %75, %78, %cst_34 {dimension_numbers = #tpu.dot_dimension_numbers<[1], [0], [0], [1], [0, 0, 1, 1], [], []>} : vector<128x128xf32>, vector<128x64xf32>, vector<128x64xf32> -> vector<128x64xf32>
    %80 = arith.maximumf %77, %79 : vector<128x64xf32>
    %81 = tpu.iota {dimensions = array<i32: 0>} : vector<128x1xi32>
    %c16_i32 = arith.constant 16 : i32
    %c0_i32_35 = arith.constant 0 : i32
    %82 = arith.cmpi eq, %c16_i32, %c0_i32_35 : i32
    %c1_i32_36 = arith.constant 1 : i32
    %83 = arith.select %82, %c1_i32_36, %c16_i32 : i32
    %84 = vector.broadcast %83 : i32 to vector<128x1xi32>
    %85 = arith.remsi %81, %84 : vector<128x1xi32>
    %c0_i32_37 = arith.constant 0 : i32
    %86 = vector.broadcast %c0_i32_37 : i32 to vector<128x1xi32>
    %87 = arith.cmpi ne, %85, %86 : vector<128x1xi32>
    %c0_i32_38 = arith.constant 0 : i32
    %88 = vector.broadcast %c0_i32_38 : i32 to vector<128x1xi32>
    %89 = arith.cmpi slt, %85, %88 : vector<128x1xi32>
    %c0_i32_39 = arith.constant 0 : i32
    %90 = arith.cmpi slt, %83, %c0_i32_39 : i32
    %91 = vector.broadcast %90 : i1 to vector<128x1xi1>
    %92 = vector.broadcast %91 : vector<128x1xi1> to vector<128x1xi1>
    %93 = arith.xori %89, %92 : vector<128x1xi1>
    %94 = arith.andi %93, %87 : vector<128x1xi1>
    %95 = vector.broadcast %83 : i32 to vector<128x1xi32>
    %96 = arith.addi %85, %95 : vector<128x1xi32>
    %97 = arith.select %94, %96, %85 : vector<128x1xi1>, vector<128x1xi32>
    %c0_i32_40 = arith.constant 0 : i32
    %98 = vector.broadcast %c0_i32_40 : i32 to vector<128x1xi32>
    %99 = arith.cmpi ne, %97, %98 : vector<128x1xi32>
    %100 = arith.extui %99 : vector<128x1xi1> to vector<128x1xi32>
    %101 = arith.sitofp %100 : vector<128x1xi32> to vector<128x1xf32>
    %c16_i32_41 = arith.constant 16 : i32
    %c0_i32_42 = arith.constant 0 : i32
    %102 = arith.cmpi eq, %c16_i32_41, %c0_i32_42 : i32
    %c1_i32_43 = arith.constant 1 : i32
    %103 = arith.select %102, %c1_i32_43, %c16_i32_41 : i32
    %104 = vector.broadcast %103 : i32 to vector<128x1xi32>
    %105 = arith.remsi %81, %104 : vector<128x1xi32>
    %c0_i32_44 = arith.constant 0 : i32
    %106 = vector.broadcast %c0_i32_44 : i32 to vector<128x1xi32>
    %107 = arith.cmpi ne, %105, %106 : vector<128x1xi32>
    %c0_i32_45 = arith.constant 0 : i32
    %108 = vector.broadcast %c0_i32_45 : i32 to vector<128x1xi32>
    %109 = arith.cmpi slt, %105, %108 : vector<128x1xi32>
    %c0_i32_46 = arith.constant 0 : i32
    %110 = arith.cmpi slt, %103, %c0_i32_46 : i32
    %111 = vector.broadcast %110 : i1 to vector<128x1xi1>
    %112 = vector.broadcast %111 : vector<128x1xi1> to vector<128x1xi1>
    %113 = arith.xori %109, %112 : vector<128x1xi1>
    %114 = arith.andi %113, %107 : vector<128x1xi1>
    %115 = vector.broadcast %103 : i32 to vector<128x1xi32>
    %116 = arith.addi %105, %115 : vector<128x1xi32>
    %117 = arith.select %114, %116, %105 : vector<128x1xi1>, vector<128x1xi32>
    %c15_i32 = arith.constant 15 : i32
    %118 = vector.broadcast %c15_i32 : i32 to vector<128x1xi32>
    %119 = arith.cmpi ne, %117, %118 : vector<128x1xi32>
    %120 = arith.extui %119 : vector<128x1xi1> to vector<128x1xi32>
    %121 = arith.sitofp %120 : vector<128x1xi32> to vector<128x1xf32>
    %c1_i32_47 = arith.constant 1 : i32
    %122 = tpu.dynamic_rotate %80 by %c1_i32_47 dim 0 : vector<128x64xf32>, i32 -> vector<128x64xf32>
    %123 = vector.broadcast %101 : vector<128x1xf32> to vector<128x64xf32>
    %124 = arith.mulf %122, %123 : vector<128x64xf32>
    %c127_i32 = arith.constant 127 : i32
    %125 = tpu.dynamic_rotate %80 by %c127_i32 dim 0 : vector<128x64xf32>, i32 -> vector<128x64xf32>
    %126 = vector.broadcast %121 : vector<128x1xf32> to vector<128x64xf32>
    %127 = arith.mulf %125, %126 : vector<128x64xf32>
    %128 = tpu.concatenate %124, %80, %127 in 1 : vector<128x64xf32>, vector<128x64xf32>, vector<128x64xf32> -> vector<128x192xf32>
    %129 = arith.truncf %128 : vector<128x192xf32> to vector<128x192xbf16>
    %c0_48 = arith.constant 0 : index
    %c0_49 = arith.constant 0 : index
    %130 = vector.load %arg9[%c0_48, %c0_49] : memref<192x128xbf16, #tpu.memory_space<vmem>>, vector<192x128xbf16>
    %cst_50 = arith.constant dense<0.000000e+00> : vector<128x128xf32>
    %131 = tpu.matmul %129, %130, %cst_50 {dimension_numbers = #tpu.dot_dimension_numbers<[1], [0], [0], [1], [0, 0, 1, 1], [], []>} : vector<128x192xbf16>, vector<192x128xbf16>, vector<128x128xf32> -> vector<128x128xf32>
    %c0_51 = arith.constant 0 : index
    %c0_52 = arith.constant 0 : index
    %132 = vector.load %arg10[%c0_51, %c0_52] : memref<1x128xf32, #tpu.memory_space<vmem>>, vector<1x128xf32>
    %133 = vector.broadcast %132 : vector<1x128xf32> to vector<128x128xf32>
    %134 = arith.addf %131, %133 : vector<128x128xf32>
    %cst_53 = arith.constant 0.000000e+00 : f32
    %135 = vector.broadcast %cst_53 : f32 to vector<128x128xf32>
    %136 = arith.maximumf %134, %135 : vector<128x128xf32>
    %c1_i32_54 = arith.constant 1 : i32
    %137 = tpu.dynamic_rotate %136 by %c1_i32_54 dim 0 : vector<128x128xf32>, i32 -> vector<128x128xf32>
    %138 = vector.broadcast %101 : vector<128x1xf32> to vector<128x128xf32>
    %139 = arith.mulf %137, %138 : vector<128x128xf32>
    %c127_i32_55 = arith.constant 127 : i32
    %140 = tpu.dynamic_rotate %136 by %c127_i32_55 dim 0 : vector<128x128xf32>, i32 -> vector<128x128xf32>
    %141 = vector.broadcast %121 : vector<128x1xf32> to vector<128x128xf32>
    %142 = arith.mulf %140, %141 : vector<128x128xf32>
    %143 = tpu.concatenate %139, %136, %142 in 1 : vector<128x128xf32>, vector<128x128xf32>, vector<128x128xf32> -> vector<128x384xf32>
    %144 = arith.truncf %143 : vector<128x384xf32> to vector<128x384xbf16>
    %c0_56 = arith.constant 0 : index
    %c0_57 = arith.constant 0 : index
    %145 = vector.load %arg11[%c0_56, %c0_57] : memref<384x128xbf16, #tpu.memory_space<vmem>>, vector<384x128xbf16>
    %cst_58 = arith.constant dense<0.000000e+00> : vector<128x128xf32>
    %146 = tpu.matmul %144, %145, %cst_58 {dimension_numbers = #tpu.dot_dimension_numbers<[1], [0], [0], [1], [0, 0, 1, 1], [], []>} : vector<128x384xbf16>, vector<384x128xbf16>, vector<128x128xf32> -> vector<128x128xf32>
    %c0_59 = arith.constant 0 : index
    %c0_60 = arith.constant 0 : index
    %147 = vector.load %arg12[%c0_59, %c0_60] : memref<1x128xf32, #tpu.memory_space<vmem>>, vector<1x128xf32>
    %148 = vector.broadcast %147 : vector<1x128xf32> to vector<128x128xf32>
    %149 = arith.addf %146, %148 : vector<128x128xf32>
    %cst_61 = arith.constant 0.000000e+00 : f32
    %150 = vector.broadcast %cst_61 : f32 to vector<128x128xf32>
    %151 = arith.maximumf %149, %150 : vector<128x128xf32>
    %c127_i32_62 = arith.constant 127 : i32
    %152 = tpu.dynamic_rotate %151 by %c127_i32_62 dim 0 : vector<128x128xf32>, i32 -> vector<128x128xf32>
    %153 = arith.maximumf %151, %152 : vector<128x128xf32>
    %c0_63 = arith.constant 0 : index
    %c0_64 = arith.constant 0 : index
    %154 = vector.load %arg13[%c0_63, %c0_64] : memref<64x128xf32, #tpu.memory_space<vmem>>, vector<64x128xf32>
    %cst_65 = arith.constant dense<0.000000e+00> : vector<64x128xf32>
    %155 = tpu.matmul %154, %153, %cst_65 {dimension_numbers = #tpu.dot_dimension_numbers<[1], [0], [0], [1], [0, 0, 1, 1], [], []>} : vector<64x128xf32>, vector<128x128xf32>, vector<64x128xf32> -> vector<64x128xf32>
    %c0_66 = arith.constant 0 : index
    %c0_67 = arith.constant 0 : index
    %156 = vector.load %arg14[%c0_66, %c0_67] : memref<128x64xf32, #tpu.memory_space<vmem>>, vector<128x64xf32>
    %cst_68 = arith.constant dense<0.000000e+00> : vector<64x64xf32>
    %157 = tpu.matmul %155, %156, %cst_68 {dimension_numbers = #tpu.dot_dimension_numbers<[1], [0], [0], [1], [0, 0, 1, 1], [], []>} : vector<64x128xf32>, vector<128x64xf32>, vector<64x64xf32> -> vector<64x64xf32>
    %c0_69 = arith.constant 0 : index
    %c0_70 = arith.constant 0 : index
    %158 = vector.load %arg15[%c0_69, %c0_70] : memref<128x64xf32, #tpu.memory_space<vmem>>, vector<128x64xf32>
    %cst_71 = arith.constant dense<0.000000e+00> : vector<64x64xf32>
    %159 = tpu.matmul %155, %158, %cst_71 {dimension_numbers = #tpu.dot_dimension_numbers<[1], [0], [0], [1], [0, 0, 1, 1], [], []>} : vector<64x128xf32>, vector<128x64xf32>, vector<64x64xf32> -> vector<64x64xf32>
    %160 = arith.maximumf %157, %159 : vector<64x64xf32>
    %161 = tpu.iota {dimensions = array<i32: 0>} : vector<64x1xi32>
    %c8_i32 = arith.constant 8 : i32
    %c0_i32_72 = arith.constant 0 : i32
    %162 = arith.cmpi eq, %c8_i32, %c0_i32_72 : i32
    %c1_i32_73 = arith.constant 1 : i32
    %163 = arith.select %162, %c1_i32_73, %c8_i32 : i32
    %164 = vector.broadcast %163 : i32 to vector<64x1xi32>
    %165 = arith.remsi %161, %164 : vector<64x1xi32>
    %c0_i32_74 = arith.constant 0 : i32
    %166 = vector.broadcast %c0_i32_74 : i32 to vector<64x1xi32>
    %167 = arith.cmpi ne, %165, %166 : vector<64x1xi32>
    %c0_i32_75 = arith.constant 0 : i32
    %168 = vector.broadcast %c0_i32_75 : i32 to vector<64x1xi32>
    %169 = arith.cmpi slt, %165, %168 : vector<64x1xi32>
    %c0_i32_76 = arith.constant 0 : i32
    %170 = arith.cmpi slt, %163, %c0_i32_76 : i32
    %171 = vector.broadcast %170 : i1 to vector<64x1xi1>
    %172 = vector.broadcast %171 : vector<64x1xi1> to vector<64x1xi1>
    %173 = arith.xori %169, %172 : vector<64x1xi1>
    %174 = arith.andi %173, %167 : vector<64x1xi1>
    %175 = vector.broadcast %163 : i32 to vector<64x1xi32>
    %176 = arith.addi %165, %175 : vector<64x1xi32>
    %177 = arith.select %174, %176, %165 : vector<64x1xi1>, vector<64x1xi32>
    %c0_i32_77 = arith.constant 0 : i32
    %178 = vector.broadcast %c0_i32_77 : i32 to vector<64x1xi32>
    %179 = arith.cmpi ne, %177, %178 : vector<64x1xi32>
    %180 = arith.extui %179 : vector<64x1xi1> to vector<64x1xi32>
    %181 = arith.sitofp %180 : vector<64x1xi32> to vector<64x1xf32>
    %c8_i32_78 = arith.constant 8 : i32
    %c0_i32_79 = arith.constant 0 : i32
    %182 = arith.cmpi eq, %c8_i32_78, %c0_i32_79 : i32
    %c1_i32_80 = arith.constant 1 : i32
    %183 = arith.select %182, %c1_i32_80, %c8_i32_78 : i32
    %184 = vector.broadcast %183 : i32 to vector<64x1xi32>
    %185 = arith.remsi %161, %184 : vector<64x1xi32>
    %c0_i32_81 = arith.constant 0 : i32
    %186 = vector.broadcast %c0_i32_81 : i32 to vector<64x1xi32>
    %187 = arith.cmpi ne, %185, %186 : vector<64x1xi32>
    %c0_i32_82 = arith.constant 0 : i32
    %188 = vector.broadcast %c0_i32_82 : i32 to vector<64x1xi32>
    %189 = arith.cmpi slt, %185, %188 : vector<64x1xi32>
    %c0_i32_83 = arith.constant 0 : i32
    %190 = arith.cmpi slt, %183, %c0_i32_83 : i32
    %191 = vector.broadcast %190 : i1 to vector<64x1xi1>
    %192 = vector.broadcast %191 : vector<64x1xi1> to vector<64x1xi1>
    %193 = arith.xori %189, %192 : vector<64x1xi1>
    %194 = arith.andi %193, %187 : vector<64x1xi1>
    %195 = vector.broadcast %183 : i32 to vector<64x1xi32>
    %196 = arith.addi %185, %195 : vector<64x1xi32>
    %197 = arith.select %194, %196, %185 : vector<64x1xi1>, vector<64x1xi32>
    %c7_i32 = arith.constant 7 : i32
    %198 = vector.broadcast %c7_i32 : i32 to vector<64x1xi32>
    %199 = arith.cmpi ne, %197, %198 : vector<64x1xi32>
    %200 = arith.extui %199 : vector<64x1xi1> to vector<64x1xi32>
    %201 = arith.sitofp %200 : vector<64x1xi32> to vector<64x1xf32>
    %c1_i32_84 = arith.constant 1 : i32
    %202 = tpu.dynamic_rotate %160 by %c1_i32_84 dim 0 : vector<64x64xf32>, i32 -> vector<64x64xf32>
    %203 = vector.broadcast %181 : vector<64x1xf32> to vector<64x64xf32>
    %204 = arith.mulf %202, %203 : vector<64x64xf32>
    %c63_i32 = arith.constant 63 : i32
    %205 = tpu.dynamic_rotate %160 by %c63_i32 dim 0 : vector<64x64xf32>, i32 -> vector<64x64xf32>
    %206 = vector.broadcast %201 : vector<64x1xf32> to vector<64x64xf32>
    %207 = arith.mulf %205, %206 : vector<64x64xf32>
    %208 = tpu.concatenate %204, %160, %207 in 1 : vector<64x64xf32>, vector<64x64xf32>, vector<64x64xf32> -> vector<64x192xf32>
    %209 = arith.truncf %208 : vector<64x192xf32> to vector<64x192xbf16>
    %c0_85 = arith.constant 0 : index
    %c0_86 = arith.constant 0 : index
    %210 = vector.load %arg16[%c0_85, %c0_86] : memref<192x128xbf16, #tpu.memory_space<vmem>>, vector<192x128xbf16>
    %cst_87 = arith.constant dense<0.000000e+00> : vector<64x128xf32>
    %211 = tpu.matmul %209, %210, %cst_87 {dimension_numbers = #tpu.dot_dimension_numbers<[1], [0], [0], [1], [0, 0, 1, 1], [], []>} : vector<64x192xbf16>, vector<192x128xbf16>, vector<64x128xf32> -> vector<64x128xf32>
    %c0_88 = arith.constant 0 : index
    %c0_89 = arith.constant 0 : index
    %212 = vector.load %arg17[%c0_88, %c0_89] : memref<1x128xf32, #tpu.memory_space<vmem>>, vector<1x128xf32>
    %213 = vector.broadcast %212 : vector<1x128xf32> to vector<64x128xf32>
    %214 = arith.addf %211, %213 : vector<64x128xf32>
    %cst_90 = arith.constant 0.000000e+00 : f32
    %215 = vector.broadcast %cst_90 : f32 to vector<64x128xf32>
    %216 = arith.maximumf %214, %215 : vector<64x128xf32>
    %c1_i32_91 = arith.constant 1 : i32
    %217 = tpu.dynamic_rotate %216 by %c1_i32_91 dim 0 : vector<64x128xf32>, i32 -> vector<64x128xf32>
    %218 = vector.broadcast %181 : vector<64x1xf32> to vector<64x128xf32>
    %219 = arith.mulf %217, %218 : vector<64x128xf32>
    %c63_i32_92 = arith.constant 63 : i32
    %220 = tpu.dynamic_rotate %216 by %c63_i32_92 dim 0 : vector<64x128xf32>, i32 -> vector<64x128xf32>
    %221 = vector.broadcast %201 : vector<64x1xf32> to vector<64x128xf32>
    %222 = arith.mulf %220, %221 : vector<64x128xf32>
    %223 = tpu.concatenate %219, %216, %222 in 1 : vector<64x128xf32>, vector<64x128xf32>, vector<64x128xf32> -> vector<64x384xf32>
    %224 = arith.truncf %223 : vector<64x384xf32> to vector<64x384xbf16>
    %c0_93 = arith.constant 0 : index
    %c0_94 = arith.constant 0 : index
    %225 = vector.load %arg18[%c0_93, %c0_94] : memref<384x128xbf16, #tpu.memory_space<vmem>>, vector<384x128xbf16>
    %cst_95 = arith.constant dense<0.000000e+00> : vector<64x128xf32>
    %226 = tpu.matmul %224, %225, %cst_95 {dimension_numbers = #tpu.dot_dimension_numbers<[1], [0], [0], [1], [0, 0, 1, 1], [], []>} : vector<64x384xbf16>, vector<384x128xbf16>, vector<64x128xf32> -> vector<64x128xf32>
    %c0_96 = arith.constant 0 : index
    %c0_97 = arith.constant 0 : index
    %227 = vector.load %arg19[%c0_96, %c0_97] : memref<1x128xf32, #tpu.memory_space<vmem>>, vector<1x128xf32>
    %228 = vector.broadcast %227 : vector<1x128xf32> to vector<64x128xf32>
    %229 = arith.addf %226, %228 : vector<64x128xf32>
    %cst_98 = arith.constant 0.000000e+00 : f32
    %230 = vector.broadcast %cst_98 : f32 to vector<64x128xf32>
    %231 = arith.maximumf %229, %230 : vector<64x128xf32>
    %c1_i32_99 = arith.constant 1 : i32
    %232 = tpu.dynamic_rotate %231 by %c1_i32_99 dim 0 : vector<64x128xf32>, i32 -> vector<64x128xf32>
    %233 = vector.broadcast %181 : vector<64x1xf32> to vector<64x128xf32>
    %234 = arith.mulf %232, %233 : vector<64x128xf32>
    %c63_i32_100 = arith.constant 63 : i32
    %235 = tpu.dynamic_rotate %231 by %c63_i32_100 dim 0 : vector<64x128xf32>, i32 -> vector<64x128xf32>
    %236 = vector.broadcast %201 : vector<64x1xf32> to vector<64x128xf32>
    %237 = arith.mulf %235, %236 : vector<64x128xf32>
    %238 = tpu.concatenate %234, %231, %237 in 1 : vector<64x128xf32>, vector<64x128xf32>, vector<64x128xf32> -> vector<64x384xf32>
    %239 = arith.truncf %238 : vector<64x384xf32> to vector<64x384xbf16>
    %c0_101 = arith.constant 0 : index
    %c0_102 = arith.constant 0 : index
    %240 = vector.load %arg20[%c0_101, %c0_102] : memref<384x128xbf16, #tpu.memory_space<vmem>>, vector<384x128xbf16>
    %cst_103 = arith.constant dense<0.000000e+00> : vector<64x128xf32>
    %241 = tpu.matmul %239, %240, %cst_103 {dimension_numbers = #tpu.dot_dimension_numbers<[1], [0], [0], [1], [0, 0, 1, 1], [], []>} : vector<64x384xbf16>, vector<384x128xbf16>, vector<64x128xf32> -> vector<64x128xf32>
    %c0_104 = arith.constant 0 : index
    %c0_105 = arith.constant 0 : index
    %242 = vector.load %arg21[%c0_104, %c0_105] : memref<1x128xf32, #tpu.memory_space<vmem>>, vector<1x128xf32>
    %243 = vector.broadcast %242 : vector<1x128xf32> to vector<64x128xf32>
    %244 = arith.addf %241, %243 : vector<64x128xf32>
    %cst_106 = arith.constant 0.000000e+00 : f32
    %245 = vector.broadcast %cst_106 : f32 to vector<64x128xf32>
    %246 = arith.maximumf %244, %245 : vector<64x128xf32>
    %c63_i32_107 = arith.constant 63 : i32
    %247 = tpu.dynamic_rotate %246 by %c63_i32_107 dim 0 : vector<64x128xf32>, i32 -> vector<64x128xf32>
    %248 = arith.maximumf %246, %247 : vector<64x128xf32>
    %c0_108 = arith.constant 0 : index
    %c0_109 = arith.constant 0 : index
    %249 = vector.load %arg22[%c0_108, %c0_109] : memref<32x64xf32, #tpu.memory_space<vmem>>, vector<32x64xf32>
    %cst_110 = arith.constant dense<0.000000e+00> : vector<32x128xf32>
    %250 = tpu.matmul %249, %248, %cst_110 {dimension_numbers = #tpu.dot_dimension_numbers<[1], [0], [0], [1], [0, 0, 1, 1], [], []>} : vector<32x64xf32>, vector<64x128xf32>, vector<32x128xf32> -> vector<32x128xf32>
    %c0_111 = arith.constant 0 : index
    %c0_112 = arith.constant 0 : index
    %251 = vector.load %arg23[%c0_111, %c0_112] : memref<128x64xf32, #tpu.memory_space<vmem>>, vector<128x64xf32>
    %cst_113 = arith.constant dense<0.000000e+00> : vector<32x64xf32>
    %252 = tpu.matmul %250, %251, %cst_113 {dimension_numbers = #tpu.dot_dimension_numbers<[1], [0], [0], [1], [0, 0, 1, 1], [], []>} : vector<32x128xf32>, vector<128x64xf32>, vector<32x64xf32> -> vector<32x64xf32>
    %c0_114 = arith.constant 0 : index
    %c0_115 = arith.constant 0 : index
    %253 = vector.load %arg24[%c0_114, %c0_115] : memref<128x64xf32, #tpu.memory_space<vmem>>, vector<128x64xf32>
    %cst_116 = arith.constant dense<0.000000e+00> : vector<32x64xf32>
    %254 = tpu.matmul %250, %253, %cst_116 {dimension_numbers = #tpu.dot_dimension_numbers<[1], [0], [0], [1], [0, 0, 1, 1], [], []>} : vector<32x128xf32>, vector<128x64xf32>, vector<32x64xf32> -> vector<32x64xf32>
    %255 = arith.maximumf %252, %254 : vector<32x64xf32>
    %256 = tpu.iota {dimensions = array<i32: 0>} : vector<32x1xi32>
    %c4_i32 = arith.constant 4 : i32
    %c0_i32_117 = arith.constant 0 : i32
    %257 = arith.cmpi eq, %c4_i32, %c0_i32_117 : i32
    %c1_i32_118 = arith.constant 1 : i32
    %258 = arith.select %257, %c1_i32_118, %c4_i32 : i32
    %259 = vector.broadcast %258 : i32 to vector<32x1xi32>
    %260 = arith.remsi %256, %259 : vector<32x1xi32>
    %c0_i32_119 = arith.constant 0 : i32
    %261 = vector.broadcast %c0_i32_119 : i32 to vector<32x1xi32>
    %262 = arith.cmpi ne, %260, %261 : vector<32x1xi32>
    %c0_i32_120 = arith.constant 0 : i32
    %263 = vector.broadcast %c0_i32_120 : i32 to vector<32x1xi32>
    %264 = arith.cmpi slt, %260, %263 : vector<32x1xi32>
    %c0_i32_121 = arith.constant 0 : i32
    %265 = arith.cmpi slt, %258, %c0_i32_121 : i32
    %266 = vector.broadcast %265 : i1 to vector<32x1xi1>
    %267 = vector.broadcast %266 : vector<32x1xi1> to vector<32x1xi1>
    %268 = arith.xori %264, %267 : vector<32x1xi1>
    %269 = arith.andi %268, %262 : vector<32x1xi1>
    %270 = vector.broadcast %258 : i32 to vector<32x1xi32>
    %271 = arith.addi %260, %270 : vector<32x1xi32>
    %272 = arith.select %269, %271, %260 : vector<32x1xi1>, vector<32x1xi32>
    %c0_i32_122 = arith.constant 0 : i32
    %273 = vector.broadcast %c0_i32_122 : i32 to vector<32x1xi32>
    %274 = arith.cmpi ne, %272, %273 : vector<32x1xi32>
    %275 = arith.extui %274 : vector<32x1xi1> to vector<32x1xi32>
    %276 = arith.sitofp %275 : vector<32x1xi32> to vector<32x1xf32>
    %c4_i32_123 = arith.constant 4 : i32
    %c0_i32_124 = arith.constant 0 : i32
    %277 = arith.cmpi eq, %c4_i32_123, %c0_i32_124 : i32
    %c1_i32_125 = arith.constant 1 : i32
    %278 = arith.select %277, %c1_i32_125, %c4_i32_123 : i32
    %279 = vector.broadcast %278 : i32 to vector<32x1xi32>
    %280 = arith.remsi %256, %279 : vector<32x1xi32>
    %c0_i32_126 = arith.constant 0 : i32
    %281 = vector.broadcast %c0_i32_126 : i32 to vector<32x1xi32>
    %282 = arith.cmpi ne, %280, %281 : vector<32x1xi32>
    %c0_i32_127 = arith.constant 0 : i32
    %283 = vector.broadcast %c0_i32_127 : i32 to vector<32x1xi32>
    %284 = arith.cmpi slt, %280, %283 : vector<32x1xi32>
    %c0_i32_128 = arith.constant 0 : i32
    %285 = arith.cmpi slt, %278, %c0_i32_128 : i32
    %286 = vector.broadcast %285 : i1 to vector<32x1xi1>
    %287 = vector.broadcast %286 : vector<32x1xi1> to vector<32x1xi1>
    %288 = arith.xori %284, %287 : vector<32x1xi1>
    %289 = arith.andi %288, %282 : vector<32x1xi1>
    %290 = vector.broadcast %278 : i32 to vector<32x1xi32>
    %291 = arith.addi %280, %290 : vector<32x1xi32>
    %292 = arith.select %289, %291, %280 : vector<32x1xi1>, vector<32x1xi32>
    %c3_i32 = arith.constant 3 : i32
    %293 = vector.broadcast %c3_i32 : i32 to vector<32x1xi32>
    %294 = arith.cmpi ne, %292, %293 : vector<32x1xi32>
    %295 = arith.extui %294 : vector<32x1xi1> to vector<32x1xi32>
    %296 = arith.sitofp %295 : vector<32x1xi32> to vector<32x1xf32>
    %c1_i32_129 = arith.constant 1 : i32
    %297 = tpu.dynamic_rotate %255 by %c1_i32_129 dim 0 : vector<32x64xf32>, i32 -> vector<32x64xf32>
    %298 = vector.broadcast %276 : vector<32x1xf32> to vector<32x64xf32>
    %299 = arith.mulf %297, %298 : vector<32x64xf32>
    %c31_i32_130 = arith.constant 31 : i32
    %300 = tpu.dynamic_rotate %255 by %c31_i32_130 dim 0 : vector<32x64xf32>, i32 -> vector<32x64xf32>
    %301 = vector.broadcast %296 : vector<32x1xf32> to vector<32x64xf32>
    %302 = arith.mulf %300, %301 : vector<32x64xf32>
    %303 = tpu.concatenate %299, %255, %302 in 1 : vector<32x64xf32>, vector<32x64xf32>, vector<32x64xf32> -> vector<32x192xf32>
    %304 = arith.truncf %303 : vector<32x192xf32> to vector<32x192xbf16>
    %c0_131 = arith.constant 0 : index
    %c0_132 = arith.constant 0 : index
    %305 = vector.load %arg25[%c0_131, %c0_132] : memref<192x128xbf16, #tpu.memory_space<vmem>>, vector<192x128xbf16>
    %cst_133 = arith.constant dense<0.000000e+00> : vector<32x128xf32>
    %306 = tpu.matmul %304, %305, %cst_133 {dimension_numbers = #tpu.dot_dimension_numbers<[1], [0], [0], [1], [0, 0, 1, 1], [], []>} : vector<32x192xbf16>, vector<192x128xbf16>, vector<32x128xf32> -> vector<32x128xf32>
    %c0_134 = arith.constant 0 : index
    %c0_135 = arith.constant 0 : index
    %307 = vector.load %arg26[%c0_134, %c0_135] : memref<1x128xf32, #tpu.memory_space<vmem>>, vector<1x128xf32>
    %308 = vector.broadcast %307 : vector<1x128xf32> to vector<32x128xf32>
    %309 = arith.addf %306, %308 : vector<32x128xf32>
    %cst_136 = arith.constant 0.000000e+00 : f32
    %310 = vector.broadcast %cst_136 : f32 to vector<32x128xf32>
    %311 = arith.maximumf %309, %310 : vector<32x128xf32>
    %c1_i32_137 = arith.constant 1 : i32
    %312 = tpu.dynamic_rotate %311 by %c1_i32_137 dim 0 : vector<32x128xf32>, i32 -> vector<32x128xf32>
    %313 = vector.broadcast %276 : vector<32x1xf32> to vector<32x128xf32>
    %314 = arith.mulf %312, %313 : vector<32x128xf32>
    %c31_i32_138 = arith.constant 31 : i32
    %315 = tpu.dynamic_rotate %311 by %c31_i32_138 dim 0 : vector<32x128xf32>, i32 -> vector<32x128xf32>
    %316 = vector.broadcast %296 : vector<32x1xf32> to vector<32x128xf32>
    %317 = arith.mulf %315, %316 : vector<32x128xf32>
    %318 = tpu.concatenate %314, %311, %317 in 1 : vector<32x128xf32>, vector<32x128xf32>, vector<32x128xf32> -> vector<32x384xf32>
    %319 = arith.truncf %318 : vector<32x384xf32> to vector<32x384xbf16>
    %c0_139 = arith.constant 0 : index
    %c0_140 = arith.constant 0 : index
    %320 = vector.load %arg27[%c0_139, %c0_140] : memref<384x128xbf16, #tpu.memory_space<vmem>>, vector<384x128xbf16>
    %cst_141 = arith.constant dense<0.000000e+00> : vector<32x128xf32>
    %321 = tpu.matmul %319, %320, %cst_141 {dimension_numbers = #tpu.dot_dimension_numbers<[1], [0], [0], [1], [0, 0, 1, 1], [], []>} : vector<32x384xbf16>, vector<384x128xbf16>, vector<32x128xf32> -> vector<32x128xf32>
    %c0_142 = arith.constant 0 : index
    %c0_143 = arith.constant 0 : index
    %322 = vector.load %arg28[%c0_142, %c0_143] : memref<1x128xf32, #tpu.memory_space<vmem>>, vector<1x128xf32>
    %323 = vector.broadcast %322 : vector<1x128xf32> to vector<32x128xf32>
    %324 = arith.addf %321, %323 : vector<32x128xf32>
    %cst_144 = arith.constant 0.000000e+00 : f32
    %325 = vector.broadcast %cst_144 : f32 to vector<32x128xf32>
    %326 = arith.maximumf %324, %325 : vector<32x128xf32>
    %c1_i32_145 = arith.constant 1 : i32
    %327 = tpu.dynamic_rotate %326 by %c1_i32_145 dim 0 : vector<32x128xf32>, i32 -> vector<32x128xf32>
    %328 = vector.broadcast %276 : vector<32x1xf32> to vector<32x128xf32>
    %329 = arith.mulf %327, %328 : vector<32x128xf32>
    %c31_i32_146 = arith.constant 31 : i32
    %330 = tpu.dynamic_rotate %326 by %c31_i32_146 dim 0 : vector<32x128xf32>, i32 -> vector<32x128xf32>
    %331 = vector.broadcast %296 : vector<32x1xf32> to vector<32x128xf32>
    %332 = arith.mulf %330, %331 : vector<32x128xf32>
    %333 = tpu.concatenate %329, %326, %332 in 1 : vector<32x128xf32>, vector<32x128xf32>, vector<32x128xf32> -> vector<32x384xf32>
    %334 = arith.truncf %333 : vector<32x384xf32> to vector<32x384xbf16>
    %c0_147 = arith.constant 0 : index
    %c0_148 = arith.constant 0 : index
    %335 = vector.load %arg29[%c0_147, %c0_148] : memref<384x128xbf16, #tpu.memory_space<vmem>>, vector<384x128xbf16>
    %cst_149 = arith.constant dense<0.000000e+00> : vector<32x128xf32>
    %336 = tpu.matmul %334, %335, %cst_149 {dimension_numbers = #tpu.dot_dimension_numbers<[1], [0], [0], [1], [0, 0, 1, 1], [], []>} : vector<32x384xbf16>, vector<384x128xbf16>, vector<32x128xf32> -> vector<32x128xf32>
    %c0_150 = arith.constant 0 : index
    %c0_151 = arith.constant 0 : index
    %337 = vector.load %arg30[%c0_150, %c0_151] : memref<1x128xf32, #tpu.memory_space<vmem>>, vector<1x128xf32>
    %338 = vector.broadcast %337 : vector<1x128xf32> to vector<32x128xf32>
    %339 = arith.addf %336, %338 : vector<32x128xf32>
    %cst_152 = arith.constant 0.000000e+00 : f32
    %340 = vector.broadcast %cst_152 : f32 to vector<32x128xf32>
    %341 = arith.maximumf %339, %340 : vector<32x128xf32>
    %c31_i32_153 = arith.constant 31 : i32
    %342 = tpu.dynamic_rotate %341 by %c31_i32_153 dim 0 : vector<32x128xf32>, i32 -> vector<32x128xf32>
    %343 = arith.maximumf %341, %342 : vector<32x128xf32>
    %c0_154 = arith.constant 0 : index
    %c0_155 = arith.constant 0 : index
    %344 = vector.load %arg31[%c0_154, %c0_155] : memref<16x32xf32, #tpu.memory_space<vmem>>, vector<16x32xf32>
    %cst_156 = arith.constant dense<0.000000e+00> : vector<16x128xf32>
    %345 = tpu.matmul %344, %343, %cst_156 {dimension_numbers = #tpu.dot_dimension_numbers<[1], [0], [0], [1], [0, 0, 1, 1], [], []>} : vector<16x32xf32>, vector<32x128xf32>, vector<16x128xf32> -> vector<16x128xf32>
    %c0_157 = arith.constant 0 : index
    %c0_158 = arith.constant 0 : index
    %346 = vector.load %arg32[%c0_157, %c0_158] : memref<128x64xf32, #tpu.memory_space<vmem>>, vector<128x64xf32>
    %cst_159 = arith.constant dense<0.000000e+00> : vector<16x64xf32>
    %347 = tpu.matmul %345, %346, %cst_159 {dimension_numbers = #tpu.dot_dimension_numbers<[1], [0], [0], [1], [0, 0, 1, 1], [], []>} : vector<16x128xf32>, vector<128x64xf32>, vector<16x64xf32> -> vector<16x64xf32>
    %c0_160 = arith.constant 0 : index
    %c0_161 = arith.constant 0 : index
    %348 = vector.load %arg33[%c0_160, %c0_161] : memref<128x64xf32, #tpu.memory_space<vmem>>, vector<128x64xf32>
    %cst_162 = arith.constant dense<0.000000e+00> : vector<16x64xf32>
    %349 = tpu.matmul %345, %348, %cst_162 {dimension_numbers = #tpu.dot_dimension_numbers<[1], [0], [0], [1], [0, 0, 1, 1], [], []>} : vector<16x128xf32>, vector<128x64xf32>, vector<16x64xf32> -> vector<16x64xf32>
    %350 = arith.maximumf %347, %349 : vector<16x64xf32>
    %351 = tpu.iota {dimensions = array<i32: 0>} : vector<16x1xi32>
    %c2_i32 = arith.constant 2 : i32
    %c0_i32_163 = arith.constant 0 : i32
    %352 = arith.cmpi eq, %c2_i32, %c0_i32_163 : i32
    %c1_i32_164 = arith.constant 1 : i32
    %353 = arith.select %352, %c1_i32_164, %c2_i32 : i32
    %354 = vector.broadcast %353 : i32 to vector<16x1xi32>
    %355 = arith.remsi %351, %354 : vector<16x1xi32>
    %c0_i32_165 = arith.constant 0 : i32
    %356 = vector.broadcast %c0_i32_165 : i32 to vector<16x1xi32>
    %357 = arith.cmpi ne, %355, %356 : vector<16x1xi32>
    %c0_i32_166 = arith.constant 0 : i32
    %358 = vector.broadcast %c0_i32_166 : i32 to vector<16x1xi32>
    %359 = arith.cmpi slt, %355, %358 : vector<16x1xi32>
    %c0_i32_167 = arith.constant 0 : i32
    %360 = arith.cmpi slt, %353, %c0_i32_167 : i32
    %361 = vector.broadcast %360 : i1 to vector<16x1xi1>
    %362 = vector.broadcast %361 : vector<16x1xi1> to vector<16x1xi1>
    %363 = arith.xori %359, %362 : vector<16x1xi1>
    %364 = arith.andi %363, %357 : vector<16x1xi1>
    %365 = vector.broadcast %353 : i32 to vector<16x1xi32>
    %366 = arith.addi %355, %365 : vector<16x1xi32>
    %367 = arith.select %364, %366, %355 : vector<16x1xi1>, vector<16x1xi32>
    %c0_i32_168 = arith.constant 0 : i32
    %368 = vector.broadcast %c0_i32_168 : i32 to vector<16x1xi32>
    %369 = arith.cmpi ne, %367, %368 : vector<16x1xi32>
    %370 = arith.extui %369 : vector<16x1xi1> to vector<16x1xi32>
    %371 = arith.sitofp %370 : vector<16x1xi32> to vector<16x1xf32>
    %c2_i32_169 = arith.constant 2 : i32
    %c0_i32_170 = arith.constant 0 : i32
    %372 = arith.cmpi eq, %c2_i32_169, %c0_i32_170 : i32
    %c1_i32_171 = arith.constant 1 : i32
    %373 = arith.select %372, %c1_i32_171, %c2_i32_169 : i32
    %374 = vector.broadcast %373 : i32 to vector<16x1xi32>
    %375 = arith.remsi %351, %374 : vector<16x1xi32>
    %c0_i32_172 = arith.constant 0 : i32
    %376 = vector.broadcast %c0_i32_172 : i32 to vector<16x1xi32>
    %377 = arith.cmpi ne, %375, %376 : vector<16x1xi32>
    %c0_i32_173 = arith.constant 0 : i32
    %378 = vector.broadcast %c0_i32_173 : i32 to vector<16x1xi32>
    %379 = arith.cmpi slt, %375, %378 : vector<16x1xi32>
    %c0_i32_174 = arith.constant 0 : i32
    %380 = arith.cmpi slt, %373, %c0_i32_174 : i32
    %381 = vector.broadcast %380 : i1 to vector<16x1xi1>
    %382 = vector.broadcast %381 : vector<16x1xi1> to vector<16x1xi1>
    %383 = arith.xori %379, %382 : vector<16x1xi1>
    %384 = arith.andi %383, %377 : vector<16x1xi1>
    %385 = vector.broadcast %373 : i32 to vector<16x1xi32>
    %386 = arith.addi %375, %385 : vector<16x1xi32>
    %387 = arith.select %384, %386, %375 : vector<16x1xi1>, vector<16x1xi32>
    %c1_i32_175 = arith.constant 1 : i32
    %388 = vector.broadcast %c1_i32_175 : i32 to vector<16x1xi32>
    %389 = arith.cmpi ne, %387, %388 : vector<16x1xi32>
    %390 = arith.extui %389 : vector<16x1xi1> to vector<16x1xi32>
    %391 = arith.sitofp %390 : vector<16x1xi32> to vector<16x1xf32>
    %c1_i32_176 = arith.constant 1 : i32
    %392 = tpu.dynamic_rotate %350 by %c1_i32_176 dim 0 : vector<16x64xf32>, i32 -> vector<16x64xf32>
    %393 = vector.broadcast %371 : vector<16x1xf32> to vector<16x64xf32>
    %394 = arith.mulf %392, %393 : vector<16x64xf32>
    %c15_i32_177 = arith.constant 15 : i32
    %395 = tpu.dynamic_rotate %350 by %c15_i32_177 dim 0 : vector<16x64xf32>, i32 -> vector<16x64xf32>
    %396 = vector.broadcast %391 : vector<16x1xf32> to vector<16x64xf32>
    %397 = arith.mulf %395, %396 : vector<16x64xf32>
    %398 = tpu.concatenate %394, %350, %397 in 1 : vector<16x64xf32>, vector<16x64xf32>, vector<16x64xf32> -> vector<16x192xf32>
    %399 = arith.truncf %398 : vector<16x192xf32> to vector<16x192xbf16>
    %c0_178 = arith.constant 0 : index
    %c0_179 = arith.constant 0 : index
    %400 = vector.load %arg34[%c0_178, %c0_179] : memref<192x64xbf16, #tpu.memory_space<vmem>>, vector<192x64xbf16>
    %cst_180 = arith.constant dense<0.000000e+00> : vector<16x64xf32>
    %401 = tpu.matmul %399, %400, %cst_180 {dimension_numbers = #tpu.dot_dimension_numbers<[1], [0], [0], [1], [0, 0, 1, 1], [], []>} : vector<16x192xbf16>, vector<192x64xbf16>, vector<16x64xf32> -> vector<16x64xf32>
    %c0_181 = arith.constant 0 : index
    %c0_182 = arith.constant 0 : index
    %402 = vector.load %arg35[%c0_181, %c0_182] : memref<1x64xf32, #tpu.memory_space<vmem>>, vector<1x64xf32>
    %403 = vector.broadcast %402 : vector<1x64xf32> to vector<16x64xf32>
    %404 = arith.addf %401, %403 : vector<16x64xf32>
    %cst_183 = arith.constant 0.000000e+00 : f32
    %405 = vector.broadcast %cst_183 : f32 to vector<16x64xf32>
    %406 = arith.maximumf %404, %405 : vector<16x64xf32>
    %c1_i32_184 = arith.constant 1 : i32
    %407 = tpu.dynamic_rotate %406 by %c1_i32_184 dim 0 : vector<16x64xf32>, i32 -> vector<16x64xf32>
    %408 = vector.broadcast %371 : vector<16x1xf32> to vector<16x64xf32>
    %409 = arith.mulf %407, %408 : vector<16x64xf32>
    %c15_i32_185 = arith.constant 15 : i32
    %410 = tpu.dynamic_rotate %406 by %c15_i32_185 dim 0 : vector<16x64xf32>, i32 -> vector<16x64xf32>
    %411 = vector.broadcast %391 : vector<16x1xf32> to vector<16x64xf32>
    %412 = arith.mulf %410, %411 : vector<16x64xf32>
    %413 = tpu.concatenate %409, %406, %412 in 1 : vector<16x64xf32>, vector<16x64xf32>, vector<16x64xf32> -> vector<16x192xf32>
    %414 = arith.truncf %413 : vector<16x192xf32> to vector<16x192xbf16>
    %c0_186 = arith.constant 0 : index
    %c0_187 = arith.constant 0 : index
    %415 = vector.load %arg36[%c0_186, %c0_187] : memref<192x64xbf16, #tpu.memory_space<vmem>>, vector<192x64xbf16>
    %cst_188 = arith.constant dense<0.000000e+00> : vector<16x64xf32>
    %416 = tpu.matmul %414, %415, %cst_188 {dimension_numbers = #tpu.dot_dimension_numbers<[1], [0], [0], [1], [0, 0, 1, 1], [], []>} : vector<16x192xbf16>, vector<192x64xbf16>, vector<16x64xf32> -> vector<16x64xf32>
    %c0_189 = arith.constant 0 : index
    %c0_190 = arith.constant 0 : index
    %417 = vector.load %arg37[%c0_189, %c0_190] : memref<1x64xf32, #tpu.memory_space<vmem>>, vector<1x64xf32>
    %418 = vector.broadcast %417 : vector<1x64xf32> to vector<16x64xf32>
    %419 = arith.addf %416, %418 : vector<16x64xf32>
    %cst_191 = arith.constant 0.000000e+00 : f32
    %420 = vector.broadcast %cst_191 : f32 to vector<16x64xf32>
    %421 = arith.maximumf %419, %420 : vector<16x64xf32>
    %c1_i32_192 = arith.constant 1 : i32
    %422 = tpu.dynamic_rotate %421 by %c1_i32_192 dim 0 : vector<16x64xf32>, i32 -> vector<16x64xf32>
    %423 = vector.broadcast %371 : vector<16x1xf32> to vector<16x64xf32>
    %424 = arith.mulf %422, %423 : vector<16x64xf32>
    %c15_i32_193 = arith.constant 15 : i32
    %425 = tpu.dynamic_rotate %421 by %c15_i32_193 dim 0 : vector<16x64xf32>, i32 -> vector<16x64xf32>
    %426 = vector.broadcast %391 : vector<16x1xf32> to vector<16x64xf32>
    %427 = arith.mulf %425, %426 : vector<16x64xf32>
    %428 = tpu.concatenate %424, %421, %427 in 1 : vector<16x64xf32>, vector<16x64xf32>, vector<16x64xf32> -> vector<16x192xf32>
    %429 = arith.truncf %428 : vector<16x192xf32> to vector<16x192xbf16>
    %c0_194 = arith.constant 0 : index
    %c0_195 = arith.constant 0 : index
    %430 = vector.load %arg38[%c0_194, %c0_195] : memref<192x64xbf16, #tpu.memory_space<vmem>>, vector<192x64xbf16>
    %cst_196 = arith.constant dense<0.000000e+00> : vector<16x64xf32>
    %431 = tpu.matmul %429, %430, %cst_196 {dimension_numbers = #tpu.dot_dimension_numbers<[1], [0], [0], [1], [0, 0, 1, 1], [], []>} : vector<16x192xbf16>, vector<192x64xbf16>, vector<16x64xf32> -> vector<16x64xf32>
    %c0_197 = arith.constant 0 : index
    %c0_198 = arith.constant 0 : index
    %432 = vector.load %arg39[%c0_197, %c0_198] : memref<1x64xf32, #tpu.memory_space<vmem>>, vector<1x64xf32>
    %433 = vector.broadcast %432 : vector<1x64xf32> to vector<16x64xf32>
    %434 = arith.addf %431, %433 : vector<16x64xf32>
    %cst_199 = arith.constant 0.000000e+00 : f32
    %435 = vector.broadcast %cst_199 : f32 to vector<16x64xf32>
    %436 = arith.maximumf %434, %435 : vector<16x64xf32>
    %c15_i32_200 = arith.constant 15 : i32
    %437 = tpu.dynamic_rotate %436 by %c15_i32_200 dim 0 : vector<16x64xf32>, i32 -> vector<16x64xf32>
    %438 = arith.maximumf %436, %437 : vector<16x64xf32>
    %c0_201 = arith.constant 0 : index
    %c0_202 = arith.constant 0 : index
    %439 = vector.load %arg40[%c0_201, %c0_202] : memref<8x16xf32, #tpu.memory_space<vmem>>, vector<8x16xf32>
    %cst_203 = arith.constant dense<0.000000e+00> : vector<8x64xf32>
    %440 = tpu.matmul %439, %438, %cst_203 {dimension_numbers = #tpu.dot_dimension_numbers<[1], [0], [0], [1], [0, 0, 1, 1], [], []>} : vector<8x16xf32>, vector<16x64xf32>, vector<8x64xf32> -> vector<8x64xf32>
    %c0_204 = arith.constant 0 : index
    %c0_205 = arith.constant 0 : index
    %441 = vector.load %arg41[%c0_204, %c0_205] : memref<64x32xf32, #tpu.memory_space<vmem>>, vector<64x32xf32>
    %cst_206 = arith.constant dense<0.000000e+00> : vector<8x32xf32>
    %442 = tpu.matmul %440, %441, %cst_206 {dimension_numbers = #tpu.dot_dimension_numbers<[1], [0], [0], [1], [0, 0, 1, 1], [], []>} : vector<8x64xf32>, vector<64x32xf32>, vector<8x32xf32> -> vector<8x32xf32>
    %c0_207 = arith.constant 0 : index
    %c0_208 = arith.constant 0 : index
    %443 = vector.load %arg42[%c0_207, %c0_208] : memref<64x32xf32, #tpu.memory_space<vmem>>, vector<64x32xf32>
    %cst_209 = arith.constant dense<0.000000e+00> : vector<8x32xf32>
    %444 = tpu.matmul %440, %443, %cst_209 {dimension_numbers = #tpu.dot_dimension_numbers<[1], [0], [0], [1], [0, 0, 1, 1], [], []>} : vector<8x64xf32>, vector<64x32xf32>, vector<8x32xf32> -> vector<8x32xf32>
    %445 = arith.maximumf %442, %444 : vector<8x32xf32>
    %446 = arith.truncf %445 : vector<8x32xf32> to vector<8x32xbf16>
    %c0_210 = arith.constant 0 : index
    %c0_211 = arith.constant 0 : index
    %447 = vector.load %arg43[%c0_210, %c0_211] : memref<32x64xbf16, #tpu.memory_space<vmem>>, vector<32x64xbf16>
    %cst_212 = arith.constant dense<0.000000e+00> : vector<8x64xf32>
    %448 = tpu.matmul %446, %447, %cst_212 {dimension_numbers = #tpu.dot_dimension_numbers<[1], [0], [0], [1], [0, 0, 1, 1], [], []>} : vector<8x32xbf16>, vector<32x64xbf16>, vector<8x64xf32> -> vector<8x64xf32>
    %c0_213 = arith.constant 0 : index
    %c0_214 = arith.constant 0 : index
    %449 = vector.load %arg44[%c0_213, %c0_214] : memref<1x64xf32, #tpu.memory_space<vmem>>, vector<1x64xf32>
    %450 = vector.broadcast %449 : vector<1x64xf32> to vector<8x64xf32>
    %451 = arith.addf %448, %450 : vector<8x64xf32>
    %cst_215 = arith.constant 0.000000e+00 : f32
    %452 = vector.broadcast %cst_215 : f32 to vector<8x64xf32>
    %453 = arith.maximumf %451, %452 : vector<8x64xf32>
    %454 = arith.truncf %453 : vector<8x64xf32> to vector<8x64xbf16>
    %c0_216 = arith.constant 0 : index
    %c0_217 = arith.constant 0 : index
    %455 = vector.load %arg45[%c0_216, %c0_217] : memref<64x64xbf16, #tpu.memory_space<vmem>>, vector<64x64xbf16>
    %cst_218 = arith.constant dense<0.000000e+00> : vector<8x64xf32>
    %456 = tpu.matmul %454, %455, %cst_218 {dimension_numbers = #tpu.dot_dimension_numbers<[1], [0], [0], [1], [0, 0, 1, 1], [], []>} : vector<8x64xbf16>, vector<64x64xbf16>, vector<8x64xf32> -> vector<8x64xf32>
    %c0_219 = arith.constant 0 : index
    %c0_220 = arith.constant 0 : index
    %457 = vector.load %arg46[%c0_219, %c0_220] : memref<1x64xf32, #tpu.memory_space<vmem>>, vector<1x64xf32>
    %458 = vector.broadcast %457 : vector<1x64xf32> to vector<8x64xf32>
    %459 = arith.addf %456, %458 : vector<8x64xf32>
    %cst_221 = arith.constant 0.000000e+00 : f32
    %460 = vector.broadcast %cst_221 : f32 to vector<8x64xf32>
    %461 = arith.maximumf %459, %460 : vector<8x64xf32>
    %462 = arith.truncf %461 : vector<8x64xf32> to vector<8x64xbf16>
    %c0_222 = arith.constant 0 : index
    %c0_223 = arith.constant 0 : index
    %463 = vector.load %arg47[%c0_222, %c0_223] : memref<64x128xbf16, #tpu.memory_space<vmem>>, vector<64x128xbf16>
    %cst_224 = arith.constant dense<0.000000e+00> : vector<8x128xf32>
    %464 = tpu.matmul %462, %463, %cst_224 {dimension_numbers = #tpu.dot_dimension_numbers<[1], [0], [0], [1], [0, 0, 1, 1], [], []>} : vector<8x64xbf16>, vector<64x128xbf16>, vector<8x128xf32> -> vector<8x128xf32>
    %c0_225 = arith.constant 0 : index
    %c0_226 = arith.constant 0 : index
    %465 = vector.load %arg48[%c0_225, %c0_226] : memref<1x128xf32, #tpu.memory_space<vmem>>, vector<1x128xf32>
    %466 = vector.broadcast %465 : vector<1x128xf32> to vector<8x128xf32>
    %467 = arith.addf %464, %466 : vector<8x128xf32>
    %c0_227 = arith.constant 0 : index
    %c0_228 = arith.constant 0 : index
    %468 = vector.load %arg49[%c0_227, %c0_228] : memref<8x128xf32, #tpu.memory_space<vmem>>, vector<8x128xf32>
    tpu.vector_store %arg49[%c0_227, %c0_228], %467 {strides = array<i32>} : memref<8x128xf32, #tpu.memory_space<vmem>>, vector<8x128xf32>,
    return
  }
  func.func @transform_0(%arg0: i32) -> (i32, i32) {
    %c0_i32 = arith.constant 0 : i32
    %c0_i32_0 = arith.constant 0 : i32
    return %arg0, %c0_i32 : i32, i32
  }
  func.func @transform_1(%arg0: i32) -> (i32, i32) {
    %c0_i32 = arith.constant 0 : i32
    %c0_i32_0 = arith.constant 0 : i32
    %c0_i32_1 = arith.constant 0 : i32
    return %c0_i32, %c0_i32_0 : i32, i32
  }
  func.func @transform_2(%arg0: i32) -> (i32, i32) {
    %c0_i32 = arith.constant 0 : i32
    %c0_i32_0 = arith.constant 0 : i32
    %c0_i32_1 = arith.constant 0 : i32
    return %c0_i32, %c0_i32_0 : i32, i32
  }
  func.func @transform_3(%arg0: i32) -> (i32, i32) {
    %c0_i32 = arith.constant 0 : i32
    %c0_i32_0 = arith.constant 0 : i32
    %c0_i32_1 = arith.constant 0 : i32
    return %c0_i32, %c0_i32_0 : i32, i32
  }
  func.func @transform_4(%arg0: i32) -> (i32, i32) {
    %c0_i32 = arith.constant 0 : i32
    %c0_i32_0 = arith.constant 0 : i32
    %c0_i32_1 = arith.constant 0 : i32
    return %c0_i32, %c0_i32_0 : i32, i32
  }
  func.func @transform_5(%arg0: i32) -> (i32, i32) {
    %c0_i32 = arith.constant 0 : i32
    %c0_i32_0 = arith.constant 0 : i32
    %c0_i32_1 = arith.constant 0 : i32
    return %c0_i32, %c0_i32_0 : i32, i32
  }
  func.func @transform_6(%arg0: i32) -> (i32, i32) {
    %c0_i32 = arith.constant 0 : i32
    %c0_i32_0 = arith.constant 0 : i32
    %c0_i32_1 = arith.constant 0 : i32
    return %c0_i32, %c0_i32_0 : i32, i32
  }
  func.func @transform_7(%arg0: i32) -> (i32, i32) {
    %c0_i32 = arith.constant 0 : i32
    %c0_i32_0 = arith.constant 0 : i32
    %c0_i32_1 = arith.constant 0 : i32
    return %c0_i32, %c0_i32_0 : i32, i32
  }
  func.func @transform_8(%arg0: i32) -> (i32, i32) {
    %c0_i32 = arith.constant 0 : i32
    %c0_i32_0 = arith.constant 0 : i32
    %c0_i32_1 = arith.constant 0 : i32
    return %c0_i32, %c0_i32_0 : i32, i32
  }
  func.func @transform_9(%arg0: i32) -> (i32, i32) {
    %c0_i32 = arith.constant 0 : i32
    %c0_i32_0 = arith.constant 0 : i32
    %c0_i32_1 = arith.constant 0 : i32
    return %c0_i32, %c0_i32_0 : i32, i32
  }
  func.func @transform_10(%arg0: i32) -> (i32, i32) {
    %c0_i32 = arith.constant 0 : i32
    %c0_i32_0 = arith.constant 0 : i32
    %c0_i32_1 = arith.constant 0 : i32
    return %c0_i32, %c0_i32_0 : i32, i32
  }
  func.func @transform_11(%arg0: i32) -> (i32, i32) {
    %c0_i32 = arith.constant 0 : i32
    %c0_i32_0 = arith.constant 0 : i32
    %c0_i32_1 = arith.constant 0 : i32
    return %c0_i32, %c0_i32_0 : i32, i32
  }
  func.func @transform_12(%arg0: i32) -> (i32, i32) {
    %c0_i32 = arith.constant 0 : i32
    %c0_i32_0 = arith.constant 0 : i32
    %c0_i32_1 = arith.constant 0 : i32
    return %c0_i32, %c0_i32_0 : i32, i32
  }
  func.func @transform_13(%arg0: i32) -> (i32, i32) {
    %c0_i32 = arith.constant 0 : i32
    %c0_i32_0 = arith.constant 0 : i32
    %c0_i32_1 = arith.constant 0 : i32
    return %c0_i32, %c0_i32_0 : i32, i32
  }
  func.func @transform_14(%arg0: i32) -> (i32, i32) {
    %c0_i32 = arith.constant 0 : i32
    %c0_i32_0 = arith.constant 0 : i32
    %c0_i32_1 = arith.constant 0 : i32
    return %c0_i32, %c0_i32_0 : i32, i32
  }
  func.func @transform_15(%arg0: i32) -> (i32, i32) {
    %c0_i32 = arith.constant 0 : i32
    %c0_i32_0 = arith.constant 0 : i32
    %c0_i32_1 = arith.constant 0 : i32
    return %c0_i32, %c0_i32_0 : i32, i32
  }
  func.func @transform_16(%arg0: i32) -> (i32, i32) {
    %c0_i32 = arith.constant 0 : i32
    %c0_i32_0 = arith.constant 0 : i32
    %c0_i32_1 = arith.constant 0 : i32
    return %c0_i32, %c0_i32_0 : i32, i32
  }
  func.func @transform_17(%arg0: i32) -> (i32, i32) {
    %c0_i32 = arith.constant 0 : i32
    %c0_i32_0 = arith.constant 0 : i32
    %c0_i32_1 = arith.constant 0 : i32
    return %c0_i32, %c0_i32_0 : i32, i32
  }
  func.func @transform_18(%arg0: i32) -> (i32, i32) {
    %c0_i32 = arith.constant 0 : i32
    %c0_i32_0 = arith.constant 0 : i32
    %c0_i32_1 = arith.constant 0 : i32
    return %c0_i32, %c0_i32_0 : i32, i32
  }
  func.func @transform_19(%arg0: i32) -> (i32, i32) {
    %c0_i32 = arith.constant 0 : i32
    %c0_i32_0 = arith.constant 0 : i32
    %c0_i32_1 = arith.constant 0 : i32
    return %c0_i32, %c0_i32_0 : i32, i32
  }
  func.func @transform_20(%arg0: i32) -> (i32, i32) {
    %c0_i32 = arith.constant 0 : i32
    %c0_i32_0 = arith.constant 0 : i32
    %c0_i32_1 = arith.constant 0 : i32
    return %c0_i32, %c0_i32_0 : i32, i32
  }
  func.func @transform_21(%arg0: i32) -> (i32, i32) {
    %c0_i32 = arith.constant 0 : i32
    %c0_i32_0 = arith.constant 0 : i32
    %c0_i32_1 = arith.constant 0 : i32
    return %c0_i32, %c0_i32_0 : i32, i32
  }
  func.func @transform_22(%arg0: i32) -> (i32, i32) {
    %c0_i32 = arith.constant 0 : i32
    %c0_i32_0 = arith.constant 0 : i32
    %c0_i32_1 = arith.constant 0 : i32
    return %c0_i32, %c0_i32_0 : i32, i32
  }
  func.func @transform_23(%arg0: i32) -> (i32, i32) {
    %c0_i32 = arith.constant 0 : i32
    %c0_i32_0 = arith.constant 0 : i32
    %c0_i32_1 = arith.constant 0 : i32
    return %c0_i32, %c0_i32_0 : i32, i32
  }
  func.func @transform_24(%arg0: i32) -> (i32, i32) {
    %c0_i32 = arith.constant 0 : i32
    %c0_i32_0 = arith.constant 0 : i32
    %c0_i32_1 = arith.constant 0 : i32
    return %c0_i32, %c0_i32_0 : i32, i32
  }
  func.func @transform_25(%arg0: i32) -> (i32, i32) {
    %c0_i32 = arith.constant 0 : i32
    %c0_i32_0 = arith.constant 0 : i32
    %c0_i32_1 = arith.constant 0 : i32
    return %c0_i32, %c0_i32_0 : i32, i32
  }
  func.func @transform_26(%arg0: i32) -> (i32, i32) {
    %c0_i32 = arith.constant 0 : i32
    %c0_i32_0 = arith.constant 0 : i32
    %c0_i32_1 = arith.constant 0 : i32
    return %c0_i32, %c0_i32_0 : i32, i32
  }
  func.func @transform_27(%arg0: i32) -> (i32, i32) {
    %c0_i32 = arith.constant 0 : i32
    %c0_i32_0 = arith.constant 0 : i32
    %c0_i32_1 = arith.constant 0 : i32
    return %c0_i32, %c0_i32_0 : i32, i32
  }
  func.func @transform_28(%arg0: i32) -> (i32, i32) {
    %c0_i32 = arith.constant 0 : i32
    %c0_i32_0 = arith.constant 0 : i32
    %c0_i32_1 = arith.constant 0 : i32
    return %c0_i32, %c0_i32_0 : i32, i32
  }
  func.func @transform_29(%arg0: i32) -> (i32, i32) {
    %c0_i32 = arith.constant 0 : i32
    %c0_i32_0 = arith.constant 0 : i32
    %c0_i32_1 = arith.constant 0 : i32
    return %c0_i32, %c0_i32_0 : i32, i32
  }
  func.func @transform_30(%arg0: i32) -> (i32, i32) {
    %c0_i32 = arith.constant 0 : i32
    %c0_i32_0 = arith.constant 0 : i32
    %c0_i32_1 = arith.constant 0 : i32
    return %c0_i32, %c0_i32_0 : i32, i32
  }
  func.func @transform_31(%arg0: i32) -> (i32, i32) {
    %c0_i32 = arith.constant 0 : i32
    %c0_i32_0 = arith.constant 0 : i32
    %c0_i32_1 = arith.constant 0 : i32
    return %c0_i32, %c0_i32_0 : i32, i32
  }
  func.func @transform_32(%arg0: i32) -> (i32, i32) {
    %c0_i32 = arith.constant 0 : i32
    %c0_i32_0 = arith.constant 0 : i32
    %c0_i32_1 = arith.constant 0 : i32
    return %c0_i32, %c0_i32_0 : i32, i32
  }
  func.func @transform_33(%arg0: i32) -> (i32, i32) {
    %c0_i32 = arith.constant 0 : i32
    %c0_i32_0 = arith.constant 0 : i32
    %c0_i32_1 = arith.constant 0 : i32
    return %c0_i32, %c0_i32_0 : i32, i32
  }
  func.func @transform_34(%arg0: i32) -> (i32, i32) {
    %c0_i32 = arith.constant 0 : i32
    %c0_i32_0 = arith.constant 0 : i32
    %c0_i32_1 = arith.constant 0 : i32
    return %c0_i32, %c0_i32_0 : i32, i32
  }
  func.func @transform_35(%arg0: i32) -> (i32, i32) {
    %c0_i32 = arith.constant 0 : i32
    %c0_i32_0 = arith.constant 0 : i32
    %c0_i32_1 = arith.constant 0 : i32
    return %c0_i32, %c0_i32_0 : i32, i32
  }
  func.func @transform_36(%arg0: i32) -> (i32, i32) {
    %c0_i32 = arith.constant 0 : i32
    %c0_i32_0 = arith.constant 0 : i32
    %c0_i32_1 = arith.constant 0 : i32
    return %c0_i32, %c0_i32_0 : i32, i32
  }
  func.func @transform_37(%arg0: i32) -> (i32, i32) {
    %c0_i32 = arith.constant 0 : i32
    %c0_i32_0 = arith.constant 0 : i32
    %c0_i32_1 = arith.constant 0 : i32
    return %c0_i32, %c0_i32_0 : i32, i32
  }
  func.func @transform_38(%arg0: i32) -> (i32, i32) {
    %c0_i32 = arith.constant 0 : i32
    %c0_i32_0 = arith.constant 0 : i32
    %c0_i32_1 = arith.constant 0 : i32
    return %c0_i32, %c0_i32_0 : i32, i32
  }
  func.func @transform_39(%arg0: i32) -> (i32, i32) {
    %c0_i32 = arith.constant 0 : i32
    %c0_i32_0 = arith.constant 0 : i32
    %c0_i32_1 = arith.constant 0 : i32
    return %c0_i32, %c0_i32_0 : i32, i32
  }
  func.func @transform_40(%arg0: i32) -> (i32, i32) {
    %c0_i32 = arith.constant 0 : i32
    %c0_i32_0 = arith.constant 0 : i32
    %c0_i32_1 = arith.constant 0 : i32
    return %c0_i32, %c0_i32_0 : i32, i32
  }
  func.func @transform_41(%arg0: i32) -> (i32, i32) {
    %c0_i32 = arith.constant 0 : i32
    %c0_i32_0 = arith.constant 0 : i32
    %c0_i32_1 = arith.constant 0 : i32
    return %c0_i32, %c0_i32_0 : i32, i32
  }
  func.func @transform_42(%arg0: i32) -> (i32, i32) {
    %c0_i32 = arith.constant 0 : i32
    %c0_i32_0 = arith.constant 0 : i32
    %c0_i32_1 = arith.constant 0 : i32
    return %c0_i32, %c0_i32_0 : i32, i32
  }
  func.func @transform_43(%arg0: i32) -> (i32, i32) {
    %c0_i32 = arith.constant 0 : i32
    %c0_i32_0 = arith.constant 0 : i32
    %c0_i32_1 = arith.constant 0 : i32
    return %c0_i32, %c0_i32_0 : i32, i32
  }
  func.func @transform_44(%arg0: i32) -> (i32, i32) {
    %c0_i32 = arith.constant 0 : i32
    %c0_i32_0 = arith.constant 0 : i32
    %c0_i32_1 = arith.constant 0 : i32
    return %c0_i32, %c0_i32_0 : i32, i32
  }
  func.func @transform_45(%arg0: i32) -> (i32, i32) {
    %c0_i32 = arith.constant 0 : i32
    %c0_i32_0 = arith.constant 0 : i32
    %c0_i32_1 = arith.constant 0 : i32
    return %c0_i32, %c0_i32_0 : i32, i32
  }
  func.func @transform_46(%arg0: i32) -> (i32, i32) {
    %c0_i32 = arith.constant 0 : i32
    %c0_i32_0 = arith.constant 0 : i32
    %c0_i32_1 = arith.constant 0 : i32
    return %c0_i32, %c0_i32_0 : i32, i32
  }
  func.func @transform_47(%arg0: i32) -> (i32, i32) {
    %c0_i32 = arith.constant 0 : i32
    %c0_i32_0 = arith.constant 0 : i32
    %c0_i32_1 = arith.constant 0 : i32
    return %c0_i32, %c0_i32_0 : i32, i32
  }
  func.func @transform_48(%arg0: i32) -> (i32, i32) {
    %c0_i32 = arith.constant 0 : i32
    %c0_i32_0 = arith.constant 0 : i32
    return %arg0, %c0_i32 : i32, i32
  }
}

</mosaic_0001>

<bundles_post_ra>
// kernel: vgg_classifier_forward.1
= control target key start
LH: loop header
LB: loop body
LE: loop exit
PB: predicated region body
PF: predicated region fallthrough
CT: control target
= control target key end

     0   :  { %s13033_s6 = smov 1   ;;  %s13034_s10 = smov 2   ;;  %s16795_s0 = inlined_call_operand.smem [shape: u32[49], index: -1, kind: input, shape index: {}] }
   0x1   :  { %s13101_s5 = sld [smem:[%s16795_s0]]   ;;  %s13035_s14 = smov 3  }
   0x2   :  { %s13106_s9 = sld [smem:[%s16795_s0 + %s13033_s6]]   ;;  %s13036_s18 = smov 4  }
   0x3   :  { %s13111_s13 = sld [smem:[%s16795_s0 + %s13034_s10]]   ;;  %s13037_s22 = smov 5  }
   0x4   :  { %s13116_s17 = sld [smem:[%s16795_s0 + %s13035_s14]]   ;;  %s13038_s26 = smov 6  }
   0x5   :  { %s13121_s21 = sld [smem:[%s16795_s0 + %s13036_s18]]   ;;  %s13039_s30 = smov 7  }
   0x6   :  { %s13126_s25 = sld [smem:[%s16795_s0 + %s13037_s22]]   ;;  %s13040_s4 = smov 8  }
   0x7   :  { %s13131_s29 = sld [smem:[%s16795_s0 + %s13038_s26]]   ;;  %s13041_s10 = smov 9  }
   0x8   :  { %s13136_s3 = sld [smem:[%s16795_s0 + %s13039_s30]]   ;;  %s13042_s15 = smov 10  }
   0x9   :  { %s13141_s8 = sld [smem:[%s16795_s0 + %s13040_s4]]   ;;  %s13043_s20 = smov 11  }
   0xa   :  { %s13146_s14 = sld [smem:[%s16795_s0 + %s13041_s10]]   ;;  %s13044_s26 = smov 12  }
   0xb   :  { %s13151_s19 = sld [smem:[%s16795_s0 + %s13042_s15]]   ;;  %s13045_s1 = smov 13  }
   0xc   :  { %s13156_s24 = sld [smem:[%s16795_s0 + %s13043_s20]]   ;;  %s13046_s7 = smov 14  }
   0xd   :  { %s13161_s30 = sld [smem:[%s16795_s0 + %s13044_s26]]   ;;  %s13047_s15 = smov 15  }
   0xe   :  { %s13166_s6 = sld [smem:[%s16795_s0 + %s13045_s1]]   ;;  %s13048_s22 = smov 16  }
   0xf   :  { %s13171_s12 = sld [smem:[%s16795_s0 + %s13046_s7]]   ;;  %s13049_s28 = smov 17  }
  0x10   :  { %16875 = sst [smem:[#allocation17_spill]] %s13146_s14  ;;  %s13050_s7 = smov 18  }
  0x11   :  { %16876 = sst [smem:[#allocation18_spill]] %s13151_s19 }
  0x12   :  { %16877 = sst [smem:[#allocation19_spill]] %s13156_s24 }
  0x13   :  { %16878 = sst [smem:[#allocation20_spill]] %s13161_s30 }
  0x14   :  { %16879 = sst [smem:[#allocation21_spill]] %s13166_s6 }
  0x15   :  { %16880 = sst [smem:[#allocation22_spill]] %s13171_s12 }
  0x16   :  { %s13176_s20 = sld [smem:[%s16795_s0 + %s13047_s15]]   ;;  %s13051_s15 = smov 19  }
  0x17   :  { %s13181_s27 = sld [smem:[%s16795_s0 + %s13048_s22]]   ;;  %s13052_s22 = smov 20  }
  0x18   :  { %s13186_s4 = sld [smem:[%s16795_s0 + %s13049_s28]]   ;;  %s13053_s28 = smov 21  }
  0x19   :  { %s13191_s12 = sld [smem:[%s16795_s0 + %s13050_s7]]   ;;  %s13054_s7 = smov 22  }
  0x1c   :  { %16881 = sst [smem:[#allocation23_spill]] %s13176_s20 }
  0x1d   :  { %16882 = sst [smem:[#allocation24_spill]] %s13181_s27 }
  0x1e   :  { %16883 = sst [smem:[#allocation25_spill]] %s13186_s4 }
  0x1f   :  { %16884 = sst [smem:[#allocation26_spill]] %s13191_s12 }
  0x20   :  { %s13196_s20 = sld [smem:[%s16795_s0 + %s13051_s15]]   ;;  %s13055_s15 = smov 23  }
  0x21   :  { %s13201_s27 = sld [smem:[%s16795_s0 + %s13052_s22]]   ;;  %s13056_s22 = smov 24  }
  0x22   :  { %s13206_s4 = sld [smem:[%s16795_s0 + %s13053_s28]]   ;;  %s13057_s28 = smov 25  }
  0x23   :  { %s13211_s12 = sld [smem:[%s16795_s0 + %s13054_s7]]   ;;  %s13058_s7 = smov 26  }
  0x26   :  { %16885 = sst [smem:[#allocation27_spill]] %s13196_s20 }
  0x27   :  { %16886 = sst [smem:[#allocation28_spill]] %s13201_s27 }
  0x28   :  { %16887 = sst [smem:[#allocation29_spill]] %s13206_s4 }
  0x29   :  { %16888 = sst [smem:[#allocation30_spill]] %s13211_s12 }
  0x2a   :  { %s13216_s20 = sld [smem:[%s16795_s0 + %s13055_s15]]   ;;  %s13059_s15 = smov 27  }
  0x2b   :  { %s13221_s27 = sld [smem:[%s16795_s0 + %s13056_s22]]   ;;  %s13060_s22 = smov 28  }
  0x2c   :  { %s13226_s4 = sld [smem:[%s16795_s0 + %s13057_s28]]   ;;  %s13061_s28 = smov 29  }
  0x2d   :  { %s13231_s12 = sld [smem:[%s16795_s0 + %s13058_s7]]   ;;  %s13062_s7 = smov 30  }
  0x30   :  { %16889 = sst [smem:[#allocation31_spill]] %s13216_s20 }
  0x31   :  { %16890 = sst [smem:[#allocation32_spill]] %s13221_s27 }
  0x32   :  { %16891 = sst [smem:[#allocation33_spill]] %s13226_s4 }
  0x33   :  { %16892 = sst [smem:[#allocation34_spill]] %s13231_s12 }
  0x34   :  { %s13236_s20 = sld [smem:[%s16795_s0 + %s13059_s15]]   ;;  %s13063_s15 = smov 31  }
  0x35   :  { %s13241_s27 = sld [smem:[%s16795_s0 + %s13060_s22]]   ;;  %s13064_s22 = smov 32  }
  0x36   :  { %s13246_s4 = sld [smem:[%s16795_s0 + %s13061_s28]]   ;;  %s13065_s28 = smov 33  }
  0x37   :  { %s13251_s12 = sld [smem:[%s16795_s0 + %s13062_s7]]   ;;  %s13066_s7 = smov 34  }
  0x38   :  { %s13266_s24 = sld [smem:[%s16795_s0 + %s13065_s28]]   ;;  %s13069_s28 = smov 37  }
  0x3a   :  { %16893 = sst [smem:[#allocation35_spill]] %s13236_s20 }
  0x3b   :  { %16894 = sst [smem:[#allocation36_spill]] %s13241_s27 }
  0x3c   :  { %s13256_s20 = sld [smem:[%s16795_s0 + %s13063_s15]]   ;;  %s13067_s15 = smov 35  }
  0x3d   :  { %16895 = sst [smem:[#allocation37_spill]] %s13251_s12 }
  0x3e   :  { %s13261_s27 = sld [smem:[%s16795_s0 + %s13064_s22]]   ;;  %s13068_s22 = smov 36  }
  0x3f   :  { %16898 = sst [smem:[#allocation40_spill]] %s13266_s24 }
  0x40   :  { %s13271_s12 = sld [smem:[%s16795_s0 + %s13066_s7]]   ;;  %s13070_s7 = smov 38  }
  0x41   :  { %s13286_s24 = sld [smem:[%s16795_s0 + %s13069_s28]]   ;;  %s13073_s28 = smov 41  }
  0x42   :  { %16896 = sst [smem:[#allocation38_spill]] %s13256_s20 }
  0x43   :  { %s13276_s20 = sld [smem:[%s16795_s0 + %s13067_s15]]   ;;  %s13071_s15 = smov 39  }
  0x44   :  { %16897 = sst [smem:[#allocation39_spill]] %s13261_s27 }
  0x45   :  { %s13281_s27 = sld [smem:[%s16795_s0 + %s13068_s22]]   ;;  %s13072_s22 = smov 40  }
  0x46   :  { %s13291_s6 = sld [smem:[%s16795_s0 + %s13070_s7]]   ;;  %s13074_s7 = smov 42  }
  0x47   :  { %16900 = sst [smem:[#allocation42_spill]] %s13286_s24 }
  0x48   :  { %s13301_s30 = sld [smem:[%s16795_s0 + %s13072_s22]]   ;;  %s13076_s22 = smov 44  }
  0x49   :  { %16899 = sst [smem:[#allocation41_spill]] %s13276_s20 }
  0x4a   :  { %s13296_s20 = sld [smem:[%s16795_s0 + %s13071_s15]]   ;;  %s13075_s15 = smov 43  }
  0x4b   :  { %s13306_s24 = sld [smem:[%s16795_s0 + %s13073_s28]]   ;;  %s13077_s28 = smov 45  }
  0x4c   :  { %s13311_s14 = sld [smem:[%s16795_s0 + %s13074_s7]]   ;;  %s13078_s7 = smov 46  }
  0x4e   :  { %16902 = sst [smem:[#allocation44_spill]] %s13301_s30 }
  0x4f   :  { %s13321_s30 = sld [smem:[%s16795_s0 + %s13076_s22]]   ;;  %s13080_s22 = smov 48  }
  0x50   :  { %16901 = sst [smem:[#allocation43_spill]] %s13296_s20 }
  0x51   :  { %16903 = sst [smem:[#allocation45_spill]] %s13306_s24 }
  0x52   :  { %16904 = sst [smem:[#allocation46_spill]] %s13311_s14 }
  0x53   :  { %s13316_s20 = sld [smem:[%s16795_s0 + %s13075_s15]]   ;;  %s13079_s15 = smov 47  }
  0x54   :  { %s13326_s24 = sld [smem:[%s16795_s0 + %s13077_s28]]  }
  0x55   :  { %16905 = sst [smem:[#allocation47_spill]] %s13321_s30 }
  0x56   :  { %s13331_s14 = sld [smem:[%s16795_s0 + %s13078_s7]]  }
  0x57   :  { %s13336_s19 = sld [smem:[%s16795_s0 + %s13079_s15]]  }
  0x58   :  { %s13341_s30 = sld [smem:[%s16795_s0 + %s13080_s22]]  }
  0x59   :  { %102 = vsyncpa [#allocation3], 0 }
  0x5a   :  { %103 = vsyncpa [#allocation5], 0 }
  0x5b   :  { %104 = vsyncpa [#allocation8], 0 }
  0x5c   :  { %105 = vsyncpa [#allocation11], 0  ;;  %s13343_s28 = smov 0  }
  0x5d LB: > { %s13081_s1 = smov [#allocation4]   ;;  %s13349_s7 = sadd.s32 4294967295, %s13031_s28   ;;  %s13031_s28 = sphi %s13343_s28, %s111_s28  }
  0x5e   : > { %s1275_s2 = sshll.u32 %s13081_s1, 4  ;;  %p10006_p0 = scmp.ge.s32.totalorder %s13031_s28, 1  ;;  %s13354_s2 = int_to_ptr.vmem [resolvable:$true] %s1275_s2 }
  0x5f   : > { %p1155_p1 = scmp.lt.s32.totalorder %s13031_s28, 3  ;;  %p16819_p2 = scmp.eq.s32.totalorder %s13349_s7, 0 }
  0x60   : > { %s13082_s10 = smov [#allocation7]   ;;  %s13083_s15 = smov [#allocation10]  }
  0x61   : > { %p13356_p3 = pnand %p10006_p0, %p1155_p1  ;;  %s1303_s11 = sshll.u32 %s13082_s10, 4  ;;  %s13362_s11 = int_to_ptr.vmem [resolvable:$true] %s1303_s11 }
  0x62   : > { %s1340_s16 = sshll.u32 %s13083_s15, 4  ;;  %s13084_s22 = smov [#allocation2]   ;;  %s13370_s16 = int_to_ptr.vmem [resolvable:$true] %s1340_s16 }
  0x63   : > { %s16906_s0 = scalar_select %p13356_p3, 1, 0 }
  0x64   : > { %p12374_p4 = pneg %p13356_p3  ;;  %s1252_s23 = sshll.u32 %s13084_s22, 4  ;;  %s13372_s23 = int_to_ptr.vmem [resolvable:$true] %s1252_s23 }
  0x65   : > { %s12813_s26 = scalar_lea.hbm %s13271_s12, 16 }
  0x66   : > { %p13366_p5 = pnand %p16819_p2, %p12374_p4  ;;  %p12814_p6 = scmp.ne.s32.totalorder %s13271_s12, %s12813_s26 }
  0x67   : > { %p12820_p10 = scmp.lt.u32.totalorder %s12813_s26, %s13271_s12 }
  0x68   : > { %p13378_p7 = pneg %p13366_p5 }
  0x6a   : > { %p12816_p8 = pnand %p13378_p7, %p12814_p6 }
  0x6c   : > { %p12817_p9 = pneg %p12816_p8 }
  0x6e   : > { %p12822_p11 = pnand %p12820_p10, %p12817_p9 }
  0x70   : > { %12825 = shalt.err (!%p12822_p11)
}
  0x71   : > { %s12826_s10 = scalar_lea.vmem %s13354_s2, 16  ;;  %s12833_s15 = scalar_lea.vmem %s13354_s2, 32 }
  0x72   : > { %p12827_p12 = scmp.ne.s32.totalorder %s13354_s2, %s12826_s10  ;;  %p12834_p1 = scmp.lt.s32.totalorder %s13354_s2, %s13354_s2 }
  0x73   : > { %p12835_p4 = scmp.lt.s32.totalorder %s12833_s15, %s12826_s10 }
  0x74   : > { %p12829_p13 = pnand %p12827_p12, %p13378_p7 }
  0x75   : > { %p12836_p2 = por %p12835_p4, %p12834_p1 }
  0x76   : > { %p12830_p0 = pneg %p12829_p13 }
  0x78   : > { %p12837_p6 = pnand %p12836_p2, %p12830_p0 }
  0x7a   : > { %12840 = shalt.err (!%p12837_p6)
}
  0x7b   : > { %12380 = dma.hbm_to_vmem [thread:$0]  (!%p13366_p5), %s13271_s12, 16, %s13354_s2, [#allocation5]  }
  0x7c   : > { %s12841_s22 = scalar_lea.hbm %s13291_s6, 16 }
  0x7d   : > { %p12842_p8 = scmp.ne.s32.totalorder %s13291_s6, %s12841_s22  ;;  %p12848_p11 = scmp.lt.u32.totalorder %s12841_s22, %s13291_s6 }
  0x7f   : > { %p12844_p9 = pnand %p12842_p8, %p13378_p7 }
  0x81   : > { %p12845_p10 = pneg %p12844_p9 }
  0x83   : > { %p12850_p12 = pnand %p12848_p11, %p12845_p10 }
  0x85   : > { %12853 = shalt.err (!%p12850_p12)
}
  0x86   : > { %s12854_s26 = scalar_lea.vmem %s13362_s11, 16  ;;  %s12861_s10 = scalar_lea.vmem %s13362_s11, 32 }
  0x87   : > { %p12855_p2 = scmp.ne.s32.totalorder %s13362_s11, %s12854_s26  ;;  %p12862_p1 = scmp.lt.s32.totalorder %s13362_s11, %s13362_s11 }
  0x88   : > { %p12863_p4 = scmp.lt.s32.totalorder %s12861_s10, %s12854_s26 }
  0x89   : > { %p12857_p13 = pnand %p12855_p2, %p13378_p7 }
  0x8a   : > { %p12864_p6 = por %p12863_p4, %p12862_p1 }
  0x8b   : > { %p12858_p0 = pneg %p12857_p13 }
  0x8d   : > { %p12865_p8 = pnand %p12864_p6, %p12858_p0 }
  0x8f   : > { %12868 = shalt.err (!%p12865_p8)
}
  0x90   : > { %12386 = dma.hbm_to_vmem [thread:$0]  (!%p13366_p5), %s13291_s6, 16, %s13362_s11, [#allocation8]  }
  0x91   : > { %s12869_s2 = scalar_lea.hbm %s13326_s24, 16 }
  0x92   : > { %p12870_p9 = scmp.ne.s32.totalorder %s13326_s24, %s12869_s2  ;;  %p12876_p12 = scmp.lt.u32.totalorder %s12869_s2, %s13326_s24 }
  0x94   : > { %p12872_p10 = pnand %p12870_p9, %p13378_p7 }
  0x96   : > { %p12873_p11 = pneg %p12872_p10 }
  0x98   : > { %p12878_p2 = pnand %p12876_p12, %p12873_p11 }
  0x9a   : > { %12881 = shalt.err (!%p12878_p2)
}
  0x9b   : > { %s12882_s15 = scalar_lea.vmem %s13370_s16, 16  ;;  %s12889_s22 = scalar_lea.vmem %s13370_s16, 32 }
  0x9c   : > { %p12883_p13 = scmp.ne.s32.totalorder %s13370_s16, %s12882_s15  ;;  %p12890_p4 = scmp.lt.s32.totalorder %s13370_s16, %s13370_s16 }
  0x9d   : > { %p12891_p6 = scmp.lt.s32.totalorder %s12889_s22, %s12882_s15 }
  0x9e   : > { %p12885_p0 = pnand %p12883_p13, %p13378_p7 }
  0x9f   : > { %p12892_p8 = por %p12891_p6, %p12890_p4 }
  0xa0   : > { %p12886_p1 = pneg %p12885_p0 }
  0xa2   : > { %p12893_p9 = pnand %p12892_p8, %p12886_p1 }
  0xa4   : > { %12896 = shalt.err (!%p12893_p9)
}
  0xa5   : > { %12392 = dma.hbm_to_vmem [thread:$0]  (!%p13366_p5), %s13326_s24, 16, %s13370_s16, [#allocation11]  }
  0xa6   : > { %s12897_s11 = scalar_lea.hbm %s13246_s4, 16 }
  0xa7   : > { %p12898_p10 = scmp.ne.s32.totalorder %s13246_s4, %s12897_s11  ;;  %p12904_p2 = scmp.lt.u32.totalorder %s12897_s11, %s13246_s4 }
  0xa9   : > { %p12900_p11 = pnand %p12898_p10, %p13378_p7 }
  0xab   : > { %p12901_p12 = pneg %p12900_p11 }
  0xad   : > { %p12906_p13 = pnand %p12904_p2, %p12901_p12 }
  0xaf   : > { %12909 = shalt.err (!%p12906_p13)
}
  0xb0   : > { %s12910_s26 = scalar_lea.vmem %s13372_s23, 16  ;;  %s12917_s10 = scalar_lea.vmem %s13372_s23, 32 }
  0xb1   : > { %p12911_p0 = scmp.ne.s32.totalorder %s13372_s23, %s12910_s26  ;;  %p12918_p6 = scmp.lt.s32.totalorder %s13372_s23, %s13372_s23 }
  0xb2   : > { %p12919_p8 = scmp.lt.s32.totalorder %s12917_s10, %s12910_s26 }
  0xb3   : > { %p12913_p1 = pnand %p12911_p0, %p13378_p7 }
  0xb4   : > { %p12920_p9 = por %p12919_p8, %p12918_p6 }
  0xb5   : > { %p12914_p4 = pneg %p12913_p1 }
  0xb7   : > { %p12921_p10 = pnand %p12920_p9, %p12914_p4 }
  0xb9   : > { %12924 = shalt.err (!%p12921_p10)
}
  0xba   : > { %12377 = dma.hbm_to_vmem [thread:$0]  (!%p13366_p5), %s13246_s4, 16, %s13372_s23, [#allocation3]  }
  0xbb   : > { %s13085_s16 = smov [#allocation6]   ;;  %s13086_s15 = smov [#allocation9]  }
  0xbc   : > { %s1289_s2 = sshll.u32 %s13085_s16, 4  ;;  %s1326_s22 = sshll.u32 %s13086_s15, 4  ;;  %s1290_s2 = int_to_ptr.vmem [resolvable:$true] %s1289_s2  ;;  %s1327_s22 = int_to_ptr.vmem [resolvable:$true] %s1326_s22 }
  0xbd   : > { %s12925_s11 = scalar_lea.hbm %s13281_s27, 16 }
  0xbe   : > { %p12926_p11 = scmp.ne.s32.totalorder %s13281_s27, %s12925_s11  ;;  %p12932_p13 = scmp.lt.u32.totalorder %s12925_s11, %s13281_s27 }
  0xc0   : > { %p12928_p12 = pnand %p12926_p11, %p13378_p7 }
  0xc2   : > { %p12929_p2 = pneg %p12928_p12 }
  0xc4   : > { %p12934_p0 = pnand %p12932_p13, %p12929_p2 }
  0xc6   : > { %12937 = shalt.err (!%p12934_p0)
}
  0xc7   : > { %s12938_s26 = scalar_lea.vmem %s1290_s2, 16  ;;  %s12945_s23 = scalar_lea.vmem %s1290_s2, 32 }
  0xc8   : > { %p12939_p1 = scmp.ne.s32.totalorder %s1290_s2, %s12938_s26  ;;  %p12946_p8 = scmp.lt.s32.totalorder %s1290_s2, %s1290_s2 }
  0xc9   : > { %p12947_p9 = scmp.lt.s32.totalorder %s12945_s23, %s12938_s26 }
  0xca   : > { %p12941_p4 = pnand %p12939_p1, %p13378_p7 }
  0xcb   : > { %p12948_p10 = por %p12947_p9, %p12946_p8 }
  0xcc   : > { %p12942_p6 = pneg %p12941_p4 }
  0xce   : > { %p12949_p3 = pnand %p12948_p10, %p12942_p6 }
  0xd0   : > { %12952 = shalt.err (!%p12949_p3)
}
  0xd1   : > { %12383 = dma.hbm_to_vmem [thread:$0]  (!%p13366_p5), %s13281_s27, 16, %s1290_s2, [#allocation5]  }
  0xd2   : > { %s12953_s10 = scalar_lea.hbm %s13316_s20, 16 }
  0xd3   : > { %p12954_p11 = scmp.ne.s32.totalorder %s13316_s20, %s12953_s10  ;;  %p12960_p13 = scmp.lt.u32.totalorder %s12953_s10, %s13316_s20 }
  0xd5   : > { %p12956_p12 = pnand %p12954_p11, %p13378_p7 }
  0xd7   : > { %p12957_p2 = pneg %p12956_p12 }
  0xd9   : > { %p12962_p0 = pnand %p12960_p13, %p12957_p2 }
  0xdb   : > { %12965 = shalt.err (!%p12962_p0)
}
  0xdc   : > { %s12966_s16 = scalar_lea.vmem %s1327_s22, 16  ;;  %s12973_s15 = scalar_lea.vmem %s1327_s22, 32 }
  0xdd   : > { %p12967_p3 = scmp.ne.s32.totalorder %s1327_s22, %s12966_s16  ;;  %p12974_p6 = scmp.lt.s32.totalorder %s1327_s22, %s1327_s22 }
  0xde   : > { %p12975_p8 = scmp.lt.s32.totalorder %s12973_s15, %s12966_s16 }
  0xdf   : > { %p12969_p1 = pnand %p12967_p3, %p13378_p7 }
  0xe0   : > { %p12976_p9 = por %p12975_p8, %p12974_p6 }
  0xe1   : > { %p12970_p4 = pneg %p12969_p1 }
  0xe3   : > { %p12977_p10 = pnand %p12976_p9, %p12970_p4 }
  0xe5   : > { %12980 = shalt.err (!%p12977_p10)
}
  0xe6   : > { %12389 = dma.hbm_to_vmem [thread:$0]  (!%p13366_p5), %s13316_s20, 16, %s1327_s22, [#allocation8]  }
  0xe7   : > { %s13087_s2 = smov [#allocation12]   ;;  %s12981_s26 = scalar_lea.hbm %s13336_s19, 16 }
  0xe8   : > { %s1354_s11 = sshll.u32 %s13087_s2, 4  ;;  %p12982_p11 = scmp.ne.s32.totalorder %s13336_s19, %s12981_s26  ;;  %s1355_s11 = int_to_ptr.vmem [resolvable:$true] %s1354_s11 }
  0xe9   : > { %p12988_p13 = scmp.lt.u32.totalorder %s12981_s26, %s13336_s19 }
  0xea   : > { %p12984_p12 = pnand %p12982_p11, %p13378_p7 }
  0xec   : > { %p12985_p2 = pneg %p12984_p12 }
  0xee   : > { %p12990_p0 = pnand %p12988_p13, %p12985_p2 }
  0xf0   : > { %12993 = shalt.err (!%p12990_p0)
}
  0xf1   : > { %s12994_s23 = scalar_lea.vmem %s1355_s11, 16  ;;  %s13001_s10 = scalar_lea.vmem %s1355_s11, 32 }
  0xf2   : > { %p12995_p3 = scmp.ne.s32.totalorder %s1355_s11, %s12994_s23  ;;  %p13002_p6 = scmp.lt.s32.totalorder %s1355_s11, %s1355_s11 }
  0xf3   : > { %p13003_p8 = scmp.lt.s32.totalorder %s13001_s10, %s12994_s23 }
  0xf4   : > { %p12997_p1 = pnand %p12995_p3, %p13378_p7 }
  0xf5   : > { %p13004_p9 = por %p13003_p8, %p13002_p6 }
  0xf6   : > { %p12998_p4 = pneg %p12997_p1 }
  0xf8   : > { %p13005_p10 = pnand %p13004_p9, %p12998_p4 }
  0xfa   : > { %13008 = shalt.err (!%p13005_p10)
}
  0xfb   : > { %12395 = dma.hbm_to_vmem [thread:$0]  (!%p13366_p5), %s13336_s19, 16, %s1355_s11, [#allocation11]  }
  0xfc   : > { %p16909_p11 = scmp.ne.s32.totalorder %s16906_s0, 0 }
  0xfe   : > { %1376 = sbr.rel (%p16909_p11) target bundleno = 7367 (0x1cc7), region = 212 }
 0x105   : > { %p16910_p12 = scmp.eq.s32.totalorder %s13349_s7, 0 }
 0x107   : > { %13014 = dma.done.wait (%p16910_p12), [#allocation3], 16   ;;  %p16911_p2 = pmov %p16910_p12 }
 0x109   : > { %13016 = vsyncadd (%p16911_p2), [#allocation3], 4294967280  ;;  %p16912_p7 = pmov %p16911_p2 }
 0x10a   : > { %p16913_p13 = pmov %p16911_p2 }
 0x10b   : > { %13018 = dma.done.wait (%p16912_p7), [#allocation5], 32  }
 0x10c   : > { %13020 = vsyncadd (%p16913_p13), [#allocation5], 4294967264  ;;  %p16914_p0 = pmov %p16911_p2 }
 0x10e   : > { %13022 = dma.done.wait (%p16914_p0), [#allocation8], 32   ;;  %p16915_p5 = pmov %p16914_p0 }
 0x10f   : > { %p16916_p3 = pmov %p16914_p0 }
 0x110   : > { %13024 = vsyncadd (%p16915_p5), [#allocation8], 4294967264 }
 0x111   : > { %13026 = dma.done.wait (%p16916_p3), [#allocation11], 32   ;;  %p16917_p1 = pmov %p16914_p0 }
 0x112   : > { %v12563_v0 = vld [vmem:[%s13106_s9 + $0x40] sm:$0xff]   ;;  %v12565_v2 = vld [vmem:[%s13106_s9 + $0x48] sm:$0xff]   ;;  %s10023_s0 = sshll.u32 %s13349_s7, 5  ;;  %v1556_v5 = vlaneseq  ;;  %v12568_v6 = vld [vmem:[%s13106_s9 + $0x50] sm:$0xff]   ;;  %v16824_v39 = vmov 0.0   ;;  %s16859_s22 = smov 64  }
 0x113   : > { %13028 = vsyncadd (%p16917_p1), [#allocation11], 4294967264  ;;  %v12564_v1 = vld [vmem:[%s13106_s9] sm:$0xff]   ;;  %10383 = vmatprep.subr.bf16.mxu0 %v12563_v0  ;;  %v12567_v4 = vld [vmem:[%s13106_s9 + $0x8] sm:$0xff]   ;;  %p1514_p4 = scmp.lt.s32.totalorder %s10023_s0, 63  ;;  %s17057_s16 = sld [smem:[#allocation18_spill]] }
 0x114   : > { %10384 = vmatpush3.bf16.msra.mxu0 %v12564_v1  ;;  %v12566_v3 = vld [vmem:[%s13106_s9 + $0x80] sm:$0xff]   ;;  %v12569_v7 = vld [vmem:[%s13106_s9 + $0x88] sm:$0xff]   ;;  %v12570_v8 = vld [vmem:[%s13106_s9 + $0x10] sm:$0xff]   ;;  %v13502_v10 = vshrl.u32 %v1556_v5, 7  ;;  %s17067_s15 = sld [smem:[#allocation17_spill]]  ;;  %s17068_s2 = sld [smem:[#allocation20_spill]] }
 0x115   : > { %10385 = vmatprep.subr.bf16.mxu0 %v12565_v2  ;;  %11259 = vmatprep.subr.bf16.mxu1 %v12566_v3  ;;  %v12571_v9 = vld [vmem:[%s13106_s9 + $0x58] sm:$0xff]   ;;  %v12572_v11 = vld [vmem:[%s13106_s9 + $0x90] sm:$0xff]   ;;  %s17121_s0 = smov (!%p1514_p4, %s10023_s0), 63  ;;  %v12574_v13 = vld [vmem:[%s13106_s9 + $0x60] sm:$0xff]   ;;  %s17073_s11 = sld [smem:[#allocation21_spill]] }
 0x116   : > { %11260 = vmatpush3.bf16.msra.mxu1 %v12566_v3  ;;  %v12573_v12 = vld [vmem:[%s13106_s9 + $0x18] sm:$0xff]   ;;  %v13511_v15 = vadd.s32 24, %v13502_v10  ;;  %s10024_s18 = sshll.u32 %s17121_s0, 3  ;;  %v1593_v16 = vand.u32 31, %v13502_v10  ;;  %v12576_v17 = vld [vmem:[%s13106_s9 + $0x20] sm:$0xff]   ;;  %v13517_v18 = vadd.s32 32, %v13502_v10 }
 0x117   : > { %11261 = vmatprep.subr.bf16.mxu1 %v12569_v7  ;;  %v12575_v14 = vld [vmem:[%s13106_s9 + $0x98] sm:$0xff]   ;;  %v12578_v19 = vld [vmem:[%s13106_s9 + $0xa0] sm:$0xff]   ;;  %vm2294_vm0 = vcmp.lt.s32.totalorder %v13502_v10, 7  ;;  %v13522_v20 = vadd.s32 56, %v13502_v10  ;;  %v12577_v21 = vld [vmem:[%s13106_s9 + $0x68] sm:$0xff]   ;;  %vm2197_vm1 = vcmp.lt.s32.totalorder %v13502_v10, 1  ;;  %s13544_s1 = scalar_lea.vmem %s13101_s5, %s10024_s18 }
 0x118   : > { %10386 = vmatpush3.bf16.msra.mxu0 %v12567_v4  ;;  %16918 = vst [vmem:[#allocation48_spill] sm:$0xff] %v13511_v15  ;;  %16919 = vst [vmem:[#allocation49_spill] sm:$0xff] %v13517_v18  ;;  %v1614_v22 = vand.u32 31, %v13511_v15  ;;  %v13528_v23 = vadd.s32 64, %v13502_v10  ;;  %v13531_v24 = vadd.s32 88, %v13502_v10  ;;  %v12579_v25 = vld [vmem:[%s13106_s9 + $0x28] sm:$0xff]  }
 0x119   : > { %10387 = vmatprep.subr.bf16.mxu0 %v12568_v6  ;;  %16920 = vst [vmem:[#allocation50_spill] sm:$0xff] %v13522_v20  ;;  %vm13534_vm2 = vcmp.ne.s32.totalorder %v1593_v16, 0  ;;  %v12581_v27 = vld [vmem:[%s13106_s9 + $0xa8] sm:$0xff]   ;;  %v13540_v28 = vadd.s32 96, %v13502_v10  ;;  %v12580_v29 = vld [vmem:[%s13106_s9 + $0x70] sm:$0xff]   ;;  %v1621_v32 = vand.u32 31, %v13517_v18 }
 0x11a   : > { %11262 = vmatpush3.bf16.msra.mxu1 %v12569_v7  ;;  %16921 = vst [vmem:[#allocation51_spill] sm:$0xff] %v13528_v23  ;;  %16922 = vst [vmem:[#allocation52_spill] sm:$0xff] %v13531_v24  ;;  %vm13546_vm3 = vcmp.ne.s32.totalorder %v1614_v22, 31  ;;  %v12582_v31 = vld [vmem:[%s13106_s9 + $0x30] sm:$0xff]   ;;  %v12583_v33 = vld [vmem:[%s13106_s9 + $0x78] sm:$0xff]   ;;  %v1642_v35 = vand.u32 31, %v13522_v20 }
 0x11b   : > { %11263 = vmatprep.subr.bf16.mxu1 %v12572_v11  ;;  %16925 = vst [vmem:[#allocation53_spill] sm:$0xff] %v13540_v28  ;;  %v12584_v34 = vld [vmem:[%s13106_s9 + $0xb0] sm:$0xff]   ;;  %v13556_v36 = vld [vmem:[%s13544_s1] sm:$0xff]  ;;  %v13559_v37 = vld [vmem:[%s13544_s1 + $0x8] sm:$0xff]  ;;  %v13567_v40 = vsel %vm13534_vm2, 1.0, %v16824_v39  ;;  %v1649_v41 = vand.u32 31, %v13528_v23 }
 0x11c   : > { %10388 = vmatpush3.bf16.msra.mxu0 %v12570_v8  ;;  %v13562_v38 = vld [vmem:[%s13544_s1 + $0xf8] sm:$0xff]  ;;  %v13571_v42 = vadd.s32 120, %v13502_v10  ;;  %v2165_v43 = vrot.slane %v13556_v36, 7  ;;  %v2166_v44 = vrot.slane %v13559_v37, 7  ;;  %v16821_v45 = vrot.slane %v13556_v36, 1  ;;  %v13581_v49 = vld [vmem:[%s13544_s1 + $0x10] sm:$0xff] }
 0x11d   : > { %10389 = vmatprep.subr.bf16.mxu0 %v12571_v9  ;;  %v2263_v46 = vrot.slane %v13559_v37, 1  ;;  %v2360_v47 = vpack.c.bf16 %v13559_v37, %v13556_v36  ;;  %v16822_v48 = vrot.slane %v13562_v38, 7  ;;  %v13586_v50 = vsel %vm13546_vm3, 1.0, %v16824_v39  ;;  %v13595_v54 = vld [vmem:[%s13544_s1 + $0x18] sm:$0xff]  ;;  %v13598_v55 = vld [vmem:[%s13544_s1 + $0x20] sm:$0xff]  ;;  %v13624_v2 = vld [vmem:[%s13544_s1 + $0x30] sm:$0xff] }
 0x11e   : > { %11264 = vmatpush3.bf16.msra.mxu1 %v12572_v11  ;;  %16928 = vst [vmem:[#allocation54_spill] sm:$0xff] %v13571_v42  ;;  %v1670_v51 = vand.u32 31, %v13531_v24  ;;  %v2264_v52 = vrot.slane %v13581_v49, 1  ;;  %vm13600_vm4 = vcmp.ne.s32.totalorder %v1621_v32, 0  ;;  %vm13604_vm5 = vcmp.ne.s32.totalorder %v1642_v35, 31  ;;  %v12585_v58 = vld [vmem:[%s13106_s9 + $0x38] sm:$0xff]  }
 0x11f   : > { %11265 = vmatprep.subr.bf16.mxu1 %v12575_v14  ;;  %v2325_v53 = vsel %vm2294_vm0, %v16821_v45, %v2263_v46  ;;  %v2228_v59 = vsel %vm2197_vm1, %v2165_v43, %v2166_v44  ;;  %v2229_v60 = vsel %vm2197_vm1, %v16822_v48, %v2165_v43  ;;  %v12586_v61 = vld [vmem:[%s13106_s9 + $0xb8] sm:$0xff]   ;;  %v2265_v62 = vrot.slane %v13595_v54, 1  ;;  %2638 = vmatprep.mubr.bf16.mxu0 %v2360_v47  ;;  %v13634_v7 = vld [vmem:[%s13544_s1 + $0x28] sm:$0xff]  ;;  %v13640_v9 = vld [vmem:[%s13544_s1 + $0x40] sm:$0xff]  ;;  %s17077_s26 = sld [smem:[#allocation19_spill]]  ;;  %s17079_s23 = sld [smem:[#allocation22_spill]] }
 0x120   : > { %10390 = vmatpush3.bf16.msra.mxu0 %v12573_v12  ;;  %v2266_v63 = vrot.slane %v13598_v55, 1  ;;  %v2230_v0 = vmul.f32 %v13567_v40, %v2229_v60  ;;  %v2324_v1 = vsel %vm2294_vm0, %v2263_v46, %v2264_v52  ;;  %vm13626_vm6 = vcmp.ne.s32.totalorder %v1649_v41, 0  ;;  %v13637_v8 = vld [vmem:[%s13544_s1 + $0x38] sm:$0xff]  ;;  %v13679_v43 = vld [vmem:[%s13544_s1 + $0x48] sm:$0xff]  ;;  %v13687_v47 = vld [vmem:[%s13544_s1 + $0x50] sm:$0xff]  ;;  %s17080_s10 = sld [smem:[#allocation23_spill]] }
 0x121   : > { %10391 = vmatprep.subr.bf16.mxu0 %v12574_v13  ;;  %v1677_v4 = vand.u32 31, %v13540_v28  ;;  %v2361_v5 = vpack.c.bf16 %v2324_v1, %v2325_v53  ;;  %vm13642_vm7 = vcmp.ne.s32.totalorder %v1670_v51, 31  ;;  %v1698_v12 = vand.u32 31, %v13571_v42  ;;  %v13705_v56 = vld [vmem:[%s13544_s1 + $0x60] sm:$0xff]  ;;  %v13725_v1 = vld [vmem:[%s13544_s1 + $0x70] sm:$0xff]  ;;  %s17093_s0 = sld [smem:[#allocation25_spill]] }
 0x122   : > { %11266 = vmatpush3.bf16.msra.mxu1 %v12575_v14  ;;  %v2322_v6 = vsel %vm2294_vm0, %v2265_v62, %v2266_v63  ;;  %v2359_v13 = vpack.c.bf16 %v2228_v59, %v2230_v0  ;;  %v2323_v14 = vsel %vm2294_vm0, %v2264_v52, %v2265_v62  ;;  %v2168_v22 = vrot.slane %v13595_v54, 7  ;;  %s17094_s18 = sld [smem:[#allocation24_spill]]  ;;  %p1519_p6 = scmp.lt.s32.totalorder %s13349_s7, 1 }
 0x123   : > { %11267 = vmatprep.subr.bf16.mxu1 %v12578_v19  ;;  %v2330_v16 = vmul.f32 %v13586_v50, %v2322_v6  ;;  %11275 = vmatprep.mubr.bf16.mxu1 %v2361_v5  ;;  %vm13660_vm8 = vcmp.ne.s32.totalorder %v1677_v4, 0  ;;  %v13667_v32 = vsel %vm13600_vm4, 1.0, %v16824_v39  ;;  %v13684_v46 = vsel %vm13626_vm6, 1.0, %v16824_v39 }
 0x124   : > { %10392 = vmatpush3.bf16.msra.mxu0 %v12576_v17  ;;  %v2267_v17 = vrot.slane %v13634_v7, 1  ;;  %v2169_v53 = vrot.slane %v13598_v55, 7  ;;  %v13710_v57 = vsel %vm13660_vm8, 1.0, %v16824_v39  ;;  %vm13713_vm9 = vcmp.ne.s32.totalorder %v1698_v12, 31  ;;  %v13736_v12 = vld [vmem:[%s13544_s1 + $0x68] sm:$0xff]  ;;  %s17123_s7 = smov (!%p1519_p6, %s13349_s7), 1 }
 0x125   : > { %10393 = vmatprep.subr.bf16.mxu0 %v12577_v21  ;;  %v2167_v21 = vrot.slane %v13581_v49, 7  ;;  %v2170_v37 = vrot.slane %v13634_v7, 7  ;;  %v2272_v60 = vrot.slane %v13687_v47, 1  ;;  %v2274_v0 = vrot.slane %v13705_v56, 1 }
 0x126   : > { %11268 = vmatpush3.bf16.msra.mxu1 %v12578_v19  ;;  %v2363_v19 = vpack.c.bf16 %v13595_v54, %v13581_v49  ;;  %v2321_v26 = vsel %vm2294_vm0, %v2266_v63, %v2267_v17  ;;  %v13692_v49 = vsel %vm13642_vm7, 1.0, %v16824_v39  ;;  %v13702_v54 = vld [vmem:[%s13544_s1 + $0x58] sm:$0xff]  ;;  %v2366_v3 = vpack.c.bf16 %v13634_v7, %v13598_v55 }
 0x127   : > { %11269 = vmatprep.subr.bf16.mxu1 %v12581_v27  ;;  %v2226_v51 = vsel %vm2197_vm1, %v2167_v21, %v2168_v22  ;;  %v2227_v52 = vsel %vm2197_vm1, %v2166_v44, %v2167_v21  ;;  %v2273_v63 = vrot.slane %v13702_v54, 1  ;;  %v2225_v4 = vsel %vm2197_vm1, %v2168_v22, %v2169_v53 }
 0x128   : > { %10394 = vmatpush3.bf16.msra.mxu0 %v12579_v25  ;;  %v2268_v25 = vrot.slane %v13624_v2, 1  ;;  %v1573_v55 = vadd.s32 128, %v13502_v10  ;;  %v2234_v7 = vmul.f32 %v13667_v32, %v2225_v4  ;;  %v1576_v21 = vadd.s32 152, %v13502_v10 }
 0x129   : > { %10395 = vmatprep.subr.bf16.mxu0 %v12580_v29  ;;  %v2270_v29 = vrot.slane %v13640_v9, 1  ;;  %v2224_v22 = vsel %vm2197_vm1, %v2169_v53, %v2170_v37  ;;  %v16945_v45 = vrot.slane %v13736_v12, 7  ;;  %vm4812_vm6 = vcmask 523264  }
 0x12a   : > { %11270 = vmatpush3.bf16.msra.mxu1 %v12581_v27  ;;  %v2269_v27 = vrot.slane %v13637_v8, 1  ;;  %v1705_v59 = vand.u32 31, %v1573_v55  ;;  %v2174_v55 = vrot.slane %v13679_v43, 7 }
 0x12b   : > { %11271 = vmatprep.subr.bf16.mxu1 %v12584_v34 }
 0x12c   : > { %10396 = vmatpush3.bf16.msra.mxu0 %v12582_v31  ;;  %v2364_v31 = vpack.c.bf16 %v2330_v16, %v2323_v14  ;;  %v2318_v41 = vsel %vm2294_vm0, %v2269_v27, %v2270_v29  ;;  %v2319_v62 = vsel %vm2294_vm0, %v2268_v25, %v2269_v27  ;;  %v13744_v14 = vsel %vm13713_vm9, 1.0, %v16824_v39 }
 0x12d   : > { %10397 = vmatprep.subr.bf16.mxu0 %v12583_v33  ;;  %v2320_v33 = vsel %vm2294_vm0, %v2267_v17, %v2268_v25  ;;  %v2314_v17 = vsel %vm2294_vm0, %v2273_v63, %v2274_v0  ;;  %v2275_v25 = vrot.slane %v13736_v12, 1  ;;  %v2171_v27 = vrot.slane %v13624_v2, 7 }
 0x12e   : > { %11272 = vmatpush3.bf16.msra.mxu1 %v12584_v34  ;;  %v13674_v34 = vsel %vm13604_vm5, 1.0, %v16824_v39  ;;  %v2367_v35 = vpack.c.bf16 %v2320_v33, %v2321_v26  ;;  %v2276_v26 = vrot.slane %v13725_v1, 1  ;;  %v2338_v30 = vmul.f32 %v13692_v49, %v2314_v17 }
 0x12f   : > { %11273 = vmatprep.subr.bf16.mxu1 %v12586_v61  ;;  %v2334_v44 = vmul.f32 %v13674_v34, %v2318_v41  ;;  %v2315_v33 = vsel %vm2294_vm0, %v2272_v60, %v2273_v63  ;;  %v2313_v53 = vsel %vm2294_vm0, %v2274_v0, %v2275_v25  ;;  %v13788_v63 = vld [vmem:[%s13544_s1 + $0xa0] sm:$0xff]  ;;  %v1580_v0 = vadd.s32 184, %v13502_v10 }
 0x130   : > { %10398 = vmatpush3.bf16.msra.mxu0 %v12585_v58  ;;  %v2271_v58 = vrot.slane %v13679_v43, 1  ;;  %vm13797_vm10 = vcmp.ne.s32.totalorder %v1705_v59, 0  ;;  %v2372_v17 = vpack.c.bf16 %v13679_v43, %v13640_v9  ;;  %v13828_v59 = vld [vmem:[%s13544_s1 + $0xc0] sm:$0xff] }
 0x131   : > { %v2370_v11 = vpack.c.bf16 %v2334_v44, %v2319_v62  ;;  %v13775_v44 = vld [vmem:[%s13544_s1 + $0x90] sm:$0xff]  ;;  %v13785_v62 = vld [vmem:[%s13544_s1 + $0x98] sm:$0xff] }
 0x132   : > { %11274 = vmatpush3.bf16.msra.mxu1 %v12586_v61  ;;  %v2362_v61 = vpack.c.bf16 %v2226_v51, %v2227_v52  ;;  %v2316_v5 = vsel %vm2294_vm0, %v2271_v58, %v2272_v60  ;;  %v2317_v6 = vsel %vm2294_vm0, %v2270_v29, %v2271_v58  ;;  %v2172_v29 = vrot.slane %v13637_v8, 7  ;;  %v13772_v58 = vld [vmem:[%s13544_s1 + $0x88] sm:$0xff] }
 0x133   : > { %2639 = vmatmul.mubr.bf16.vlgmr.msra.gmra.mrb[0].mxu0 %v2359_v13  ;;  %v13739_v13 = vld [vmem:[%s13544_s1 + $0x78] sm:$0xff]  ;;  %v2373_v16 = vpack.c.bf16 %v2316_v5, %v2317_v6  ;;  %v2369_v51 = vpack.c.bf16 %v13637_v8, %v13624_v2  ;;  %v2312_v52 = vsel %vm2294_vm0, %v2275_v25, %v2276_v26  ;;  %v13778_v60 = vadd.s32 160, %v13502_v10 }
 0x134   : > { %2646 = vmatprep.mubr.bf16.mxu0 %v2363_v19  ;;  %v13751_v19 = vld [vmem:[%s13544_s1 + $0x80] sm:$0xff]  ;;  %v2223_v2 = vsel %vm2197_vm1, %v2170_v37, %v2171_v27  ;;  %v2376_v8 = vpack.c.bf16 %v2338_v30, %v2315_v33  ;;  %v2379_v4 = vpack.c.bf16 %v2312_v52, %v2313_v53  ;;  %v2279_v6 = vrot.slane %v13772_v58, 1  ;;  %v13817_v52 = vld [vmem:[%s13544_s1 + $0xb0] sm:$0xff] }
 0x135   : > { %11276 = vmatmul.mubr.bf16.vlgmr.msra.gmra.mrb[0].mxu1 %v2364_v31  ;;  %v2365_v31 = vpack.c.bf16 %v2224_v22, %v2234_v7  ;;  %v2278_v41 = vrot.slane %v13751_v19, 1  ;;  %v1726_v37 = vand.u32 31, %v1576_v21  ;;  %v2175_v22 = vrot.slane %v13687_v47, 7 }
 0x136   : > { %11279 = vmatprep.mubr.bf16.mxu1 %v2367_v35  ;;  %v2277_v35 = vrot.slane %v13739_v13, 1  ;;  %v2281_v30 = vrot.slane %v13785_v62, 1  ;;  %v2177_v53 = vrot.slane %v13705_v56, 7 }
 0x137   : > { %vm2088_vm11 = vcmp.ne.s32.totalorder %v1726_v37, 31  ;;  %v1754_v37 = vand.u32 31, %v1580_v0 }
 0x138   : > { %v2310_v5 = vsel %vm2294_vm0, %v2277_v35, %v2278_v41 }
 0x139   : > { %v2342_v25 = vmul.f32 %v13744_v14, %v2310_v5  ;;  %v13834_v5 = vsel %vm2088_vm11, 1.0, %v16824_v39  ;;  %vm2092_vm12 = vcmp.ne.s32.totalorder %v1754_v37, 31 }
 0x13b   : > { %2647 = vmatmul.mubr.bf16.gmra.mrb[4].mxu0 %v2362_v61  ;;  %v2222_v61 = vsel %vm2197_vm1, %v2171_v27, %v2172_v29  ;;  %v2311_v27 = vsel %vm2294_vm0, %v2276_v26, %v2277_v35  ;;  %v13822_v26 = vld [vmem:[%s13544_s1 + $0xa8] sm:$0xff]  ;;  %v13825_v35 = vld [vmem:[%s13544_s1 + $0xb8] sm:$0xff] }
 0x13c   : > { %2654 = vmatprep.mubr.bf16.mxu0 %v2366_v3  ;;  %v2173_v3 = vrot.slane %v13640_v9, 7  ;;  %v2176_v9 = vrot.slane %v13702_v54, 7 }
 0x13d   : > { %11280 = vmatmul.mubr.bf16.gmra.mrb[4].mxu1 %v2370_v11  ;;  %v2280_v11 = vrot.slane %v13775_v44, 1 }
 0x13e   : > { %11283 = vmatprep.mubr.bf16.mxu1 %v2373_v16  ;;  %v2368_v16 = vpack.c.bf16 %v2222_v61, %v2223_v2  ;;  %v2221_v21 = vsel %vm2197_vm1, %v2172_v29, %v2173_v3  ;;  %v2382_v2 = vpack.c.bf16 %v2342_v25, %v2311_v27  ;;  %v2283_v25 = vrot.slane %v13822_v26, 1 }
 0x13f   : > { %v2308_v33 = vsel %vm2294_vm0, %v2279_v6, %v2280_v11  ;;  %v2238_v61 = vmul.f32 %v13684_v46, %v2221_v21  ;;  %v2220_v21 = vsel %vm2197_vm1, %v2173_v3, %v2174_v55  ;;  %v2284_v27 = vrot.slane %v13817_v52, 1 }
 0x140   : > { %v2286_v3 = vrot.slane %v13828_v59, 1 }
 0x143   : > { %2655 = vmatmul.mubr.bf16.gmra.mrb[8].mxu0 %v2365_v31  ;;  %v2282_v31 = vrot.slane %v13788_v63, 1 }
 0x144   : > { %2662 = vmatprep.mubr.bf16.mxu0 %v2369_v51  ;;  %v2309_v51 = vsel %vm2294_vm0, %v2278_v41, %v2279_v6  ;;  %v2304_v41 = vsel %vm2294_vm0, %v2283_v25, %v2284_v27 }
 0x145   : > { %11284 = vmatmul.mubr.bf16.gmra.mrb[8].mxu1 %v2376_v8  ;;  %v2306_v6 = vsel %vm2294_vm0, %v2281_v30, %v2282_v31  ;;  %v2371_v8 = vpack.c.bf16 %v2220_v21, %v2238_v61  ;;  %v2305_v61 = vsel %vm2294_vm0, %v2282_v31, %v2283_v25  ;;  %v13865_v21 = vld [vmem:[%s13544_s1 + $0xd0] sm:$0xff]  ;;  %v1581_v31 = vadd.s32 192, %v13502_v10  ;;  %v13885_v25 = vld [vmem:[%s13544_s1 + $0xe0] sm:$0xff] }
 0x146   : > { %11287 = vmatprep.mubr.bf16.mxu1 %v2379_v4  ;;  %v2385_v4 = vpack.c.bf16 %v2308_v33, %v2309_v51  ;;  %v1733_v33 = vand.u32 31, %v13778_v60  ;;  %v2375_v51 = vpack.c.bf16 %v13702_v54, %v13687_v47  ;;  %v2346_v0 = vmul.f32 %v13834_v5, %v2306_v6 }
 0x147   : > { %v2307_v60 = vsel %vm2294_vm0, %v2280_v11, %v2281_v30  ;;  %v13875_v11 = vld [vmem:[%s13544_s1 + $0xd8] sm:$0xff]  ;;  %v1584_v30 = vadd.s32 216, %v13502_v10  ;;  %v13879_v6 = vsel %vm2092_vm12, 1.0, %v16824_v39  ;;  %v2391_v48 = vpack.c.bf16 %v2304_v41, %v2305_v61 }
 0x148   : > { %vm13867_vm13 = vcmp.ne.s32.totalorder %v1733_v33, 0  ;;  %v2388_v37 = vpack.c.bf16 %v2346_v0, %v2307_v60  ;;  %v2378_v33 = vpack.c.bf16 %v13736_v12, %v13705_v56  ;;  %v2218_v0 = vsel %vm2197_vm1, %v2175_v22, %v2176_v9 }
 0x149   : > { %v1782_v29 = vand.u32 31, %v1584_v30  ;;  %v2288_v41 = vrot.slane %v13865_v21, 1  ;;  %v13908_v61 = vsel %vm13867_vm13, 1.0, %v16824_v39  ;;  %v2185_v47 = vrot.slane %v13788_v63, 7 }
 0x14a   : > { %v1761_v30 = vand.u32 31, %v1581_v31  ;;  %v2289_v7 = vrot.slane %v13875_v11, 1  ;;  %v2290_v54 = vrot.slane %v13885_v25, 1 }
 0x14b   : > { %2663 = vmatmul.mubr.bf16.gmra.mrb[12].mxu0 %v2368_v16  ;;  %v13854_v16 = vsel %vm13797_vm10, 1.0, %v16824_v39  ;;  %vm2096_vm14 = vcmp.ne.s32.totalorder %v1782_v29, 31 }
 0x14c   : > { %2670 = vmatprep.mubr.bf16.mxu0 %v2372_v17  ;;  %v2285_v17 = vrot.slane %v13825_v35, 1  ;;  %vm1997_vm15 = vcmp.ne.s32.totalorder %v1761_v30, 0 }
 0x14d   : > { %11288 = vmatmul.mubr.bf16.gmra.mrb[12].mxu1 %v2382_v2 }
 0x14e   : > { %11291 = vmatprep.mubr.bf16.mxu1 %v2385_v4  ;;  %v13872_v4 = vld [vmem:[%s13544_s1 + $0xc8] sm:$0xff]  ;;  %v2302_v2 = vsel %vm2294_vm0, %v2285_v17, %v2286_v3 }
 0x14f   : > { %v2287_v60 = vrot.slane %v13872_v4, 1  ;;  %v2350_v43 = vmul.f32 %v13879_v6, %v2302_v2  ;;  %v2216_v2 = vsel %vm2197_vm1, %v2177_v53, %v16945_v45 }
 0x151   : > { %v2300_v31 = vsel %vm2294_vm0, %v2287_v60, %v2288_v41  ;;  %v2301_v56 = vsel %vm2294_vm0, %v2286_v3, %v2287_v60  ;;  %v2298_v3 = vsel %vm2294_vm0, %v2289_v7, %v2290_v54  ;;  %v16948_v60 = vrot.slane %v13739_v13, 7 }
 0x153   : > { %2671 = vmatmul.mubr.bf16.gmra.mrb[16].mxu0 %v2371_v8  ;;  %v2219_v8 = vsel %vm2197_vm1, %v2174_v55, %v2175_v22  ;;  %v2217_v55 = vsel %vm2197_vm1, %v2176_v9, %v2177_v53  ;;  %v2303_v22 = vsel %vm2294_vm0, %v2284_v27, %v2285_v17  ;;  %v13929_v9 = vld [vmem:[%s13544_s1 + $0xe8] sm:$0xff]  ;;  %v1588_v27 = vadd.s32 248, %v13502_v10 }
 0x154   : > { %2678 = vmatprep.mubr.bf16.mxu0 %v2375_v51  ;;  %v2374_v51 = vpack.c.bf16 %v2218_v0, %v2219_v8  ;;  %v2242_v45 = vmul.f32 %v13710_v57, %v2217_v55  ;;  %v13944_v0 = vsel %vm2096_vm14, 1.0, %v16824_v39  ;;  %v2291_v8 = vrot.slane %v13929_v9, 1 }
 0x155   : > { %11292 = vmatmul.mubr.bf16.gmra.mrb[16].mxu1 %v2388_v37  ;;  %v13932_v37 = vld [vmem:[%s13544_s1 + $0xf0] sm:$0xff]  ;;  %v2397_v17 = vpack.c.bf16 %v2300_v31, %v2301_v56  ;;  %v1810_v55 = vand.u32 31, %v1588_v27  ;;  %v16823_v30 = vrot.slane %v13929_v9, 7  ;;  %v13956_v53 = vsel %vm1997_vm15, 1.0, %v16824_v39  ;;  %s17095_s1 = sld [smem:[#allocation27_spill]] }
 0x156   : > { %11295 = vmatprep.mubr.bf16.mxu1 %v2391_v48  ;;  %v2394_v48 = vpack.c.bf16 %v2350_v43, %v2303_v22  ;;  %v2292_v43 = vrot.slane %v13932_v37, 1  ;;  %v2377_v22 = vpack.c.bf16 %v2216_v2, %v2242_v45  ;;  %v2195_v29 = vrot.slane %v13932_v37, 7 }
 0x157   : > { %v2354_v31 = vmul.f32 %v13944_v0, %v2298_v3  ;;  %vm2100_vm2 = vcmp.ne.s32.totalorder %v1810_v55, 31  ;;  %v2293_v2 = vrot.slane %v13562_v38, 1  ;;  %v16946_v27 = vrot.slane %v13562_v38, 7 }
 0x158   : > { %v2297_v45 = vsel %vm2294_vm0, %v2290_v54, %v2291_v8 }
 0x159   : > { %v13969_v56 = vsel %vm2197_vm1, %v2195_v29, %v16946_v27  ;;  %v16947_v27 = vrot.slane %v13556_v36, 1 }
 0x15b   : > { %2679 = vmatmul.mubr.bf16.gmra.mrb[20].mxu0 %v2374_v51  ;;  %v2299_v51 = vsel %vm2294_vm0, %v2288_v41, %v2289_v7  ;;  %v13975_v41 = vsel %vm2197_vm1, %v16823_v30, %v2195_v29  ;;  %v2381_v7 = vpack.c.bf16 %v13739_v13, %v13725_v1  ;;  %v2326_v29 = vsel %vm2294_vm0, %v2293_v2, %v16947_v27 }
 0x15c   : > { %2686 = vmatprep.mubr.bf16.mxu0 %v2378_v33  ;;  %v13962_v33 = vsel %vm2100_vm2, 1.0, %v16824_v39  ;;  %v2400_v3 = vpack.c.bf16 %v2354_v31, %v2299_v51  ;;  %v16949_v30 = vrot.slane %v13725_v1, 7  ;;  %v2295_v31 = vsel %vm2294_vm0, %v2292_v43, %v2293_v2 }
 0x15d   : > { %11296 = vmatmul.mubr.bf16.gmra.mrb[20].mxu1 %v2394_v48  ;;  %v2404_v48 = vpack.c.bf16 %v13969_v56, %v13975_v41  ;;  %v2358_v36 = vmul.f32 %v13962_v33, %v2326_v29  ;;  %v16953_v1 = vrot.slane %v13739_v13, 7  ;;  %v2387_v13 = vpack.c.bf16 %v13785_v62, %v13775_v44  ;;  %v12602_v56 = vld [vmem:[%s13116_s17 + $0x18] sm:$0xff]   ;;  %v12603_v41 = vld [vmem:[%s13116_s17 + $0x60] sm:$0xff]  }
 0x15e   : > { %11299 = vmatprep.mubr.bf16.mxu1 %v2397_v17  ;;  %v2296_v17 = vsel %vm2294_vm0, %v2291_v8, %v2292_v43  ;;  %v2214_v39 = vsel %vm2197_vm1, %v16949_v30, %v16948_v60  ;;  %v16950_v54 = vmov %v16949_v30  ;;  %v16951_v8 = vrot.slane %v13736_v12, 7 }
 0x15f   : > { %v2403_v55 = vpack.c.bf16 %v2296_v17, %v2297_v45  ;;  %v16952_v60 = vrot.slane %v13751_v19, 7  ;;  %v2406_v30 = vpack.c.bf16 %v2358_v36, %v2295_v31 }
 0x161   : > { %v2213_v12 = vsel %vm2197_vm1, %v16953_v1, %v16952_v60  ;;  %v16955_v45 = vmov %v16952_v60  ;;  %v2393_v60 = vpack.c.bf16 %v13825_v35, %v13817_v52  ;;  %v16963_v1 = vrot.slane %v13817_v52, 7 }
 0x162   : > { %v2246_v17 = vmul.f32 %v13854_v16, %v2213_v12 }
 0x163   : > { %2687 = vmatmul.mubr.bf16.gmra.mrb[24].mxu0 %v2377_v22  ;;  %v2215_v22 = vsel %vm2197_vm1, %v16951_v8, %v16950_v54 }
 0x164   : > { %2694 = vmatprep.mubr.bf16.mxu0 %v2381_v7  ;;  %v2380_v51 = vpack.c.bf16 %v2214_v39, %v2215_v22  ;;  %v2384_v7 = vpack.c.bf16 %v13772_v58, %v13751_v19  ;;  %v16954_v39 = vrot.slane %v13772_v58, 7  ;;  %v2390_v22 = vpack.c.bf16 %v13822_v26, %v13788_v63 }
 0x165   : > { %11300 = vmatmul.mubr.bf16.gmra.mrb[24].mxu1 %v2400_v3  ;;  %v16956_v3 = vrot.slane %v13785_v62, 7  ;;  %v16961_v58 = vrot.slane %v13822_v26, 7  ;;  %v16962_v62 = vrot.slane %v13825_v35, 7  ;;  %v2192_v26 = vrot.slane %v13875_v11, 7 }
 0x166   : > { %11303 = vmatprep.mubr.bf16.mxu1 %v2403_v55  ;;  %v2212_v43 = vsel %vm2197_vm1, %v16955_v45, %v16954_v39  ;;  %v16957_v55 = vrot.slane %v13775_v44, 7  ;;  %v16959_v19 = vmov %v16954_v39  ;;  %v12587_v39 = vld [vmem:[%s13116_s17 + $0x80] sm:$0xff]  }
 0x167   : > { %v2383_v2 = vpack.c.bf16 %v2212_v43, %v2246_v17  ;;  %v16960_v36 = vmov %v16956_v3  ;;  %v2208_v31 = vsel %vm2197_vm1, %v2185_v47, %v16961_v58  ;;  %v2206_v12 = vsel %vm2197_vm1, %v16963_v1, %v16962_v62  ;;  %11307 = vmatprep.subr.bf16.mxu0 %v12587_v39 }
 0x168   : > { %v2210_v27 = vsel %vm2197_vm1, %v16957_v55, %v16956_v3  ;;  %v16958_v29 = vmov %v16957_v55  ;;  %v16965_v63 = vmov %v16961_v58  ;;  %v2191_v17 = vrot.slane %v13865_v21, 7  ;;  %11308 = vmatpush3.bf16.msra.mxu0 %v12587_v39 }
 0x169   : > { %v2211_v54 = vsel %vm2197_vm1, %v16959_v19, %v16958_v29  ;;  %v2396_v43 = vpack.c.bf16 %v13872_v4, %v13828_v59  ;;  %v1585_v3 = vadd.s32 224, %v13502_v10  ;;  %v2193_v55 = vrot.slane %v13885_v25, 7 }
 0x16a   : > { %v2386_v8 = vpack.c.bf16 %v2210_v27, %v2211_v54  ;;  %v12588_v27 = vld [vmem:[%s13116_s17 + $0x88] sm:$0xff]   ;;  %v16968_v19 = vrot.slane %v13872_v4, 7  ;;  %v16973_v39 = vpack.c.bf16 %v13562_v38, %v13932_v37  ;;  %v12599_v38 = vld [vmem:[%s13116_s17 + $0x50] sm:$0xff]  }
 0x16b   : > { %2695 = vmatmul.mubr.bf16.gmra.mrb[28].mxu0 %v2380_v51  ;;  %v2209_v51 = vsel %vm2197_vm1, %v16960_v36, %v2185_v47  ;;  %11309 = vmatprep.subr.bf16.mxu0 %v12588_v27  ;;  %v12592_v4 = vld [vmem:[%s13116_s17 + $0xa8] sm:$0xff]   ;;  %v12600_v37 = vld [vmem:[%s13116_s17 + $0x10] sm:$0xff]  }
 0x16c   : > { %2702 = vmatprep.mubr.bf16.mxu0 %v2384_v7  ;;  %v2250_v44 = vmul.f32 %v13908_v61, %v2209_v51  ;;  %11310 = vmatpush3.bf16.msra.mxu0 %v12588_v27  ;;  %v2399_v51 = vpack.c.bf16 %v13875_v11, %v13865_v21  ;;  %v16970_v58 = vmov %v16968_v19  ;;  %v12591_v21 = vld [vmem:[%s13116_s17 + $0xa0] sm:$0xff]  }
 0x16d   : > { %11304 = vmatmul.mubr.bf16.gmra.mrb[28].mxu1 %v2406_v30  ;;  %v16964_v30 = vmov %v16963_v1  ;;  %v2201_v1 = vsel %vm2197_vm1, %v2192_v26, %v2193_v55  ;;  %v14128_v27 = vld [vmem:[%s13111_s13] ss:$0 sm:$0xff] }
 0x16e   : > { %v2389_v7 = vpack.c.bf16 %v2208_v31, %v2250_v44  ;;  %v2207_v47 = vsel %vm2197_vm1, %v16965_v63, %v16964_v30  ;;  %v12590_v44 = vld [vmem:[%s13116_s17 + $0x98] sm:$0xff]   ;;  %v2203_v31 = vsel %vm2197_vm1, %v16970_v58, %v2191_v17  ;;  %v16972_v30 = vrot.slane %v13929_v9, 7 }
 0x16f   : > { %v2392_v45 = vpack.c.bf16 %v2206_v12, %v2207_v47 }
 0x170   : > { %v2200_v63 = vsel %vm2197_vm1, %v2193_v55, %v16972_v30 }
 0x173   : > { %2703 = vmatmul.mubr.bf16.gmra.mrb[32].mxu0 %v2383_v2  ;;  %v16966_v2 = vrot.slane %v13828_v59, 7  ;;  %v2202_v59 = vsel %vm2197_vm1, %v2191_v17, %v2192_v26  ;;  %v12594_v17 = vld [vmem:[%s13116_s17 + $0xb8] sm:$0xff]   ;;  %v12606_v26 = vld [vmem:[%s13116_s17 + $0x28] sm:$0xff]  }
 0x174   : > { %2710 = vmatprep.mubr.bf16.mxu0 %v2387_v13  ;;  %v16967_v13 = vmov %v16962_v62  ;;  %v2398_v11 = vpack.c.bf16 %v2202_v59, %v2203_v31  ;;  %v2402_v62 = vpack.c.bf16 %v13929_v9, %v13885_v25  ;;  %v12593_v25 = vld [vmem:[%s13116_s17 + $0xb0] sm:$0xff]   ;;  %v12595_v9 = vld [vmem:[%s13116_s17 + $0x40] sm:$0xff]  }
 0x175   : > { %v2205_v52 = vsel %vm2197_vm1, %v16967_v13, %v16966_v2  ;;  %v16969_v35 = vmov %v16966_v2  ;;  %10519 = vmatprep.subr.bf16.mxu1 %v12595_v9  ;;  %v12598_v2 = vld [vmem:[%s13116_s17 + $0x8] sm:$0xff]   ;;  %v12601_v13 = vld [vmem:[%s13116_s17 + $0x58] sm:$0xff]  }
 0x176   : > { %v2254_v29 = vmul.f32 %v13956_v53, %v2205_v52  ;;  %v2204_v54 = vsel %vm2197_vm1, %v16969_v35, %v16968_v19  ;;  %v12605_v52 = vld [vmem:[%s13116_s17 + $0x68] sm:$0xff]   ;;  %v12607_v35 = vld [vmem:[%s13116_s17 + $0x70] sm:$0xff]  }
 0x178   : > { %v2395_v36 = vpack.c.bf16 %v2204_v54, %v2254_v29 }
 0x17b   : > { %2711 = vmatmul.mubr.bf16.gmra.mrb[36].mxu0 %v2386_v8  ;;  %v1789_v8 = vand.u32 31, %v1585_v3 }
 0x17c   : > { %2718 = vmatprep.mubr.bf16.mxu0 %v2390_v22  ;;  %v12589_v22 = vld [vmem:[%s13116_s17 + $0x90] sm:$0xff]  }
 0x17d   : > { %11311 = vmatprep.subr.bf16.mxu0 %v12589_v22  ;;  %vm2001_vm3 = vcmp.ne.s32.totalorder %v1789_v8, 0 }
 0x17e   : > { %11312 = vmatpush3.bf16.msra.mxu0 %v12589_v22  ;;  %v12608_v22 = vld [vmem:[%s13116_s17 + $0x30] sm:$0xff]  }
 0x17f   : > { %11313 = vmatprep.subr.bf16.mxu0 %v12590_v44 }
 0x182   : > { %11314 = vmatpush3.bf16.msra.mxu0 %v12590_v44 }
 0x183   : > { %2719 = vmatmul.mubr.bf16.gmra.mrb[40].mxu0 %v2389_v7  ;;  %v16971_v7 = vmov 0.0   ;;  %11315 = vmatprep.subr.bf16.mxu0 %v12591_v21 }
 0x184   : > { %2726 = vmatprep.mubr.bf16.mxu0 %v2393_v60  ;;  %v14094_v60 = vsel %vm2001_vm3, 1.0, %v16971_v7 }
 0x185   : > { %v2258_v12 = vmul.f32 %v14094_v60, %v2201_v1 }
 0x186   : > { %11316 = vmatpush3.bf16.msra.mxu0 %v12591_v21 }
 0x187   : > { %11317 = vmatprep.subr.bf16.mxu0 %v12592_v4  ;;  %v2401_v47 = vpack.c.bf16 %v2200_v63, %v2258_v12 }
 0x18a   : > { %11318 = vmatpush3.bf16.msra.mxu0 %v12592_v4 }
 0x18b   : > { %2727 = vmatmul.mubr.bf16.gmra.mrb[44].mxu0 %v2392_v45  ;;  %11319 = vmatprep.subr.bf16.mxu0 %v12593_v25  ;;  %v12596_v45 = vld [vmem:[%s13116_s17] sm:$0xff]  }
 0x18c   : > { %2734 = vmatprep.mubr.bf16.mxu0 %v2396_v43  ;;  %10520 = vmatpush3.bf16.msra.mxu1 %v12596_v45  ;;  %v12597_v43 = vld [vmem:[%s13116_s17 + $0x48] sm:$0xff]  }
 0x18d   : > { %10521 = vmatprep.subr.bf16.mxu1 %v12597_v43 }
 0x18e   : > { %11320 = vmatpush3.bf16.msra.mxu0 %v12593_v25 }
 0x18f   : > { %11321 = vmatprep.subr.bf16.mxu0 %v12594_v17 }
 0x190   : > { %10522 = vmatpush3.bf16.msra.mxu1 %v12598_v2 }
 0x191   : > { %10523 = vmatprep.subr.bf16.mxu1 %v12599_v38 }
 0x192   : > { %11322 = vmatpush3.bf16.msra.mxu0 %v12594_v17 }
 0x193   : > { %2735 = vmatmul.mubr.bf16.gmra.mrb[48].mxu0 %v2395_v36 }
 0x194   : > { %2742 = vmatprep.mubr.bf16.mxu0 %v2399_v51  ;;  %10524 = vmatpush3.bf16.msra.mxu1 %v12600_v37 }
 0x195   : > { %10525 = vmatprep.subr.bf16.mxu1 %v12601_v13 }
 0x198   : > { %10526 = vmatpush3.bf16.msra.mxu1 %v12602_v56 }
 0x199   : > { %10527 = vmatprep.subr.bf16.mxu1 %v12603_v41 }
 0x19b   : > { %2743 = vmatmul.mubr.bf16.gmra.mrb[52].mxu0 %v2398_v11  ;;  %v12609_v11 = vld [vmem:[%s13116_s17 + $0x78] sm:$0xff]  }
 0x19c   : > { %2750 = vmatprep.mubr.bf16.mxu0 %v2402_v62  ;;  %v12610_v62 = vld [vmem:[%s13116_s17 + $0x38] sm:$0xff]  }
 0x1a3   : > { %2751 = vmatmul.mubr.bf16.gmra.mrb[56].mxu0 %v2401_v47 }
 0x1a4   : > { %2758 = vmatprep.mubr.bf16.mxu0 %v16973_v39 }
 0x1ab   : > { %2759 = vmatmul.mubr.bf16.gmra.mrb[60].mxu0 %v2404_v48  ;;  %v12604_v48 = vld [vmem:[%s13116_s17 + $0x20] sm:$0xff]  }
 0x1ac   : > { %10528 = vmatpush3.bf16.msra.mxu1 %v12604_v48 }
 0x1ad   : > { %10529 = vmatprep.subr.bf16.mxu1 %v12605_v52 }
 0x1b0   : > { %10530 = vmatpush3.bf16.msra.mxu1 %v12606_v26 }
 0x1b1   : > { %10531 = vmatprep.subr.bf16.mxu1 %v12607_v35 }
 0x1b4   : > { %10532 = vmatpush3.bf16.msra.mxu1 %v12608_v22 }
 0x1b5   : > { %10533 = vmatprep.subr.bf16.mxu1 %v12609_v11 }
 0x1b8   : > { %10534 = vmatpush3.bf16.msra.mxu1 %v12610_v62 }
 0x206   : > { %v10399_v3 = vpop.f32.mrb[0].mxu0 }
 0x207   : > { %v10400_v55 = vpop.f32.mrb[1].mxu0 }
 0x208   : > { %v10401_v29 = vadd.f32 %v10400_v55, %v10399_v3  ;;  %v10402_v19 = vpop.f32.mrb[2].mxu0  ;;  %v11277_v8 = vpop.f32.mrb[0].mxu1 }
 0x209   : > { %v10403_v54 = vpop.f32.mrb[3].mxu0  ;;  %v2801_v44 = vpop.f32.mrb[1].mxu1 }
 0x20a   : > { %v10404_v36 = vadd.f32 %v10403_v54, %v10402_v19  ;;  %v2641_v51 = vadd.f32 %v10401_v29, %v14128_v27  ;;  %v11278_v59 = vpop.f32.mrb[2].mxu1 }
 0x20b   : > { %v2804_v21 = vpop.f32.mrb[3].mxu1 }
 0x20c   : > { %v2802_v58 = vadd.f32 %v2801_v44, %v2641_v51  ;;  %v2644_v31 = vadd.f32 %v10404_v36, %v14128_v27 }
 0x20e   : > { %v14136_v1 = vmax.f32 %v2802_v58, 0.0  ;;  %v2805_v4 = vadd.f32 %v2804_v21, %v2644_v31  ;;  %v10405_v12 = vpop.f32.mrb[4].mxu0 }
 0x20f   : > { %v10406_v30 = vpop.f32.mrb[5].mxu0 }
 0x210   : > { %v2929_v63 = vmax.f32 %v2805_v4, 0.0  ;;  %v10407_v25 = vadd.f32 %v10406_v30, %v10405_v12  ;;  %v10408_v47 = vpop.f32.mrb[6].mxu0  ;;  %v14138_v39 = vpop.f32.mrb[4].mxu1  ;;  %v16827_v9 = vrot.slane %v14136_v1, 7  ;;  %v16826_v19 = vrot.slane %v14136_v1, 1 }
 0x211   : > { %v10409_v17 = vpop.f32.mrb[7].mxu0  ;;  %v2817_v38 = vpop.f32.mrb[5].mxu1 }
 0x212   : > { %v2961_v45 = vrot.slane %v2929_v63, 7  ;;  %v2649_v43 = vadd.f32 %v10407_v25, %v14128_v27  ;;  %v10410_v2 = vadd.f32 %v10409_v17, %v10408_v47  ;;  %v3153_v37 = vpack.c.bf16 %v2929_v63, %v14136_v1  ;;  %v14143_v13 = vpop.f32.mrb[6].mxu1 }
 0x213   : > { %v2820_v52 = vpop.f32.mrb[7].mxu1  ;;  %v3057_v26 = vrot.slane %v2929_v63, 1 }
 0x214   : > { %v14149_v56 = vsel %vm2197_vm1, %v16827_v9, %v2961_v45  ;;  %v2810_v41 = vadd.f32 %v11277_v8, %v2649_v43  ;;  %v2652_v48 = vadd.f32 %v10410_v2, %v14128_v27  ;;  %3431 = vmatprep.mubr.bf16.mxu1 %v3153_v37 }
 0x215   : > { %v3118_v58 = vsel %vm2294_vm0, %v16826_v19, %v3057_v26 }
 0x216   : > { %v14152_v3 = vmax.f32 %v2810_v41, 0.0  ;;  %v2813_v55 = vadd.f32 %v11278_v59, %v2652_v48  ;;  %v10411_v29 = vpop.f32.mrb[8].mxu0 }
 0x217   : > { %v10412_v35 = vpop.f32.mrb[9].mxu0 }
 0x218   : > { %v14155_v54 = vmax.f32 %v2813_v55, 0.0  ;;  %v10413_v22 = vadd.f32 %v10412_v35, %v10411_v29  ;;  %v10414_v36 = vpop.f32.mrb[10].mxu0  ;;  %v3058_v51 = vrot.slane %v14152_v3, 1  ;;  %v2962_v8 = vrot.slane %v14152_v3, 7  ;;  %v14163_v31 = vpop.f32.mrb[8].mxu1 }
 0x219   : > { %v10415_v44 = vpop.f32.mrb[11].mxu0  ;;  %v14169_v4 = vpop.f32.mrb[9].mxu1 }
 0x21a   : > { %v3059_v59 = vrot.slane %v14155_v54, 1  ;;  %v10416_v21 = vadd.f32 %v10415_v44, %v10414_v36  ;;  %v2657_v11 = vadd.f32 %v10413_v22, %v14128_v27  ;;  %v3117_v62 = vsel %vm2294_vm0, %v3057_v26, %v3058_v51  ;;  %v14171_v30 = vpop.f32.mrb[10].mxu1 }
 0x21b   : > { %v3154_v12 = vpack.c.bf16 %v3117_v62, %v3118_v58  ;;  %v2963_v25 = vrot.slane %v14155_v54, 7  ;;  %v14178_v47 = vsel %vm2197_vm1, %v2961_v45, %v2962_v8  ;;  %v2836_v37 = vpop.f32.mrb[11].mxu1 }
 0x21c   : > { %v2818_v17 = vadd.f32 %v2817_v38, %v2657_v11  ;;  %v2660_v43 = vadd.f32 %v10416_v21, %v14128_v27  ;;  %v3116_v2 = vsel %vm2294_vm0, %v3058_v51, %v3059_v59 }
 0x21d   : > { %11323 = vmatprep.mubr.bf16.mxu0 %v3154_v12  ;;  %v14185_v41 = vsel %vm2197_vm1, %v2962_v8, %v2963_v25 }
 0x21e   : > { %v14187_v48 = vmax.f32 %v2818_v17, 0.0  ;;  %v2821_v26 = vadd.f32 %v2820_v52, %v2660_v43  ;;  %v10417_v55 = vpop.f32.mrb[12].mxu0 }
 0x21f   : > { %v10418_v29 = vpop.f32.mrb[13].mxu0 }
 0x220   : > { %v2964_v38 = vrot.slane %v14187_v48, 7  ;;  %v3060_v35 = vrot.slane %v14187_v48, 1  ;;  %v14193_v22 = vmax.f32 %v2821_v26, 0.0  ;;  %v10419_v36 = vadd.f32 %v10418_v29, %v10417_v55  ;;  %v10420_v51 = vpop.f32.mrb[14].mxu0  ;;  %v14195_v58 = vpop.f32.mrb[12].mxu1 }
 0x221   : > { %v10421_v44 = vpop.f32.mrb[15].mxu0  ;;  %v14202_v62 = vpop.f32.mrb[13].mxu1 }
 0x222   : > { %v3115_v8 = vsel %vm2294_vm0, %v3059_v59, %v3060_v35  ;;  %v2965_v52 = vrot.slane %v14193_v22, 7  ;;  %v3061_v21 = vrot.slane %v14193_v22, 1  ;;  %v2665_v11 = vadd.f32 %v10419_v36, %v14128_v27  ;;  %v14205_v43 = vpop.f32.mrb[14].mxu1 }
 0x223   : > { %v3123_v12 = vmul.f32 %v13586_v50, %v3115_v8  ;;  %v10422_v17 = vadd.f32 %v10421_v44, %v10420_v51  ;;  %v3019_v55 = vsel %vm2197_vm1, %v2963_v25, %v2964_v38  ;;  %v14214_v45 = vpop.f32.mrb[15].mxu1 }
 0x224   : > { %v2826_v59 = vadd.f32 %v14138_v39, %v2665_v11  ;;  %v3114_v29 = vsel %vm2294_vm0, %v3060_v35, %v3061_v21  ;;  %v14218_v36 = vsel %vm2197_vm1, %v2964_v38, %v2965_v52  ;;  %v14221_v50 = vmul.f32 %v13667_v32, %v3019_v55 }
 0x225   : > { %v2668_v51 = vadd.f32 %v10422_v17, %v14128_v27  ;;  %v3157_v44 = vpack.c.bf16 %v3123_v12, %v3116_v2 }
 0x226   : > { %v14224_v8 = vmax.f32 %v2826_v59, 0.0  ;;  %v10423_v25 = vpop.f32.mrb[16].mxu0 }
 0x227   : > { %v2829_v35 = vadd.f32 %v14143_v13, %v2668_v51  ;;  %v10424_v11 = vpop.f32.mrb[17].mxu0  ;;  %11324 = vmatmul.mubr.bf16.vlgmr.msra.gmra.mrb[64].mxu0 %v3157_v44 }
 0x228   : > { %v10425_v26 = vadd.f32 %v10424_v11, %v10423_v25  ;;  %v10426_v63 = vpop.f32.mrb[18].mxu0  ;;  %v3062_v38 = vrot.slane %v14224_v8, 1  ;;  %v2966_v32 = vrot.slane %v14224_v8, 7  ;;  %v14233_v2 = vpop.f32.mrb[16].mxu1 }
 0x229   : > { %v14231_v55 = vmax.f32 %v2829_v35, 0.0  ;;  %v10427_v17 = vpop.f32.mrb[19].mxu0  ;;  %v14238_v13 = vpop.f32.mrb[17].mxu1 }
 0x22a   : > { %v10428_v12 = vadd.f32 %v10427_v17, %v10426_v63  ;;  %v2673_v59 = vadd.f32 %v10425_v26, %v14128_v27  ;;  %v3113_v39 = vsel %vm2294_vm0, %v3061_v21, %v3062_v38  ;;  %v14242_v51 = vsel %vm2197_vm1, %v2965_v52, %v2966_v32  ;;  %v14245_v35 = vpop.f32.mrb[18].mxu1 }
 0x22b   : > { %16974 = vst [vmem:[#allocation55_spill] sm:$0xff] %v14242_v51  ;;  %v3160_v44 = vpack.c.bf16 %v3113_v39, %v3114_v29  ;;  %v3063_v25 = vrot.slane %v14231_v55, 1  ;;  %v2967_v63 = vrot.slane %v14231_v55, 7  ;;  %v14252_v17 = vpop.f32.mrb[19].mxu1 }
 0x22c   : > { %v2834_v26 = vadd.f32 %v14169_v4, %v2673_v59  ;;  %v2676_v21 = vadd.f32 %v10428_v12, %v14128_v27 }
 0x22d   : > { %11327 = vmatprep.mubr.bf16.mxu0 %v3160_v44  ;;  %v3112_v52 = vsel %vm2294_vm0, %v3062_v38, %v3063_v25  ;;  %v14258_v29 = vsel %vm2197_vm1, %v2966_v32, %v2967_v63 }
 0x22e   : > { %v14260_v39 = vmax.f32 %v2834_v26, 0.0  ;;  %v2837_v19 = vadd.f32 %v2836_v37, %v2676_v21  ;;  %v10429_v11 = vpop.f32.mrb[20].mxu0 }
 0x22f   : > { %v10430_v4 = vpop.f32.mrb[21].mxu0 }
 0x230   : > { %16975 = vst [vmem:[#allocation56_spill] sm:$0xff] %v14260_v39  ;;  %v2968_v12 = vrot.slane %v14260_v39, 7  ;;  %v3064_v59 = vrot.slane %v14260_v39, 1  ;;  %v14266_v44 = vmax.f32 %v2837_v19, 0.0  ;;  %v10431_v28 = vadd.f32 %v10430_v4, %v10429_v11  ;;  %v10432_v38 = vpop.f32.mrb[22].mxu0  ;;  %v14268_v18 = vpop.f32.mrb[20].mxu1 }
 0x231   : > { %v10433_v23 = vpop.f32.mrb[23].mxu0  ;;  %v14273_v9 = vpop.f32.mrb[21].mxu1 }
 0x232   : > { %16976 = vst [vmem:[#allocation57_spill] sm:$0xff] %v14266_v44  ;;  %v2969_v32 = vrot.slane %v14266_v44, 7  ;;  %v3065_v37 = vrot.slane %v14266_v44, 1  ;;  %v2681_v26 = vadd.f32 %v10431_v28, %v14128_v27  ;;  %v10434_v21 = vadd.f32 %v10433_v23, %v10432_v38  ;;  %v14277_v24 = vpop.f32.mrb[22].mxu1 }
 0x233   : > { %v3111_v42 = vsel %vm2294_vm0, %v3063_v25, %v3064_v59  ;;  %v3015_v11 = vsel %vm2197_vm1, %v2967_v63, %v2968_v12  ;;  %v14288_v38 = vpop.f32.mrb[23].mxu1 }
 0x234   : > { %v2842_v4 = vadd.f32 %v14163_v31, %v2681_v26  ;;  %v2684_v20 = vadd.f32 %v10434_v21, %v14128_v27  ;;  %v3127_v28 = vmul.f32 %v13674_v34, %v3111_v42  ;;  %v3110_v23 = vsel %vm2294_vm0, %v3064_v59, %v3065_v37 }
 0x235   : > { %v14292_v25 = vsel %vm2197_vm1, %v2968_v12, %v2969_v32  ;;  %v14295_v19 = vmul.f32 %v13684_v46, %v3015_v11 }
 0x236   : > { %16977 = vst [vmem:[#allocation58_spill] sm:$0xff] %v14292_v25  ;;  %v14297_v7 = vmax.f32 %v2842_v4, 0.0  ;;  %v2845_v31 = vadd.f32 %v14171_v30, %v2684_v20  ;;  %v10435_v63 = vpop.f32.mrb[24].mxu0  ;;  %v3163_v26 = vpack.c.bf16 %v3127_v28, %v3112_v52 }
 0x237   : > { %16978 = vst [vmem:[#allocation59_spill] sm:$0xff] %v14295_v19  ;;  %v10436_v21 = vpop.f32.mrb[25].mxu0 }
 0x238   : > { %16979 = vst [vmem:[#allocation60_spill] sm:$0xff] %v14297_v7  ;;  %v14302_v34 = vmax.f32 %v2845_v31, 0.0  ;;  %v10437_v59 = vadd.f32 %v10436_v21, %v10435_v63  ;;  %11328 = vmatmul.mubr.bf16.gmra.mrb[68].mxu0 %v3163_v26  ;;  %v10438_v15 = vpop.f32.mrb[26].mxu0  ;;  %v3066_v12 = vrot.slane %v14297_v7, 1  ;;  %v2970_v46 = vrot.slane %v14297_v7, 7  ;;  %v14306_v4 = vpop.f32.mrb[24].mxu1 }
 0x239   : > { %v10439_v11 = vpop.f32.mrb[27].mxu0  ;;  %v14312_v28 = vpop.f32.mrb[25].mxu1 }
 0x23a   : > { %16980 = vst [vmem:[#allocation61_spill] sm:$0xff] %v14302_v34  ;;  %v10440_v39 = vadd.f32 %v10439_v11, %v10438_v15  ;;  %v2689_v20 = vadd.f32 %v10437_v59, %v14128_v27  ;;  %v3109_v30 = vsel %vm2294_vm0, %v3065_v37, %v3066_v12  ;;  %v3067_v52 = vrot.slane %v14302_v34, 1  ;;  %v14314_v63 = vpop.f32.mrb[26].mxu1 }
 0x23b   : > { %v3166_v31 = vpack.c.bf16 %v3109_v30, %v3110_v23  ;;  %v2971_v21 = vrot.slane %v14302_v34, 7  ;;  %v14321_v15 = vsel %vm2197_vm1, %v2969_v32, %v2970_v46  ;;  %v14327_v42 = vpop.f32.mrb[27].mxu1 }
 0x23c   : > { %16981 = vst [vmem:[#allocation62_spill] sm:$0xff] %v14321_v15  ;;  %v2850_v59 = vadd.f32 %v14202_v62, %v2689_v20  ;;  %v2692_v37 = vadd.f32 %v10440_v39, %v14128_v27  ;;  %v3108_v11 = vsel %vm2294_vm0, %v3066_v12, %v3067_v52 }
 0x23d   : > { %11331 = vmatprep.mubr.bf16.mxu0 %v3166_v31  ;;  %v14331_v23 = vsel %vm2197_vm1, %v2970_v46, %v2971_v21 }
 0x23e   : > { %16982 = vst [vmem:[#allocation63_spill] sm:$0xff] %v14331_v23  ;;  %v14333_v30 = vmax.f32 %v2850_v59, 0.0  ;;  %v2853_v26 = vadd.f32 %v14214_v45, %v2692_v37  ;;  %v10441_v32 = vpop.f32.mrb[28].mxu0 }
 0x23f   : > { %v10442_v20 = vpop.f32.mrb[29].mxu0 }
 0x240   : > { %16983 = vst [vmem:[#allocation64_spill] sm:$0xff] %v14333_v30  ;;  %v2972_v39 = vrot.slane %v14333_v30, 7  ;;  %v3068_v12 = vrot.slane %v14333_v30, 1  ;;  %v14340_v7 = vmax.f32 %v2853_v26, 0.0  ;;  %v10443_v31 = vadd.f32 %v10442_v20, %v10441_v32  ;;  %v10444_v34 = vpop.f32.mrb[30].mxu0  ;;  %v14342_v46 = vpop.f32.mrb[28].mxu1 }
 0x241   : > { %v10445_v19 = vpop.f32.mrb[31].mxu0  ;;  %v14347_v62 = vpop.f32.mrb[29].mxu1 }
 0x242   : > { %16984 = vst [vmem:[#allocation65_spill] sm:$0xff] %v14340_v7  ;;  %v2973_v59 = vrot.slane %v14340_v7, 7  ;;  %v3069_v45 = vrot.slane %v14340_v7, 1  ;;  %v2697_v37 = vadd.f32 %v10443_v31, %v14128_v27  ;;  %v10446_v25 = vadd.f32 %v10445_v19, %v10444_v34  ;;  %v14351_v23 = vpop.f32.mrb[30].mxu1 }
 0x243   : > { %v3107_v15 = vsel %vm2294_vm0, %v3067_v52, %v3068_v12  ;;  %v3011_v32 = vsel %vm2197_vm1, %v2971_v21, %v2972_v39  ;;  %v14362_v34 = vpop.f32.mrb[31].mxu1 }
 0x244   : > { %v2858_v20 = vadd.f32 %v14195_v58, %v2697_v37  ;;  %v2700_v44 = vadd.f32 %v10446_v25, %v14128_v27  ;;  %v3131_v31 = vmul.f32 %v13692_v49, %v3107_v15  ;;  %v3106_v19 = vsel %vm2294_vm0, %v3068_v12, %v3069_v45 }
 0x245   : > { %v14366_v52 = vsel %vm2197_vm1, %v2972_v39, %v2973_v59  ;;  %v14369_v26 = vmul.f32 %v13710_v57, %v3011_v32 }
 0x246   : > { %v14371_v30 = vmax.f32 %v2858_v20, 0.0  ;;  %v2861_v58 = vadd.f32 %v14205_v43, %v2700_v44  ;;  %v10447_v21 = vpop.f32.mrb[32].mxu0  ;;  %v3169_v25 = vpack.c.bf16 %v3131_v31, %v3108_v11 }
 0x247   : > { %v10448_v37 = vpop.f32.mrb[33].mxu0 }
 0x248   : > { %v14376_v15 = vmax.f32 %v2861_v58, 0.0  ;;  %v10449_v12 = vadd.f32 %v10448_v37, %v10447_v21  ;;  %11332 = vmatmul.mubr.bf16.gmra.mrb[72].mxu0 %v3169_v25  ;;  %v10450_v7 = vpop.f32.mrb[34].mxu0  ;;  %v3070_v39 = vrot.slane %v14371_v30, 1  ;;  %v2974_v57 = vrot.slane %v14371_v30, 7 }
 0x249   : > { %v10451_v32 = vpop.f32.mrb[35].mxu0 }
 0x24a   : > { %v10452_v20 = vadd.f32 %v10451_v32, %v10450_v7  ;;  %v2705_v51 = vadd.f32 %v10449_v12, %v14128_v27  ;;  %v3105_v43 = vsel %vm2294_vm0, %v3069_v45, %v3070_v39  ;;  %v3071_v44 = vrot.slane %v14376_v15, 1 }
 0x24b   : > { %v3172_v11 = vpack.c.bf16 %v3105_v43, %v3106_v19  ;;  %v2975_v58 = vrot.slane %v14376_v15, 7  ;;  %v14389_v21 = vsel %vm2197_vm1, %v2973_v59, %v2974_v57 }
 0x24c   : > { %16985 = vst [vmem:[#allocation66_spill] sm:$0xff] %v14389_v21  ;;  %v2866_v25 = vadd.f32 %v14238_v13, %v2705_v51  ;;  %v2708_v7 = vadd.f32 %v10452_v20, %v14128_v27  ;;  %v3104_v37 = vsel %vm2294_vm0, %v3070_v39, %v3071_v44 }
 0x24d   : > { %11335 = vmatprep.mubr.bf16.mxu0 %v3172_v11  ;;  %v14397_v45 = vsel %vm2197_vm1, %v2974_v57, %v2975_v58 }
 0x24e   : > { %16986 = vst [vmem:[#allocation67_spill] sm:$0xff] %v14397_v45  ;;  %v14399_v19 = vmax.f32 %v2866_v25, 0.0  ;;  %v2869_v12 = vadd.f32 %v14252_v17, %v2708_v7  ;;  %v10453_v32 = vpop.f32.mrb[36].mxu0 }
 0x24f   : > { %v10454_v43 = vpop.f32.mrb[37].mxu0 }
 0x250   : > { %v2976_v13 = vrot.slane %v14399_v19, 7  ;;  %v3072_v51 = vrot.slane %v14399_v19, 1  ;;  %v14406_v20 = vmax.f32 %v2869_v12, 0.0  ;;  %v10455_v39 = vadd.f32 %v10454_v43, %v10453_v32  ;;  %v10456_v11 = vpop.f32.mrb[38].mxu0 }
 0x251   : > { %v10457_v31 = vpop.f32.mrb[39].mxu0 }
 0x252   : > { %v2977_v57 = vrot.slane %v14406_v20, 7  ;;  %v3073_v25 = vrot.slane %v14406_v20, 1  ;;  %v2713_v17 = vadd.f32 %v10455_v39, %v14128_v27  ;;  %v10458_v7 = vadd.f32 %v10457_v31, %v10456_v11 }
 0x253   : > { %v3103_v59 = vsel %vm2294_vm0, %v3071_v44, %v3072_v51  ;;  %v3007_v12 = vsel %vm2197_vm1, %v2975_v58, %v2976_v13 }
 0x254   : > { %v2874_v32 = vadd.f32 %v14233_v2, %v2713_v17  ;;  %v2716_v43 = vadd.f32 %v10458_v7, %v14128_v27  ;;  %v3135_v21 = vmul.f32 %v13744_v14, %v3103_v59  ;;  %v3102_v45 = vsel %vm2294_vm0, %v3072_v51, %v3073_v25 }
 0x255   : > { %v14424_v31 = vsel %vm2197_vm1, %v2976_v13, %v2977_v57  ;;  %v14427_v44 = vmul.f32 %v13854_v16, %v3007_v12 }
 0x256   : > { %v14429_v39 = vmax.f32 %v2874_v32, 0.0  ;;  %v2877_v58 = vadd.f32 %v14245_v35, %v2716_v43  ;;  %v10459_v11 = vpop.f32.mrb[40].mxu0  ;;  %v3175_v2 = vpack.c.bf16 %v3135_v21, %v3104_v37 }
 0x257   : > { %v10460_v17 = vpop.f32.mrb[41].mxu0 }
 0x258   : > { %v14434_v59 = vmax.f32 %v2877_v58, 0.0  ;;  %v10461_v51 = vadd.f32 %v10460_v17, %v10459_v11  ;;  %11336 = vmatmul.mubr.bf16.gmra.mrb[76].mxu0 %v3175_v2  ;;  %v10462_v7 = vpop.f32.mrb[42].mxu0  ;;  %v3074_v13 = vrot.slane %v14429_v39, 1  ;;  %v2978_v16 = vrot.slane %v14429_v39, 7 }
 0x259   : > { %v10463_v12 = vpop.f32.mrb[43].mxu0 }
 0x25a   : > { %v10464_v32 = vadd.f32 %v10463_v12, %v10462_v7  ;;  %v2721_v49 = vadd.f32 %v10461_v51, %v14128_v27  ;;  %v3101_v35 = vsel %vm2294_vm0, %v3073_v25, %v3074_v13  ;;  %v3075_v21 = vrot.slane %v14434_v59, 1 }
 0x25b   : > { %v3178_v37 = vpack.c.bf16 %v3101_v35, %v3102_v45  ;;  %v2979_v58 = vrot.slane %v14434_v59, 7  ;;  %v14447_v11 = vsel %vm2197_vm1, %v2977_v57, %v2978_v16 }
 0x25c   : > { %16987 = vst [vmem:[#allocation68_spill] sm:$0xff] %v14447_v11  ;;  %v2882_v2 = vadd.f32 %v14273_v9, %v2721_v49  ;;  %v2724_v17 = vadd.f32 %v10464_v32, %v14128_v27  ;;  %v3100_v51 = vsel %vm2294_vm0, %v3074_v13, %v3075_v21 }
 0x25d   : > { %11339 = vmatprep.mubr.bf16.mxu0 %v3178_v37  ;;  %v14455_v45 = vsel %vm2197_vm1, %v2978_v16, %v2979_v58 }
 0x25e   : > { %16988 = vst [vmem:[#allocation69_spill] sm:$0xff] %v14455_v45  ;;  %v14457_v25 = vmax.f32 %v2882_v2, 0.0  ;;  %v2885_v7 = vadd.f32 %v14288_v38, %v2724_v17  ;;  %v10465_v12 = vpop.f32.mrb[44].mxu0 }
 0x25f   : > { %v10466_v35 = vpop.f32.mrb[45].mxu0 }
 0x260   : > { %v2980_v9 = vrot.slane %v14457_v25, 7  ;;  %v3076_v49 = vrot.slane %v14457_v25, 1  ;;  %v14464_v32 = vmax.f32 %v2885_v7, 0.0  ;;  %v10467_v13 = vadd.f32 %v10466_v35, %v10465_v12  ;;  %v10468_v37 = vpop.f32.mrb[46].mxu0 }
 0x261   : > { %v10469_v43 = vpop.f32.mrb[47].mxu0 }
 0x262   : > { %v2981_v16 = vrot.slane %v14464_v32, 7  ;;  %v3077_v2 = vrot.slane %v14464_v32, 1  ;;  %v2729_v38 = vadd.f32 %v10467_v13, %v14128_v27  ;;  %v10470_v17 = vadd.f32 %v10469_v43, %v10468_v37 }
 0x263   : > { %v3099_v57 = vsel %vm2294_vm0, %v3075_v21, %v3076_v49  ;;  %v3003_v7 = vsel %vm2197_vm1, %v2979_v58, %v2980_v9 }
 0x264   : > { %v2890_v12 = vadd.f32 %v14268_v18, %v2729_v38  ;;  %v2732_v35 = vadd.f32 %v10470_v17, %v14128_v27  ;;  %v3139_v11 = vmul.f32 %v13834_v5, %v3099_v57  ;;  %v3098_v45 = vsel %vm2294_vm0, %v3076_v49, %v3077_v2 }
 0x265   : > { %v14482_v43 = vsel %vm2197_vm1, %v2980_v9, %v2981_v16  ;;  %v14485_v21 = vmul.f32 %v13908_v61, %v3003_v7 }
 0x266   : > { %v14487_v13 = vmax.f32 %v2890_v12, 0.0  ;;  %v2893_v58 = vadd.f32 %v14277_v24, %v2732_v35  ;;  %v10471_v37 = vpop.f32.mrb[48].mxu0  ;;  %v3181_v18 = vpack.c.bf16 %v3139_v11, %v3100_v51 }
 0x267   : > { %v10472_v38 = vpop.f32.mrb[49].mxu0 }
 0x268   : > { %v14492_v57 = vmax.f32 %v2893_v58, 0.0  ;;  %v10473_v49 = vadd.f32 %v10472_v38, %v10471_v37  ;;  %11340 = vmatmul.mubr.bf16.gmra.mrb[80].mxu0 %v3181_v18  ;;  %v10474_v17 = vpop.f32.mrb[50].mxu0  ;;  %v3078_v9 = vrot.slane %v14487_v13, 1  ;;  %v2982_v61 = vrot.slane %v14487_v13, 7 }
 0x269   : > { %v10475_v7 = vpop.f32.mrb[51].mxu0 }
 0x26a   : > { %v10476_v12 = vadd.f32 %v10475_v7, %v10474_v17  ;;  %v2737_v14 = vadd.f32 %v10473_v49, %v14128_v27  ;;  %v3097_v24 = vsel %vm2294_vm0, %v3077_v2, %v3078_v9  ;;  %v3079_v11 = vrot.slane %v14492_v57, 1 }
 0x26b   : > { %v3184_v51 = vpack.c.bf16 %v3097_v24, %v3098_v45  ;;  %v2983_v58 = vrot.slane %v14492_v57, 7  ;;  %v14505_v37 = vsel %vm2197_vm1, %v2981_v16, %v2982_v61 }
 0x26c   : > { %16989 = vst [vmem:[#allocation70_spill] sm:$0xff] %v14505_v37  ;;  %v2898_v18 = vadd.f32 %v14312_v28, %v2737_v14  ;;  %v2740_v38 = vadd.f32 %v10476_v12, %v14128_v27  ;;  %v3096_v49 = vsel %vm2294_vm0, %v3078_v9, %v3079_v11 }
 0x26d   : > { %11343 = vmatprep.mubr.bf16.mxu0 %v3184_v51  ;;  %v14513_v45 = vsel %vm2197_vm1, %v2982_v61, %v2983_v58 }
 0x26e   : > { %16990 = vst [vmem:[#allocation71_spill] sm:$0xff] %v14513_v45  ;;  %v14515_v2 = vmax.f32 %v2898_v18, 0.0  ;;  %v2901_v17 = vadd.f32 %v14327_v42, %v2740_v38  ;;  %v10477_v7 = vpop.f32.mrb[52].mxu0 }
 0x26f   : > { %v10478_v24 = vpop.f32.mrb[53].mxu0 }
 0x270   : > { %v2984_v28 = vrot.slane %v14515_v2, 7  ;;  %v3080_v14 = vrot.slane %v14515_v2, 1  ;;  %v14522_v12 = vmax.f32 %v2901_v17, 0.0  ;;  %v10479_v9 = vadd.f32 %v10478_v24, %v10477_v7  ;;  %v10480_v51 = vpop.f32.mrb[54].mxu0 }
 0x271   : > { %v10481_v35 = vpop.f32.mrb[55].mxu0 }
 0x272   : > { %v2985_v61 = vrot.slane %v14522_v12, 7  ;;  %v3081_v18 = vrot.slane %v14522_v12, 1  ;;  %v2745_v42 = vadd.f32 %v10479_v9, %v14128_v27  ;;  %v10482_v38 = vadd.f32 %v10481_v35, %v10480_v51 }
 0x273   : > { %v3095_v16 = vsel %vm2294_vm0, %v3079_v11, %v3080_v14  ;;  %v2999_v17 = vsel %vm2197_vm1, %v2983_v58, %v2984_v28 }
 0x274   : > { %v2906_v7 = vadd.f32 %v14306_v4, %v2745_v42  ;;  %v2748_v24 = vadd.f32 %v10482_v38, %v14128_v27  ;;  %v3143_v37 = vmul.f32 %v13879_v6, %v3095_v16  ;;  %v3094_v45 = vsel %vm2294_vm0, %v3080_v14, %v3081_v18 }
 0x275   : > { %v14540_v35 = vsel %vm2197_vm1, %v2984_v28, %v2985_v61  ;;  %v14543_v11 = vmul.f32 %v13956_v53, %v2999_v17 }
 0x276   : > { %v14545_v9 = vmax.f32 %v2906_v7, 0.0  ;;  %v2909_v58 = vadd.f32 %v14314_v63, %v2748_v24  ;;  %v10483_v51 = vpop.f32.mrb[56].mxu0  ;;  %v3187_v4 = vpack.c.bf16 %v3143_v37, %v3096_v49 }
 0x277   : > { %v10484_v42 = vpop.f32.mrb[57].mxu0 }
 0x278   : > { %v14550_v16 = vmax.f32 %v2909_v58, 0.0  ;;  %v10485_v14 = vadd.f32 %v10484_v42, %v10483_v51  ;;  %11344 = vmatmul.mubr.bf16.gmra.mrb[84].mxu0 %v3187_v4  ;;  %v10486_v38 = vpop.f32.mrb[58].mxu0  ;;  %v3082_v28 = vrot.slane %v14545_v9, 1  ;;  %v2986_v53 = vrot.slane %v14545_v9, 7 }
 0x279   : > { %v10487_v17 = vpop.f32.mrb[59].mxu0 }
 0x27a   : > { %v10488_v7 = vadd.f32 %v10487_v17, %v10486_v38  ;;  %v2753_v5 = vadd.f32 %v10485_v14, %v14128_v27  ;;  %v3093_v63 = vsel %vm2294_vm0, %v3081_v18, %v3082_v28  ;;  %v3083_v37 = vrot.slane %v14550_v16, 1 }
 0x27b   : > { %v3190_v49 = vpack.c.bf16 %v3093_v63, %v3094_v45  ;;  %v2987_v58 = vrot.slane %v14550_v16, 7  ;;  %v14563_v51 = vsel %vm2197_vm1, %v2985_v61, %v2986_v53 }
 0x27c   : > { %16991 = vst [vmem:[#allocation72_spill] sm:$0xff] %v14563_v51  ;;  %v2914_v4 = vadd.f32 %v14347_v62, %v2753_v5  ;;  %v2756_v42 = vadd.f32 %v10488_v7, %v14128_v27  ;;  %v3092_v14 = vsel %vm2294_vm0, %v3082_v28, %v3083_v37 }
 0x27d   : > { %11347 = vmatprep.mubr.bf16.mxu0 %v3190_v49  ;;  %v14571_v45 = vsel %vm2197_vm1, %v2986_v53, %v2987_v58 }
 0x27e   : > { %16992 = vst [vmem:[#allocation73_spill] sm:$0xff] %v14571_v45  ;;  %v14573_v18 = vmax.f32 %v2914_v4, 0.0  ;;  %v2917_v38 = vadd.f32 %v14362_v34, %v2756_v42  ;;  %v10489_v17 = vpop.f32.mrb[60].mxu0 }
 0x27f   : > { %v10490_v63 = vpop.f32.mrb[61].mxu0 }
 0x280   : > { %v2988_v62 = vrot.slane %v14573_v18, 7  ;;  %v3084_v5 = vrot.slane %v14573_v18, 1  ;;  %v14580_v7 = vmax.f32 %v2917_v38, 0.0  ;;  %v10491_v28 = vadd.f32 %v10490_v63, %v10489_v17  ;;  %v10492_v49 = vpop.f32.mrb[62].mxu0 }
 0x281   : > { %v10493_v24 = vpop.f32.mrb[63].mxu0 }
 0x282   : > { %v2989_v53 = vrot.slane %v14580_v7, 7  ;;  %v3085_v4 = vrot.slane %v14580_v7, 1  ;;  %v2761_v34 = vadd.f32 %v10491_v28, %v14128_v27  ;;  %v10494_v42 = vadd.f32 %v10493_v24, %v10492_v49 }
 0x283   : > { %v3091_v61 = vsel %vm2294_vm0, %v3083_v37, %v3084_v5  ;;  %v3195_v6 = vpack.c.bf16 %v14580_v7, %v14573_v18  ;;  %v2995_v38 = vsel %vm2197_vm1, %v2987_v58, %v2988_v62 }
 0x284   : > { %v2922_v17 = vadd.f32 %v14342_v46, %v2761_v34  ;;  %v2764_v63 = vadd.f32 %v10494_v42, %v14128_v27  ;;  %v3147_v51 = vmul.f32 %v13944_v0, %v3091_v61  ;;  %v3090_v45 = vsel %vm2294_vm0, %v3084_v5, %v3085_v4 }
 0x285   : > { %v2994_v24 = vsel %vm2197_vm1, %v2988_v62, %v2989_v53  ;;  %v3052_v37 = vmul.f32 %v14094_v60, %v2995_v38  ;;  %v16993_v60 = vrot.slane %v14136_v1, 7 }
 0x286   : > { %v2958_v28 = vmax.f32 %v2922_v17, 0.0  ;;  %v2925_v18 = vadd.f32 %v14351_v23, %v2764_v63  ;;  %v3193_v7 = vpack.c.bf16 %v3147_v51, %v3092_v14  ;;  %v16994_v14 = vrot.slane %v14136_v1, 1 }
 0x287   : > { %v3194_v49 = vpack.c.bf16 %v2994_v24, %v3052_v37  ;;  %v16995_v1 = vpack.c.bf16 %v14155_v54, %v14152_v3  ;;  %v16996_v37 = vpack.c.bf16 %v14185_v41, %v14178_v47  ;;  %v17002_v54 = vld [vmem:[#allocation57_spill] sm:$0xff]  ;;  %v17005_v41 = vld [vmem:[#allocation58_spill] sm:$0xff] }
 0x288   : > { %v2959_v58 = vmax.f32 %v2925_v18, 0.0  ;;  %11348 = vmatmul.mubr.bf16.gmra.mrb[88].mxu0 %v3193_v7  ;;  %v3086_v46 = vrot.slane %v2958_v28, 1  ;;  %v2990_v34 = vrot.slane %v2958_v28, 7  ;;  %v17003_v18 = vld [vmem:[#allocation56_spill] sm:$0xff]  ;;  %v17006_v7 = vld [vmem:[#allocation59_spill] sm:$0xff] }
 0x289   : > { %v17004_v47 = vpack.c.bf16 %v17002_v54, %v17003_v18 }
 0x28a   : > { %v2991_v27 = vrot.slane %v2959_v58, 7  ;;  %v3089_v0 = vsel %vm2294_vm0, %v3085_v4, %v3086_v46  ;;  %v3087_v61 = vrot.slane %v2959_v58, 1  ;;  %v3198_v5 = vpack.c.bf16 %v2959_v58, %v2958_v28  ;;  %v17009_v58 = vld [vmem:[#allocation60_spill] sm:$0xff] }
 0x28b   : > { %v3196_v42 = vpack.c.bf16 %v3089_v0, %v3090_v45  ;;  %v2993_v62 = vsel %vm2197_vm1, %v2989_v53, %v2990_v34  ;;  %v16997_v28 = vpack.c.bf16 %v14193_v22, %v14187_v48  ;;  %v17007_v48 = vpack.c.bf16 %v17005_v41, %v17006_v7  ;;  %v17008_v22 = vld [vmem:[#allocation61_spill] sm:$0xff] }
 0x28c   : > { %v3023_v23 = vsel %vm2197_vm1, %v2991_v27, %v16993_v60  ;;  %v3088_v51 = vsel %vm2294_vm0, %v3086_v46, %v3087_v61  ;;  %v3119_v38 = vsel %vm2294_vm0, %v3087_v61, %v16994_v14  ;;  %v2992_v4 = vsel %vm2197_vm1, %v2990_v34, %v2991_v27  ;;  %v17012_v46 = vld [vmem:[#allocation62_spill] sm:$0xff]  ;;  %v17015_v34 = vld [vmem:[#allocation64_spill] sm:$0xff]  ;;  %v17019_v61 = vld [vmem:[#allocation67_spill] sm:$0xff] }
 0x28d   : > { %11351 = vmatprep.mubr.bf16.mxu0 %v3196_v42  ;;  %v3024_v45 = vmul.f32 %v13567_v40, %v3023_v23  ;;  %v3151_v53 = vmul.f32 %v13962_v33, %v3119_v38  ;;  %v3197_v17 = vpack.c.bf16 %v2992_v4, %v2993_v62  ;;  %v16998_v40 = vpack.c.bf16 %v14218_v36, %v14221_v50  ;;  %v17011_v50 = vld [vmem:[#allocation63_spill] sm:$0xff]  ;;  %v17020_v42 = vld [vmem:[#allocation66_spill] sm:$0xff] }
 0x28e   : > { %v16999_v33 = vpack.c.bf16 %v14231_v55, %v14224_v8  ;;  %v17010_v36 = vpack.c.bf16 %v17008_v22, %v17009_v58  ;;  %v17013_v8 = vpack.c.bf16 %v17011_v50, %v17012_v46  ;;  %v17014_v55 = vld [vmem:[#allocation65_spill] sm:$0xff]  ;;  %v17017_v27 = vpack.c.bf16 %v14366_v52, %v14369_v26 }
 0x28f   : > { %v3152_v63 = vpack.c.bf16 %v14149_v56, %v3024_v45  ;;  %v3199_v24 = vpack.c.bf16 %v3151_v53, %v3088_v51  ;;  %v17000_v56 = vld [vmem:[#allocation55_spill] sm:$0xff]  ;;  %v17018_v0 = vpack.c.bf16 %v14376_v15, %v14371_v30  ;;  %v17021_v62 = vpack.c.bf16 %v17019_v61, %v17020_v42  ;;  %v17025_v52 = vld [vmem:[#allocation69_spill] sm:$0xff]  ;;  %v17026_v51 = vld [vmem:[#allocation68_spill] sm:$0xff] }
 0x290   : > { %v17001_v3 = vpack.c.bf16 %v14258_v29, %v17000_v56  ;;  %v17016_v29 = vpack.c.bf16 %v17014_v55, %v17015_v34  ;;  %v17022_v60 = vpack.c.bf16 %v14406_v20, %v14399_v19  ;;  %v17023_v23 = vpack.c.bf16 %v14424_v31, %v14427_v44  ;;  %v17031_v31 = vld [vmem:[#allocation71_spill] sm:$0xff]  ;;  %v17032_v44 = vld [vmem:[#allocation70_spill] sm:$0xff] }
 0x291   : > { %3432 = vmatmul.mubr.bf16.vlgmr.msra.gmra.mrb[32].mxu1 %v3152_v63  ;;  %11352 = vmatmul.mubr.bf16.gmra.mrb[92].mxu0 %v3199_v24  ;;  %v17024_v26 = vpack.c.bf16 %v14434_v59, %v14429_v39  ;;  %v17027_v30 = vpack.c.bf16 %v17025_v52, %v17026_v51  ;;  %v17028_v15 = vpack.c.bf16 %v14464_v32, %v14457_v25 }
 0x292   : > { %3439 = vmatprep.mubr.bf16.mxu1 %v16995_v1  ;;  %v17029_v19 = vpack.c.bf16 %v14482_v43, %v14485_v21  ;;  %v17030_v20 = vpack.c.bf16 %v14492_v57, %v14487_v13  ;;  %v17033_v39 = vpack.c.bf16 %v17031_v31, %v17032_v44  ;;  %v17034_v59 = vpack.c.bf16 %v14522_v12, %v14515_v2  ;;  %v17037_v43 = vld [vmem:[#allocation73_spill] sm:$0xff]  ;;  %v17038_v21 = vld [vmem:[#allocation72_spill] sm:$0xff] }
 0x293   : > { %v17035_v25 = vpack.c.bf16 %v14540_v35, %v14543_v11  ;;  %v17036_v32 = vpack.c.bf16 %v14550_v16, %v14545_v9  ;;  %v17039_v13 = vpack.c.bf16 %v17037_v43, %v17038_v21 }
 0x299   : > { %3440 = vmatmul.mubr.bf16.gmra.mrb[36].mxu1 %v16996_v37 }
 0x29a   : > { %3447 = vmatprep.mubr.bf16.mxu1 %v16997_v28 }
 0x2a1   : > { %3448 = vmatmul.mubr.bf16.gmra.mrb[40].mxu1 %v16998_v40 }
 0x2a2   : > { %3455 = vmatprep.mubr.bf16.mxu1 %v16999_v33 }
 0x2a9   : > { %3456 = vmatmul.mubr.bf16.gmra.mrb[44].mxu1 %v17001_v3 }
 0x2aa   : > { %3463 = vmatprep.mubr.bf16.mxu1 %v17004_v47 }
 0x2b1   : > { %3464 = vmatmul.mubr.bf16.gmra.mrb[48].mxu1 %v17007_v48  ;;  %v14748_v48 = vld [vmem:[%s13121_s21] ss:$0 sm:$0xff] }
 0x2b2   : > { %3471 = vmatprep.mubr.bf16.mxu1 %v17010_v36 }
 0x2b9   : > { %3472 = vmatmul.mubr.bf16.gmra.mrb[52].mxu1 %v17013_v8 }
 0x2ba   : > { %3479 = vmatprep.mubr.bf16.mxu1 %v17016_v29 }
 0x2c1   : > { %3480 = vmatmul.mubr.bf16.gmra.mrb[56].mxu1 %v17017_v27 }
 0x2c2   : > { %3487 = vmatprep.mubr.bf16.mxu1 %v17018_v0 }
 0x2c9   : > { %3488 = vmatmul.mubr.bf16.gmra.mrb[60].mxu1 %v17021_v62 }
 0x2ca   : > { %3495 = vmatprep.mubr.bf16.mxu1 %v17022_v60 }
 0x2d1   : > { %3496 = vmatmul.mubr.bf16.gmra.mrb[64].mxu1 %v17023_v23 }
 0x2d2   : > { %3503 = vmatprep.mubr.bf16.mxu1 %v17024_v26 }
 0x2d9   : > { %3504 = vmatmul.mubr.bf16.gmra.mrb[68].mxu1 %v17027_v30 }
 0x2da   : > { %3511 = vmatprep.mubr.bf16.mxu1 %v17028_v15 }
 0x2e1   : > { %3512 = vmatmul.mubr.bf16.gmra.mrb[72].mxu1 %v17029_v19 }
 0x2e2   : > { %3519 = vmatprep.mubr.bf16.mxu1 %v17030_v20 }
 0x2e9   : > { %3520 = vmatmul.mubr.bf16.gmra.mrb[76].mxu1 %v17033_v39 }
 0x2ea   : > { %3527 = vmatprep.mubr.bf16.mxu1 %v17034_v59  ;;  %v3850_v59 = vld [vmem:[%s13126_s25 + $0x8] sm:$0xff] }
 0x2eb   : > { %3945 = vmatprep.mubr.f32.mxu0 %v3850_v59 }
 0x2f1   : > { %3528 = vmatmul.mubr.bf16.gmra.mrb[80].mxu1 %v17035_v25 }
 0x2f2   : > { %3535 = vmatprep.mubr.bf16.mxu1 %v17036_v32 }
 0x2f9   : > { %3536 = vmatmul.mubr.bf16.gmra.mrb[84].mxu1 %v17039_v13 }
 0x2fa   : > { %3543 = vmatprep.mubr.bf16.mxu1 %v3195_v6  ;;  %v11325_v57 = vpop.f32.mrb[64].mxu0 }
 0x2fb   : > { %v3594_v14 = vpop.f32.mrb[65].mxu0 }
 0x2fc   : > { %v11326_v38 = vpop.f32.mrb[66].mxu0 }
 0x2fd   : > { %v3597_v4 = vpop.f32.mrb[67].mxu0 }
 0x301   : > { %3544 = vmatmul.mubr.bf16.gmra.mrb[88].mxu1 %v3194_v49 }
 0x302   : > { %3551 = vmatprep.mubr.bf16.mxu1 %v3198_v5 }
 0x309   : > { %3552 = vmatmul.mubr.bf16.gmra.mrb[92].mxu1 %v3197_v17 }
 0x30b   : > { %v14697_v2 = vpop.f32.mrb[68].mxu0 }
 0x30c   : > { %v14699_v12 = vpop.f32.mrb[69].mxu0 }
 0x30d   : > { %v14701_v35 = vpop.f32.mrb[70].mxu0 }
 0x30e   : > { %v14703_v11 = vpop.f32.mrb[71].mxu0 }
 0x31b   : > { %v14705_v9 = vpop.f32.mrb[72].mxu0 }
 0x31c   : > { %v14707_v16 = vpop.f32.mrb[73].mxu0 }
 0x31d   : > { %v14709_v6 = vpop.f32.mrb[74].mxu0 }
 0x31e   : > { %v14711_v45 = vpop.f32.mrb[75].mxu0 }
 0x32b   : > { %v14713_v53 = vpop.f32.mrb[76].mxu0 }
 0x32c   : > { %v14715_v49 = vpop.f32.mrb[77].mxu0 }
 0x32d   : > { %v14717_v5 = vpop.f32.mrb[78].mxu0 }
 0x32e   : > { %v14719_v17 = vpop.f32.mrb[79].mxu0 }
 0x33b   : > { %v14721_v63 = vpop.f32.mrb[80].mxu0 }
 0x33c   : > { %v14723_v24 = vpop.f32.mrb[81].mxu0 }
 0x33d   : > { %v14725_v1 = vpop.f32.mrb[82].mxu0 }
 0x33e   : > { %v14727_v37 = vpop.f32.mrb[83].mxu0 }
 0x34b   : > { %v14729_v28 = vpop.f32.mrb[84].mxu0 }
 0x34c   : > { %v14731_v40 = vpop.f32.mrb[85].mxu0 }
 0x34d   : > { %v14733_v33 = vpop.f32.mrb[86].mxu0 }
 0x34e   : > { %v14735_v56 = vpop.f32.mrb[87].mxu0 }
 0x35b   : > { %v14737_v3 = vpop.f32.mrb[88].mxu0 }
 0x35c   : > { %v14739_v54 = vpop.f32.mrb[89].mxu0 }
 0x35d   : > { %v14741_v18 = vpop.f32.mrb[90].mxu0 }
 0x35e   : > { %v14743_v47 = vpop.f32.mrb[91].mxu0 }
 0x364   : > { %v10535_v41 = vpop.f32.mrb[32].mxu1  ;;  %v14745_v7 = vpop.f32.mrb[92].mxu0 }
 0x365   : > { %v10536_v22 = vpop.f32.mrb[33].mxu1  ;;  %v14750_v58 = vpop.f32.mrb[93].mxu0 }
 0x366   : > { %v10537_v36 = vadd.f32 %v10536_v22, %v10535_v41  ;;  %v10538_v50 = vpop.f32.mrb[34].mxu1  ;;  %v14752_v46 = vpop.f32.mrb[94].mxu0 }
 0x367   : > { %v10539_v8 = vpop.f32.mrb[35].mxu1  ;;  %v14754_v55 = vpop.f32.mrb[95].mxu0 }
 0x368   : > { %v3434_v34 = vadd.f32 %v10537_v36, %v14748_v48  ;;  %v10540_v29 = vadd.f32 %v10539_v8, %v10538_v50 }
 0x36a   : > { %v3595_v27 = vadd.f32 %v3594_v14, %v3434_v34  ;;  %v3437_v0 = vadd.f32 %v10540_v29, %v14748_v48 }
 0x36c   : > { %v3721_v61 = vmax.f32 %v3595_v27, 0.0  ;;  %v3598_v42 = vadd.f32 %v3597_v4, %v3437_v0  ;;  %v10541_v62 = vpop.f32.mrb[36].mxu1 }
 0x36d   : > { %v10542_v60 = vpop.f32.mrb[37].mxu1 }
 0x36e   : > { %v3722_v23 = vmax.f32 %v3598_v42, 0.0  ;;  %v10543_v26 = vadd.f32 %v10542_v60, %v10541_v62  ;;  %v10544_v52 = vpop.f32.mrb[38].mxu1  ;;  %v14758_v30 = vrot.slane %v3721_v61, 1 }
 0x36f   : > { %v10545_v51 = vpop.f32.mrb[39].mxu1 }
 0x370   : > { %v3754_v15 = vrot.slane %v3722_v23, 1  ;;  %v3442_v19 = vadd.f32 %v10543_v26, %v14748_v48  ;;  %v10546_v20 = vadd.f32 %v10545_v51, %v10544_v52 }
 0x372   : > { %v3603_v31 = vadd.f32 %v11325_v57, %v3442_v19  ;;  %v3445_v44 = vadd.f32 %v10546_v20, %v14748_v48  ;;  %v3815_v39 = vsel %vm2294_vm0, %v14758_v30, %v3754_v15 }
 0x373   : > { %v14766_v25 = vmax.f32 %v3721_v61, %v3815_v39 }
 0x374   : > { %v3723_v32 = vmax.f32 %v3603_v31, 0.0  ;;  %v3606_v43 = vadd.f32 %v11326_v38, %v3445_v44  ;;  %v10547_v21 = vpop.f32.mrb[40].mxu1 }
 0x375   : > { %v10548_v13 = vpop.f32.mrb[41].mxu1 }
 0x376   : > { %v3755_v14 = vrot.slane %v3723_v32, 1  ;;  %v3724_v4 = vmax.f32 %v3606_v43, 0.0  ;;  %v10549_v41 = vadd.f32 %v10548_v13, %v10547_v21  ;;  %v10550_v22 = vpop.f32.mrb[42].mxu1 }
 0x377   : > { %v10551_v36 = vpop.f32.mrb[43].mxu1 }
 0x378   : > { %v3756_v57 = vrot.slane %v3724_v4, 1  ;;  %v3450_v50 = vadd.f32 %v10549_v41, %v14748_v48  ;;  %v10552_v8 = vadd.f32 %v10551_v36, %v10550_v22  ;;  %v3814_v34 = vsel %vm2294_vm0, %v3754_v15, %v3755_v14 }
 0x379   : > { %v14771_v29 = vmax.f32 %v3722_v23, %v3814_v34 }
 0x37a   : > { %v3611_v27 = vadd.f32 %v14699_v12, %v3450_v50  ;;  %v3453_v38 = vadd.f32 %v10552_v8, %v14748_v48  ;;  %v3813_v0 = vsel %vm2294_vm0, %v3755_v14, %v3756_v57 }
 0x37b   : > { %v11977_v61 = vpack.c.bf16 %v14771_v29, %v14766_v25  ;;  %v14779_v42 = vmax.f32 %v3723_v32, %v3813_v0 }
 0x37c   : > { %v3725_v62 = vmax.f32 %v3611_v27, 0.0  ;;  %v3614_v60 = vadd.f32 %v14703_v11, %v3453_v38  ;;  %v10553_v26 = vpop.f32.mrb[44].mxu1 }
 0x37d   : > { %v10554_v52 = vpop.f32.mrb[45].mxu1 }
 0x37e   : > { %v3757_v51 = vrot.slane %v3725_v62, 1  ;;  %v3726_v23 = vmax.f32 %v3614_v60, 0.0  ;;  %v10555_v15 = vadd.f32 %v10554_v52, %v10553_v26  ;;  %v10556_v19 = vpop.f32.mrb[46].mxu1 }
 0x37f   : > { %v10557_v12 = vpop.f32.mrb[47].mxu1 }
 0x380   : > { %v3758_v20 = vrot.slane %v3726_v23, 1  ;;  %v3458_v31 = vadd.f32 %v10555_v15, %v14748_v48  ;;  %v10558_v44 = vadd.f32 %v10557_v12, %v10556_v19  ;;  %v3812_v39 = vsel %vm2294_vm0, %v3756_v57, %v3757_v51 }
 0x381   : > { %v14785_v59 = vmax.f32 %v3724_v4, %v3812_v39 }
 0x382   : > { %v3619_v32 = vadd.f32 %v14697_v2, %v3458_v31  ;;  %v3461_v11 = vadd.f32 %v10558_v44, %v14748_v48  ;;  %v3811_v43 = vsel %vm2294_vm0, %v3757_v51, %v3758_v20 }
 0x383   : > { %v11981_v21 = vpack.c.bf16 %v14785_v59, %v14779_v42  ;;  %v14793_v13 = vmax.f32 %v3725_v62, %v3811_v43 }
 0x384   : > { %v3727_v14 = vmax.f32 %v3619_v32, 0.0  ;;  %v3622_v41 = vadd.f32 %v14701_v35, %v3461_v11  ;;  %v10559_v22 = vpop.f32.mrb[48].mxu1 }
 0x385   : > { %v10560_v36 = vpop.f32.mrb[49].mxu1 }
 0x386   : > { %v3759_v57 = vrot.slane %v3727_v14, 1  ;;  %v3728_v4 = vmax.f32 %v3622_v41, 0.0  ;;  %v10561_v50 = vadd.f32 %v10560_v36, %v10559_v22  ;;  %v10562_v8 = vpop.f32.mrb[50].mxu1 }
 0x387   : > { %v10563_v2 = vpop.f32.mrb[51].mxu1 }
 0x388   : > { %v3760_v34 = vrot.slane %v3728_v4, 1  ;;  %v3466_v27 = vadd.f32 %v10561_v50, %v14748_v48  ;;  %v10564_v38 = vadd.f32 %v10563_v2, %v10562_v8  ;;  %v3810_v0 = vsel %vm2294_vm0, %v3758_v20, %v3759_v57 }
 0x389   : > { %v14799_v60 = vmax.f32 %v3726_v23, %v3810_v0 }
 0x38a   : > { %v3627_v62 = vadd.f32 %v14707_v16, %v3466_v27  ;;  %v3469_v35 = vadd.f32 %v10564_v38, %v14748_v48  ;;  %v3809_v26 = vsel %vm2294_vm0, %v3759_v57, %v3760_v34 }
 0x38b   : > { %v11985_v52 = vpack.c.bf16 %v14799_v60, %v14793_v13  ;;  %v14807_v51 = vmax.f32 %v3727_v14, %v3809_v26 }
 0x38c   : > { %v3729_v15 = vmax.f32 %v3627_v62, 0.0  ;;  %v3630_v19 = vadd.f32 %v14711_v45, %v3469_v35  ;;  %v10565_v12 = vpop.f32.mrb[52].mxu1 }
 0x38d   : > { %v10566_v31 = vpop.f32.mrb[53].mxu1 }
 0x38e   : > { %v3761_v20 = vrot.slane %v3729_v15, 1  ;;  %v3730_v23 = vmax.f32 %v3630_v19, 0.0  ;;  %v10567_v44 = vadd.f32 %v10566_v31, %v10565_v12  ;;  %v10568_v39 = vpop.f32.mrb[54].mxu1 }
 0x38f   : > { %v10569_v16 = vpop.f32.mrb[55].mxu1 }
 0x390   : > { %v3762_v32 = vrot.slane %v3730_v23, 1  ;;  %v3474_v11 = vadd.f32 %v10567_v44, %v14748_v48  ;;  %v10570_v43 = vadd.f32 %v10569_v16, %v10568_v39  ;;  %v3808_v41 = vsel %vm2294_vm0, %v3760_v34, %v3761_v20 }
 0x391   : > { %v14813_v22 = vmax.f32 %v3728_v4, %v3808_v41 }
 0x392   : > { %v3635_v14 = vadd.f32 %v14705_v9, %v3474_v11  ;;  %v3477_v45 = vadd.f32 %v10570_v43, %v14748_v48  ;;  %v3807_v36 = vsel %vm2294_vm0, %v3761_v20, %v3762_v32 }
 0x393   : > { %v11989_v57 = vpack.c.bf16 %v14813_v22, %v14807_v51  ;;  %v14821_v50 = vmax.f32 %v3729_v15, %v3807_v36 }
 0x394   : > { %v3731_v8 = vmax.f32 %v3635_v14, 0.0  ;;  %v3638_v2 = vadd.f32 %v14709_v6, %v3477_v45  ;;  %v10571_v27 = vpop.f32.mrb[56].mxu1 }
 0x395   : > { %v10572_v38 = vpop.f32.mrb[57].mxu1 }
 0x396   : > { %v3763_v34 = vrot.slane %v3731_v8, 1  ;;  %v3732_v4 = vmax.f32 %v3638_v2, 0.0  ;;  %v10573_v0 = vadd.f32 %v10572_v38, %v10571_v27  ;;  %v10574_v62 = vpop.f32.mrb[58].mxu1 }
 0x397   : > { %v10575_v9 = vpop.f32.mrb[59].mxu1 }
 0x398   : > { %v3764_v35 = vrot.slane %v3732_v4, 1  ;;  %v3482_v26 = vadd.f32 %v10573_v0, %v14748_v48  ;;  %v10576_v19 = vadd.f32 %v10575_v9, %v10574_v62  ;;  %v3806_v12 = vsel %vm2294_vm0, %v3762_v32, %v3763_v34 }
 0x399   : > { %v14827_v31 = vmax.f32 %v3730_v23, %v3806_v12 }
 0x39a   : > { %v3643_v15 = vadd.f32 %v14715_v49, %v3482_v26  ;;  %v3485_v6 = vadd.f32 %v10576_v19, %v14748_v48  ;;  %v3805_v20 = vsel %vm2294_vm0, %v3763_v34, %v3764_v35 }
 0x39b   : > { %v11993_v44 = vpack.c.bf16 %v14827_v31, %v14821_v50  ;;  %v14835_v39 = vmax.f32 %v3731_v8, %v3805_v20 }
 0x39c   : > { %v3733_v16 = vmax.f32 %v3643_v15, 0.0  ;;  %v3646_v11 = vadd.f32 %v14719_v17, %v3485_v6  ;;  %v10577_v43 = vpop.f32.mrb[60].mxu1 }
 0x39d   : > { %v10578_v41 = vpop.f32.mrb[61].mxu1 }
 0x39e   : > { %v3765_v32 = vrot.slane %v3733_v16, 1  ;;  %v3734_v23 = vmax.f32 %v3646_v11, 0.0  ;;  %v10579_v14 = vadd.f32 %v10578_v41, %v10577_v43  ;;  %v10580_v45 = vpop.f32.mrb[62].mxu1 }
 0x39f   : > { %v10581_v49 = vpop.f32.mrb[63].mxu1 }
 0x3a0   : > { %v3766_v36 = vrot.slane %v3734_v23, 1  ;;  %v3490_v2 = vadd.f32 %v10579_v14, %v14748_v48  ;;  %v10582_v27 = vadd.f32 %v10581_v49, %v10580_v45  ;;  %v3804_v38 = vsel %vm2294_vm0, %v3764_v35, %v3765_v32 }
 0x3a1   : > { %v14841_v34 = vmax.f32 %v3732_v4, %v3804_v38 }
 0x3a2   : > { %v3651_v8 = vadd.f32 %v14713_v53, %v3490_v2  ;;  %v3493_v17 = vadd.f32 %v10582_v27, %v14748_v48  ;;  %v3803_v0 = vsel %vm2294_vm0, %v3765_v32, %v3766_v36 }
 0x3a3   : > { %v11997_v62 = vpack.c.bf16 %v14841_v34, %v14835_v39  ;;  %v14849_v9 = vmax.f32 %v3733_v16, %v3803_v0 }
 0x3a4   : > { %v3735_v26 = vmax.f32 %v3651_v8, 0.0  ;;  %v3654_v19 = vadd.f32 %v14717_v5, %v3493_v17  ;;  %v10583_v12 = vpop.f32.mrb[64].mxu1 }
 0x3a5   : > { %v10584_v15 = vpop.f32.mrb[65].mxu1 }
 0x3a6   : > { %v3767_v35 = vrot.slane %v3735_v26, 1  ;;  %v3736_v4 = vmax.f32 %v3654_v19, 0.0  ;;  %v10585_v6 = vadd.f32 %v10584_v15, %v10583_v12  ;;  %v10586_v20 = vpop.f32.mrb[66].mxu1 }
 0x3a7   : > { %v10587_v53 = vpop.f32.mrb[67].mxu1 }
 0x3a8   : > { %v3768_v11 = vrot.slane %v3736_v4, 1  ;;  %v3498_v43 = vadd.f32 %v10585_v6, %v14748_v48  ;;  %v10588_v41 = vadd.f32 %v10587_v53, %v10586_v20  ;;  %v3802_v32 = vsel %vm2294_vm0, %v3766_v36, %v3767_v35  ;;  %v4027_v20 = vld [vmem:[%s13131_s29 + $0x8] sm:$0xff]  ;;  %v4028_v53 = vld [vmem:[%s13131_s29 + $0x10] sm:$0xff] }
 0x3a9   : > { %v14855_v14 = vmax.f32 %v3734_v23, %v3802_v32 }
 0x3aa   : > { %v3659_v16 = vadd.f32 %v14723_v24, %v3498_v43  ;;  %v3501_v5 = vadd.f32 %v10588_v41, %v14748_v48  ;;  %v3801_v45 = vsel %vm2294_vm0, %v3767_v35, %v3768_v11 }
 0x3ab   : > { %v12001_v49 = vpack.c.bf16 %v14855_v14, %v14849_v9  ;;  %v14863_v2 = vmax.f32 %v3735_v26, %v3801_v45  ;;  %v3853_v9 = vld [vmem:[%s13126_s25 + $0x20] sm:$0xff]  ;;  %v3856_v14 = vld [vmem:[%s13126_s25 + $0x38] sm:$0xff] }
 0x3ac   : > { %v3737_v27 = vmax.f32 %v3659_v16, 0.0  ;;  %v3662_v36 = vadd.f32 %v14727_v37, %v3501_v5  ;;  %v10589_v23 = vpop.f32.mrb[68].mxu1  ;;  %v4026_v37 = vld [vmem:[%s13131_s29] sm:$0xff]  ;;  %v4029_v5 = vld [vmem:[%s13131_s29 + $0x18] sm:$0xff] }
 0x3ad   : > { %v10590_v38 = vpop.f32.mrb[69].mxu1  ;;  %v12007_v16 = vpack.c.bf16 %v4027_v20, %v4026_v37  ;;  %v4032_v37 = vld [vmem:[%s13131_s29 + $0x30] sm:$0xff]  ;;  %v4033_v20 = vld [vmem:[%s13131_s29 + $0x38] sm:$0xff] }
 0x3ae   : > { %v3769_v8 = vrot.slane %v3737_v27, 1  ;;  %v3738_v24 = vmax.f32 %v3662_v36, 0.0  ;;  %v10591_v17 = vadd.f32 %v10590_v38, %v10589_v23  ;;  %v10592_v0 = vpop.f32.mrb[70].mxu1  ;;  %v12011_v23 = vpack.c.bf16 %v4029_v5, %v4028_v53 }
 0x3af   : > { %v10593_v19 = vpop.f32.mrb[71].mxu1  ;;  %12008 = vmatprep.subr.bf16.mxu1 %v12007_v16 }
 0x3b0   : > { %v3770_v12 = vrot.slane %v3738_v24, 1  ;;  %v3506_v15 = vadd.f32 %v10591_v17, %v14748_v48  ;;  %v10594_v26 = vadd.f32 %v10593_v19, %v10592_v0  ;;  %v3800_v35 = vsel %vm2294_vm0, %v3768_v11, %v3769_v8  ;;  %v4031_v11 = vld [vmem:[%s13131_s29 + $0x28] sm:$0xff]  ;;  %12010 = vmatpush3.bf16.msra.mxu1 %v12007_v16 }
 0x3b1   : > { %v14869_v6 = vmax.f32 %v3736_v4, %v3800_v35  ;;  %v4030_v4 = vld [vmem:[%s13131_s29 + $0x20] sm:$0xff]  ;;  %12012 = vmatprep.subr.bf16.mxu1 %v12011_v23 }
 0x3b2   : > { %v3667_v43 = vadd.f32 %v14721_v63, %v3506_v15  ;;  %v3509_v41 = vadd.f32 %v10594_v26, %v14748_v48  ;;  %v3799_v32 = vsel %vm2294_vm0, %v3769_v8, %v3770_v12 }
 0x3b3   : > { %v3833_v45 = vmax.f32 %v3737_v27, %v3799_v32  ;;  %v12005_v36 = vpack.c.bf16 %v14869_v6, %v14863_v2  ;;  %v12015_v27 = vpack.c.bf16 %v4031_v11, %v4030_v4  ;;  %v12019_v11 = vpack.c.bf16 %v4033_v20, %v4032_v37  ;;  %v4037_v37 = vld [vmem:[%s13131_s29 + $0x58] sm:$0xff]  ;;  %v3858_v2 = vld [vmem:[%s13126_s25 + $0x48] sm:$0xff]  ;;  %v3857_v6 = vld [vmem:[%s13126_s25 + $0x40] sm:$0xff] }
 0x3b4   : > { %v3739_v38 = vmax.f32 %v3667_v43, 0.0  ;;  %v3670_v17 = vadd.f32 %v14725_v1, %v3509_v41  ;;  %v10595_v63 = vpop.f32.mrb[72].mxu1  ;;  %12014 = vmatpush3.bf16.msra.mxu1 %v12011_v23 }
 0x3b5   : > { %v10596_v0 = vpop.f32.mrb[73].mxu1  ;;  %12016 = vmatprep.subr.bf16.mxu1 %v12015_v27 }
 0x3b6   : > { %v3771_v19 = vrot.slane %v3739_v38, 1  ;;  %v3740_v8 = vmax.f32 %v3670_v17, 0.0  ;;  %v10597_v15 = vadd.f32 %v10596_v0, %v10595_v63  ;;  %v10598_v26 = vpop.f32.mrb[74].mxu1  ;;  %v4034_v0 = vld [vmem:[%s13131_s29 + $0x40] sm:$0xff] }
 0x3b7   : > { %v10599_v35 = vpop.f32.mrb[75].mxu1 }
 0x3b8   : > { %v3772_v53 = vrot.slane %v3740_v8, 1  ;;  %v3514_v43 = vadd.f32 %v10597_v15, %v14748_v48  ;;  %v10600_v32 = vadd.f32 %v10599_v35, %v10598_v26  ;;  %v3798_v1 = vsel %vm2294_vm0, %v3770_v12, %v3771_v19  ;;  %v4035_v15 = vld [vmem:[%s13131_s29 + $0x48] sm:$0xff]  ;;  %12018 = vmatpush3.bf16.msra.mxu1 %v12015_v27 }
 0x3b9   : > { %v3834_v41 = vmax.f32 %v3738_v24, %v3798_v1  ;;  %12020 = vmatprep.subr.bf16.mxu1 %v12019_v11 }
 0x3ba   : > { %v3675_v16 = vadd.f32 %v14731_v40, %v3514_v43  ;;  %v3517_v5 = vadd.f32 %v10600_v32, %v14748_v48  ;;  %v3797_v4 = vsel %vm2294_vm0, %v3771_v19, %v3772_v53  ;;  %v4036_v19 = vld [vmem:[%s13131_s29 + $0x50] sm:$0xff] }
 0x3bb   : > { %v11975_v17 = vpack.c.bf16 %v3834_v41, %v3833_v45  ;;  %v3835_v63 = vmax.f32 %v3739_v38, %v3797_v4  ;;  %v12023_v45 = vpack.c.bf16 %v4035_v15, %v4034_v0  ;;  %v12027_v29 = vpack.c.bf16 %v4037_v37, %v4036_v19 }
 0x3bc   : > { %v3741_v26 = vmax.f32 %v3675_v16, 0.0  ;;  %v3678_v12 = vadd.f32 %v14735_v56, %v3517_v5  ;;  %v10601_v24 = vpop.f32.mrb[76].mxu1  ;;  %12022 = vmatpush3.bf16.msra.mxu1 %v12019_v11 }
 0x3bd   : > { %v10602_v23 = vpop.f32.mrb[77].mxu1  ;;  %11976 = vmatprep.subr.bf16.mxu0 %v11975_v17  ;;  %12024 = vmatprep.subr.bf16.mxu1 %v12023_v45 }
 0x3be   : > { %v3773_v40 = vrot.slane %v3741_v26, 1  ;;  %v3742_v35 = vmax.f32 %v3678_v12, 0.0  ;;  %v10603_v43 = vadd.f32 %v10602_v23, %v10601_v24  ;;  %v10604_v32 = vpop.f32.mrb[78].mxu1  ;;  %11978 = vmatpush3.bf16.msra.mxu0 %v11977_v61 }
 0x3bf   : > { %v10605_v38 = vpop.f32.mrb[79].mxu1 }
 0x3c0   : > { %v3774_v20 = vrot.slane %v3742_v35, 1  ;;  %v3522_v56 = vadd.f32 %v10603_v43, %v14748_v48  ;;  %v10606_v1 = vadd.f32 %v10605_v38, %v10604_v32  ;;  %v3796_v27 = vsel %vm2294_vm0, %v3772_v53, %v3773_v40  ;;  %12026 = vmatpush3.bf16.msra.mxu1 %v12023_v45 }
 0x3c1   : > { %v3836_v41 = vmax.f32 %v3740_v8, %v3796_v27  ;;  %12028 = vmatprep.subr.bf16.mxu1 %v12027_v29 }
 0x3c2   : > { %v3683_v16 = vadd.f32 %v14729_v28, %v3522_v56  ;;  %v3525_v5 = vadd.f32 %v10606_v1, %v14748_v48  ;;  %v3795_v25 = vsel %vm2294_vm0, %v3773_v40, %v3774_v20 }
 0x3c3   : > { %v11979_v61 = vpack.c.bf16 %v3836_v41, %v3835_v63  ;;  %v3837_v4 = vmax.f32 %v3741_v26, %v3795_v25 }
 0x3c4   : > { %v3743_v17 = vmax.f32 %v3683_v16, 0.0  ;;  %v3686_v0 = vadd.f32 %v14733_v33, %v3525_v5  ;;  %v10607_v15 = vpop.f32.mrb[80].mxu1  ;;  %12030 = vmatpush3.bf16.msra.mxu1 %v12027_v29 }
 0x3c5   : > { %v10608_v12 = vpop.f32.mrb[81].mxu1  ;;  %11980 = vmatprep.subr.bf16.mxu0 %v11979_v61 }
 0x3c6   : > { %v3775_v8 = vrot.slane %v3743_v17, 1  ;;  %v3744_v53 = vmax.f32 %v3686_v0, 0.0  ;;  %v10609_v11 = vadd.f32 %v10608_v12, %v10607_v15  ;;  %v10610_v28 = vpop.f32.mrb[82].mxu1  ;;  %11982 = vmatpush3.bf16.msra.mxu0 %v11981_v21 }
 0x3c7   : > { %v10611_v24 = vpop.f32.mrb[83].mxu1 }
 0x3c8   : > { %v3776_v23 = vrot.slane %v3744_v53, 1  ;;  %v3530_v63 = vadd.f32 %v10609_v11, %v14748_v48  ;;  %v10612_v26 = vadd.f32 %v10611_v24, %v10610_v28  ;;  %v3794_v33 = vsel %vm2294_vm0, %v3774_v20, %v3775_v8 }
 0x3c9   : > { %v3838_v40 = vmax.f32 %v3742_v35, %v3794_v33 }
 0x3ca   : > { %v3691_v43 = vadd.f32 %v14739_v54, %v3530_v63  ;;  %v3533_v32 = vadd.f32 %v10612_v26, %v14748_v48  ;;  %v3793_v45 = vsel %vm2294_vm0, %v3775_v8, %v3776_v23 }
 0x3cb   : > { %v11983_v42 = vpack.c.bf16 %v3838_v40, %v3837_v4  ;;  %v3839_v59 = vmax.f32 %v3743_v17, %v3793_v45 }
 0x3cc   : > { %v3745_v21 = vmax.f32 %v3691_v43, 0.0  ;;  %v3694_v38 = vadd.f32 %v14743_v47, %v3533_v32  ;;  %v10613_v19 = vpop.f32.mrb[84].mxu1 }
 0x3cd   : > { %v10614_v37 = vpop.f32.mrb[85].mxu1  ;;  %11984 = vmatprep.subr.bf16.mxu0 %v11983_v42 }
 0x3ce   : > { %v3777_v56 = vrot.slane %v3745_v21, 1  ;;  %v3746_v1 = vmax.f32 %v3694_v38, 0.0  ;;  %v10615_v20 = vadd.f32 %v10614_v37, %v10613_v19  ;;  %v10616_v35 = vpop.f32.mrb[86].mxu1  ;;  %11986 = vmatpush3.bf16.msra.mxu0 %v11985_v52 }
 0x3cf   : > { %v10617_v54 = vpop.f32.mrb[87].mxu1 }
 0x3d0   : > { %v3778_v27 = vrot.slane %v3746_v1, 1  ;;  %v3538_v41 = vadd.f32 %v10615_v20, %v14748_v48  ;;  %v10618_v16 = vadd.f32 %v10617_v54, %v10616_v35  ;;  %v3792_v5 = vsel %vm2294_vm0, %v3776_v23, %v3777_v56 }
 0x3d1   : > { %v3840_v47 = vmax.f32 %v3744_v53, %v3792_v5 }
 0x3d2   : > { %v3699_v25 = vadd.f32 %v14737_v3, %v3538_v41  ;;  %v3541_v29 = vadd.f32 %v10618_v16, %v14748_v48  ;;  %v3791_v61 = vsel %vm2294_vm0, %v3777_v56, %v3778_v27 }
 0x3d3   : > { %v11987_v4 = vpack.c.bf16 %v3840_v47, %v3839_v59  ;;  %v3841_v17 = vmax.f32 %v3745_v21, %v3791_v61  ;;  %v3854_v61 = vld [vmem:[%s13126_s25 + $0x28] sm:$0xff] }
 0x3d4   : > { %v3747_v13 = vmax.f32 %v3699_v25, 0.0  ;;  %v3702_v60 = vadd.f32 %v14741_v18, %v3541_v29  ;;  %v10619_v52 = vpop.f32.mrb[88].mxu1  ;;  %v3851_v29 = vld [vmem:[%s13126_s25 + $0x10] sm:$0xff] }
 0x3d5   : > { %v10620_v0 = vpop.f32.mrb[89].mxu1  ;;  %11988 = vmatprep.subr.bf16.mxu0 %v11987_v4  ;;  %v3859_v4 = vld [vmem:[%s13126_s25 + $0x50] sm:$0xff] }
 0x3d6   : > { %v3779_v15 = vrot.slane %v3747_v13, 1  ;;  %v3748_v12 = vmax.f32 %v3702_v60, 0.0  ;;  %v10621_v8 = vadd.f32 %v10620_v0, %v10619_v52  ;;  %v10622_v11 = vpop.f32.mrb[90].mxu1  ;;  %11990 = vmatpush3.bf16.msra.mxu0 %v11989_v57  ;;  %v3864_v60 = vld [vmem:[%s13126_s25 + $0x78] sm:$0xff]  ;;  %v3863_v52 = vld [vmem:[%s13126_s25 + $0x70] sm:$0xff]  ;;  %v3866_v0 = vld [vmem:[%s13126_s25 + $0x88] sm:$0xff] }
 0x3d7   : > { %v10623_v3 = vpop.f32.mrb[91].mxu1 }
 0x3d8   : > { %v3780_v53 = vrot.slane %v3748_v12, 1  ;;  %v3546_v28 = vadd.f32 %v10621_v8, %v14748_v48  ;;  %v10624_v24 = vadd.f32 %v10623_v3, %v10622_v11  ;;  %v3790_v23 = vsel %vm2294_vm0, %v3778_v27, %v3779_v15  ;;  %v3867_v8 = vld [vmem:[%s13126_s25 + $0x90] sm:$0xff]  ;;  %v3870_v11 = vld [vmem:[%s13126_s25 + $0xa8] sm:$0xff]  ;;  %v3869_v3 = vld [vmem:[%s13126_s25 + $0xa0] sm:$0xff] }
 0x3d9   : > { %v3842_v18 = vmax.f32 %v3746_v1, %v3790_v23  ;;  %v3873_v23 = vld [vmem:[%s13126_s25 + $0xc0] sm:$0xff] }
 0x3da   : > { %v3707_v63 = vadd.f32 %v14750_v58, %v3546_v28  ;;  %v3549_v26 = vadd.f32 %v10624_v24, %v14748_v48  ;;  %v3789_v33 = vsel %vm2294_vm0, %v3779_v15, %v3780_v53  ;;  %v3865_v15 = vld [vmem:[%s13126_s25 + $0x80] sm:$0xff]  ;;  %v3871_v28 = vld [vmem:[%s13126_s25 + $0xb0] sm:$0xff]  ;;  %v3874_v24 = vld [vmem:[%s13126_s25 + $0xc8] sm:$0xff] }
 0x3db   : > { %v11991_v40 = vpack.c.bf16 %v3842_v18, %v3841_v17  ;;  %v3843_v43 = vmax.f32 %v3747_v13, %v3789_v33  ;;  %v3862_v17 = vld [vmem:[%s13126_s25 + $0x68] sm:$0xff]  ;;  %v3861_v13 = vld [vmem:[%s13126_s25 + $0x60] sm:$0xff]  ;;  %v3876_v18 = vld [vmem:[%s13126_s25 + $0xd8] sm:$0xff] }
 0x3dc   : > { %v3749_v51 = vmax.f32 %v3707_v63, 0.0  ;;  %v3710_v22 = vadd.f32 %v14754_v55, %v3549_v26  ;;  %v10625_v57 = vpop.f32.mrb[92].mxu1  ;;  %v3875_v63 = vld [vmem:[%s13126_s25 + $0xd0] sm:$0xff]  ;;  %v3878_v26 = vld [vmem:[%s13126_s25 + $0xe8] sm:$0xff]  ;;  %v3877_v33 = vld [vmem:[%s13126_s25 + $0xe0] sm:$0xff] }
 0x3dd   : > { %v10626_v32 = vpop.f32.mrb[93].mxu1  ;;  %11992 = vmatprep.subr.bf16.mxu0 %v11991_v40  ;;  %v3880_v40 = vld [vmem:[%s13126_s25 + $0xf8] sm:$0xff] }
 0x3de   : > { %v3781_v45 = vrot.slane %v3749_v51, 1  ;;  %v3750_v42 = vmax.f32 %v3710_v22, 0.0  ;;  %v10627_v59 = vadd.f32 %v10626_v32, %v10625_v57  ;;  %v10628_v21 = vpop.f32.mrb[94].mxu1  ;;  %11994 = vmatpush3.bf16.msra.mxu0 %v11993_v44  ;;  %v4039_v22 = vld [vmem:[%s13131_s29 + $0x68] sm:$0xff]  ;;  %v4040_v32 = vld [vmem:[%s13131_s29 + $0x70] sm:$0xff] }
 0x3df   : > { %v10629_v58 = vpop.f32.mrb[95].mxu1 }
 0x3e0   : > { %v3782_v38 = vrot.slane %v3750_v42, 1  ;;  %v3554_v19 = vadd.f32 %v10627_v59, %v14748_v48  ;;  %v10630_v37 = vadd.f32 %v10629_v58, %v10628_v21  ;;  %v3788_v56 = vsel %vm2294_vm0, %v3780_v53, %v3781_v45  ;;  %v3872_v53 = vld [vmem:[%s13126_s25 + $0xb8] sm:$0xff]  ;;  %v4187_v59 = vld [vmem:[%s13136_s3] sm:$0xff]  ;;  %v4188_v21 = vld [vmem:[%s13136_s3 + $0x8] sm:$0xff] }
 0x3e1   : > { %v3844_v55 = vmax.f32 %v3748_v12, %v3788_v56  ;;  %v3868_v12 = vld [vmem:[%s13126_s25 + $0x98] sm:$0xff]  ;;  %v12039_v58 = vpack.c.bf16 %v4188_v21, %v4187_v59  ;;  %v4189_v56 = vld [vmem:[%s13136_s3 + $0x10] sm:$0xff] }
 0x3e2   : > { %v3715_v1 = vadd.f32 %v14745_v7, %v3554_v19  ;;  %v3557_v20 = vadd.f32 %v10630_v37, %v14748_v48  ;;  %v3787_v35 = vsel %vm2294_vm0, %v3781_v45, %v3782_v38  ;;  %v4041_v45 = vld [vmem:[%s13131_s29 + $0x78] sm:$0xff] }
 0x3e3   : > { %v11995_v54 = vpack.c.bf16 %v3844_v55, %v3843_v43  ;;  %v3845_v27 = vmax.f32 %v3749_v51, %v3787_v35  ;;  %v3879_v43 = vld [vmem:[%s13126_s25 + $0xf0] sm:$0xff]  ;;  %v4038_v51 = vld [vmem:[%s13131_s29 + $0x60] sm:$0xff]  ;;  %v4190_v55 = vld [vmem:[%s13136_s3 + $0x18] sm:$0xff] }
 0x3e4   : > { %v3751_v50 = vmax.f32 %v3715_v1, 0.0  ;;  %v3718_v31 = vadd.f32 %v14752_v46, %v3557_v20  ;;  %v12031_v57 = vpack.c.bf16 %v4039_v22, %v4038_v51 }
 0x3e5   : > { %11996 = vmatprep.subr.bf16.mxu0 %v11995_v54  ;;  %v12043_v54 = vpack.c.bf16 %v4190_v55, %v4189_v56 }
 0x3e6   : > { %v3783_v44 = vrot.slane %v3751_v50, 1  ;;  %v3752_v41 = vmax.f32 %v3718_v31, 0.0  ;;  %11998 = vmatpush3.bf16.msra.mxu0 %v11997_v62  ;;  %v3849_v62 = vld [vmem:[%s13126_s25] sm:$0xff]  ;;  %12032 = vmatprep.subr.bf16.mxu1 %v12031_v57 }
 0x3e7   : > { %12034 = vmatpush3.bf16.msra.mxu1 %v12031_v57 }
 0x3e8   : > { %v3784_v7 = vrot.slane %v3752_v41, 1  ;;  %v3786_v48 = vsel %vm2294_vm0, %v3782_v38, %v3783_v44 }
 0x3e9   : > { %v3846_v16 = vmax.f32 %v3750_v42, %v3786_v48  ;;  %v12035_v42 = vpack.c.bf16 %v4041_v45, %v4040_v32  ;;  %v4193_v48 = vld [vmem:[%s13136_s3 + $0x30] sm:$0xff] }
 0x3ea   : > { %v3785_v5 = vsel %vm2294_vm0, %v3783_v44, %v3784_v7  ;;  %v3816_v46 = vsel %vm2294_vm0, %v3784_v7, %v14758_v30  ;;  %v3852_v30 = vld [vmem:[%s13126_s25 + $0x18] sm:$0xff] }
 0x3eb   : > { %v11999_v47 = vpack.c.bf16 %v3846_v16, %v3845_v27  ;;  %v3847_v25 = vmax.f32 %v3751_v50, %v3785_v5  ;;  %v3848_v39 = vmax.f32 %v3752_v41, %v3816_v46  ;;  %12036 = vmatprep.subr.bf16.mxu1 %v12035_v42  ;;  %v4191_v27 = vld [vmem:[%s13136_s3 + $0x20] sm:$0xff]  ;;  %v4192_v50 = vld [vmem:[%s13136_s3 + $0x28] sm:$0xff]  ;;  %v4194_v16 = vld [vmem:[%s13136_s3 + $0x38] sm:$0xff] }
 0x3ec   : > { %12038 = vmatpush3.bf16.msra.mxu1 %v12035_v42  ;;  %v12047_v7 = vpack.c.bf16 %v4192_v50, %v4191_v27  ;;  %v12613_v27 = vld [vmem:[%s13141_s8 + $0x10] sm:$0xff]   ;;  %v12614_v50 = vld [vmem:[%s13141_s8 + $0x18] sm:$0xff]  }
 0x3ed   : > { %12000 = vmatprep.subr.bf16.mxu0 %v11999_v47  ;;  %v12003_v34 = vpack.c.bf16 %v3848_v39, %v3847_v25  ;;  %12040 = vmatprep.subr.bf16.mxu1 %v12039_v58  ;;  %v12051_v25 = vpack.c.bf16 %v4194_v16, %v4193_v48  ;;  %v4195_v39 = vld [vmem:[%s13136_s3 + $0x40] sm:$0xff] }
 0x3ee   : > { %12002 = vmatpush3.bf16.msra.mxu0 %v12001_v49  ;;  %v3855_v49 = vld [vmem:[%s13126_s25 + $0x30] sm:$0xff]  ;;  %v12619_v48 = vld [vmem:[%s13141_s8 + $0x40] sm:$0xff]  }
 0x3ef   : > { %12004 = vmatprep.subr.bf16.mxu0 %v12003_v34  ;;  %v4196_v34 = vld [vmem:[%s13136_s3 + $0x48] sm:$0xff] }
 0x3f2   : > { %12006 = vmatpush3.bf16.msra.mxu0 %v12005_v36  ;;  %v3860_v36 = vld [vmem:[%s13126_s25 + $0x58] sm:$0xff] }
 0x3f5   : > { %3946 = vmatmul.mubr.f32.vlgmr.msra.gmra.mrb[96].mxu0 %v3849_v62 }
 0x3f6   : > { %3950 = vmatprep.mubr.f32.mxu0 %v3852_v30 }
 0x3f9   : > { %3951 = vmatmul.mubr.f32.gmra.mrb[98].mxu0 %v3851_v29 }
 0x3fa   : > { %3955 = vmatprep.mubr.f32.mxu0 %v3854_v61  ;;  %v12055_v61 = vpack.c.bf16 %v4196_v34, %v4195_v39 }
 0x3fd   : > { %3956 = vmatmul.mubr.f32.gmra.mrb[100].mxu0 %v3853_v9  ;;  %v4197_v9 = vld [vmem:[%s13136_s3 + $0x50] sm:$0xff] }
 0x3fe   : > { %3960 = vmatprep.mubr.f32.mxu0 %v3856_v14  ;;  %v4198_v14 = vld [vmem:[%s13136_s3 + $0x58] sm:$0xff] }
 0x401   : > { %3961 = vmatmul.mubr.f32.gmra.mrb[102].mxu0 %v3855_v49 }
 0x402   : > { %3965 = vmatprep.mubr.f32.mxu0 %v3858_v2 }
 0x405   : > { %3966 = vmatmul.mubr.f32.gmra.mrb[104].mxu0 %v3857_v6 }
 0x406   : > { %3970 = vmatprep.mubr.f32.mxu0 %v3860_v36  ;;  %v12059_v36 = vpack.c.bf16 %v4198_v14, %v4197_v9 }
 0x409   : > { %3971 = vmatmul.mubr.f32.gmra.mrb[106].mxu0 %v3859_v4  ;;  %v4199_v4 = vld [vmem:[%s13136_s3 + $0x60] sm:$0xff] }
 0x40a   : > { %3975 = vmatprep.mubr.f32.mxu0 %v3862_v17  ;;  %v4200_v17 = vld [vmem:[%s13136_s3 + $0x68] sm:$0xff] }
 0x40d   : > { %3976 = vmatmul.mubr.f32.gmra.mrb[108].mxu0 %v3861_v13 }
 0x40e   : > { %3980 = vmatprep.mubr.f32.mxu0 %v3864_v60 }
 0x411   : > { %3981 = vmatmul.mubr.f32.gmra.mrb[110].mxu0 %v3863_v52 }
 0x412   : > { %3985 = vmatprep.mubr.f32.mxu0 %v3866_v0  ;;  %v12063_v0 = vpack.c.bf16 %v4200_v17, %v4199_v4  ;;  %v12622_v4 = vld [vmem:[%s13141_s8 + $0x58] sm:$0xff]  }
 0x415   : > { %3986 = vmatmul.mubr.f32.gmra.mrb[112].mxu0 %v3865_v15  ;;  %v4201_v15 = vld [vmem:[%s13136_s3 + $0x70] sm:$0xff] }
 0x416   : > { %3990 = vmatprep.mubr.f32.mxu0 %v3868_v12  ;;  %v4202_v12 = vld [vmem:[%s13136_s3 + $0x78] sm:$0xff] }
 0x419   : > { %3991 = vmatmul.mubr.f32.gmra.mrb[114].mxu0 %v3867_v8 }
 0x41a   : > { %3995 = vmatprep.mubr.f32.mxu0 %v3870_v11 }
 0x41d   : > { %3996 = vmatmul.mubr.f32.gmra.mrb[116].mxu0 %v3869_v3 }
 0x41e   : > { %4000 = vmatprep.mubr.f32.mxu0 %v3872_v53  ;;  %v12067_v53 = vpack.c.bf16 %v4202_v12, %v4201_v15 }
 0x421   : > { %4001 = vmatmul.mubr.f32.gmra.mrb[118].mxu0 %v3871_v28 }
 0x422   : > { %4005 = vmatprep.mubr.f32.mxu0 %v3874_v24 }
 0x425   : > { %4006 = vmatmul.mubr.f32.gmra.mrb[120].mxu0 %v3873_v23 }
 0x426   : > { %4010 = vmatprep.mubr.f32.mxu0 %v3876_v18 }
 0x429   : > { %4011 = vmatmul.mubr.f32.gmra.mrb[122].mxu0 %v3875_v63 }
 0x42a   : > { %4015 = vmatprep.mubr.f32.mxu0 %v3878_v26 }
 0x42d   : > { %4016 = vmatmul.mubr.f32.gmra.mrb[124].mxu0 %v3877_v33 }
 0x42e   : > { %4020 = vmatprep.mubr.f32.mxu0 %v3880_v40 }
 0x431   : > { %4021 = vmatmul.mubr.f32.gmra.mrb[126].mxu0 %v3879_v43 }
 0x4c8   : > { %v10687_v38 = vpop.f32.mrb[96].mxu0 }
 0x4c9   : > { %v10688_v19 = vpop.f32.mrb[97].mxu0 }
 0x4ca   : > { %v15006_v37 = vadd.f32 %v10688_v19, %v10687_v38 }
 0x4cc   : > { %v10690_v1 = vpop.f32.mrb[98].mxu0  ;;  %11387 = vmatprep.mubr.f32.mxu1 %v15006_v37 }
 0x4cd   : > { %v10691_v20 = vpop.f32.mrb[99].mxu0 }
 0x4ce   : > { %v15011_v35 = vadd.f32 %v10691_v20, %v10690_v1 }
 0x4d0   : > { %v10693_v31 = vpop.f32.mrb[100].mxu0  ;;  %11388 = vmatmul.mubr.f32.vlgmr.msra.gmra.mrb[96].mxu1 %v15011_v35 }
 0x4d1   : > { %v10694_v44 = vpop.f32.mrb[101].mxu0  ;;  %12042 = vmatpush3.bf16.msra.mxu1 %v12039_v58 }
 0x4d2   : > { %v15016_v41 = vadd.f32 %v10694_v44, %v10693_v31  ;;  %12044 = vmatprep.subr.bf16.mxu1 %v12043_v54  ;;  %v12615_v31 = vld [vmem:[%s13141_s8 + $0x20] sm:$0xff]   ;;  %v12616_v44 = vld [vmem:[%s13141_s8 + $0x28] sm:$0xff]  }
 0x4d4   : > { %v10696_v5 = vpop.f32.mrb[102].mxu0  ;;  %11390 = vmatprep.mubr.f32.mxu1 %v15016_v41 }
 0x4d5   : > { %v10697_v46 = vpop.f32.mrb[103].mxu0  ;;  %12046 = vmatpush3.bf16.msra.mxu1 %v12043_v54  ;;  %v12612_v54 = vld [vmem:[%s13141_s8 + $0x8] sm:$0xff]  }
 0x4d6   : > { %v15021_v47 = vadd.f32 %v10697_v46, %v10696_v5  ;;  %12048 = vmatprep.subr.bf16.mxu1 %v12047_v7  ;;  %v12620_v5 = vld [vmem:[%s13141_s8 + $0x48] sm:$0xff]  }
 0x4d8   : > { %v10699_v62 = vpop.f32.mrb[104].mxu0  ;;  %11391 = vmatmul.mubr.f32.gmra.mrb[98].mxu1 %v15021_v47 }
 0x4d9   : > { %v10700_v30 = vpop.f32.mrb[105].mxu0  ;;  %12050 = vmatpush3.bf16.msra.mxu1 %v12047_v7  ;;  %v12618_v7 = vld [vmem:[%s13141_s8 + $0x38] sm:$0xff]  }
 0x4da   : > { %v15026_v29 = vadd.f32 %v10700_v30, %v10699_v62  ;;  %12052 = vmatprep.subr.bf16.mxu1 %v12051_v25 }
 0x4dc   : > { %v10702_v49 = vpop.f32.mrb[106].mxu0  ;;  %11393 = vmatprep.mubr.f32.mxu1 %v15026_v29 }
 0x4dd   : > { %v10703_v2 = vpop.f32.mrb[107].mxu0  ;;  %12054 = vmatpush3.bf16.msra.mxu1 %v12051_v25 }
 0x4de   : > { %v10704_v6 = vadd.f32 %v10703_v2, %v10702_v49  ;;  %12056 = vmatprep.subr.bf16.mxu1 %v12055_v61 }
 0x4e0   : > { %v10705_v13 = vpop.f32.mrb[108].mxu0  ;;  %11394 = vmatmul.mubr.f32.gmra.mrb[100].mxu1 %v10704_v6 }
 0x4e1   : > { %v10706_v60 = vpop.f32.mrb[109].mxu0  ;;  %12058 = vmatpush3.bf16.msra.mxu1 %v12055_v61 }
 0x4e2   : > { %v10707_v52 = vadd.f32 %v10706_v60, %v10705_v13  ;;  %12060 = vmatprep.subr.bf16.mxu1 %v12059_v36 }
 0x4e4   : > { %v10708_v8 = vpop.f32.mrb[110].mxu0  ;;  %11396 = vmatprep.mubr.f32.mxu1 %v10707_v52 }
 0x4e5   : > { %v10709_v11 = vpop.f32.mrb[111].mxu0  ;;  %12062 = vmatpush3.bf16.msra.mxu1 %v12059_v36  ;;  %v15080_v36 = vadd.s32 8, %v13502_v10 }
 0x4e6   : > { %v10710_v3 = vadd.f32 %v10709_v11, %v10708_v8  ;;  %12064 = vmatprep.subr.bf16.mxu1 %v12063_v0  ;;  %v17040_v8 = vld [vmem:[#allocation48_spill] sm:$0xff] }
 0x4e7   : > { %v4375_v60 = vand.u32 15, %v15080_v36  ;;  %v4389_v11 = vand.u32 15, %v17040_v8 }
 0x4e8   : > { %v10711_v28 = vpop.f32.mrb[112].mxu0  ;;  %11397 = vmatmul.mubr.f32.gmra.mrb[102].mxu1 %v10710_v3 }
 0x4e9   : > { %v10712_v24 = vpop.f32.mrb[113].mxu0  ;;  %12066 = vmatpush3.bf16.msra.mxu1 %v12063_v0  ;;  %vm15091_vm4 = vcmp.ne.s32.totalorder %v4375_v60, 15  ;;  %vm4607_vm5 = vcmp.ne.s32.totalorder %v4389_v11, 15 }
 0x4ea   : > { %v10713_v23 = vadd.f32 %v10712_v24, %v10711_v28  ;;  %12068 = vmatprep.subr.bf16.mxu1 %v12067_v53 }
 0x4ec   : > { %v10714_v18 = vpop.f32.mrb[114].mxu0  ;;  %11399 = vmatprep.mubr.f32.mxu1 %v10713_v23 }
 0x4ed   : > { %v10715_v63 = vpop.f32.mrb[115].mxu0  ;;  %12070 = vmatpush3.bf16.msra.mxu1 %v12067_v53 }
 0x4ee   : > { %v10716_v26 = vadd.f32 %v10715_v63, %v10714_v18 }
 0x4f0   : > { %v10717_v33 = vpop.f32.mrb[116].mxu0  ;;  %11400 = vmatmul.mubr.f32.gmra.mrb[104].mxu1 %v10716_v26 }
 0x4f1   : > { %v10718_v40 = vpop.f32.mrb[117].mxu0 }
 0x4f2   : > { %v10719_v43 = vadd.f32 %v10718_v40, %v10717_v33 }
 0x4f4   : > { %v10720_v51 = vpop.f32.mrb[118].mxu0  ;;  %11402 = vmatprep.mubr.f32.mxu1 %v10719_v43 }
 0x4f5   : > { %v10721_v22 = vpop.f32.mrb[119].mxu0 }
 0x4f6   : > { %v10722_v57 = vadd.f32 %v10721_v22, %v10720_v51 }
 0x4f8   : > { %v10723_v32 = vpop.f32.mrb[120].mxu0  ;;  %11403 = vmatmul.mubr.f32.gmra.mrb[106].mxu1 %v10722_v57 }
 0x4f9   : > { %v10724_v45 = vpop.f32.mrb[121].mxu0 }
 0x4fa   : > { %v10725_v42 = vadd.f32 %v10724_v45, %v10723_v32 }
 0x4fc   : > { %v10726_v59 = vpop.f32.mrb[122].mxu0  ;;  %11405 = vmatprep.mubr.f32.mxu1 %v10725_v42 }
 0x4fd   : > { %v10727_v21 = vpop.f32.mrb[123].mxu0 }
 0x4fe   : > { %v10728_v58 = vadd.f32 %v10727_v21, %v10726_v59 }
 0x500   : > { %v10729_v38 = vpop.f32.mrb[124].mxu0  ;;  %11406 = vmatmul.mubr.f32.gmra.mrb[108].mxu1 %v10728_v58 }
 0x501   : > { %v10730_v19 = vpop.f32.mrb[125].mxu0 }
 0x502   : > { %v10731_v56 = vadd.f32 %v10730_v19, %v10729_v38 }
 0x504   : > { %v10732_v55 = vpop.f32.mrb[126].mxu0  ;;  %11408 = vmatprep.mubr.f32.mxu1 %v10731_v56 }
 0x505   : > { %v10733_v1 = vpop.f32.mrb[127].mxu0 }
 0x506   : > { %v10734_v20 = vadd.f32 %v10733_v1, %v10732_v55 }
 0x508   : > { %11409 = vmatmul.mubr.f32.gmra.mrb[110].mxu1 %v10734_v20 }
 0x509   : > { %11443 = vmatprep.mubr.f32.mxu1 %v15006_v37  ;;  %v12611_v37 = vld [vmem:[%s13141_s8] sm:$0xff]  }
 0x50c   : > { %11444 = vmatmul.mubr.f32.vlgmr.msra.gmra.mrb[112].mxu1 %v15011_v35  ;;  %v16857_v35 = vmov 0  }
 0x50d   : > { %11446 = vmatprep.mubr.f32.mxu1 %v15016_v41  ;;  %4972 = vmatprep.subr.bf16.mxu0 %v16857_v35  ;;  %v12617_v41 = vld [vmem:[%s13141_s8 + $0x30] sm:$0xff]  }
 0x50e   : > { %4973 = vmatpush1.bf16.msra.mxu0 %v12611_v37  ;;  %v17044_v37 = vld [vmem:[#allocation50_spill] sm:$0xff] }
 0x50f   : > { %4974 = vmatprep.subr.bf16.mxu0 %v16857_v35 }
 0x510   : > { %11447 = vmatmul.mubr.f32.gmra.mrb[114].mxu1 %v15021_v47  ;;  %v12621_v47 = vld [vmem:[%s13141_s8 + $0x50] sm:$0xff]  }
 0x511   : > { %11449 = vmatprep.mubr.f32.mxu1 %v15026_v29 }
 0x512   : > { %4975 = vmatpush1.bf16.msra.mxu0 %v12612_v54  ;;  %v4417_v54 = vand.u32 15, %v17044_v37 }
 0x513   : > { %4976 = vmatprep.subr.bf16.mxu0 %v16857_v35 }
 0x514   : > { %11450 = vmatmul.mubr.f32.gmra.mrb[116].mxu1 %v10704_v6  ;;  %vm15144_vm8 = vcmp.ne.s32.totalorder %v4417_v54, 15 }
 0x515   : > { %11452 = vmatprep.mubr.f32.mxu1 %v10707_v52 }
 0x516   : > { %4977 = vmatpush1.bf16.msra.mxu0 %v12613_v27 }
 0x517   : > { %4978 = vmatprep.subr.bf16.mxu0 %v16857_v35 }
 0x518   : > { %11453 = vmatmul.mubr.f32.gmra.mrb[118].mxu1 %v10710_v3 }
 0x519   : > { %11455 = vmatprep.mubr.f32.mxu1 %v10713_v23 }
 0x51a   : > { %4979 = vmatpush1.bf16.msra.mxu0 %v12614_v50 }
 0x51b   : > { %4980 = vmatprep.subr.bf16.mxu0 %v16857_v35 }
 0x51c   : > { %11456 = vmatmul.mubr.f32.gmra.mrb[120].mxu1 %v10716_v26  ;;  %v15099_v26 = vadd.s32 40, %v13502_v10 }
 0x51d   : > { %11458 = vmatprep.mubr.f32.mxu1 %v10719_v43  ;;  %v1566_v43 = vadd.s32 72, %v13502_v10 }
 0x51e   : > { %4981 = vmatpush1.bf16.msra.mxu0 %v12615_v31 }
 0x51f   : > { %4982 = vmatprep.subr.bf16.mxu0 %v16857_v35  ;;  %v4431_v27 = vand.u32 15, %v1566_v43 }
 0x520   : > { %11459 = vmatmul.mubr.f32.gmra.mrb[122].mxu1 %v10722_v57 }
 0x521   : > { %11461 = vmatprep.mubr.f32.mxu1 %v10725_v42  ;;  %v17043_v42 = vmov 0.0   ;;  %vm15148_vm9 = vcmp.ne.s32.totalorder %v4431_v27, 15 }
 0x522   : > { %4983 = vmatpush1.bf16.msra.mxu0 %v12616_v44  ;;  %v15116_v59 = vsel %vm15091_vm4, 1.0, %v17043_v42 }
 0x523   : > { %4984 = vmatprep.subr.bf16.mxu0 %v16857_v35 }
 0x524   : > { %11462 = vmatmul.mubr.f32.gmra.mrb[124].mxu1 %v10728_v58 }
 0x525   : > { %11464 = vmatprep.mubr.f32.mxu1 %v10731_v56  ;;  %v4403_v56 = vand.u32 15, %v15099_v26 }
 0x526   : > { %4985 = vmatpush1.bf16.msra.mxu0 %v12617_v41 }
 0x527   : > { %4986 = vmatprep.subr.bf16.mxu0 %v16857_v35  ;;  %vm15139_vm7 = vcmp.ne.s32.totalorder %v4403_v56, 15 }
 0x528   : > { %11465 = vmatmul.mubr.f32.gmra.mrb[126].mxu1 %v10734_v20  ;;  %v15120_v20 = vsel %vm4607_vm5, 1.0, %v17043_v42 }
 0x52a   : > { %4987 = vmatpush1.bf16.msra.mxu0 %v12618_v7 }
 0x52b   : > { %4988 = vmatprep.subr.bf16.mxu0 %v16857_v35 }
 0x52e   : > { %4989 = vmatpush1.bf16.msra.mxu0 %v12619_v48 }
 0x52f   : > { %4990 = vmatprep.subr.bf16.mxu0 %v16857_v35 }
 0x532   : > { %4991 = vmatpush1.bf16.msra.mxu0 %v12620_v5 }
 0x533   : > { %4992 = vmatprep.subr.bf16.mxu0 %v16857_v35 }
 0x536   : > { %4993 = vmatpush1.bf16.msra.mxu0 %v12621_v47 }
 0x537   : > { %4994 = vmatprep.subr.bf16.mxu0 %v16857_v35 }
 0x53a   : > { %4995 = vmatpush1.bf16.msra.mxu0 %v12622_v4 }
 0x5a3   : > { %v11389_v16 = vpop.f32.mrb[96].mxu1 }
 0x5a4   : > { %v4108_v46 = vpop.f32.mrb[97].mxu1 }
 0x5ab   : > { %v11392_v25 = vpop.f32.mrb[98].mxu1 }
 0x5ac   : > { %v4118_v39 = vpop.f32.mrb[99].mxu1 }
 0x5b3   : > { %v11395_v34 = vpop.f32.mrb[100].mxu1 }
 0x5b4   : > { %v4128_v62 = vpop.f32.mrb[101].mxu1 }
 0x5bb   : > { %v15063_v30 = vpop.f32.mrb[102].mxu1 }
 0x5bc   : > { %v15065_v29 = vpop.f32.mrb[103].mxu1 }
 0x5c3   : > { %v15067_v61 = vpop.f32.mrb[104].mxu1 }
 0x5c4   : > { %v15069_v9 = vpop.f32.mrb[105].mxu1 }
 0x5cb   : > { %v15071_v14 = vpop.f32.mrb[106].mxu1 }
 0x5cc   : > { %v15073_v49 = vpop.f32.mrb[107].mxu1 }
 0x5d3   : > { %v15075_v2 = vpop.f32.mrb[108].mxu1 }
 0x5d4   : > { %v15077_v6 = vpop.f32.mrb[109].mxu1 }
 0x5db   : > { %v15083_v17 = vpop.f32.mrb[110].mxu1 }
 0x5dc   : > { %v15085_v13 = vpop.f32.mrb[111].mxu1 }
 0x5df   : > { %v11445_v52 = vpop.f32.mrb[112].mxu1 }
 0x5e0   : > { %v4349_v0 = vmax.f32 %v11389_v16, %v11445_v52  ;;  %v4269_v15 = vpop.f32.mrb[113].mxu1 }
 0x5e1   : > { %v15088_v12 = vmax.f32 %v4108_v46, %v4269_v15 }
 0x5e2   : > { %v4653_v3 = vrot.slane %v4349_v0, 7  ;;  %v4701_v53 = vrot.slane %v4349_v0, 1 }
 0x5e3   : > { %v4652_v24 = vrot.slane %v15088_v12, 7  ;;  %v4700_v23 = vrot.slane %v15088_v12, 1  ;;  %v11448_v18 = vpop.f32.mrb[114].mxu1  ;;  %v12478_v63 = vpack.i.bf16 %v4349_v0, %v15088_v12 }
 0x5e4   : > { %v4351_v33 = vmax.f32 %v11392_v25, %v11448_v18  ;;  %v4279_v40 = vpop.f32.mrb[115].mxu1 }
 0x5e5   : > { %v4350_v51 = vmax.f32 %v4118_v39, %v4279_v40  ;;  %12479 = vrot.lane.b32.xlu0 %v12478_v63, %s16859_s22  ;;  %v4730_v22 = vsel %vm2294_vm0, %v4700_v23, %v4701_v53  ;;  %v15111_v57 = vsel %vm2197_vm1, %v4652_v24, %v4653_v3 }
 0x5e6   : > { %v4655_v32 = vrot.slane %v4351_v33, 7  ;;  %v4703_v45 = vrot.slane %v4351_v33, 1 }
 0x5e7   : > { %v4654_v21 = vrot.slane %v4350_v51, 7  ;;  %v4702_v58 = vrot.slane %v4350_v51, 1  ;;  %v11451_v38 = vpop.f32.mrb[116].mxu1  ;;  %v12483_v19 = vpack.i.bf16 %v4351_v33, %v4350_v51  ;;  %v15175_v51 = vsel %vm15139_vm7, 1.0, %v17043_v42 }
 0x5e8   : > { %v4353_v55 = vmax.f32 %v11395_v34, %v11451_v38  ;;  %v4289_v1 = vpop.f32.mrb[117].mxu1  ;;  %v17052_v34 = vld [vmem:[#allocation54_spill] sm:$0xff] }
 0x5e9   : > { %v15125_v50 = vsel %vm2197_vm1, %v4653_v3, %v4654_v21  ;;  %v4729_v31 = vsel %vm2294_vm0, %v4701_v53, %v4702_v58  ;;  %v4352_v44 = vmax.f32 %v4128_v62, %v4289_v1  ;;  %12484 = vrot.lane.b32.xlu0 %v12483_v19, %s16859_s22  ;;  %v15132_v41 = vsel %vm2294_vm0, %v4702_v58, %v4703_v45 }
 0x5ea   : > { %v4657_v7 = vrot.slane %v4353_v55, 7  ;;  %v4705_v48 = vrot.slane %v4353_v55, 1  ;;  %v4733_v16 = vmul.f32 %v15116_v59, %v4729_v31  ;;  %v15137_v5 = vsel %vm2197_vm1, %v4654_v21, %v4655_v32 }
 0x5eb   : > { %v4656_v46 = vrot.slane %v4352_v44, 7  ;;  %v4704_v47 = vrot.slane %v4352_v44, 1  ;;  %v11454_v25 = vpop.f32.mrb[118].mxu1  ;;  %v12488_v39 = vpack.i.bf16 %v4353_v55, %v4352_v44  ;;  %v15183_v21 = vsel %vm15144_vm8, 1.0, %v17043_v42 }
 0x5ec   : > { %v4355_v62 = vmax.f32 %v15063_v30, %v11454_v25  ;;  %v4299_v4 = vpop.f32.mrb[119].mxu1  ;;  %v4830_v60 = vpack.c.bf16 %v4733_v16, %v4730_v22  ;;  %v15188_v58 = vsel %vm15148_vm9, 1.0, %v17043_v42  ;;  %v1567_v25 = vadd.s32 80, %v13502_v10 }
 0x5ed   : > { %v15154_v15 = vsel %vm2197_vm1, %v4655_v32, %v4656_v46  ;;  %v4727_v11 = vsel %vm2294_vm0, %v4703_v45, %v4704_v47  ;;  %v4354_v3 = vmax.f32 %v15065_v29, %v4299_v4  ;;  %12489 = vrot.lane.b32.xlu1 %v12488_v39, %s16859_s22  ;;  %v15162_v30 = vsel %vm2294_vm0, %v4704_v47, %v4705_v48 }
 0x5ee   : > { %v4659_v53 = vrot.slane %v4355_v62, 7  ;;  %v4707_v28 = vrot.slane %v4355_v62, 1  ;;  %10121 = vmatprep.mubr.msk.bf16.mxu0 %vm4812_vm6, %v4830_v60  ;;  %v15166_v18 = vmul.f32 %v15120_v20, %v4727_v11  ;;  %v15170_v63 = vsel %vm2197_vm1, %v4656_v46, %v4657_v7 }
 0x5ef   : > { %v4658_v33 = vrot.slane %v4354_v3, 7  ;;  %v4706_v40 = vrot.slane %v4354_v3, 1  ;;  %v11457_v29 = vpop.f32.mrb[120].mxu1  ;;  %v12493_v43 = vpack.i.bf16 %v4355_v62, %v4354_v3  ;;  %v1570_v39 = vadd.s32 104, %v13502_v10 }
 0x5f0   : > { %v4357_v22 = vmax.f32 %v15067_v61, %v11457_v29  ;;  %v4309_v32 = vpop.f32.mrb[121].mxu1  ;;  %v4832_v45 = vpack.c.bf16 %v15166_v18, %v15132_v41  ;;  %v4473_v62 = vand.u32 15, %v17052_v34  ;;  %v4438_v18 = vand.u32 15, %v1567_v25 }
 0x5f1   : > { %v15192_v38 = vsel %vm2197_vm1, %v4657_v7, %v4658_v33  ;;  %v4725_v61 = vsel %vm2294_vm0, %v4705_v48, %v4706_v40  ;;  %v4356_v19 = vmax.f32 %v15069_v9, %v4309_v32  ;;  %12494 = vrot.lane.b32.xlu1 %v12493_v43, %s16859_s22  ;;  %v15200_v56 = vsel %vm2294_vm0, %v4706_v40, %v4707_v28  ;;  %v17051_v9 = vld [vmem:[#allocation52_spill] sm:$0xff] }
 0x5f2   : > { %v4661_v55 = vrot.slane %v4357_v22, 7  ;;  %v4709_v1 = vrot.slane %v4357_v22, 1  ;;  %v15203_v54 = vmul.f32 %v15175_v51, %v4725_v61  ;;  %v15207_v27 = vsel %vm2197_vm1, %v4658_v33, %v4659_v53 }
 0x5f3   : > { %v4660_v31 = vrot.slane %v4356_v19, 7  ;;  %v4708_v44 = vrot.slane %v4356_v19, 1  ;;  %v11460_v7 = vpop.f32.mrb[122].mxu1  ;;  %v12498_v48 = vpack.i.bf16 %v4357_v22, %v4356_v19  ;;  %v4445_v16 = vand.u32 15, %v17051_v9 }
 0x5f4   : > { %v4359_v46 = vmax.f32 %v15071_v14, %v11460_v7  ;;  %v4319_v47 = vpop.f32.mrb[123].mxu1  ;;  %v4459_v61 = vand.u32 15, %v1570_v39  ;;  %vm15241_vm11 = vcmp.ne.s32.totalorder %v4473_v62, 15  ;;  %vm4566_vm4 = vcmp.ne.s32.totalorder %v4438_v18, 0 }
 0x5f5   : > { %v15217_v4 = vsel %vm2197_vm1, %v4659_v53, %v4660_v31  ;;  %v4723_v60 = vsel %vm2294_vm0, %v4707_v28, %v4708_v44  ;;  %v4358_v52 = vmax.f32 %v15073_v49, %v4319_v47  ;;  %12499 = vrot.lane.b32.xlu0 %v12498_v48, %s16859_s22  ;;  %v15225_v14 = vsel %vm2294_vm0, %v4708_v44, %v4709_v1 }
 0x5f6   : > { %v4663_v0 = vrot.slane %v4359_v46, 7  ;;  %v4711_v11 = vrot.slane %v4359_v46, 1  ;;  %v15228_v3 = vmul.f32 %v15183_v21, %v4723_v60  ;;  %v15232_v53 = vsel %vm2197_vm1, %v4660_v31, %v4661_v55 }
 0x5f7   : > { %v4662_v33 = vrot.slane %v4358_v52, 7  ;;  %v4710_v40 = vrot.slane %v4358_v52, 1  ;;  %v11463_v28 = vpop.f32.mrb[124].mxu1  ;;  %v12503_v29 = vpack.i.bf16 %v4359_v46, %v4358_v52  ;;  %vm15234_vm10 = vcmp.ne.s32.totalorder %v4445_v16, 15 }
 0x5f8   : > { %v4361_v43 = vmax.f32 %v15075_v2, %v11463_v28  ;;  %v4329_v22 = vpop.f32.mrb[125].mxu1  ;;  %vm4617_vm12 = vcmp.ne.s32.totalorder %v4459_v61, 15  ;;  %v15275_v52 = vsel %vm15241_vm11, 1.0, %v17043_v42  ;;  %v17060_v25 = vpack.c.bf16 %v15203_v54, %v15162_v30 }
 0x5f9   : > { %v15247_v31 = vsel %vm2197_vm1, %v4661_v55, %v4662_v33  ;;  %v4721_v44 = vsel %vm2294_vm0, %v4709_v1, %v4710_v40  ;;  %v4360_v7 = vmax.f32 %v15077_v6, %v4329_v22  ;;  %12504 = vrot.lane.b32.xlu1 %v12503_v29, %s16859_s22  ;;  %v15255_v2 = vsel %vm2294_vm0, %v4710_v40, %v4711_v11 }
 0x5fa   : > { %v4665_v48 = vrot.slane %v4361_v43, 7  ;;  %v4713_v9 = vrot.slane %v4361_v43, 1  ;;  %v15258_v16 = vmul.f32 %v15188_v58, %v4721_v44  ;;  %v15262_v55 = vsel %vm2197_vm1, %v4662_v33, %v4663_v0 }
 0x5fb   : > { %v4664_v46 = vrot.slane %v4360_v7, 7  ;;  %v4712_v47 = vrot.slane %v4360_v7, 1  ;;  %v11466_v1 = vpop.f32.mrb[126].mxu1  ;;  %v12508_v39 = vpack.i.bf16 %v4361_v43, %v4360_v7  ;;  %v15267_v6 = vsel %vm15234_vm10, 1.0, %v17043_v42 }
 0x5fc   : > { %v4363_v34 = vmax.f32 %v15083_v17, %v11466_v1  ;;  %v4339_v62 = vpop.f32.mrb[127].mxu1  ;;  %v15394_v30 = vsel %vm4566_vm4, 1.0, %v17043_v42 }
 0x5fd   : > { %v15279_v33 = vsel %vm2197_vm1, %v4663_v0, %v4664_v46  ;;  %v4719_v40 = vsel %vm2294_vm0, %v4711_v11, %v4712_v47  ;;  %v4362_v28 = vmax.f32 %v15085_v13, %v4339_v62  ;;  %12509 = vrot.lane.b32.xlu0 %v12508_v39, %s16859_s22  ;;  %v15287_v17 = vsel %vm2294_vm0, %v4712_v47, %v4713_v9  ;;  %v12623_v39 = vld [vmem:[%s17057_s16 + $0x80] sm:$0xff]  }
 0x5fe   : > { %v4667_v29 = vrot.slane %v4363_v34, 7  ;;  %v4715_v49 = vrot.slane %v4363_v34, 1  ;;  %v15290_v43 = vmul.f32 %v15267_v6, %v4719_v40  ;;  %v15294_v0 = vsel %vm2197_vm1, %v4664_v46, %v4665_v48  ;;  %11467 = vmatprep.subr.bf16.mxu0 %v12623_v39 }
 0x5ff   : > { %v4666_v22 = vrot.slane %v4362_v28, 7  ;;  %v4714_v11 = vrot.slane %v4362_v28, 1  ;;  %v12513_v61 = vpack.i.bf16 %v4363_v34, %v4362_v28  ;;  %v15297_v13 = vsel %vm4617_vm12, 1.0, %v17043_v42 }
 0x600   : > { %v4683_v19 = vsel %vm2197_vm1, %v4667_v29, %v4652_v24  ;;  %v4731_v44 = vsel %vm2294_vm0, %v4715_v49, %v4700_v23  ;;  %v4368_v34 = vand.u32 15, %v13502_v10  ;;  %v15337_v62 = vadd.s32 16, %v13502_v10 }
 0x601   : > { %v15311_v46 = vsel %vm2197_vm1, %v4665_v48, %v4666_v22  ;;  %v4717_v47 = vsel %vm2294_vm0, %v4713_v9, %v4714_v11  ;;  %12514 = vrot.lane.b32.xlu1 %v12513_v61, %s16859_s22  ;;  %v15318_v24 = vsel %vm2294_vm0, %v4714_v11, %v4715_v49  ;;  %v15324_v23 = vmul.f32 %v15275_v52, %v4731_v44 }
 0x602   : > { %v15321_v12 = vmul.f32 %v15297_v13, %v4717_v47  ;;  %v15328_v1 = vsel %vm2197_vm1, %v4666_v22, %v4667_v29  ;;  %vm4556_vm13 = vcmp.ne.s32.totalorder %v4368_v34, 0  ;;  %v4382_v40 = vand.u32 15, %v15337_v62  ;;  %v17058_v29 = vld [vmem:[#allocation49_spill] sm:$0xff] }
 0x603   : > { %v15341_v28 = vsel %vm4556_vm13, 1.0, %v17043_v42  ;;  %v4396_v49 = vand.u32 15, %v17058_v29  ;;  %v15345_v22 = vadd.s32 48, %v13502_v10 }
 0x604   : > { %vm4558_vm14 = vcmp.ne.s32.totalorder %v4382_v40, 0  ;;  %v4684_v61 = vmul.f32 %v15341_v28, %v4683_v19 }
 0x605   : > { %v15349_v35 = vsel %vm4558_vm14, 1.0, %v17043_v42  ;;  %vm4560_vm15 = vcmp.ne.s32.totalorder %v4396_v49, 0  ;;  %v4410_v40 = vand.u32 15, %v15345_v22 }
 0x606   : > { %v4686_v19 = vmul.f32 %v15349_v35, %v15125_v50 }
 0x607   : > { %vm4562_vm2 = vcmp.ne.s32.totalorder %v4410_v40, 0 }
 0x608   : > { %v15372_v41 = vsel %vm4562_vm2, 1.0, %v17043_v42 }
 0x609   : > { %v4690_v40 = vmul.f32 %v15372_v41, %v15192_v38 }
 0x657   : > { %v12480_v11 = vpop.permute.xlu0 %12479 }
 0x658   : > { %v12482_v44 = vunpack.i.h.bf16 %v12480_v11  ;;  %v12481_v47 = vunpack.i.l.bf16 %v12480_v11  ;;  %v15358_v11 = vsel %vm4560_vm15, 1.0, %v17043_v42 }
 0x65a   : > { %v4813_v34 = vsel %vm4812_vm6, %v4684_v61, %v12481_v47  ;;  %v4814_v9 = vsel %vm4812_vm6, %v15111_v57, %v12482_v44  ;;  %v4688_v47 = vmul.f32 %v15358_v11, %v15154_v15 }
 0x65b   : > { %v4829_v48 = vpack.c.bf16 %v4814_v9, %v4813_v34  ;;  %v12485_v7 = vpop.permute.xlu0 %12484 }
 0x65c   : > { %v12487_v60 = vunpack.i.h.bf16 %v12485_v7  ;;  %v12486_v32 = vunpack.i.l.bf16 %v12485_v7  ;;  %v17059_v7 = vld [vmem:[#allocation51_spill] sm:$0xff] }
 0x65d   : > { %5005 = vmatmul.mubr.bf16.vlgmr.msra.gmra.mrb[128].mxu0 %v4829_v48  ;;  %v4424_v49 = vand.u32 15, %v17059_v7  ;;  %v1571_v7 = vadd.s32 112, %v13502_v10 }
 0x65e   : > { %10122 = vmatprep.mubr.msk.bf16.mxu0 %vm4812_vm6, %v4832_v45  ;;  %v4815_v57 = vsel %vm4812_vm6, %v4686_v19, %v12486_v32  ;;  %v4816_v9 = vsel %vm4812_vm6, %v15137_v5, %v12487_v60  ;;  %11468 = vmatpush3.bf16.msra.mxu0 %v12623_v39 }
 0x65f   : > { %v12490_v50 = vpop.permute.xlu1 %12489  ;;  %v4831_v48 = vpack.c.bf16 %v4816_v9, %v4815_v57  ;;  %vm4564_vm3 = vcmp.ne.s32.totalorder %v4424_v49, 0  ;;  %v17061_v57 = vld [vmem:[#allocation53_spill] sm:$0xff] }
 0x660   : > { %v12492_v61 = vunpack.i.h.bf16 %v12490_v50  ;;  %v12491_v44 = vunpack.i.l.bf16 %v12490_v50  ;;  %v15380_v15 = vsel %vm4564_vm3, 1.0, %v17043_v42  ;;  %v4452_v9 = vand.u32 15, %v17061_v57 }
 0x662   : > { %v4817_v45 = vsel %vm4812_vm6, %v4688_v47, %v12491_v44  ;;  %v4818_v5 = vsel %vm4812_vm6, %v15170_v63, %v12492_v61  ;;  %v4692_v61 = vmul.f32 %v15380_v15, %v15217_v4  ;;  %vm4568_vm5 = vcmp.ne.s32.totalorder %v4452_v9, 0 }
 0x663   : > { %v12495_v32 = vpop.permute.xlu1 %12494  ;;  %v4833_v60 = vpack.c.bf16 %v4818_v5, %v4817_v45  ;;  %v15402_v4 = vsel %vm4568_vm5, 1.0, %v17043_v42 }
 0x664   : > { %v12497_v39 = vunpack.i.h.bf16 %v12495_v32  ;;  %v12496_v34 = vunpack.i.l.bf16 %v12495_v32  ;;  %v4694_v32 = vmul.f32 %v15394_v30, %v15247_v31  ;;  %v4696_v31 = vmul.f32 %v15402_v4, %v15279_v33 }
 0x665   : > { %5013 = vmatmul.mubr.bf16.gmra.mrb[132].mxu0 %v4831_v48  ;;  %v17063_v33 = vpack.c.bf16 %v15258_v16, %v15225_v14  ;;  %v17065_v14 = vpack.c.bf16 %v15321_v12, %v15287_v17  ;;  %v17066_v16 = vpack.c.bf16 %v15324_v23, %v15318_v24  ;;  %v12626_v17 = vld [vmem:[%s17057_s16 + $0x98] sm:$0xff]   ;;  %v12628_v24 = vld [vmem:[%s17057_s16 + $0xa8] sm:$0xff]   ;;  %v12629_v12 = vld [vmem:[%s17057_s16 + $0xb0] sm:$0xff]  }
 0x666   : > { %10123 = vmatprep.mubr.msk.bf16.mxu0 %vm4812_vm6, %v17060_v25  ;;  %v4819_v63 = vsel %vm4812_vm6, %v4690_v40, %v12496_v34  ;;  %v4820_v19 = vsel %vm4812_vm6, %v15207_v27, %v12497_v39  ;;  %v4466_v27 = vand.u32 15, %v1571_v7  ;;  %v17062_v39 = vpack.c.bf16 %v15228_v3, %v15200_v56  ;;  %v12630_v23 = vld [vmem:[%s17057_s16 + $0xb8] sm:$0xff]  }
 0x667   : > { %v12500_v38 = vpop.permute.xlu0 %12499  ;;  %v4835_v49 = vpack.c.bf16 %v4820_v19, %v4819_v63 }
 0x668   : > { %v12502_v50 = vunpack.i.h.bf16 %v12500_v38  ;;  %v12501_v48 = vunpack.i.l.bf16 %v12500_v38  ;;  %vm4570_vm7 = vcmp.ne.s32.totalorder %v4466_v27, 0  ;;  %v12635_v27 = vld [vmem:[%s17057_s16 + $0x50] sm:$0xff]  }
 0x66a   : > { %v4821_v54 = vsel %vm4812_vm6, %v4692_v61, %v12501_v48  ;;  %v4822_v44 = vsel %vm4812_vm6, %v15232_v53, %v12502_v50  ;;  %v17064_v61 = vpack.c.bf16 %v15290_v43, %v15255_v2  ;;  %v12625_v2 = vld [vmem:[%s17057_s16 + $0x90] sm:$0xff]   ;;  %v12627_v43 = vld [vmem:[%s17057_s16 + $0xa0] sm:$0xff]  }
 0x66b   : > { %v12505_v47 = vpop.permute.xlu1 %12504  ;;  %v4837_v18 = vpack.c.bf16 %v4822_v44, %v4821_v54  ;;  %v12633_v54 = vld [vmem:[%s17057_s16 + $0x48] sm:$0xff]  }
 0x66c   : > { %v12507_v45 = vunpack.i.h.bf16 %v12505_v47  ;;  %v12506_v5 = vunpack.i.l.bf16 %v12505_v47  ;;  %v12634_v44 = vld [vmem:[%s17057_s16 + $0x8] sm:$0xff]   ;;  %v12636_v47 = vld [vmem:[%s17057_s16 + $0x10] sm:$0xff]  }
 0x66d   : > { %5021 = vmatmul.mubr.bf16.gmra.mrb[136].mxu0 %v4833_v60  ;;  %v15414_v60 = vsel %vm4570_vm7, 1.0, %v17043_v42 }
 0x66e   : > { %10124 = vmatprep.mubr.msk.bf16.mxu0 %vm4812_vm6, %v17062_v39  ;;  %v4823_v53 = vsel %vm4812_vm6, %v4694_v32, %v12506_v5  ;;  %v4824_v34 = vsel %vm4812_vm6, %v15262_v55, %v12507_v45  ;;  %v4698_v38 = vmul.f32 %v15414_v60, %v15311_v46  ;;  %v12624_v46 = vld [vmem:[%s17057_s16 + $0x88] sm:$0xff]   ;;  %v12638_v45 = vld [vmem:[%s17057_s16 + $0x18] sm:$0xff]   ;;  %v12639_v5 = vld [vmem:[%s17057_s16 + $0x60] sm:$0xff]  }
 0x66f   : > { %v12510_v40 = vpop.permute.xlu0 %12509  ;;  %v4839_v25 = vpack.c.bf16 %v4824_v34, %v4823_v53  ;;  %11469 = vmatprep.subr.bf16.mxu0 %v12624_v46  ;;  %v12640_v32 = vld [vmem:[%s17057_s16 + $0x20] sm:$0xff]   ;;  %v12641_v39 = vld [vmem:[%s17057_s16 + $0x68] sm:$0xff]   ;;  %v12643_v34 = vld [vmem:[%s17057_s16 + $0x70] sm:$0xff]  }
 0x670   : > { %v12512_v63 = vunpack.i.h.bf16 %v12510_v40  ;;  %v12511_v19 = vunpack.i.l.bf16 %v12510_v40  ;;  %11470 = vmatpush3.bf16.msra.mxu0 %v12624_v46  ;;  %v12642_v53 = vld [vmem:[%s17057_s16 + $0x28] sm:$0xff]   ;;  %v12644_v40 = vld [vmem:[%s17057_s16 + $0x30] sm:$0xff]  }
 0x671   : > { %11471 = vmatprep.subr.bf16.mxu0 %v12625_v2 }
 0x672   : > { %v4825_v56 = vsel %vm4812_vm6, %v4696_v31, %v12511_v19  ;;  %v4826_v3 = vsel %vm4812_vm6, %v15294_v0, %v12512_v63  ;;  %v12646_v63 = vld [vmem:[%s17057_s16 + $0x38] sm:$0xff]   ;;  %v15464_v19 = vld [vmem:[%s17067_s15] ss:$0 sm:$0xff]  ;;  %s17096_s15 = sld [smem:[#allocation26_spill]] }
 0x673   : > { %v12515_v57 = vpop.permute.xlu1 %12514  ;;  %v4841_v9 = vpack.c.bf16 %v4826_v3, %v4825_v56 }
 0x674   : > { %v12517_v55 = vunpack.i.h.bf16 %v12515_v57  ;;  %v12516_v7 = vunpack.i.l.bf16 %v12515_v57  ;;  %11472 = vmatpush3.bf16.msra.mxu0 %v12625_v2 }
 0x675   : > { %5029 = vmatmul.mubr.bf16.gmra.mrb[140].mxu0 %v4835_v49  ;;  %11473 = vmatprep.subr.bf16.mxu0 %v12626_v17  ;;  %v12632_v49 = vld [vmem:[%s17057_s16] sm:$0xff]  }
 0x676   : > { %10125 = vmatprep.mubr.msk.bf16.mxu0 %vm4812_vm6, %v17063_v33  ;;  %v4827_v50 = vsel %vm4812_vm6, %v4698_v38, %v12516_v7  ;;  %v4828_v0 = vsel %vm4812_vm6, %v15328_v1, %v12517_v55  ;;  %v12631_v1 = vld [vmem:[%s17057_s16 + $0x40] sm:$0xff]  }
 0x677   : > { %v4843_v48 = vpack.c.bf16 %v4828_v0, %v4827_v50  ;;  %10799 = vmatprep.subr.bf16.mxu1 %v12631_v1 }
 0x678   : > { %11474 = vmatpush3.bf16.msra.mxu0 %v12626_v17  ;;  %10800 = vmatpush3.bf16.msra.mxu1 %v12632_v49 }
 0x679   : > { %11475 = vmatprep.subr.bf16.mxu0 %v12627_v43  ;;  %10801 = vmatprep.subr.bf16.mxu1 %v12633_v54 }
 0x67c   : > { %11476 = vmatpush3.bf16.msra.mxu0 %v12627_v43  ;;  %10802 = vmatpush3.bf16.msra.mxu1 %v12634_v44 }
 0x67d   : > { %5037 = vmatmul.mubr.bf16.gmra.mrb[144].mxu0 %v4837_v18  ;;  %11477 = vmatprep.subr.bf16.mxu0 %v12628_v24  ;;  %v12637_v18 = vld [vmem:[%s17057_s16 + $0x58] sm:$0xff]  }
 0x67e   : > { %10126 = vmatprep.mubr.msk.bf16.mxu0 %vm4812_vm6, %v17064_v61  ;;  %10803 = vmatprep.subr.bf16.mxu1 %v12635_v27 }
 0x680   : > { %11478 = vmatpush3.bf16.msra.mxu0 %v12628_v24  ;;  %10804 = vmatpush3.bf16.msra.mxu1 %v12636_v47 }
 0x681   : > { %11479 = vmatprep.subr.bf16.mxu0 %v12629_v12  ;;  %10805 = vmatprep.subr.bf16.mxu1 %v12637_v18 }
 0x684   : > { %11480 = vmatpush3.bf16.msra.mxu0 %v12629_v12  ;;  %10806 = vmatpush3.bf16.msra.mxu1 %v12638_v45 }
 0x685   : > { %5045 = vmatmul.mubr.bf16.gmra.mrb[148].mxu0 %v4839_v25  ;;  %11481 = vmatprep.subr.bf16.mxu0 %v12630_v23  ;;  %v12645_v25 = vld [vmem:[%s17057_s16 + $0x78] sm:$0xff]  }
 0x686   : > { %10127 = vmatprep.mubr.msk.bf16.mxu0 %vm4812_vm6, %v17065_v14  ;;  %10807 = vmatprep.subr.bf16.mxu1 %v12639_v5 }
 0x688   : > { %11482 = vmatpush3.bf16.msra.mxu0 %v12630_v23  ;;  %10808 = vmatpush3.bf16.msra.mxu1 %v12640_v32 }
 0x689   : > { %10809 = vmatprep.subr.bf16.mxu1 %v12641_v39 }
 0x68c   : > { %10810 = vmatpush3.bf16.msra.mxu1 %v12642_v53 }
 0x68d   : > { %5053 = vmatmul.mubr.bf16.gmra.mrb[152].mxu0 %v4841_v9  ;;  %10811 = vmatprep.subr.bf16.mxu1 %v12643_v34 }
 0x68e   : > { %10128 = vmatprep.mubr.msk.bf16.mxu0 %vm4812_vm6, %v17066_v16 }
 0x690   : > { %10812 = vmatpush3.bf16.msra.mxu1 %v12644_v40 }
 0x691   : > { %10813 = vmatprep.subr.bf16.mxu1 %v12645_v25 }
 0x694   : > { %10814 = vmatpush3.bf16.msra.mxu1 %v12646_v63 }
 0x695   : > { %5061 = vmatmul.mubr.bf16.gmra.mrb[156].mxu0 %v4843_v48 }
 0x730   : > { %v5006_v31 = vpop.f32.mrb[128].mxu0 }
 0x731   : > { %v5007_v56 = vadd.f32 %v15464_v19, %v5006_v31  ;;  %v5008_v3 = vpop.f32.mrb[129].mxu0 }
 0x732   : > { %v5009_v57 = vpop.f32.mrb[130].mxu0 }
 0x733   : > { %v15467_v9 = vmax.f32 %v5007_v56, 0.0  ;;  %v5010_v55 = vadd.f32 %v15464_v19, %v5009_v57  ;;  %v5011_v7 = vpop.f32.mrb[131].mxu0 }
 0x735   : > { %v5070_v38 = vmax.f32 %v5010_v55, 0.0  ;;  %v5085_v33 = vrot.slane %v15467_v9, 7  ;;  %v5133_v50 = vrot.slane %v15467_v9, 1 }
 0x737   : > { %v5086_v0 = vrot.slane %v5070_v38, 7  ;;  %v5134_v48 = vrot.slane %v5070_v38, 1  ;;  %v5182_v61 = vpack.c.bf16 %v5070_v38, %v15467_v9 }
 0x738   : > { %v5014_v14 = vpop.f32.mrb[132].mxu0 }
 0x739   : > { %v15477_v16 = vsel %vm2197_vm1, %v5085_v33, %v5086_v0  ;;  %v5015_v46 = vadd.f32 %v15464_v19, %v5014_v14  ;;  %v5016_v2 = vpop.f32.mrb[133].mxu0  ;;  %5436 = vmatprep.mubr.bf16.mxu1 %v5182_v61  ;;  %v5163_v17 = vsel %vm2294_vm0, %v5133_v50, %v5134_v48 }
 0x73a   : > { %v5017_v43 = vpop.f32.mrb[134].mxu0 }
 0x73b   : > { %v15484_v24 = vmax.f32 %v5015_v46, 0.0  ;;  %v5018_v12 = vadd.f32 %v15464_v19, %v5017_v43  ;;  %v5019_v23 = vpop.f32.mrb[135].mxu0 }
 0x73d   : > { %v5087_v1 = vrot.slane %v15484_v24, 7  ;;  %v5135_v49 = vrot.slane %v15484_v24, 1  ;;  %v15489_v54 = vmax.f32 %v5018_v12, 0.0 }
 0x73f   : > { %v5088_v44 = vrot.slane %v15489_v54, 7  ;;  %v5136_v27 = vrot.slane %v15489_v54, 1  ;;  %v5162_v47 = vsel %vm2294_vm0, %v5134_v48, %v5135_v49  ;;  %v5185_v18 = vpack.c.bf16 %v15489_v54, %v15484_v24  ;;  %v5662_v54 = vld [vmem:[%s17068_s2] sm:$0xff] }
 0x740   : > { %v5022_v45 = vpop.f32.mrb[136].mxu0  ;;  %v5166_v5 = vmul.f32 %v15116_v59, %v5162_v47  ;;  %v5114_v32 = vsel %vm2197_vm1, %v5086_v0, %v5087_v1 }
 0x741   : > { %v5161_v39 = vsel %vm2294_vm0, %v5135_v49, %v5136_v27  ;;  %v5023_v53 = vadd.f32 %v15464_v19, %v5022_v45  ;;  %v5024_v34 = vpop.f32.mrb[137].mxu0  ;;  %v15505_v40 = vsel %vm2197_vm1, %v5087_v1, %v5088_v44  ;;  %v15508_v25 = vmul.f32 %v15349_v35, %v5114_v32 }
 0x742   : > { %v5025_v63 = vpop.f32.mrb[138].mxu0  ;;  %v5183_v31 = vpack.c.bf16 %v5166_v5, %v5163_v17 }
 0x743   : > { %v15510_v56 = vmax.f32 %v5023_v53, 0.0  ;;  %v5026_v59 = vadd.f32 %v15464_v19, %v5025_v63  ;;  %v5027_v3 = vpop.f32.mrb[139].mxu0  ;;  %v5184_v57 = vpack.c.bf16 %v15505_v40, %v15508_v25 }
 0x744   : > { %11483 = vmatprep.mubr.bf16.mxu0 %v5183_v31 }
 0x745   : > { %v5089_v55 = vrot.slane %v15510_v56, 7  ;;  %v5137_v7 = vrot.slane %v15510_v56, 1  ;;  %v15517_v38 = vmax.f32 %v5026_v59, 0.0 }
 0x747   : > { %v5160_v35 = vsel %vm2294_vm0, %v5136_v27, %v5137_v7  ;;  %v5090_v0 = vrot.slane %v15517_v38, 7  ;;  %v5138_v48 = vrot.slane %v15517_v38, 1  ;;  %v5112_v2 = vsel %vm2197_vm1, %v5088_v44, %v5089_v55 }
 0x748   : > { %v5168_v14 = vmul.f32 %v15120_v20, %v5160_v35  ;;  %v5030_v46 = vpop.f32.mrb[140].mxu0  ;;  %v15536_v1 = vmul.f32 %v15358_v11, %v5112_v2 }
 0x749   : > { %v5031_v17 = vadd.f32 %v15464_v19, %v5030_v46  ;;  %v5032_v43 = vpop.f32.mrb[141].mxu0  ;;  %v5159_v12 = vsel %vm2294_vm0, %v5137_v7, %v5138_v48  ;;  %v15533_v23 = vsel %vm2197_vm1, %v5089_v55, %v5090_v0 }
 0x74a   : > { %v5033_v49 = vpop.f32.mrb[142].mxu0  ;;  %v5186_v27 = vpack.c.bf16 %v5168_v14, %v5161_v39 }
 0x74b   : > { %v15538_v20 = vmax.f32 %v5031_v17, 0.0  ;;  %v5034_v47 = vadd.f32 %v15464_v19, %v5033_v49  ;;  %v5035_v44 = vpop.f32.mrb[143].mxu0 }
 0x74c   : > { %11484 = vmatmul.mubr.bf16.vlgmr.msra.gmra.mrb[160].mxu0 %v5186_v27 }
 0x74d   : > { %v5091_v5 = vrot.slane %v15538_v20, 7  ;;  %v5139_v32 = vrot.slane %v15538_v20, 1  ;;  %v15545_v53 = vmax.f32 %v5034_v47, 0.0 }
 0x74f   : > { %v5092_v11 = vrot.slane %v15545_v53, 7  ;;  %v5140_v34 = vrot.slane %v15545_v53, 1  ;;  %v5158_v39 = vsel %vm2294_vm0, %v5138_v48, %v5139_v32  ;;  %v5110_v3 = vsel %vm2197_vm1, %v5090_v0, %v5091_v5 }
 0x750   : > { %v5038_v31 = vpop.f32.mrb[144].mxu0  ;;  %v5170_v59 = vmul.f32 %v15175_v51, %v5158_v39  ;;  %v15564_v48 = vmul.f32 %v15372_v41, %v5110_v3 }
 0x751   : > { %v5039_v55 = vadd.f32 %v15464_v19, %v5038_v31  ;;  %v5040_v7 = vpop.f32.mrb[145].mxu0  ;;  %v5157_v35 = vsel %vm2294_vm0, %v5139_v32, %v5140_v34  ;;  %v15561_v14 = vsel %vm2197_vm1, %v5091_v5, %v5092_v11 }
 0x752   : > { %v5041_v46 = vpop.f32.mrb[146].mxu0  ;;  %v5189_v2 = vpack.c.bf16 %v5170_v59, %v5159_v12  ;;  %v17072_v9 = vpack.c.bf16 %v15561_v14, %v15564_v48  ;;  %v5780_v14 = vld [vmem:[%s17073_s11 + $0x28] sm:$0xff] }
 0x753   : > { %v15566_v17 = vmax.f32 %v5039_v55, 0.0  ;;  %v5042_v51 = vadd.f32 %v15464_v19, %v5041_v46  ;;  %v5043_v0 = vpop.f32.mrb[147].mxu0 }
 0x754   : > { %11487 = vmatprep.mubr.bf16.mxu0 %v5189_v2 }
 0x755   : > { %v5093_v49 = vrot.slane %v15566_v17, 7  ;;  %v5141_v27 = vrot.slane %v15566_v17, 1  ;;  %v15573_v47 = vmax.f32 %v5042_v51, 0.0 }
 0x757   : > { %v5094_v41 = vrot.slane %v15573_v47, 7  ;;  %v5142_v44 = vrot.slane %v15573_v47, 1  ;;  %v5156_v12 = vsel %vm2294_vm0, %v5140_v34, %v5141_v27  ;;  %v5108_v31 = vsel %vm2197_vm1, %v5092_v11, %v5093_v49 }
 0x758   : > { %v5046_v32 = vpop.f32.mrb[148].mxu0  ;;  %v5172_v39 = vmul.f32 %v15183_v21, %v5156_v12  ;;  %v15592_v34 = vmul.f32 %v15380_v15, %v5108_v31 }
 0x759   : > { %v5047_v59 = vadd.f32 %v15464_v19, %v5046_v32  ;;  %v5048_v3 = vpop.f32.mrb[149].mxu0  ;;  %v5155_v55 = vsel %vm2294_vm0, %v5141_v27, %v5142_v44  ;;  %v15589_v7 = vsel %vm2197_vm1, %v5093_v49, %v5094_v41 }
 0x75a   : > { %v5049_v46 = vpop.f32.mrb[150].mxu0  ;;  %v5192_v2 = vpack.c.bf16 %v5172_v39, %v5157_v35 }
 0x75b   : > { %v15594_v51 = vmax.f32 %v5047_v59, 0.0  ;;  %v5050_v21 = vadd.f32 %v15464_v19, %v5049_v46  ;;  %v5051_v11 = vpop.f32.mrb[151].mxu0 }
 0x75c   : > { %11488 = vmatmul.mubr.bf16.gmra.mrb[164].mxu0 %v5192_v2 }
 0x75d   : > { %v5095_v27 = vrot.slane %v15594_v51, 7  ;;  %v5143_v12 = vrot.slane %v15594_v51, 1  ;;  %v15601_v49 = vmax.f32 %v5050_v21, 0.0 }
 0x75f   : > { %v5096_v15 = vrot.slane %v15601_v49, 7  ;;  %v5144_v32 = vrot.slane %v15601_v49, 1  ;;  %v5154_v35 = vsel %vm2294_vm0, %v5142_v44, %v5143_v12  ;;  %v5106_v3 = vsel %vm2197_vm1, %v5094_v41, %v5095_v27 }
 0x760   : > { %v5054_v31 = vpop.f32.mrb[152].mxu0  ;;  %v5174_v59 = vmul.f32 %v15188_v58, %v5154_v35  ;;  %v5127_v44 = vmul.f32 %v15394_v30, %v5106_v3  ;;  %v17076_v24 = vpack.c.bf16 %v15601_v49, %v15594_v51  ;;  %v5783_v49 = vld [vmem:[%s17073_s11 + $0x40] sm:$0xff] }
 0x761   : > { %v5055_v46 = vadd.f32 %v15464_v19, %v5054_v31  ;;  %v5056_v2 = vpop.f32.mrb[153].mxu0  ;;  %v5153_v21 = vsel %vm2294_vm0, %v5143_v12, %v5144_v32  ;;  %v15617_v11 = vsel %vm2197_vm1, %v5095_v27, %v5096_v15 }
 0x762   : > { %v5057_v0 = vpop.f32.mrb[154].mxu0  ;;  %v5195_v39 = vpack.c.bf16 %v5174_v59, %v5155_v55  ;;  %v5196_v41 = vpack.c.bf16 %v15617_v11, %v5127_v44 }
 0x763   : > { %v5081_v5 = vmax.f32 %v5055_v46, 0.0  ;;  %v5058_v58 = vadd.f32 %v15464_v19, %v5057_v0  ;;  %v5059_v35 = vpop.f32.mrb[155].mxu0 }
 0x764   : > { %11491 = vmatprep.mubr.bf16.mxu0 %v5195_v39 }
 0x765   : > { %v5097_v31 = vrot.slane %v5081_v5, 7  ;;  %v5145_v2 = vrot.slane %v5081_v5, 1  ;;  %v5082_v43 = vmax.f32 %v5058_v58, 0.0 }
 0x767   : > { %v5098_v63 = vrot.slane %v5082_v43, 7  ;;  %v5146_v12 = vrot.slane %v5082_v43, 1  ;;  %v5152_v27 = vsel %vm2294_vm0, %v5144_v32, %v5145_v2  ;;  %v5200_v45 = vpack.c.bf16 %v5082_v43, %v5081_v5 }
 0x768   : > { %v5062_v61 = vpop.f32.mrb[156].mxu0  ;;  %v5176_v30 = vmul.f32 %v15267_v6, %v5152_v27  ;;  %v5104_v55 = vsel %vm2197_vm1, %v5096_v15, %v5097_v31 }
 0x769   : > { %v5063_v0 = vadd.f32 %v15464_v19, %v5062_v61  ;;  %v5064_v59 = vpop.f32.mrb[157].mxu0  ;;  %v5151_v39 = vsel %vm2294_vm0, %v5145_v2, %v5146_v12  ;;  %v5103_v3 = vsel %vm2197_vm1, %v5097_v31, %v5098_v63  ;;  %v5129_v46 = vmul.f32 %v15402_v4, %v5104_v55 }
 0x76a   : > { %v5065_v11 = vpop.f32.mrb[158].mxu0  ;;  %v5198_v32 = vpack.c.bf16 %v5176_v30, %v5153_v21 }
 0x76b   : > { %v5083_v43 = vmax.f32 %v5063_v0, 0.0  ;;  %v5066_v5 = vadd.f32 %v15464_v19, %v5065_v11  ;;  %v5067_v6 = vpop.f32.mrb[159].mxu0  ;;  %v5199_v44 = vpack.c.bf16 %v5103_v3, %v5129_v46 }
 0x76c   : > { %11492 = vmatmul.mubr.bf16.gmra.mrb[168].mxu0 %v5198_v32 }
 0x76d   : > { %v5099_v15 = vrot.slane %v5083_v43, 7  ;;  %v5147_v58 = vrot.slane %v5083_v43, 1  ;;  %v5084_v61 = vmax.f32 %v5066_v5, 0.0  ;;  %v5786_v5 = vld [vmem:[%s17073_s11 + $0x58] sm:$0xff] }
 0x76f   : > { %v5100_v35 = vrot.slane %v5084_v61, 7  ;;  %v5148_v27 = vrot.slane %v5084_v61, 1  ;;  %v5150_v2 = vsel %vm2294_vm0, %v5146_v12, %v5147_v58  ;;  %v5203_v59 = vpack.c.bf16 %v5084_v61, %v5083_v43  ;;  %v5785_v43 = vld [vmem:[%s17073_s11 + $0x50] sm:$0xff] }
 0x770   : > { %v5178_v31 = vmul.f32 %v15297_v13, %v5150_v2  ;;  %v5102_v4 = vsel %vm2197_vm1, %v5098_v63, %v5099_v15  ;;  %v12123_v6 = vpack.c.bf16 %v5786_v5, %v5785_v43  ;;  %v5789_v61 = vld [vmem:[%s17073_s11 + $0x70] sm:$0xff] }
 0x771   : > { %v5116_v19 = vsel %vm2197_vm1, %v5100_v35, %v5085_v33  ;;  %v5149_v21 = vsel %vm2294_vm0, %v5147_v58, %v5148_v27  ;;  %v5164_v30 = vsel %vm2294_vm0, %v5148_v27, %v5133_v50  ;;  %v5101_v12 = vsel %vm2197_vm1, %v5099_v15, %v5100_v35  ;;  %v5788_v15 = vld [vmem:[%s17073_s11 + $0x68] sm:$0xff]  ;;  %v5790_v35 = vld [vmem:[%s17073_s11 + $0x78] sm:$0xff] }
 0x772   : > { %v5117_v13 = vmul.f32 %v15341_v28, %v5116_v19  ;;  %v5201_v55 = vpack.c.bf16 %v5178_v31, %v5151_v39  ;;  %v5180_v63 = vmul.f32 %v15275_v52, %v5164_v30  ;;  %v5131_v0 = vmul.f32 %v15414_v60, %v5102_v4 }
 0x773   : > { %v17069_v52 = vpack.c.bf16 %v15517_v38, %v15510_v56  ;;  %v17070_v28 = vpack.c.bf16 %v15533_v23, %v15536_v1  ;;  %v17071_v60 = vpack.c.bf16 %v15545_v53, %v15538_v20  ;;  %v17074_v50 = vpack.c.bf16 %v15573_v47, %v15566_v17  ;;  %v5776_v38 = vld [vmem:[%s17073_s11 + $0x8] sm:$0xff]  ;;  %v5777_v1 = vld [vmem:[%s17073_s11 + $0x10] sm:$0xff]  ;;  %v5778_v20 = vld [vmem:[%s17073_s11 + $0x18] sm:$0xff] }
 0x774   : > { %11495 = vmatprep.mubr.bf16.mxu0 %v5201_v55  ;;  %v5181_v33 = vpack.c.bf16 %v15477_v16, %v5117_v13  ;;  %v5204_v3 = vpack.c.bf16 %v5180_v63, %v5149_v21  ;;  %v5202_v46 = vpack.c.bf16 %v5101_v12, %v5131_v0  ;;  %v17075_v16 = vpack.c.bf16 %v15589_v7, %v15592_v34  ;;  %v5779_v53 = vld [vmem:[%s17073_s11 + $0x20] sm:$0xff]  ;;  %v5781_v17 = vld [vmem:[%s17073_s11 + $0x30] sm:$0xff]  ;;  %v5782_v47 = vld [vmem:[%s17073_s11 + $0x38] sm:$0xff] }
 0x775   : > { %v12111_v48 = vpack.c.bf16 %v5780_v14, %v5779_v53  ;;  %v12115_v34 = vpack.c.bf16 %v5782_v47, %v5781_v17  ;;  %v12131_v2 = vpack.c.bf16 %v5790_v35, %v5789_v61  ;;  %v17078_v19 = vmov 0   ;;  %v15727_v12 = vld [vmem:[%s17077_s26] ss:$0 sm:$0xff]  ;;  %s17097_s26 = sld [smem:[#allocation29_spill]] }
 0x776   : > { %5437 = vmatmul.mubr.bf16.vlgmr.msra.gmra.mrb[128].mxu1 %v5181_v33  ;;  %11496 = vmatmul.mubr.bf16.gmra.mrb[172].mxu0 %v5204_v3 }
 0x777   : > { %5444 = vmatprep.mubr.bf16.mxu1 %v5185_v18 }
 0x77e   : > { %5445 = vmatmul.mubr.bf16.gmra.mrb[132].mxu1 %v5184_v57  ;;  %v5775_v57 = vld [vmem:[%s17073_s11] sm:$0xff] }
 0x77f   : > { %5452 = vmatprep.mubr.bf16.mxu1 %v17069_v52  ;;  %v12103_v23 = vpack.c.bf16 %v5776_v38, %v5775_v57 }
 0x781   : > { %12104 = vmatprep.subr.bf16.mxu0 %v12103_v23 }
 0x782   : > { %12106 = vmatpush3.bf16.msra.mxu0 %v12103_v23 }
 0x786   : > { %5453 = vmatmul.mubr.bf16.gmra.mrb[136].mxu1 %v17070_v28 }
 0x787   : > { %5460 = vmatprep.mubr.bf16.mxu1 %v17071_v60 }
 0x78e   : > { %5461 = vmatmul.mubr.bf16.gmra.mrb[140].mxu1 %v17072_v9 }
 0x78f   : > { %5468 = vmatprep.mubr.bf16.mxu1 %v17074_v50 }
 0x796   : > { %5469 = vmatmul.mubr.bf16.gmra.mrb[144].mxu1 %v17075_v16 }
 0x797   : > { %5476 = vmatprep.mubr.bf16.mxu1 %v17076_v24 }
 0x79e   : > { %5477 = vmatmul.mubr.bf16.gmra.mrb[148].mxu1 %v5196_v41  ;;  %v5784_v41 = vld [vmem:[%s17073_s11 + $0x48] sm:$0xff] }
 0x79f   : > { %5484 = vmatprep.mubr.bf16.mxu1 %v5200_v45  ;;  %v12107_v45 = vpack.c.bf16 %v5778_v20, %v5777_v1  ;;  %v12119_v32 = vpack.c.bf16 %v5784_v41, %v5783_v49 }
 0x7a1   : > { %12108 = vmatprep.subr.bf16.mxu0 %v12107_v45 }
 0x7a2   : > { %12110 = vmatpush3.bf16.msra.mxu0 %v12107_v45 }
 0x7a3   : > { %12112 = vmatprep.subr.bf16.mxu0 %v12111_v48 }
 0x7a6   : > { %5485 = vmatmul.mubr.bf16.gmra.mrb[152].mxu1 %v5199_v44  ;;  %12114 = vmatpush3.bf16.msra.mxu0 %v12111_v48  ;;  %v5787_v44 = vld [vmem:[%s17073_s11 + $0x60] sm:$0xff] }
 0x7a7   : > { %5492 = vmatprep.mubr.bf16.mxu1 %v5203_v59  ;;  %12116 = vmatprep.subr.bf16.mxu0 %v12115_v34  ;;  %v12127_v58 = vpack.c.bf16 %v5788_v15, %v5787_v44 }
 0x7aa   : > { %12118 = vmatpush3.bf16.msra.mxu0 %v12115_v34 }
 0x7ab   : > { %12120 = vmatprep.subr.bf16.mxu0 %v12119_v32 }
 0x7ae   : > { %5493 = vmatmul.mubr.bf16.gmra.mrb[156].mxu1 %v5202_v46  ;;  %12122 = vmatpush3.bf16.msra.mxu0 %v12119_v32 }
 0x7af   : > { %11531 = vmatprep.mubr.f32.mxu1 %v5662_v54  ;;  %12124 = vmatprep.subr.bf16.mxu0 %v12123_v6 }
 0x7b2   : > { %12126 = vmatpush3.bf16.msra.mxu0 %v12123_v6 }
 0x7b3   : > { %12128 = vmatprep.subr.bf16.mxu0 %v12127_v58 }
 0x7b6   : > { %12130 = vmatpush3.bf16.msra.mxu0 %v12127_v58 }
 0x7b7   : > { %12132 = vmatprep.subr.bf16.mxu0 %v12131_v2 }
 0x7ba   : > { %12134 = vmatpush3.bf16.msra.mxu0 %v12131_v2 }
 0x7bb   : > { %6380 = vmatprep.subr.bf16.mxu0 %v17078_v19 }
 0x81f   : > { %v15683_v18 = vpop.f32.mrb[160].mxu0 }
 0x820   : > { %v15685_v40 = vpop.f32.mrb[161].mxu0 }
 0x821   : > { %v15687_v25 = vpop.f32.mrb[162].mxu0 }
 0x822   : > { %v15689_v56 = vpop.f32.mrb[163].mxu0 }
 0x82f   : > { %v15699_v7 = vpop.f32.mrb[164].mxu0 }
 0x830   : > { %v15701_v51 = vpop.f32.mrb[165].mxu0 }
 0x831   : > { %v15705_v39 = vpop.f32.mrb[166].mxu0 }
 0x832   : > { %v15707_v11 = vpop.f32.mrb[167].mxu0 }
 0x83f   : > { %v15715_v27 = vpop.f32.mrb[168].mxu0 }
 0x840   : > { %v15717_v59 = vpop.f32.mrb[169].mxu0 }
 0x841   : > { %v15719_v31 = vpop.f32.mrb[170].mxu0 }
 0x842   : > { %v15721_v4 = vpop.f32.mrb[171].mxu0 }
 0x849   : > { %v10815_v21 = vpop.f32.mrb[128].mxu1  ;;  %v15724_v30 = vpop.f32.mrb[172].mxu0 }
 0x84a   : > { %v10816_v13 = vpop.f32.mrb[129].mxu1  ;;  %v15729_v55 = vpop.f32.mrb[173].mxu0 }
 0x84b   : > { %v10817_v63 = vadd.f32 %v10816_v13, %v10815_v21  ;;  %v10818_v0 = vpop.f32.mrb[130].mxu1  ;;  %v15731_v33 = vpop.f32.mrb[174].mxu0 }
 0x84c   : > { %v10819_v3 = vpop.f32.mrb[131].mxu1  ;;  %v15733_v46 = vpop.f32.mrb[175].mxu0 }
 0x84d   : > { %v5439_v52 = vadd.f32 %v10817_v63, %v15727_v12  ;;  %v10820_v28 = vadd.f32 %v10819_v3, %v10818_v0 }
 0x84f   : > { %v5536_v60 = vadd.f32 %v15685_v40, %v5439_v52  ;;  %v5442_v9 = vadd.f32 %v10820_v28, %v15727_v12 }
 0x851   : > { %v5598_v50 = vmax.f32 %v5536_v60, 0.0  ;;  %v5539_v16 = vadd.f32 %v15689_v56, %v5442_v9  ;;  %v10821_v24 = vpop.f32.mrb[132].mxu1 }
 0x852   : > { %v10822_v54 = vpop.f32.mrb[133].mxu1 }
 0x853   : > { %v5599_v57 = vmax.f32 %v5539_v16, 0.0  ;;  %v10823_v38 = vadd.f32 %v10822_v54, %v10821_v24  ;;  %v10824_v23 = vpop.f32.mrb[134].mxu1  ;;  %v15739_v20 = vrot.slane %v5598_v50, 1 }
 0x854   : > { %v10825_v1 = vpop.f32.mrb[135].mxu1 }
 0x855   : > { %v5615_v45 = vrot.slane %v5599_v57, 1  ;;  %v5447_v53 = vadd.f32 %v10823_v38, %v15727_v12  ;;  %v10826_v14 = vadd.f32 %v10825_v1, %v10824_v23 }
 0x857   : > { %v5544_v48 = vadd.f32 %v15683_v18, %v5447_v53  ;;  %v5450_v40 = vadd.f32 %v10826_v14, %v15727_v12  ;;  %v5644_v56 = vsel %vm2294_vm0, %v15739_v20, %v5615_v45 }
 0x858   : > { %v5646_v17 = vmax.f32 %v5598_v50, %v5644_v56 }
 0x859   : > { %v5600_v47 = vmax.f32 %v5544_v48, 0.0  ;;  %v5547_v34 = vadd.f32 %v15687_v25, %v5450_v40  ;;  %v10827_v49 = vpop.f32.mrb[136].mxu1 }
 0x85a   : > { %v10828_v41 = vpop.f32.mrb[137].mxu1 }
 0x85b   : > { %v5616_v32 = vrot.slane %v5600_v47, 1  ;;  %v5601_v43 = vmax.f32 %v5547_v34, 0.0  ;;  %v10829_v5 = vadd.f32 %v10828_v41, %v10827_v49  ;;  %v10830_v6 = vpop.f32.mrb[138].mxu1 }
 0x85c   : > { %v10831_v44 = vpop.f32.mrb[139].mxu1 }
 0x85d   : > { %v5617_v15 = vrot.slane %v5601_v43, 1  ;;  %v5455_v18 = vadd.f32 %v10829_v5, %v15727_v12  ;;  %v10832_v58 = vadd.f32 %v10831_v44, %v10830_v6  ;;  %v5643_v61 = vsel %vm2294_vm0, %v5615_v45, %v5616_v32 }
 0x85e   : > { %v5647_v35 = vmax.f32 %v5599_v57, %v5643_v61 }
 0x85f   : > { %v5552_v2 = vadd.f32 %v15701_v51, %v5455_v18  ;;  %v5458_v21 = vadd.f32 %v10832_v58, %v15727_v12  ;;  %v5642_v25 = vsel %vm2294_vm0, %v5616_v32, %v5617_v15 }
 0x860   : > { %v12071_v13 = vpack.c.bf16 %v5647_v35, %v5646_v17  ;;  %v5648_v63 = vmax.f32 %v5600_v47, %v5642_v25 }
 0x861   : > { %v5602_v0 = vmax.f32 %v5552_v2, 0.0  ;;  %v5555_v3 = vadd.f32 %v15707_v11, %v5458_v21  ;;  %v10833_v52 = vpop.f32.mrb[140].mxu1 }
 0x862   : > { %v10834_v28 = vpop.f32.mrb[141].mxu1  ;;  %12072 = vmatprep.subr.bf16.mxu1 %v12071_v13 }
 0x863   : > { %v5618_v60 = vrot.slane %v5602_v0, 1  ;;  %v5603_v9 = vmax.f32 %v5555_v3, 0.0  ;;  %v10835_v50 = vadd.f32 %v10834_v28, %v10833_v52  ;;  %v10836_v16 = vpop.f32.mrb[142].mxu1  ;;  %12074 = vmatpush3.bf16.msra.mxu1 %v12071_v13 }
 0x864   : > { %v10837_v24 = vpop.f32.mrb[143].mxu1 }
 0x865   : > { %v5619_v51 = vrot.slane %v5603_v9, 1  ;;  %v5463_v54 = vadd.f32 %v10835_v50, %v15727_v12  ;;  %v10838_v57 = vadd.f32 %v10837_v24, %v10836_v16  ;;  %v5641_v38 = vsel %vm2294_vm0, %v5617_v15, %v5618_v60 }
 0x866   : > { %v5649_v23 = vmax.f32 %v5601_v43, %v5641_v38 }
 0x867   : > { %v5560_v1 = vadd.f32 %v15699_v7, %v5463_v54  ;;  %v5466_v11 = vadd.f32 %v10838_v57, %v15727_v12  ;;  %v5640_v45 = vsel %vm2294_vm0, %v5618_v60, %v5619_v51 }
 0x868   : > { %v12075_v53 = vpack.c.bf16 %v5649_v23, %v5648_v63  ;;  %v5650_v14 = vmax.f32 %v5602_v0, %v5640_v45 }
 0x869   : > { %v5604_v48 = vmax.f32 %v5560_v1, 0.0  ;;  %v5563_v40 = vadd.f32 %v15705_v39, %v5466_v11  ;;  %v10839_v56 = vpop.f32.mrb[144].mxu1 }
 0x86a   : > { %v10840_v17 = vpop.f32.mrb[145].mxu1  ;;  %12076 = vmatprep.subr.bf16.mxu1 %v12075_v53 }
 0x86b   : > { %v5620_v47 = vrot.slane %v5604_v48, 1  ;;  %v5605_v34 = vmax.f32 %v5563_v40, 0.0  ;;  %v10841_v49 = vadd.f32 %v10840_v17, %v10839_v56  ;;  %v10842_v41 = vpop.f32.mrb[146].mxu1  ;;  %12078 = vmatpush3.bf16.msra.mxu1 %v12075_v53 }
 0x86c   : > { %v10843_v32 = vpop.f32.mrb[147].mxu1 }
 0x86d   : > { %v5621_v7 = vrot.slane %v5605_v34, 1  ;;  %v5471_v43 = vadd.f32 %v10841_v49, %v15727_v12  ;;  %v10844_v5 = vadd.f32 %v10843_v32, %v10842_v41  ;;  %v5639_v6 = vsel %vm2294_vm0, %v5619_v51, %v5620_v47 }
 0x86e   : > { %v5651_v44 = vmax.f32 %v5603_v9, %v5639_v6 }
 0x86f   : > { %v5568_v15 = vadd.f32 %v15717_v59, %v5471_v43  ;;  %v5474_v39 = vadd.f32 %v10844_v5, %v15727_v12  ;;  %v5638_v18 = vsel %vm2294_vm0, %v5620_v47, %v5621_v7 }
 0x870   : > { %v12079_v58 = vpack.c.bf16 %v5651_v44, %v5650_v14  ;;  %v5652_v61 = vmax.f32 %v5604_v48, %v5638_v18 }
 0x871   : > { %v5606_v35 = vmax.f32 %v5568_v15, 0.0  ;;  %v5571_v2 = vadd.f32 %v15721_v4, %v5474_v39  ;;  %v10845_v21 = vpop.f32.mrb[148].mxu1 }
 0x872   : > { %v10846_v25 = vpop.f32.mrb[149].mxu1  ;;  %12080 = vmatprep.subr.bf16.mxu1 %v12079_v58 }
 0x873   : > { %v5622_v13 = vrot.slane %v5606_v35, 1  ;;  %v5607_v63 = vmax.f32 %v5571_v2, 0.0  ;;  %v10847_v0 = vadd.f32 %v10846_v25, %v10845_v21  ;;  %v10848_v3 = vpop.f32.mrb[150].mxu1  ;;  %12082 = vmatpush3.bf16.msra.mxu1 %v12079_v58 }
 0x874   : > { %v10849_v52 = vpop.f32.mrb[151].mxu1 }
 0x875   : > { %v5623_v59 = vrot.slane %v5607_v63, 1  ;;  %v5479_v28 = vadd.f32 %v10847_v0, %v15727_v12  ;;  %v10850_v60 = vadd.f32 %v10849_v52, %v10848_v3  ;;  %v5637_v9 = vsel %vm2294_vm0, %v5621_v7, %v5622_v13 }
 0x876   : > { %v5653_v50 = vmax.f32 %v5605_v34, %v5637_v9 }
 0x877   : > { %v5576_v16 = vadd.f32 %v15715_v27, %v5479_v28  ;;  %v5482_v4 = vadd.f32 %v10850_v60, %v15727_v12  ;;  %v5636_v24 = vsel %vm2294_vm0, %v5622_v13, %v5623_v59 }
 0x878   : > { %v12083_v51 = vpack.c.bf16 %v5653_v50, %v5652_v61  ;;  %v5654_v54 = vmax.f32 %v5606_v35, %v5636_v24  ;;  %v5896_v24 = vld [vmem:[%s17079_s23] sm:$0xff] }
 0x879   : > { %v5608_v57 = vmax.f32 %v5576_v16, 0.0  ;;  %v5579_v38 = vadd.f32 %v15719_v31, %v5482_v4  ;;  %v10851_v23 = vpop.f32.mrb[152].mxu1 }
 0x87a   : > { %v10852_v1 = vpop.f32.mrb[153].mxu1  ;;  %12084 = vmatprep.subr.bf16.mxu1 %v12083_v51 }
 0x87b   : > { %v5624_v11 = vrot.slane %v5608_v57, 1  ;;  %v5609_v45 = vmax.f32 %v5579_v38, 0.0  ;;  %v10853_v53 = vadd.f32 %v10852_v1, %v10851_v23  ;;  %v10854_v14 = vpop.f32.mrb[154].mxu1  ;;  %12086 = vmatpush3.bf16.msra.mxu1 %v12083_v51  ;;  %v5897_v51 = vld [vmem:[%s17079_s23 + $0x8] sm:$0xff]  ;;  %v5898_v38 = vld [vmem:[%s17079_s23 + $0x10] sm:$0xff]  ;;  %v5899_v23 = vld [vmem:[%s17079_s23 + $0x18] sm:$0xff] }
 0x87c   : > { %v10855_v48 = vpop.f32.mrb[155].mxu1  ;;  %v5664_v1 = vld [vmem:[%s17068_s2 + $0x10] sm:$0xff] }
 0x87d   : > { %v5625_v27 = vrot.slane %v5609_v45, 1  ;;  %v5487_v40 = vadd.f32 %v10853_v53, %v15727_v12  ;;  %v10856_v56 = vadd.f32 %v10855_v48, %v10854_v14  ;;  %v5635_v17 = vsel %vm2294_vm0, %v5623_v59, %v5624_v11  ;;  %v5901_v53 = vld [vmem:[%s17079_s23 + $0x28] sm:$0xff]  ;;  %v5665_v14 = vld [vmem:[%s17068_s2 + $0x18] sm:$0xff]  ;;  %v5666_v48 = vld [vmem:[%s17068_s2 + $0x20] sm:$0xff] }
 0x87e   : > { %v5655_v47 = vmax.f32 %v5607_v63, %v5635_v17  ;;  %v5667_v17 = vld [vmem:[%s17068_s2 + $0x28] sm:$0xff] }
 0x87f   : > { %v5584_v34 = vadd.f32 %v15729_v55, %v5487_v40  ;;  %v5490_v31 = vadd.f32 %v10856_v56, %v15727_v12  ;;  %v5634_v49 = vsel %vm2294_vm0, %v5624_v11, %v5625_v27  ;;  %v12139_v11 = vpack.c.bf16 %v5899_v23, %v5898_v38  ;;  %v5902_v40 = vld [vmem:[%s17079_s23 + $0x30] sm:$0xff]  ;;  %v5903_v56 = vld [vmem:[%s17079_s23 + $0x38] sm:$0xff] }
 0x880   : > { %v12087_v41 = vpack.c.bf16 %v5655_v47, %v5654_v54  ;;  %v5656_v32 = vmax.f32 %v5608_v57, %v5634_v49  ;;  %v12135_v57 = vpack.c.bf16 %v5897_v51, %v5896_v24  ;;  %v5668_v47 = vld [vmem:[%s17068_s2 + $0x30] sm:$0xff]  ;;  %v5905_v49 = vld [vmem:[%s17079_s23 + $0x48] sm:$0xff] }
 0x881   : > { %v5610_v7 = vmax.f32 %v5584_v34, 0.0  ;;  %v5587_v43 = vadd.f32 %v15733_v46, %v5490_v31  ;;  %v10857_v5 = vpop.f32.mrb[156].mxu1  ;;  %v12147_v34 = vpack.c.bf16 %v5903_v56, %v5902_v40  ;;  %v5904_v31 = vld [vmem:[%s17079_s23 + $0x40] sm:$0xff] }
 0x882   : > { %v10858_v6 = vpop.f32.mrb[157].mxu1  ;;  %12088 = vmatprep.subr.bf16.mxu1 %v12087_v41 }
 0x883   : > { %v5626_v44 = vrot.slane %v5610_v7, 1  ;;  %v5611_v15 = vmax.f32 %v5587_v43, 0.0  ;;  %v10859_v39 = vadd.f32 %v10858_v6, %v10857_v5  ;;  %v10860_v18 = vpop.f32.mrb[158].mxu1  ;;  %12090 = vmatpush3.bf16.msra.mxu1 %v12087_v41  ;;  %v5669_v41 = vld [vmem:[%s17068_s2 + $0x38] sm:$0xff]  ;;  %v5908_v6 = vld [vmem:[%s17079_s23 + $0x60] sm:$0xff] }
 0x884   : > { %v10861_v58 = vpop.f32.mrb[159].mxu1  ;;  %v5907_v43 = vld [vmem:[%s17079_s23 + $0x58] sm:$0xff] }
 0x885   : > { %v5627_v55 = vrot.slane %v5611_v15, 1  ;;  %v5495_v61 = vadd.f32 %v10859_v39, %v15727_v12  ;;  %v10862_v35 = vadd.f32 %v10861_v58, %v10860_v18  ;;  %v5633_v2 = vsel %vm2294_vm0, %v5625_v27, %v5626_v44  ;;  %v5910_v39 = vld [vmem:[%s17079_s23 + $0x70] sm:$0xff]  ;;  %v5911_v18 = vld [vmem:[%s17079_s23 + $0x78] sm:$0xff] }
 0x886   : > { %v5657_v21 = vmax.f32 %v5609_v45, %v5633_v2  ;;  %v5900_v45 = vld [vmem:[%s17079_s23 + $0x20] sm:$0xff]  ;;  %v12163_v58 = vpack.c.bf16 %v5911_v18, %v5910_v39 }
 0x887   : > { %v5592_v25 = vadd.f32 %v15724_v30, %v5495_v61  ;;  %v5498_v46 = vadd.f32 %v10862_v35, %v15727_v12  ;;  %v5632_v13 = vsel %vm2294_vm0, %v5626_v44, %v5627_v55  ;;  %v12143_v27 = vpack.c.bf16 %v5901_v53, %v5900_v45  ;;  %v5909_v44 = vld [vmem:[%s17079_s23 + $0x68] sm:$0xff] }
 0x888   : > { %v12091_v63 = vpack.c.bf16 %v5657_v21, %v5656_v32  ;;  %v5658_v0 = vmax.f32 %v5610_v7, %v5632_v13  ;;  %v12151_v32 = vpack.c.bf16 %v5905_v49, %v5904_v31  ;;  %v5906_v7 = vld [vmem:[%s17079_s23 + $0x50] sm:$0xff]  ;;  %v6050_v53 = vand.u32 7, %v17040_v8 }
 0x889   : > { %v5612_v3 = vmax.f32 %v5592_v25, 0.0  ;;  %v5595_v52 = vadd.f32 %v15731_v33, %v5498_v46  ;;  %v12155_v5 = vpack.c.bf16 %v5907_v43, %v5906_v7  ;;  %v6071_v7 = vand.u32 7, %v15345_v22 }
 0x88a   : > { %12092 = vmatprep.subr.bf16.mxu1 %v12091_v63  ;;  %vm15895_vm11 = vcmp.ne.s32.totalorder %v6050_v53, 7  ;;  %vm6124_vm5 = vcmp.ne.s32.totalorder %v6050_v53, 0 }
 0x88b   : > { %v5628_v59 = vrot.slane %v5612_v3, 1  ;;  %v5613_v28 = vmax.f32 %v5595_v52, 0.0  ;;  %12094 = vmatpush3.bf16.msra.mxu1 %v12091_v63  ;;  %v12647_v63 = vld [vmem:[%s17080_s10] sm:$0xff]   ;;  %v12650_v52 = vld [vmem:[%s17080_s10 + $0x18] sm:$0xff]   ;;  %vm15920_vm15 = vcmp.ne.s32.totalorder %v6071_v7, 7 }
 0x88d   : > { %v5629_v60 = vrot.slane %v5613_v28, 1  ;;  %v5631_v30 = vsel %vm2294_vm0, %v5627_v55, %v5628_v59 }
 0x88e   : > { %v5659_v12 = vmax.f32 %v5611_v15, %v5631_v30  ;;  %v12159_v15 = vpack.c.bf16 %v5909_v44, %v5908_v6  ;;  %v12654_v30 = vld [vmem:[%s17080_s10 + $0x38] sm:$0xff]  }
 0x88f   : > { %v5630_v9 = vsel %vm2294_vm0, %v5628_v59, %v5629_v60  ;;  %v5645_v33 = vsel %vm2294_vm0, %v5629_v60, %v15739_v20  ;;  %v5663_v20 = vld [vmem:[%s17068_s2 + $0x8] sm:$0xff]  ;;  %v12651_v59 = vld [vmem:[%s17080_s10 + $0x20] sm:$0xff]   ;;  %v12653_v60 = vld [vmem:[%s17080_s10 + $0x30] sm:$0xff]   ;;  %s17106_s2 = sld [smem:[#allocation33_spill]] }
 0x890   : > { %v12095_v50 = vpack.c.bf16 %v5659_v12, %v5658_v0  ;;  %v5660_v16 = vmax.f32 %v5612_v3, %v5630_v9  ;;  %v5661_v4 = vmax.f32 %v5613_v28, %v5645_v33  ;;  %v12648_v0 = vld [vmem:[%s17080_s10 + $0x8] sm:$0xff]   ;;  %v12649_v3 = vld [vmem:[%s17080_s10 + $0x10] sm:$0xff]   ;;  %v12655_v12 = vld [vmem:[%s17080_s10 + $0x40] sm:$0xff]  }
 0x891   : > { %v12652_v28 = vld [vmem:[%s17080_s10 + $0x28] sm:$0xff]   ;;  %v12657_v33 = vld [vmem:[%s17080_s10 + $0x50] sm:$0xff]  }
 0x892   : > { %12096 = vmatprep.subr.bf16.mxu1 %v12095_v50  ;;  %v12099_v54 = vpack.c.bf16 %v5661_v4, %v5660_v16  ;;  %v12656_v9 = vld [vmem:[%s17080_s10 + $0x48] sm:$0xff]   ;;  %v12658_v16 = vld [vmem:[%s17080_s10 + $0x58] sm:$0xff]   ;;  %v6043_v4 = vand.u32 7, %v15337_v62 }
 0x893   : > { %12098 = vmatpush3.bf16.msra.mxu1 %v12095_v50  ;;  %v6029_v50 = vand.u32 7, %v13502_v10 }
 0x894   : > { %12100 = vmatprep.subr.bf16.mxu1 %v12099_v54  ;;  %vm15864_vm10 = vcmp.ne.s32.totalorder %v6043_v4, 7  ;;  %vm6123_vm4 = vcmp.ne.s32.totalorder %v6043_v4, 0 }
 0x895   : > { %vm6145_vm8 = vcmp.ne.s32.totalorder %v6029_v50, 7  ;;  %v15891_v44 = vsel %vm15864_vm10, 1.0, %v17043_v42  ;;  %vm6121_vm3 = vcmp.ne.s32.totalorder %v6029_v50, 0 }
 0x897   : > { %12102 = vmatpush3.bf16.msra.mxu1 %v12099_v54  ;;  %v6036_v54 = vand.u32 7, %v15080_v36 }
 0x898   : > { %12136 = vmatprep.subr.bf16.mxu1 %v12135_v57 }
 0x899   : > { %vm6146_vm9 = vcmp.ne.s32.totalorder %v6036_v54, 7  ;;  %vm6122_vm2 = vcmp.ne.s32.totalorder %v6036_v54, 0 }
 0x89a   : > { %11532 = vmatmul.mubr.f32.vlgmr.msra.gmra.mrb[160].mxu1 %v5663_v20 }
 0x89b   : > { %11534 = vmatprep.mubr.f32.mxu1 %v5664_v1  ;;  %12138 = vmatpush3.bf16.msra.mxu1 %v12135_v57  ;;  %v15859_v1 = vsel %vm6145_vm8, 1.0, %v17043_v42 }
 0x89c   : > { %12140 = vmatprep.subr.bf16.mxu1 %v12139_v11 }
 0x89e   : > { %11535 = vmatmul.mubr.f32.gmra.mrb[162].mxu1 %v5665_v14 }
 0x89f   : > { %11537 = vmatprep.mubr.f32.mxu1 %v5666_v48  ;;  %12142 = vmatpush3.bf16.msra.mxu1 %v12139_v11 }
 0x8a0   : > { %12144 = vmatprep.subr.bf16.mxu1 %v12143_v27 }
 0x8a2   : > { %11538 = vmatmul.mubr.f32.gmra.mrb[164].mxu1 %v5667_v17 }
 0x8a3   : > { %11540 = vmatprep.mubr.f32.mxu1 %v5668_v47  ;;  %12146 = vmatpush3.bf16.msra.mxu1 %v12143_v27  ;;  %v6078_v47 = vand.u32 7, %v17044_v37 }
 0x8a4   : > { %12148 = vmatprep.subr.bf16.mxu1 %v12147_v34 }
 0x8a5   : > { %vm15902_vm12 = vcmp.ne.s32.totalorder %v6078_v47, 7  ;;  %vm6128_vm10 = vcmp.ne.s32.totalorder %v6078_v47, 0 }
 0x8a6   : > { %11541 = vmatmul.mubr.f32.gmra.mrb[166].mxu1 %v5669_v41  ;;  %v15873_v41 = vsel %vm6146_vm9, 1.0, %v17043_v42  ;;  %vm6127_vm9 = vcmp.ne.s32.totalorder %v6071_v7, 0 }
 0x8a7   : > { %12150 = vmatpush3.bf16.msra.mxu1 %v12147_v34 }
 0x8a8   : > { %12152 = vmatprep.subr.bf16.mxu1 %v12151_v32 }
 0x8ab   : > { %12154 = vmatpush3.bf16.msra.mxu1 %v12151_v32  ;;  %v6064_v32 = vand.u32 7, %v15099_v26 }
 0x8ac   : > { %12156 = vmatprep.subr.bf16.mxu1 %v12155_v5 }
 0x8ad   : > { %vm15914_vm14 = vcmp.ne.s32.totalorder %v6064_v32, 7  ;;  %vm6126_vm8 = vcmp.ne.s32.totalorder %v6064_v32, 0 }
 0x8ae   : > { %v16042_v26 = vsel %vm6126_vm8, 1.0, %v17043_v42 }
 0x8af   : > { %12158 = vmatpush3.bf16.msra.mxu1 %v12155_v5 }
 0x8b0   : > { %12160 = vmatprep.subr.bf16.mxu1 %v12159_v15 }
 0x8b3   : > { %12162 = vmatpush3.bf16.msra.mxu1 %v12159_v15 }
 0x8b4   : > { %12164 = vmatprep.subr.bf16.mxu1 %v12163_v58 }
 0x8b7   : > { %12166 = vmatpush3.bf16.msra.mxu1 %v12163_v58  ;;  %v6057_v58 = vand.u32 7, %v17058_v29 }
 0x8b9   : > { %vm15908_vm13 = vcmp.ne.s32.totalorder %v6057_v58, 7  ;;  %vm6125_vm7 = vcmp.ne.s32.totalorder %v6057_v58, 0 }
 0x8ba   : > { %v16039_v29 = vsel %vm6125_vm7, 1.0, %v17043_v42 }
 0x96d   : > { %v11533_v55 = vpop.f32.mrb[160].mxu1 }
 0x96e   : > { %v5736_v61 = vpop.f32.mrb[161].mxu1 }
 0x96f   : > { %11575 = vmatprep.mubr.f32.mxu0 %v5736_v61  ;;  %11619 = vmatprep.mubr.f32.mxu1 %v5736_v61 }
 0x970   : > { %11576 = vmatmul.mubr.f32.vlgmr.msra.gmra.mrb[176].mxu0 %v11533_v55  ;;  %11620 = vmatmul.mubr.f32.vlgmr.msra.gmra.mrb[168].mxu1 %v11533_v55 }
 0x971   : > { %v11536_v35 = vpop.f32.mrb[162].mxu1  ;;  %6381 = vmatpush1.bf16.msra.mxu0 %v12647_v63 }
 0x972   : > { %v5746_v2 = vpop.f32.mrb[163].mxu1  ;;  %6382 = vmatprep.subr.bf16.mxu0 %v17078_v19 }
 0x973   : > { %11578 = vmatprep.mubr.f32.mxu0 %v5746_v2  ;;  %11622 = vmatprep.mubr.f32.mxu1 %v5746_v2 }
 0x974   : > { %11579 = vmatmul.mubr.f32.gmra.mrb[178].mxu0 %v11536_v35  ;;  %11623 = vmatmul.mubr.f32.gmra.mrb[170].mxu1 %v11536_v35 }
 0x975   : > { %v11539_v21 = vpop.f32.mrb[164].mxu1  ;;  %6383 = vmatpush1.bf16.msra.mxu0 %v12648_v0 }
 0x976   : > { %v5756_v25 = vpop.f32.mrb[165].mxu1  ;;  %6384 = vmatprep.subr.bf16.mxu0 %v17078_v19 }
 0x977   : > { %11581 = vmatprep.mubr.f32.mxu0 %v5756_v25  ;;  %11625 = vmatprep.mubr.f32.mxu1 %v5756_v25 }
 0x978   : > { %11582 = vmatmul.mubr.f32.gmra.mrb[180].mxu0 %v11539_v21  ;;  %11626 = vmatmul.mubr.f32.gmra.mrb[172].mxu1 %v11539_v21 }
 0x979   : > { %v11542_v46 = vpop.f32.mrb[166].mxu1  ;;  %6385 = vmatpush1.bf16.msra.mxu0 %v12649_v3 }
 0x97a   : > { %v5766_v13 = vpop.f32.mrb[167].mxu1  ;;  %6386 = vmatprep.subr.bf16.mxu0 %v17078_v19 }
 0x97b   : > { %11584 = vmatprep.mubr.f32.mxu0 %v5766_v13  ;;  %11628 = vmatprep.mubr.f32.mxu1 %v5766_v13 }
 0x97c   : > { %11585 = vmatmul.mubr.f32.gmra.mrb[182].mxu0 %v11542_v46  ;;  %11629 = vmatmul.mubr.f32.gmra.mrb[174].mxu1 %v11542_v46 }
 0x97d   : > { %6387 = vmatpush1.bf16.msra.mxu0 %v12650_v52 }
 0x97e   : > { %6388 = vmatprep.subr.bf16.mxu0 %v17078_v19 }
 0x981   : > { %6389 = vmatpush1.bf16.msra.mxu0 %v12651_v59 }
 0x982   : > { %6390 = vmatprep.subr.bf16.mxu0 %v17078_v19 }
 0x985   : > { %6391 = vmatpush1.bf16.msra.mxu0 %v12652_v28 }
 0x986   : > { %6392 = vmatprep.subr.bf16.mxu0 %v17078_v19 }
 0x989   : > { %6393 = vmatpush1.bf16.msra.mxu0 %v12653_v60 }
 0x98a   : > { %6394 = vmatprep.subr.bf16.mxu0 %v17078_v19 }
 0x98d   : > { %6395 = vmatpush1.bf16.msra.mxu0 %v12654_v30 }
 0x98e   : > { %6396 = vmatprep.subr.bf16.mxu0 %v17078_v19 }
 0x991   : > { %6397 = vmatpush1.bf16.msra.mxu0 %v12655_v12 }
 0x992   : > { %6398 = vmatprep.subr.bf16.mxu0 %v17078_v19 }
 0x995   : > { %6399 = vmatpush1.bf16.msra.mxu0 %v12656_v9 }
 0x996   : > { %6400 = vmatprep.subr.bf16.mxu0 %v17078_v19 }
 0x999   : > { %6401 = vmatpush1.bf16.msra.mxu0 %v12657_v33 }
 0x99a   : > { %6402 = vmatprep.subr.bf16.mxu0 %v17078_v19 }
 0x99d   : > { %6403 = vmatpush1.bf16.msra.mxu0 %v12658_v16 }
 0xa43   : > { %v11577_v24 = vpop.f32.mrb[176].mxu0  ;;  %v11621_v51 = vpop.f32.mrb[168].mxu1 }
 0xa44   : > { %v6018_v57 = vmax.f32 %v11577_v24, %v11621_v51  ;;  %v5857_v38 = vpop.f32.mrb[177].mxu0  ;;  %v5978_v23 = vpop.f32.mrb[169].mxu1 }
 0xa45   : > { %v15854_v20 = vmax.f32 %v5857_v38, %v5978_v23  ;;  %v15942_v38 = vsel %vm15895_vm11, 1.0, %v17043_v42  ;;  %v15947_v23 = vsel %vm15908_vm13, 1.0, %v17043_v42 }
 0xa46   : > { %v6170_v11 = vrot.slane %v6018_v57, 7  ;;  %v6194_v45 = vrot.slane %v6018_v57, 1 }
 0xa47   : > { %v6169_v48 = vrot.slane %v15854_v20, 7  ;;  %v6193_v27 = vrot.slane %v15854_v20, 1  ;;  %v11580_v40 = vpop.f32.mrb[178].mxu0  ;;  %v11624_v56 = vpop.f32.mrb[170].mxu1  ;;  %v12518_v17 = vpack.i.bf16 %v6018_v57, %v15854_v20 }
 0xa48   : > { %v6020_v34 = vmax.f32 %v11580_v40, %v11624_v56  ;;  %v5867_v31 = vpop.f32.mrb[179].mxu0  ;;  %v5988_v49 = vpop.f32.mrb[171].mxu1 }
 0xa49   : > { %v15881_v43 = vsel %vm2197_vm1, %v6169_v48, %v6170_v11  ;;  %v6207_v5 = vsel %vm2294_vm0, %v6193_v27, %v6194_v45  ;;  %v6019_v6 = vmax.f32 %v5867_v31, %v5988_v49  ;;  %12519 = vrot.lane.b32.xlu0 %v12518_v17, %s16859_s22 }
 0xa4a   : > { %v6172_v15 = vrot.slane %v6020_v34, 7  ;;  %v6196_v39 = vrot.slane %v6020_v34, 1  ;;  %v6209_v57 = vmul.f32 %v15859_v1, %v6207_v5  ;;  %v15957_v5 = vsel %vm15914_vm14, 1.0, %v17043_v42 }
 0xa4b   : > { %v6171_v55 = vrot.slane %v6019_v6, 7  ;;  %v6195_v61 = vrot.slane %v6019_v6, 1  ;;  %v11583_v35 = vpop.f32.mrb[180].mxu0  ;;  %v11627_v2 = vpop.f32.mrb[172].mxu1  ;;  %v12523_v21 = vpack.i.bf16 %v6020_v34, %v6019_v6  ;;  %v15962_v6 = vsel %vm15920_vm15, 1.0, %v17043_v42 }
 0xa4c   : > { %v6022_v46 = vmax.f32 %v11583_v35, %v11627_v2  ;;  %v5877_v13 = vpop.f32.mrb[181].mxu0  ;;  %v5998_v63 = vpop.f32.mrb[173].mxu1 }
 0xa4d   : > { %v15926_v59 = vsel %vm2197_vm1, %v6171_v55, %v6172_v15  ;;  %v15930_v28 = vsel %vm2197_vm1, %v6170_v11, %v6171_v55  ;;  %v6205_v60 = vsel %vm2294_vm0, %v6195_v61, %v6196_v39  ;;  %v6206_v30 = vsel %vm2294_vm0, %v6194_v45, %v6195_v61  ;;  %12524 = vrot.lane.b32.xlu1 %v12523_v21, %s16859_s22 }
 0xa4e   : > { %v6174_v12 = vrot.slane %v6022_v46, 7  ;;  %v6198_v9 = vrot.slane %v6022_v46, 1  ;;  %v6021_v33 = vmax.f32 %v5877_v13, %v5998_v63  ;;  %v6210_v16 = vmul.f32 %v15873_v41, %v6206_v30 }
 0xa4f   : > { %v11586_v24 = vpop.f32.mrb[182].mxu0  ;;  %v11630_v51 = vpop.f32.mrb[174].mxu1  ;;  %v15952_v11 = vsel %vm15902_vm12, 1.0, %v17043_v42  ;;  %v6211_v63 = vmul.f32 %v15891_v44, %v6205_v60 }
 0xa50   : > { %v6173_v45 = vrot.slane %v6021_v33, 7  ;;  %v6197_v14 = vrot.slane %v6021_v33, 1  ;;  %v6024_v40 = vmax.f32 %v11586_v24, %v11630_v51  ;;  %v5887_v56 = vpop.f32.mrb[183].mxu0  ;;  %v6008_v17 = vpop.f32.mrb[175].mxu1  ;;  %v12528_v34 = vpack.i.bf16 %v6022_v46, %v6021_v33 }
 0xa51   : > { %v6023_v31 = vmax.f32 %v5887_v56, %v6008_v17  ;;  %v6258_v49 = vpack.c.bf16 %v6210_v16, %v6209_v57  ;;  %v16023_v56 = vsel %vm6124_vm5, 1.0, %v17043_v42  ;;  %vm8536_vm5 = vcmask 261120  }
 0xa52   : > { %v15966_v18 = vsel %vm2197_vm1, %v6173_v45, %v6174_v12  ;;  %v6180_v55 = vsel %vm2197_vm1, %v6172_v15, %v6173_v45  ;;  %v6203_v61 = vsel %vm2294_vm0, %v6197_v14, %v6198_v9  ;;  %v6204_v35 = vsel %vm2294_vm0, %v6196_v39, %v6197_v14  ;;  %12529 = vrot.lane.b32.xlu0 %v12528_v34, %s16859_s22 }
 0xa53   : > { %v6176_v2 = vrot.slane %v6024_v40, 7  ;;  %v6200_v21 = vrot.slane %v6024_v40, 1  ;;  %v6175_v25 = vrot.slane %v6023_v31, 7  ;;  %v6199_v46 = vrot.slane %v6023_v31, 1  ;;  %10183 = vmatprep.mubr.msk.bf16.mxu0 %vm4812_vm6, %v6258_v49 }
 0xa54   : > { %v12533_v13 = vpack.i.bf16 %v6024_v40, %v6023_v31  ;;  %v6212_v0 = vmul.f32 %v15942_v38, %v6204_v35  ;;  %v15979_v15 = vmul.f32 %v15947_v23, %v6203_v61  ;;  %v16020_v40 = vsel %vm6123_vm4, 1.0, %v17043_v42 }
 0xa55   : > { %v6184_v39 = vsel %vm2197_vm1, %v6176_v2, %v6169_v48  ;;  %v6208_v3 = vsel %vm2294_vm0, %v6200_v21, %v6193_v27  ;;  %v6177_v52 = vsel %vm2197_vm1, %v6175_v25, %v6176_v2  ;;  %v6178_v60 = vsel %vm2197_vm1, %v6174_v12, %v6175_v25 }
 0xa56   : > { %v6201_v30 = vsel %vm2294_vm0, %v6199_v46, %v6200_v21  ;;  %v6202_v33 = vsel %vm2294_vm0, %v6198_v9, %v6199_v46  ;;  %12534 = vrot.lane.b32.xlu1 %v12533_v13, %s16859_s22  ;;  %v6260_v48 = vpack.c.bf16 %v6212_v0, %v6211_v63  ;;  %v6216_v27 = vmul.f32 %v15952_v11, %v6208_v3  ;;  %s17101_s22 = sld [smem:[#allocation32_spill]] }
 0xa57   : > { %v6214_v20 = vmul.f32 %v15957_v5, %v6202_v33  ;;  %v6215_v16 = vmul.f32 %v15962_v6, %v6201_v30  ;;  %v16007_v12 = vsel %vm6122_vm2, 1.0, %v17043_v42  ;;  %v16010_v9 = vsel %vm6121_vm3, 1.0, %v17043_v42  ;;  %v12659_v30 = vld [vmem:[%s17093_s0 + $0x40] sm:$0xff]   ;;  %v12662_v33 = vld [vmem:[%s17093_s0 + $0x8] sm:$0xff]  }
 0xa58   : > { %v6186_v45 = vmul.f32 %v16007_v12, %v15881_v43  ;;  %v6185_v54 = vmul.f32 %v16010_v9, %v6184_v39  ;;  %v6187_v49 = vmul.f32 %v16020_v40, %v15930_v28  ;;  %v6188_v61 = vmul.f32 %v16023_v56, %v15926_v59  ;;  %10951 = vmatprep.subr.bf16.mxu1 %v12659_v30 }
 0xa59   : > { %v6262_v24 = vpack.c.bf16 %v6214_v20, %v15979_v15  ;;  %v6264_v51 = vpack.c.bf16 %v6216_v27, %v6215_v16  ;;  %v6189_v21 = vmul.f32 %v16039_v29, %v6180_v55  ;;  %v6190_v25 = vmul.f32 %v16042_v26, %v15966_v18  ;;  %v12664_v20 = vld [vmem:[%s17093_s0 + $0x10] sm:$0xff]   ;;  %v12665_v16 = vld [vmem:[%s17093_s0 + $0x58] sm:$0xff]  }
 0xa5a   : > { %v16052_v46 = vsel %vm6127_vm9, 1.0, %v17043_v42  ;;  %v16055_v13 = vsel %vm6128_vm10, 1.0, %v17043_v42  ;;  %v12666_v27 = vld [vmem:[%s17093_s0 + $0x18] sm:$0xff]  }
 0xa5b   : > { %v6191_v18 = vmul.f32 %v16052_v46, %v6178_v60  ;;  %v6192_v0 = vmul.f32 %v16055_v13, %v6177_v52  ;;  %v12660_v60 = vld [vmem:[%s17093_s0] sm:$0xff]   ;;  %v12661_v52 = vld [vmem:[%s17093_s0 + $0x48] sm:$0xff]  }
 0xa5c   : > { %10952 = vmatpush3.bf16.msra.mxu1 %v12660_v60 }
 0xa5d   : > { %10953 = vmatprep.subr.bf16.mxu1 %v12661_v52 }
 0xa60   : > { %10954 = vmatpush3.bf16.msra.mxu1 %v12662_v33 }
 0xabb   : > { %v12520_v57 = vpop.permute.xlu0 %12519 }
 0xabc   : > { %v12522_v14 = vunpack.i.h.bf16 %v12520_v57  ;;  %v12521_v50 = vunpack.i.l.bf16 %v12520_v57  ;;  %v12669_v57 = vld [vmem:[%s17093_s0 + $0x68] sm:$0xff]  }
 0xabe   : > { %v6249_v17 = vsel %vm4812_vm6, %v6185_v54, %v12521_v50  ;;  %v6250_v4 = vsel %vm4812_vm6, %v6186_v45, %v12522_v14  ;;  %v12670_v45 = vld [vmem:[%s17093_s0 + $0x28] sm:$0xff]   ;;  %v12671_v54 = vld [vmem:[%s17093_s0 + $0x70] sm:$0xff]   ;;  %v12673_v50 = vld [vmem:[%s17093_s0 + $0x78] sm:$0xff]  }
 0xabf   : > { %v6257_v34 = vpack.c.bf16 %v6250_v4, %v6249_v17  ;;  %v12525_v53 = vpop.permute.xlu1 %12524  ;;  %v12672_v14 = vld [vmem:[%s17093_s0 + $0x30] sm:$0xff]   ;;  %v12674_v17 = vld [vmem:[%s17093_s0 + $0x38] sm:$0xff]   ;;  %v16082_v4 = vld [vmem:[%s17093_s0 + $0x80] sm:$0xff]  }
 0xac0   : > { %v12527_v43 = vunpack.i.h.bf16 %v12525_v53  ;;  %v12526_v31 = vunpack.i.l.bf16 %v12525_v53 }
 0xac1   : > { %6413 = vmatmul.mubr.bf16.vlgmr.msra.gmra.mrb[184].mxu0 %v6257_v34  ;;  %v16086_v34 = vld [vmem:[%s17094_s18] ss:$0 sm:$0xff]  ;;  %s17098_s18 = sld [smem:[#allocation30_spill]] }
 0xac2   : > { %10184 = vmatprep.mubr.msk.bf16.mxu0 %vm4812_vm6, %v6260_v48  ;;  %v6251_v35 = vsel %vm4812_vm6, %v6187_v49, %v12526_v31  ;;  %v6252_v2 = vsel %vm4812_vm6, %v6188_v61, %v12527_v43  ;;  %v12663_v48 = vld [vmem:[%s17093_s0 + $0x50] sm:$0xff]  }
 0xac3   : > { %v6259_v32 = vpack.c.bf16 %v6252_v2, %v6251_v35  ;;  %10955 = vmatprep.subr.bf16.mxu1 %v12663_v48 }
 0xac4   : > { %v12530_v58 = vpop.permute.xlu0 %12529  ;;  %10956 = vmatpush3.bf16.msra.mxu1 %v12664_v20 }
 0xac5   : > { %v12532_v59 = vunpack.i.h.bf16 %v12530_v58  ;;  %v12531_v28 = vunpack.i.l.bf16 %v12530_v58  ;;  %10957 = vmatprep.subr.bf16.mxu1 %v12665_v16 }
 0xac7   : > { %v6253_v22 = vsel %vm4812_vm6, %v6189_v21, %v12531_v28  ;;  %v6254_v37 = vsel %vm4812_vm6, %v6190_v25, %v12532_v59 }
 0xac8   : > { %v12535_v47 = vpop.permute.xlu1 %12534  ;;  %v6261_v7 = vpack.c.bf16 %v6254_v37, %v6253_v22  ;;  %10958 = vmatpush3.bf16.msra.mxu1 %v12666_v27 }
 0xac9   : > { %v12537_v63 = vunpack.i.h.bf16 %v12535_v47  ;;  %v12536_v55 = vunpack.i.l.bf16 %v12535_v47  ;;  %6421 = vmatmul.mubr.bf16.gmra.mrb[188].mxu0 %v6259_v32 }
 0xaca   : > { %10185 = vmatprep.mubr.msk.bf16.mxu0 %vm4812_vm6, %v6262_v24  ;;  %v12667_v24 = vld [vmem:[%s17093_s0 + $0x60] sm:$0xff]  }
 0xacb   : > { %v6255_v15 = vsel %vm4812_vm6, %v6191_v18, %v12536_v55  ;;  %v6256_v39 = vsel %vm4812_vm6, %v6192_v0, %v12537_v63  ;;  %10959 = vmatprep.subr.bf16.mxu1 %v12667_v24 }
 0xacc   : > { %v6263_v3 = vpack.c.bf16 %v6256_v39, %v6255_v15 }
 0xad1   : > { %6429 = vmatmul.mubr.bf16.gmra.mrb[192].mxu0 %v6261_v7 }
 0xad2   : > { %10186 = vmatprep.mubr.msk.bf16.mxu0 %vm4812_vm6, %v6264_v51  ;;  %v12668_v51 = vld [vmem:[%s17093_s0 + $0x20] sm:$0xff]  }
 0xad3   : > { %10960 = vmatpush3.bf16.msra.mxu1 %v12668_v51 }
 0xad4   : > { %10961 = vmatprep.subr.bf16.mxu1 %v12669_v57 }
 0xad7   : > { %10962 = vmatpush3.bf16.msra.mxu1 %v12670_v45 }
 0xad8   : > { %10963 = vmatprep.subr.bf16.mxu1 %v12671_v54 }
 0xad9   : > { %6437 = vmatmul.mubr.bf16.gmra.mrb[196].mxu0 %v6263_v3 }
 0xadb   : > { %10964 = vmatpush3.bf16.msra.mxu1 %v12672_v14 }
 0xadc   : > { %10965 = vmatprep.subr.bf16.mxu1 %v12673_v50 }
 0xadf   : > { %10966 = vmatpush3.bf16.msra.mxu1 %v12674_v17 }
 0xae0   : > { %11631 = vmatprep.subr.bf16.mxu1 %v16082_v4 }
 0xb94   : > { %v6414_v53 = vpop.f32.mrb[184].mxu0 }
 0xb95   : > { %v6415_v43 = vadd.f32 %v16086_v34, %v6414_v53  ;;  %v6416_v31 = vpop.f32.mrb[185].mxu0 }
 0xb96   : > { %v6417_v49 = vpop.f32.mrb[186].mxu0 }
 0xb97   : > { %v16089_v61 = vmax.f32 %v6415_v43, 0.0  ;;  %v6418_v35 = vadd.f32 %v16086_v34, %v6417_v49  ;;  %v6419_v2 = vpop.f32.mrb[187].mxu0 }
 0xb99   : > { %v6446_v32 = vmax.f32 %v6418_v35, 0.0  ;;  %v6453_v58 = vrot.slane %v16089_v61, 7  ;;  %v6477_v59 = vrot.slane %v16089_v61, 1 }
 0xb9b   : > { %v6454_v28 = vrot.slane %v6446_v32, 7  ;;  %v6478_v21 = vrot.slane %v6446_v32, 1  ;;  %v6502_v25 = vpack.c.bf16 %v6446_v32, %v16089_v61  ;;  %v12677_v61 = vld [vmem:[%s17093_s0 + $0x90] sm:$0xff]  }
 0xb9c   : > { %v6422_v22 = vpop.f32.mrb[188].mxu0 }
 0xb9d   : > { %v16099_v37 = vsel %vm2197_vm1, %v6453_v58, %v6454_v28  ;;  %v6423_v47 = vadd.f32 %v16086_v34, %v6422_v22  ;;  %v6424_v7 = vpop.f32.mrb[189].mxu0  ;;  %6744 = vmatprep.mubr.bf16.mxu1 %v6502_v25  ;;  %v6491_v63 = vsel %vm2294_vm0, %v6477_v59, %v6478_v21 }
 0xb9e   : > { %v6425_v55 = vpop.f32.mrb[190].mxu0  ;;  %v16122_v27 = vmul.f32 %v15859_v1, %v6491_v63 }
 0xb9f   : > { %v16106_v18 = vmax.f32 %v6423_v47, 0.0  ;;  %v6426_v0 = vadd.f32 %v16086_v34, %v6425_v55  ;;  %v6427_v15 = vpop.f32.mrb[191].mxu0 }
 0xba1   : > { %v6455_v39 = vrot.slane %v16106_v18, 7  ;;  %v6479_v3 = vrot.slane %v16106_v18, 1  ;;  %v16111_v30 = vmax.f32 %v6426_v0, 0.0 }
 0xba3   : > { %v6456_v60 = vrot.slane %v16111_v30, 7  ;;  %v6480_v52 = vrot.slane %v16111_v30, 1  ;;  %v6505_v33 = vpack.c.bf16 %v16111_v30, %v16106_v18  ;;  %v6466_v48 = vsel %vm2197_vm1, %v6454_v28, %v6455_v39  ;;  %v12682_v18 = vld [vmem:[%s17093_s0 + $0xb8] sm:$0xff]   ;;  %v12683_v30 = vld [vmem:[%s17095_s1 + $0x80] sm:$0xff]  }
 0xba4   : > { %v6430_v20 = vpop.f32.mrb[192].mxu0  ;;  %v6490_v16 = vsel %vm2294_vm0, %v6478_v21, %v6479_v3  ;;  %v16133_v50 = vmul.f32 %v16020_v40, %v6466_v48 }
 0xba5   : > { %v6489_v24 = vsel %vm2294_vm0, %v6479_v3, %v6480_v52  ;;  %v6431_v51 = vadd.f32 %v16086_v34, %v6430_v20  ;;  %v6432_v57 = vpop.f32.mrb[193].mxu0  ;;  %v6465_v45 = vsel %vm2197_vm1, %v6455_v39, %v6456_v60  ;;  %v16130_v54 = vmul.f32 %v15873_v41, %v6490_v16 }
 0xba6   : > { %v6433_v14 = vpop.f32.mrb[194].mxu0  ;;  %v6472_v17 = vmul.f32 %v16023_v56, %v6465_v45  ;;  %v16143_v7 = vmul.f32 %v15891_v44, %v6489_v24 }
 0xba7   : > { %v6449_v53 = vmax.f32 %v6431_v51, 0.0  ;;  %v6434_v43 = vadd.f32 %v16086_v34, %v6433_v14  ;;  %v6435_v31 = vpop.f32.mrb[195].mxu0  ;;  %v6503_v49 = vpack.c.bf16 %v16130_v54, %v16122_v27  ;;  %v12686_v27 = vld [vmem:[%s17095_s1 + $0x88] sm:$0xff]  }
 0xba8   : > { %v6504_v35 = vpack.c.bf16 %v6472_v17, %v16133_v50  ;;  %v12687_v54 = vld [vmem:[%s17095_s1 + $0x48] sm:$0xff]  }
 0xba9   : > { %v6457_v2 = vrot.slane %v6449_v53, 7  ;;  %v6481_v32 = vrot.slane %v6449_v53, 1  ;;  %v6450_v28 = vmax.f32 %v6434_v43, 0.0 }
 0xbab   : > { %v6488_v21 = vsel %vm2294_vm0, %v6480_v52, %v6481_v32  ;;  %v6458_v25 = vrot.slane %v6450_v28, 7  ;;  %v6482_v22 = vrot.slane %v6450_v28, 1  ;;  %v6508_v47 = vpack.c.bf16 %v6450_v28, %v6449_v53 }
 0xbac   : > { %v16146_v63 = vmul.f32 %v15942_v38, %v6488_v21  ;;  %v6438_v55 = vpop.f32.mrb[196].mxu0  ;;  %v6464_v0 = vsel %vm2197_vm1, %v6456_v60, %v6457_v2 }
 0xbad   : > { %v6439_v15 = vadd.f32 %v16086_v34, %v6438_v55  ;;  %v6440_v39 = vpop.f32.mrb[197].mxu0  ;;  %v6463_v3 = vsel %vm2197_vm1, %v6457_v2, %v6458_v25  ;;  %v6487_v52 = vsel %vm2294_vm0, %v6481_v32, %v6482_v22  ;;  %v6473_v20 = vmul.f32 %v16039_v29, %v6464_v0 }
 0xbae   : > { %v6441_v48 = vpop.f32.mrb[198].mxu0  ;;  %v6474_v16 = vmul.f32 %v16042_v26, %v6463_v3  ;;  %v6506_v24 = vpack.c.bf16 %v16146_v63, %v16143_v7  ;;  %v6470_v32 = vmul.f32 %v16007_v12, %v16099_v37  ;;  %v6497_v21 = vmul.f32 %v15947_v23, %v6487_v52  ;;  %v12676_v52 = vld [vmem:[%s17093_s0 + $0x88] sm:$0xff]  }
 0xbaf   : > { %v6451_v51 = vmax.f32 %v6439_v15, 0.0  ;;  %v6442_v60 = vadd.f32 %v16086_v34, %v6441_v48  ;;  %v6443_v57 = vpop.f32.mrb[199].mxu0 }
 0xbb0   : > { %v6507_v45 = vpack.c.bf16 %v6474_v16, %v6473_v20  ;;  %v12679_v16 = vld [vmem:[%s17093_s0 + $0xa0] sm:$0xff]   ;;  %v12692_v57 = vld [vmem:[%s17095_s1 + $0x98] sm:$0xff]  }
 0xbb1   : > { %v6459_v14 = vrot.slane %v6451_v51, 7  ;;  %v6483_v50 = vrot.slane %v6451_v51, 1  ;;  %v6452_v17 = vmax.f32 %v6442_v60, 0.0  ;;  %v12691_v60 = vld [vmem:[%s17095_s1 + $0x10] sm:$0xff]  }
 0xbb3   : > { %v6460_v53 = vrot.slane %v6452_v17, 7  ;;  %v6484_v43 = vrot.slane %v6452_v17, 1  ;;  %v6511_v31 = vpack.c.bf16 %v6452_v17, %v6451_v51  ;;  %v6462_v2 = vsel %vm2197_vm1, %v6458_v25, %v6459_v14  ;;  %v12680_v51 = vld [vmem:[%s17093_s0 + $0xa8] sm:$0xff]   ;;  %v12696_v17 = vld [vmem:[%s17095_s1 + $0x60] sm:$0xff]  }
 0xbb4   : > { %v6475_v28 = vmul.f32 %v16052_v46, %v6462_v2  ;;  %v6486_v34 = vsel %vm2294_vm0, %v6482_v22, %v6483_v50  ;;  %v12700_v2 = vld [vmem:[%s17095_s1 + $0x28] sm:$0xff]  }
 0xbb5   : > { %v6468_v7 = vsel %vm2197_vm1, %v6460_v53, %v6453_v58  ;;  %v6461_v63 = vsel %vm2197_vm1, %v6459_v14, %v6460_v53  ;;  %v6498_v25 = vmul.f32 %v15957_v5, %v6486_v34  ;;  %v6485_v37 = vsel %vm2294_vm0, %v6483_v50, %v6484_v43  ;;  %v12694_v14 = vld [vmem:[%s17095_s1 + $0x18] sm:$0xff]   ;;  %v12695_v50 = vld [vmem:[%s17095_s1 + $0xa0] sm:$0xff]   ;;  %v12703_v34 = vld [vmem:[%s17095_s1 + $0x30] sm:$0xff]  }
 0xbb6   : > { %v6469_v55 = vmul.f32 %v16010_v9, %v6468_v7  ;;  %v6476_v22 = vmul.f32 %v16055_v13, %v6461_v63  ;;  %v6492_v0 = vsel %vm2294_vm0, %v6484_v43, %v6477_v59  ;;  %v6499_v58 = vmul.f32 %v15962_v6, %v6485_v37  ;;  %v12678_v59 = vld [vmem:[%s17093_s0 + $0x98] sm:$0xff]   ;;  %v12697_v53 = vld [vmem:[%s17095_s1 + $0x20] sm:$0xff]   ;;  %v12698_v43 = vld [vmem:[%s17095_s1 + $0xa8] sm:$0xff]  }
 0xbb7   : > { %v6509_v15 = vpack.c.bf16 %v6498_v25, %v6497_v21  ;;  %v6500_v39 = vmul.f32 %v15952_v11, %v6492_v0  ;;  %v12704_v21 = vld [vmem:[%s17095_s1 + $0xb8] sm:$0xff]  }
 0xbb8   : > { %v6501_v3 = vpack.c.bf16 %v6470_v32, %v6469_v55  ;;  %v6510_v48 = vpack.c.bf16 %v6476_v22, %v6475_v28  ;;  %v12701_v32 = vld [vmem:[%s17095_s1 + $0xb0] sm:$0xff]   ;;  %v12705_v7 = vld [vmem:[%s17095_s1 + $0x78] sm:$0xff]  }
 0xbb9   : > { %v6512_v20 = vpack.c.bf16 %v6500_v39, %v6499_v58  ;;  %v12702_v28 = vld [vmem:[%s17095_s1 + $0x70] sm:$0xff]   ;;  %v12706_v63 = vld [vmem:[%s17095_s1 + $0x38] sm:$0xff]  }
 0xbba   : > { %6745 = vmatmul.mubr.bf16.vlgmr.msra.gmra.mrb[176].mxu1 %v6501_v3 }
 0xbbb   : > { %6752 = vmatprep.mubr.bf16.mxu1 %v6505_v33  ;;  %11632 = vmatpush3.bf16.msra.mxu1 %v16082_v4  ;;  %v12681_v4 = vld [vmem:[%s17093_s0 + $0xb0] sm:$0xff]   ;;  %v12684_v33 = vld [vmem:[%s17095_s1 + $0x40] sm:$0xff]   ;;  %s17102_s0 = sld [smem:[#allocation34_spill]] }
 0xbbc   : > { %11633 = vmatprep.subr.bf16.mxu1 %v12676_v52  ;;  %11003 = vmatprep.subr.bf16.mxu0 %v12684_v33 }
 0xbbf   : > { %11634 = vmatpush3.bf16.msra.mxu1 %v12676_v52 }
 0xbc0   : > { %11635 = vmatprep.subr.bf16.mxu1 %v12677_v61 }
 0xbc2   : > { %6753 = vmatmul.mubr.bf16.gmra.mrb[180].mxu1 %v6504_v35  ;;  %v12685_v35 = vld [vmem:[%s17095_s1] sm:$0xff]  }
 0xbc3   : > { %6760 = vmatprep.mubr.bf16.mxu1 %v6508_v47  ;;  %11636 = vmatpush3.bf16.msra.mxu1 %v12677_v61  ;;  %v12689_v47 = vld [vmem:[%s17095_s1 + $0x90] sm:$0xff]  }
 0xbc4   : > { %11637 = vmatprep.subr.bf16.mxu1 %v12678_v59  ;;  %11004 = vmatpush3.bf16.msra.mxu0 %v12685_v35 }
 0xbc5   : > { %11005 = vmatprep.subr.bf16.mxu0 %v12687_v54 }
 0xbc7   : > { %11638 = vmatpush3.bf16.msra.mxu1 %v12678_v59 }
 0xbc8   : > { %11639 = vmatprep.subr.bf16.mxu1 %v12679_v16 }
 0xbca   : > { %6761 = vmatmul.mubr.bf16.gmra.mrb[184].mxu1 %v6507_v45  ;;  %v12693_v45 = vld [vmem:[%s17095_s1 + $0x58] sm:$0xff]  }
 0xbcb   : > { %6768 = vmatprep.mubr.bf16.mxu1 %v6511_v31  ;;  %11640 = vmatpush3.bf16.msra.mxu1 %v12679_v16  ;;  %v12699_v31 = vld [vmem:[%s17095_s1 + $0x68] sm:$0xff]  }
 0xbcc   : > { %11641 = vmatprep.subr.bf16.mxu1 %v12680_v51 }
 0xbcf   : > { %11642 = vmatpush3.bf16.msra.mxu1 %v12680_v51 }
 0xbd0   : > { %11643 = vmatprep.subr.bf16.mxu1 %v12681_v4 }
 0xbd2   : > { %6769 = vmatmul.mubr.bf16.gmra.mrb[188].mxu1 %v6510_v48 }
 0xbd3   : > { %11644 = vmatpush3.bf16.msra.mxu1 %v12681_v4  ;;  %11647 = vmatprep.mubr.bf16.mxu1 %v6503_v49  ;;  %v12688_v49 = vld [vmem:[%s17095_s1 + $0x8] sm:$0xff]  }
 0xbd4   : > { %11645 = vmatprep.subr.bf16.mxu1 %v12682_v18  ;;  %11006 = vmatpush3.bf16.msra.mxu0 %v12688_v49 }
 0xbd7   : > { %11646 = vmatpush3.bf16.msra.mxu1 %v12682_v18 }
 0xbd8   : > { %11655 = vmatprep.subr.bf16.mxu1 %v12683_v30 }
 0xbda   : > { %11648 = vmatmul.mubr.bf16.vlgmr.msra.gmra.mrb[192].mxu1 %v6506_v24  ;;  %v12690_v24 = vld [vmem:[%s17095_s1 + $0x50] sm:$0xff]   ;;  %s17105_s1 = smov 64  }
 0xbdb   : > { %11651 = vmatprep.mubr.bf16.mxu1 %v6509_v15  ;;  %11656 = vmatpush3.bf16.msra.mxu1 %v12683_v30 }
 0xbdc   : > { %11657 = vmatprep.subr.bf16.mxu1 %v12686_v27  ;;  %11007 = vmatprep.subr.bf16.mxu0 %v12690_v24 }
 0xbdd   : > { %11008 = vmatpush3.bf16.msra.mxu0 %v12691_v60 }
 0xbde   : > { %11009 = vmatprep.subr.bf16.mxu0 %v12693_v45 }
 0xbdf   : > { %11658 = vmatpush3.bf16.msra.mxu1 %v12686_v27 }
 0xbe0   : > { %11659 = vmatprep.subr.bf16.mxu1 %v12689_v47 }
 0xbe1   : > { %11010 = vmatpush3.bf16.msra.mxu0 %v12694_v14 }
 0xbe2   : > { %11652 = vmatmul.mubr.bf16.gmra.mrb[196].mxu1 %v6512_v20  ;;  %11011 = vmatprep.subr.bf16.mxu0 %v12696_v17 }
 0xbe3   : > { %11660 = vmatpush3.bf16.msra.mxu1 %v12689_v47  ;;  %v10187_v47 = vld [vmem:[%s17096_s15] ss:$0 sm:$0xff]  ;;  %s17099_s15 = sld [smem:[#allocation28_spill]] }
 0xbe4   : > { %11661 = vmatprep.subr.bf16.mxu1 %v12692_v57 }
 0xbe5   : > { %11012 = vmatpush3.bf16.msra.mxu0 %v12697_v53 }
 0xbe6   : > { %11013 = vmatprep.subr.bf16.mxu0 %v12699_v31 }
 0xbe7   : > { %11662 = vmatpush3.bf16.msra.mxu1 %v12692_v57 }
 0xbe8   : > { %11663 = vmatprep.subr.bf16.mxu1 %v12695_v50 }
 0xbe9   : > { %11014 = vmatpush3.bf16.msra.mxu0 %v12700_v2 }
 0xbea   : > { %11015 = vmatprep.subr.bf16.mxu0 %v12702_v28 }
 0xbeb   : > { %11664 = vmatpush3.bf16.msra.mxu1 %v12695_v50 }
 0xbec   : > { %11665 = vmatprep.subr.bf16.mxu1 %v12698_v43 }
 0xbed   : > { %11016 = vmatpush3.bf16.msra.mxu0 %v12703_v34 }
 0xbee   : > { %11017 = vmatprep.subr.bf16.mxu0 %v12705_v7 }
 0xbef   : > { %11666 = vmatpush3.bf16.msra.mxu1 %v12698_v43 }
 0xbf0   : > { %11667 = vmatprep.subr.bf16.mxu1 %v12701_v32 }
 0xbf1   : > { %11018 = vmatpush3.bf16.msra.mxu0 %v12706_v63 }
 0xbf3   : > { %11668 = vmatpush3.bf16.msra.mxu1 %v12701_v32 }
 0xbf4   : > { %11669 = vmatprep.subr.bf16.mxu1 %v12704_v21 }
 0xbf7   : > { %11670 = vmatpush3.bf16.msra.mxu1 %v12704_v21 }
 0xc8d   : > { %v10967_v25 = vpop.f32.mrb[176].mxu1 }
 0xc8e   : > { %v10968_v37 = vpop.f32.mrb[177].mxu1 }
 0xc8f   : > { %v10969_v55 = vadd.f32 %v10968_v37, %v10967_v25  ;;  %v10970_v22 = vpop.f32.mrb[178].mxu1 }
 0xc90   : > { %v10971_v0 = vpop.f32.mrb[179].mxu1 }
 0xc91   : > { %v10972_v58 = vadd.f32 %v10971_v0, %v10970_v22  ;;  %v6747_v57 = vadd.f32 %v10969_v55, %v10187_v47 }
 0xc93   : > { %v6750_v43 = vadd.f32 %v10972_v58, %v10187_v47 }
 0xc95   : > { %v10973_v15 = vpop.f32.mrb[180].mxu1 }
 0xc96   : > { %v10974_v39 = vpop.f32.mrb[181].mxu1 }
 0xc97   : > { %v10975_v3 = vadd.f32 %v10974_v39, %v10973_v15  ;;  %v10976_v52 = vpop.f32.mrb[182].mxu1 }
 0xc98   : > { %v10977_v48 = vpop.f32.mrb[183].mxu1 }
 0xc99   : > { %v10978_v20 = vadd.f32 %v10977_v48, %v10976_v52  ;;  %v6755_v24 = vadd.f32 %v10975_v3, %v10187_v47 }
 0xc9b   : > { %v6758_v50 = vadd.f32 %v10978_v20, %v10187_v47 }
 0xc9d   : > { %v10979_v61 = vpop.f32.mrb[184].mxu1 }
 0xc9e   : > { %v10980_v59 = vpop.f32.mrb[185].mxu1 }
 0xc9f   : > { %v10981_v16 = vadd.f32 %v10980_v59, %v10979_v61  ;;  %v10982_v51 = vpop.f32.mrb[186].mxu1 }
 0xca0   : > { %v10983_v4 = vpop.f32.mrb[187].mxu1 }
 0xca1   : > { %v10984_v18 = vadd.f32 %v10983_v4, %v10982_v51  ;;  %v6763_v7 = vadd.f32 %v10981_v16, %v10187_v47 }
 0xca3   : > { %v6766_v63 = vadd.f32 %v10984_v18, %v10187_v47 }
 0xca5   : > { %v10985_v30 = vpop.f32.mrb[188].mxu1 }
 0xca6   : > { %v10986_v33 = vpop.f32.mrb[189].mxu1 }
 0xca7   : > { %v10987_v35 = vadd.f32 %v10986_v33, %v10985_v30  ;;  %v10988_v27 = vpop.f32.mrb[190].mxu1 }
 0xca8   : > { %v10989_v54 = vpop.f32.mrb[191].mxu1 }
 0xca9   : > { %v10990_v49 = vadd.f32 %v10989_v54, %v10988_v27  ;;  %v6771_v55 = vadd.f32 %v10987_v35, %v10187_v47 }
 0xcab   : > { %v6774_v22 = vadd.f32 %v10990_v49, %v10187_v47 }
 0xcad   : > { %v11649_v60 = vpop.f32.mrb[192].mxu1 }
 0xcae   : > { %v6820_v45 = vadd.f32 %v11649_v60, %v6755_v24  ;;  %v6811_v14 = vpop.f32.mrb[193].mxu1 }
 0xcaf   : > { %v6812_v17 = vadd.f32 %v6811_v14, %v6747_v57  ;;  %v11650_v53 = vpop.f32.mrb[194].mxu1 }
 0xcb0   : > { %v16224_v31 = vmax.f32 %v6820_v45, 0.0  ;;  %v6823_v2 = vadd.f32 %v11650_v53, %v6758_v50  ;;  %v6814_v32 = vpop.f32.mrb[195].mxu1 }
 0xcb1   : > { %v6842_v28 = vmax.f32 %v6812_v17, 0.0  ;;  %v6815_v34 = vadd.f32 %v6814_v32, %v6750_v43 }
 0xcb2   : > { %v16226_v21 = vmax.f32 %v6823_v2, 0.0  ;;  %v6852_v25 = vrot.slane %v16224_v31, 7  ;;  %v6876_v0 = vrot.slane %v16224_v31, 1 }
 0xcb3   : > { %v6843_v37 = vmax.f32 %v6815_v34, 0.0  ;;  %v6850_v3 = vrot.slane %v6842_v28, 7  ;;  %v6874_v59 = vrot.slane %v6842_v28, 1 }
 0xcb4   : > { %v6853_v15 = vrot.slane %v16226_v21, 7  ;;  %v6877_v58 = vrot.slane %v16226_v21, 1  ;;  %v6902_v39 = vpack.c.bf16 %v16226_v21, %v16224_v31  ;;  %v7271_v31 = vld [vmem:[%s17097_s26] sm:$0xff] }
 0xcb5   : > { %v6851_v52 = vrot.slane %v6843_v37, 7  ;;  %v6875_v48 = vrot.slane %v6843_v37, 1  ;;  %v11653_v20 = vpop.f32.mrb[196].mxu1  ;;  %v6899_v61 = vpack.c.bf16 %v6843_v37, %v6842_v28  ;;  %v7372_v21 = vld [vmem:[%s17098_s18] sm:$0xff] }
 0xcb6   : > { %v6886_v16 = vsel %vm2294_vm0, %v6876_v0, %v6877_v58  ;;  %v6836_v51 = vadd.f32 %v11653_v20, %v6771_v55  ;;  %v6827_v4 = vpop.f32.mrb[197].mxu1  ;;  %v6862_v18 = vsel %vm2197_vm1, %v6852_v25, %v6853_v15 }
 0xcb7   : > { %v6892_v30 = vmul.f32 %v15891_v44, %v6886_v16  ;;  %v6864_v33 = vsel %vm2197_vm1, %v6850_v3, %v6851_v52  ;;  %v6828_v35 = vadd.f32 %v6827_v4, %v6763_v7  ;;  %v11654_v27 = vpop.f32.mrb[198].mxu1  ;;  %7141 = vmatprep.mubr.bf16.mxu0 %v6899_v61  ;;  %v6887_v54 = vsel %vm2294_vm0, %v6875_v48, %v6876_v0 }
 0xcb8   : > { %v6867_v49 = vmul.f32 %v16007_v12, %v6864_v33  ;;  %v6848_v47 = vmax.f32 %v6836_v51, 0.0  ;;  %v6839_v24 = vadd.f32 %v11654_v27, %v6774_v22  ;;  %v6830_v60 = vpop.f32.mrb[199].mxu1  ;;  %v6888_v57 = vsel %vm2294_vm0, %v6874_v59, %v6875_v48 }
 0xcb9   : > { %v6846_v45 = vmax.f32 %v6828_v35, 0.0  ;;  %v6831_v14 = vadd.f32 %v6830_v60, %v6766_v63  ;;  %v6890_v44 = vmul.f32 %v15859_v1, %v6888_v57  ;;  %v6891_v50 = vmul.f32 %v15873_v41, %v6887_v54  ;;  %v7375_v54 = vld [vmem:[%s17098_s18 + $0x18] sm:$0xff]  ;;  %v7378_v57 = vld [vmem:[%s17098_s18 + $0x30] sm:$0xff] }
 0xcba   : > { %v6856_v17 = vrot.slane %v6848_v47, 7  ;;  %v6880_v53 = vrot.slane %v6848_v47, 1  ;;  %v6849_v43 = vmax.f32 %v6839_v24, 0.0  ;;  %v6863_v2 = vsel %vm2197_vm1, %v6851_v52, %v6852_v25  ;;  %v7377_v24 = vld [vmem:[%s17098_s18 + $0x28] sm:$0xff] }
 0xcbb   : > { %v6854_v32 = vrot.slane %v6846_v45, 7  ;;  %v6878_v12 = vrot.slane %v6846_v45, 1  ;;  %v6847_v28 = vmax.f32 %v6831_v14, 0.0  ;;  %v6900_v34 = vpack.c.bf16 %v6891_v50, %v6890_v44  ;;  %v7380_v44 = vld [vmem:[%s17098_s18 + $0x40] sm:$0xff]  ;;  %v7381_v50 = vld [vmem:[%s17098_s18 + $0x48] sm:$0xff] }
 0xcbc   : > { %v6857_v7 = vrot.slane %v6849_v43, 7  ;;  %v6881_v37 = vrot.slane %v6849_v43, 1  ;;  %v6868_v55 = vmul.f32 %v16020_v40, %v6863_v2  ;;  %v6869_v63 = vmul.f32 %v16023_v56, %v6862_v18 }
 0xcbd   : > { %v6885_v1 = vsel %vm2294_vm0, %v6877_v58, %v6878_v12  ;;  %v6855_v41 = vrot.slane %v6847_v28, 7  ;;  %v6879_v22 = vrot.slane %v6847_v28, 1  ;;  %11671 = vmatprep.mubr.bf16.mxu1 %v6900_v34  ;;  %v6905_v0 = vpack.c.bf16 %v6847_v28, %v6846_v45  ;;  %v7379_v45 = vld [vmem:[%s17098_s18 + $0x38] sm:$0xff]  ;;  %v7386_v34 = vld [vmem:[%s17098_s18 + $0x70] sm:$0xff] }
 0xcbe   : > { %v6893_v48 = vmul.f32 %v15942_v38, %v6885_v1  ;;  %v6865_v25 = vsel %vm2197_vm1, %v6857_v7, %v6850_v3  ;;  %v6882_v52 = vsel %vm2294_vm0, %v6880_v53, %v6881_v37  ;;  %v6889_v40 = vsel %vm2294_vm0, %v6881_v37, %v6874_v59 }
 0xcbf   : > { %v6866_v56 = vmul.f32 %v16010_v9, %v6865_v25  ;;  %v6883_v58 = vsel %vm2294_vm0, %v6879_v22, %v6880_v53  ;;  %v6884_v20 = vsel %vm2294_vm0, %v6878_v12, %v6879_v22  ;;  %v6896_v61 = vmul.f32 %v15962_v6, %v6882_v52  ;;  %v7382_v53 = vld [vmem:[%s17098_s18 + $0x50] sm:$0xff]  ;;  %v7385_v12 = vld [vmem:[%s17098_s18 + $0x68] sm:$0xff] }
 0xcc0   : > { %v6903_v38 = vpack.c.bf16 %v6893_v48, %v6892_v30  ;;  %v6894_v16 = vmul.f32 %v15947_v23, %v6884_v20  ;;  %v6895_v3 = vmul.f32 %v15957_v5, %v6883_v58  ;;  %v6897_v51 = vmul.f32 %v15952_v11, %v6889_v40 }
 0xcc1   : > { %v6898_v4 = vpack.c.bf16 %v6867_v49, %v6866_v56  ;;  %v6901_v18 = vpack.c.bf16 %v6869_v63, %v6868_v55  ;;  %v6860_v9 = vsel %vm2197_vm1, %v6854_v32, %v6855_v41  ;;  %v6861_v59 = vsel %vm2197_vm1, %v6853_v15, %v6854_v32  ;;  %v7384_v32 = vld [vmem:[%s17098_s18 + $0x60] sm:$0xff] }
 0xcc2   : > { %11672 = vmatmul.mubr.bf16.vlgmr.msra.gmra.mrb[200].mxu1 %v6903_v38  ;;  %v6906_v33 = vpack.c.bf16 %v6895_v3, %v6894_v16  ;;  %v6909_v35 = vpack.c.bf16 %v6897_v51, %v6896_v61  ;;  %v6870_v6 = vmul.f32 %v16039_v29, %v6861_v59  ;;  %v6871_v30 = vmul.f32 %v16042_v26, %v6860_v9 }
 0xcc3   : > { %7142 = vmatmul.mubr.bf16.vlgmr.msra.gmra.mrb[200].mxu0 %v6898_v4  ;;  %v6908_v23 = vpack.c.bf16 %v6849_v43, %v6848_v47  ;;  %v6858_v11 = vsel %vm2197_vm1, %v6856_v17, %v6857_v7  ;;  %v6859_v5 = vsel %vm2197_vm1, %v6855_v41, %v6856_v17  ;;  %v7376_v47 = vld [vmem:[%s17098_s18 + $0x20] sm:$0xff]  ;;  %v12195_v14 = vpack.c.bf16 %v7379_v45, %v7378_v57  ;;  %v7383_v43 = vld [vmem:[%s17098_s18 + $0x58] sm:$0xff] }
 0xcc4   : > { %7149 = vmatprep.mubr.bf16.mxu0 %v6902_v39  ;;  %11675 = vmatprep.mubr.bf16.mxu1 %v6906_v33  ;;  %v6904_v29 = vpack.c.bf16 %v6871_v30, %v6870_v6  ;;  %v6872_v26 = vmul.f32 %v16052_v46, %v6859_v5  ;;  %v6873_v15 = vmul.f32 %v16055_v13, %v6858_v11  ;;  %v7373_v39 = vld [vmem:[%s17098_s18 + $0x8] sm:$0xff]  ;;  %v7374_v13 = vld [vmem:[%s17098_s18 + $0x10] sm:$0xff]  ;;  %v7387_v7 = vld [vmem:[%s17098_s18 + $0x78] sm:$0xff] }
 0xcc5   : > { %v12183_v46 = vpack.c.bf16 %v7373_v39, %v7372_v21  ;;  %v12187_v49 = vpack.c.bf16 %v7375_v54, %v7374_v13  ;;  %v12191_v60 = vpack.c.bf16 %v7377_v24, %v7376_v47  ;;  %v12199_v17 = vpack.c.bf16 %v7381_v50, %v7380_v44  ;;  %v16305_v41 = vld [vmem:[%s17099_s15] ss:$0 sm:$0xff]  ;;  %s17100_s15 = sld [smem:[#allocation31_spill]] }
 0xcc6   : > { %v6907_v27 = vpack.c.bf16 %v6873_v15, %v6872_v26  ;;  %v12203_v2 = vpack.c.bf16 %v7383_v43, %v7382_v53  ;;  %v12207_v28 = vpack.c.bf16 %v7385_v12, %v7384_v32  ;;  %v12211_v37 = vpack.c.bf16 %v7387_v7, %v7386_v34 }
 0xcc7   : > { %12184 = vmatprep.subr.bf16.mxu1 %v12183_v46 }
 0xcc8   : > { %12186 = vmatpush3.bf16.msra.mxu1 %v12183_v46 }
 0xcc9   : > { %12188 = vmatprep.subr.bf16.mxu1 %v12187_v49 }
 0xcca   : > { %11676 = vmatmul.mubr.bf16.gmra.mrb[204].mxu1 %v6909_v35 }
 0xccb   : > { %7150 = vmatmul.mubr.bf16.gmra.mrb[204].mxu0 %v6901_v18 }
 0xccc   : > { %7157 = vmatprep.mubr.bf16.mxu0 %v6905_v0  ;;  %12190 = vmatpush3.bf16.msra.mxu1 %v12187_v49 }
 0xccd   : > { %12192 = vmatprep.subr.bf16.mxu1 %v12191_v60 }
 0xcd0   : > { %12194 = vmatpush3.bf16.msra.mxu1 %v12191_v60 }
 0xcd1   : > { %12196 = vmatprep.subr.bf16.mxu1 %v12195_v14 }
 0xcd3   : > { %7158 = vmatmul.mubr.bf16.gmra.mrb[208].mxu0 %v6904_v29 }
 0xcd4   : > { %7165 = vmatprep.mubr.bf16.mxu0 %v6908_v23  ;;  %12198 = vmatpush3.bf16.msra.mxu1 %v12195_v14 }
 0xcd5   : > { %12200 = vmatprep.subr.bf16.mxu1 %v12199_v17 }
 0xcd8   : > { %12202 = vmatpush3.bf16.msra.mxu1 %v12199_v17 }
 0xcd9   : > { %12204 = vmatprep.subr.bf16.mxu1 %v12203_v2 }
 0xcdb   : > { %7166 = vmatmul.mubr.bf16.gmra.mrb[212].mxu0 %v6907_v27 }
 0xcdc   : > { %11695 = vmatprep.mubr.msk.f32.mxu0 %vm4812_vm6, %v7271_v31  ;;  %12206 = vmatpush3.bf16.msra.mxu1 %v12203_v2 }
 0xcdd   : > { %12208 = vmatprep.subr.bf16.mxu1 %v12207_v28 }
 0xce0   : > { %12210 = vmatpush3.bf16.msra.mxu1 %v12207_v28 }
 0xce1   : > { %12212 = vmatprep.subr.bf16.mxu1 %v12211_v37 }
 0xce4   : > { %12214 = vmatpush3.bf16.msra.mxu1 %v12211_v37 }
 0xce5   : > { %7807 = vmatprep.subr.bf16.mxu1 %v17078_v19 }
 0xd95   : > { %v11673_v55 = vpop.f32.mrb[200].mxu1 }
 0xd96   : > { %v11019_v63 = vpop.f32.mrb[200].mxu0  ;;  %v7208_v1 = vpop.f32.mrb[201].mxu1 }
 0xd97   : > { %v11020_v22 = vpop.f32.mrb[201].mxu0  ;;  %v11674_v0 = vpop.f32.mrb[202].mxu1 }
 0xd98   : > { %v11021_v48 = vadd.f32 %v11020_v22, %v11019_v63  ;;  %v11022_v25 = vpop.f32.mrb[202].mxu0  ;;  %v7211_v52 = vpop.f32.mrb[203].mxu1 }
 0xd99   : > { %v11023_v40 = vpop.f32.mrb[203].mxu0 }
 0xd9a   : > { %v7144_v56 = vadd.f32 %v11021_v48, %v16305_v41  ;;  %v11024_v58 = vadd.f32 %v11023_v40, %v11022_v25 }
 0xd9c   : > { %v7209_v20 = vadd.f32 %v7208_v1, %v7144_v56  ;;  %v7147_v61 = vadd.f32 %v11024_v58, %v16305_v41 }
 0xd9d   : > { %v11677_v38 = vpop.f32.mrb[204].mxu1 }
 0xd9e   : > { %v7239_v16 = vmax.f32 %v7209_v20, 0.0  ;;  %v7212_v3 = vadd.f32 %v7211_v52, %v7147_v61  ;;  %v11025_v51 = vpop.f32.mrb[204].mxu0  ;;  %v7224_v4 = vpop.f32.mrb[205].mxu1 }
 0xd9f   : > { %v11026_v18 = vpop.f32.mrb[205].mxu0  ;;  %v11678_v9 = vpop.f32.mrb[206].mxu1 }
 0xda0   : > { %v7240_v59 = vmax.f32 %v7212_v3, 0.0  ;;  %v11027_v33 = vadd.f32 %v11026_v18, %v11025_v51  ;;  %v11028_v35 = vpop.f32.mrb[206].mxu0  ;;  %v7227_v6 = vpop.f32.mrb[207].mxu1  ;;  %v7247_v23 = vrot.slane %v7239_v16, 1 }
 0xda1   : > { %v11029_v30 = vpop.f32.mrb[207].mxu0 }
 0xda2   : > { %v7248_v11 = vrot.slane %v7240_v59, 1  ;;  %v7152_v5 = vadd.f32 %v11027_v33, %v16305_v41  ;;  %v11030_v29 = vadd.f32 %v11029_v30, %v11028_v35 }
 0xda4   : > { %v7217_v26 = vadd.f32 %v11673_v55, %v7152_v5  ;;  %v7155_v15 = vadd.f32 %v11030_v29, %v16305_v41  ;;  %v7261_v27 = vsel %vm2294_vm0, %v7247_v23, %v7248_v11  ;;  %v7474_v5 = vld [vmem:[%s17100_s15 + $0x8] sm:$0xff] }
 0xda5   : > { %v7263_v31 = vmax.f32 %v7239_v16, %v7261_v27  ;;  %v7476_v27 = vld [vmem:[%s17100_s15 + $0x18] sm:$0xff] }
 0xda6   : > { %v7241_v21 = vmax.f32 %v7217_v26, 0.0  ;;  %v7220_v39 = vadd.f32 %v11674_v0, %v7155_v15  ;;  %v11031_v46 = vpop.f32.mrb[208].mxu0  ;;  %v7475_v15 = vld [vmem:[%s17100_s15 + $0x10] sm:$0xff] }
 0xda7   : > { %v11032_v13 = vpop.f32.mrb[209].mxu0 }
 0xda8   : > { %v7249_v54 = vrot.slane %v7241_v21, 1  ;;  %v7242_v49 = vmax.f32 %v7220_v39, 0.0  ;;  %v11033_v47 = vadd.f32 %v11032_v13, %v11031_v46  ;;  %v11034_v24 = vpop.f32.mrb[210].mxu0  ;;  %v7477_v39 = vld [vmem:[%s17100_s15 + $0x20] sm:$0xff]  ;;  %v7478_v46 = vld [vmem:[%s17100_s15 + $0x28] sm:$0xff]  ;;  %v7274_v13 = vld [vmem:[%s17097_s26 + $0x18] sm:$0xff] }
 0xda9   : > { %v11035_v60 = vpop.f32.mrb[211].mxu0 }
 0xdaa   : > { %v7250_v57 = vrot.slane %v7242_v49, 1  ;;  %v7160_v45 = vadd.f32 %v11033_v47, %v16305_v41  ;;  %v11036_v14 = vadd.f32 %v11035_v60, %v11034_v24  ;;  %v7260_v44 = vsel %vm2294_vm0, %v7248_v11, %v7249_v54  ;;  %v7473_v11 = vld [vmem:[%s17100_s15] sm:$0xff]  ;;  %v7480_v47 = vld [vmem:[%s17100_s15 + $0x38] sm:$0xff] }
 0xdab   : > { %v7264_v50 = vmax.f32 %v7240_v59, %v7260_v44  ;;  %v12215_v26 = vpack.c.bf16 %v7474_v5, %v7473_v11  ;;  %v7481_v60 = vld [vmem:[%s17100_s15 + $0x40] sm:$0xff]  ;;  %v7484_v44 = vld [vmem:[%s17100_s15 + $0x58] sm:$0xff] }
 0xdac   : > { %v7225_v17 = vadd.f32 %v7224_v4, %v7160_v45  ;;  %v7163_v53 = vadd.f32 %v11036_v14, %v16305_v41  ;;  %v7259_v43 = vsel %vm2294_vm0, %v7249_v54, %v7250_v57  ;;  %v12223_v54 = vpack.c.bf16 %v7478_v46, %v7477_v39  ;;  %v7483_v14 = vld [vmem:[%s17100_s15 + $0x50] sm:$0xff]  ;;  %v12719_v39 = vld [vmem:[%s17102_s0 + $0x40] sm:$0xff]  }
 0xdad   : > { %v12167_v2 = vpack.c.bf16 %v7264_v50, %v7263_v31  ;;  %v7265_v32 = vmax.f32 %v7241_v21, %v7259_v43  ;;  %v7272_v31 = vld [vmem:[%s17097_s26 + $0x8] sm:$0xff]  ;;  %v12219_v21 = vpack.c.bf16 %v7476_v27, %v7475_v15  ;;  %v12235_v50 = vpack.c.bf16 %v7484_v44, %v7483_v14  ;;  %v12720_v46 = vld [vmem:[%s17102_s0] sm:$0xff]  }
 0xdae   : > { %v7243_v12 = vmax.f32 %v7225_v17, 0.0  ;;  %v7228_v28 = vadd.f32 %v7227_v6, %v7163_v53  ;;  %v11037_v34 = vpop.f32.mrb[212].mxu0  ;;  %v7485_v17 = vld [vmem:[%s17100_s15 + $0x60] sm:$0xff]  ;;  %v7486_v53 = vld [vmem:[%s17100_s15 + $0x68] sm:$0xff] }
 0xdaf   : > { %v11038_v7 = vpop.f32.mrb[213].mxu0  ;;  %12168 = vmatprep.subr.bf16.mxu0 %v12167_v2  ;;  %v12239_v43 = vpack.c.bf16 %v7486_v53, %v7485_v17  ;;  %v12722_v53 = vld [vmem:[%s17102_s0 + $0x8] sm:$0xff]  }
 0xdb0   : > { %v7251_v37 = vrot.slane %v7243_v12, 1  ;;  %v7244_v55 = vmax.f32 %v7228_v28, 0.0  ;;  %v11039_v63 = vadd.f32 %v11038_v7, %v11037_v34  ;;  %v11040_v1 = vpop.f32.mrb[214].mxu0  ;;  %12170 = vmatpush3.bf16.msra.mxu0 %v12167_v2  ;;  %v7487_v2 = vld [vmem:[%s17100_s15 + $0x70] sm:$0xff] }
 0xdb1   : > { %v11041_v22 = vpop.f32.mrb[215].mxu0 }
 0xdb2   : > { %v7252_v0 = vrot.slane %v7244_v55, 1  ;;  %v7168_v48 = vadd.f32 %v11039_v63, %v16305_v41  ;;  %v11042_v25 = vadd.f32 %v11041_v22, %v11040_v1  ;;  %v7258_v52 = vsel %vm2294_vm0, %v7250_v57, %v7251_v37  ;;  %v7482_v57 = vld [vmem:[%s17100_s15 + $0x48] sm:$0xff]  ;;  %v12709_v1 = vld [vmem:[%s17101_s22 + $0x10] sm:$0xff]   ;;  %v12710_v22 = vld [vmem:[%s17101_s22 + $0x18] sm:$0xff]  }
 0xdb3   : > { %v7266_v40 = vmax.f32 %v7242_v49, %v7258_v52  ;;  %v7479_v49 = vld [vmem:[%s17100_s15 + $0x30] sm:$0xff]  ;;  %v12231_v45 = vpack.c.bf16 %v7482_v57, %v7481_v60  ;;  %v12708_v63 = vld [vmem:[%s17101_s22 + $0x8] sm:$0xff]   ;;  %v12714_v52 = vld [vmem:[%s17101_s22 + $0x38] sm:$0xff]  }
 0xdb4   : > { %v7233_v56 = vadd.f32 %v11677_v38, %v7168_v48  ;;  %v7171_v58 = vadd.f32 %v11042_v25, %v16305_v41  ;;  %v7257_v20 = vsel %vm2294_vm0, %v7251_v37, %v7252_v0  ;;  %v12227_v24 = vpack.c.bf16 %v7480_v47, %v7479_v49  ;;  %v12712_v48 = vld [vmem:[%s17101_s22 + $0x28] sm:$0xff]   ;;  %v12713_v25 = vld [vmem:[%s17101_s22 + $0x30] sm:$0xff]  }
 0xdb5   : > { %v12171_v61 = vpack.c.bf16 %v7266_v40, %v7265_v32  ;;  %v7267_v16 = vmax.f32 %v7243_v12, %v7257_v20  ;;  %v7488_v32 = vld [vmem:[%s17100_s15 + $0x78] sm:$0xff]  ;;  %v12715_v40 = vld [vmem:[%s17101_s22 + $0x40] sm:$0xff]   ;;  %v12721_v47 = vld [vmem:[%s17102_s0 + $0x48] sm:$0xff]  }
 0xdb6   : > { %v7245_v3 = vmax.f32 %v7233_v56, 0.0  ;;  %v7236_v51 = vadd.f32 %v11678_v9, %v7171_v58  ;;  %v12243_v12 = vpack.c.bf16 %v7488_v32, %v7487_v2  ;;  %v12716_v56 = vld [vmem:[%s17101_s22 + $0x48] sm:$0xff]   ;;  %v12717_v58 = vld [vmem:[%s17101_s22 + $0x50] sm:$0xff]   ;;  %v12718_v20 = vld [vmem:[%s17101_s22 + $0x58] sm:$0xff]  }
 0xdb7   : > { %12172 = vmatprep.subr.bf16.mxu0 %v12171_v61 }
 0xdb8   : > { %v7253_v4 = vrot.slane %v7245_v3, 1  ;;  %v7246_v18 = vmax.f32 %v7236_v51, 0.0  ;;  %12174 = vmatpush3.bf16.msra.mxu0 %v12171_v61 }
 0xdba   : > { %v7254_v59 = vrot.slane %v7246_v18, 1  ;;  %v7256_v38 = vsel %vm2294_vm0, %v7252_v0, %v7253_v4  ;;  %v12711_v0 = vld [vmem:[%s17101_s22 + $0x20] sm:$0xff]  }
 0xdbb   : > { %v7268_v41 = vmax.f32 %v7244_v55, %v7256_v38  ;;  %v12707_v55 = vld [vmem:[%s17101_s22] sm:$0xff]   ;;  %v7596_v38 = vand.u32 3, %v15337_v62  ;;  %v12734_v62 = vld [vmem:[%s17102_s0 + $0x38] sm:$0xff]  }
 0xdbc   : > { %v7255_v33 = vsel %vm2294_vm0, %v7253_v4, %v7254_v59  ;;  %v7262_v35 = vsel %vm2294_vm0, %v7254_v59, %v7247_v23  ;;  %v7273_v23 = vld [vmem:[%s17097_s26 + $0x10] sm:$0xff]  ;;  %v7582_v59 = vand.u32 3, %v13502_v10 }
 0xdbd   : > { %v12175_v9 = vpack.c.bf16 %v7268_v41, %v7267_v16  ;;  %v7269_v6 = vmax.f32 %v7245_v3, %v7255_v33  ;;  %v7270_v30 = vmax.f32 %v7246_v18, %v7262_v35  ;;  %v7603_v3 = vand.u32 3, %v17040_v8 }
 0xdbe   : > { %vm16382_vm12 = vcmp.ne.s32.totalorder %v7582_v59, 3  ;;  %vm7640_vm13 = vcmp.ne.s32.totalorder %v7596_v38, 3  ;;  %vm7626_vm2 = vcmp.ne.s32.totalorder %v7582_v59, 0  ;;  %vm7628_vm3 = vcmp.ne.s32.totalorder %v7596_v38, 0 }
 0xdbf   : > { %12176 = vmatprep.subr.bf16.mxu0 %v12175_v9  ;;  %v12179_v29 = vpack.c.bf16 %v7270_v30, %v7269_v6  ;;  %vm7641_vm11 = vcmp.ne.s32.totalorder %v7603_v3, 3  ;;  %vm7629_vm4 = vcmp.ne.s32.totalorder %v7603_v3, 0 }
 0xdc0   : > { %12178 = vmatpush3.bf16.msra.mxu0 %v12175_v9  ;;  %v7589_v9 = vand.u32 3, %v15080_v36  ;;  %v16394_v49 = vsel %vm7641_vm11, 1.0, %v17043_v42  ;;  %vm9364_vm11 = vcmask 130048  }
 0xdc1   : > { %12180 = vmatprep.subr.bf16.mxu0 %v12179_v29 }
 0xdc2   : > { %vm7639_vm14 = vcmp.ne.s32.totalorder %v7589_v9, 3  ;;  %vm7627_vm15 = vcmp.ne.s32.totalorder %v7589_v9, 0  ;;  %v12725_v9 = vld [vmem:[%s17102_s0 + $0x58] sm:$0xff]  }
 0xdc3   : > { %v16410_v17 = vsel %vm7639_vm14, 1.0, %v17043_v42 }
 0xdc4   : > { %12182 = vmatpush3.bf16.msra.mxu0 %v12179_v29 }
 0xdc5   : > { %12216 = vmatprep.subr.bf16.mxu0 %v12215_v26 }
 0xdc7   : > { %11696 = vmatmul.mubr.msk.f32.vlgmr.msra.gmra.mrb[216].mxu0 %vm4812_vm6, %v7272_v31 }
 0xdc8   : > { %11698 = vmatprep.mubr.msk.f32.mxu0 %vm4812_vm6, %v7273_v23  ;;  %12218 = vmatpush3.bf16.msra.mxu0 %v12215_v26 }
 0xdc9   : > { %12220 = vmatprep.subr.bf16.mxu0 %v12219_v21 }
 0xdcb   : > { %11699 = vmatmul.mubr.msk.f32.gmra.mrb[218].mxu0 %vm4812_vm6, %v7274_v13 }
 0xdcc   : > { %12222 = vmatpush3.bf16.msra.mxu0 %v12219_v21 }
 0xdcd   : > { %12224 = vmatprep.subr.bf16.mxu0 %v12223_v54 }
 0xdd0   : > { %12226 = vmatpush3.bf16.msra.mxu0 %v12223_v54 }
 0xdd1   : > { %12228 = vmatprep.subr.bf16.mxu0 %v12227_v24 }
 0xdd4   : > { %12230 = vmatpush3.bf16.msra.mxu0 %v12227_v24 }
 0xdd5   : > { %12232 = vmatprep.subr.bf16.mxu0 %v12231_v45 }
 0xdd8   : > { %12234 = vmatpush3.bf16.msra.mxu0 %v12231_v45  ;;  %v16398_v45 = vsel %vm7640_vm13, 1.0, %v17043_v42 }
 0xdd9   : > { %12236 = vmatprep.subr.bf16.mxu0 %v12235_v50 }
 0xddc   : > { %12238 = vmatpush3.bf16.msra.mxu0 %v12235_v50  ;;  %v16407_v50 = vsel %vm16382_vm12, 1.0, %v17043_v42 }
 0xddd   : > { %12240 = vmatprep.subr.bf16.mxu0 %v12239_v43 }
 0xde0   : > { %12242 = vmatpush3.bf16.msra.mxu0 %v12239_v43 }
 0xde1   : > { %12244 = vmatprep.subr.bf16.mxu0 %v12243_v12 }
 0xde4   : > { %12246 = vmatpush3.bf16.msra.mxu0 %v12243_v12  ;;  %v12723_v12 = vld [vmem:[%s17102_s0 + $0x50] sm:$0xff]  }
 0xde5   : > { %11107 = vmatprep.subr.bf16.mxu0 %v12719_v39 }
 0xe9a   : > { %v11697_v28 = vpop.f32.mrb[216].mxu0 }
 0xe9b   : > { %v7353_v34 = vpop.f32.mrb[217].mxu0 }
 0xe9c   : > { %11733 = vmatprep.mubr.f32.mxu1 %v7353_v34  ;;  %11771 = vmatprep.mubr.f32.mxu0 %v7353_v34 }
 0xe9d   : > { %11734 = vmatmul.mubr.f32.vlgmr.msra.gmra.mrb[208].mxu1 %v11697_v28  ;;  %11772 = vmatmul.mubr.f32.vlgmr.msra.gmra.mrb[220].mxu0 %v11697_v28 }
 0xe9e   : > { %v11700_v7 = vpop.f32.mrb[218].mxu0  ;;  %7808 = vmatpush1.bf16.msra.mxu1 %v12707_v55  ;;  %11108 = vmatpush3.bf16.msra.mxu0 %v12720_v46 }
 0xe9f   : > { %v7363_v37 = vpop.f32.mrb[219].mxu0  ;;  %7809 = vmatprep.subr.bf16.mxu1 %v17078_v19  ;;  %11109 = vmatprep.subr.bf16.mxu0 %v12721_v47 }
 0xea0   : > { %11736 = vmatprep.mubr.f32.mxu1 %v7363_v37  ;;  %11774 = vmatprep.mubr.f32.mxu0 %v7363_v37 }
 0xea1   : > { %11737 = vmatmul.mubr.f32.gmra.mrb[210].mxu1 %v11700_v7  ;;  %11775 = vmatmul.mubr.f32.gmra.mrb[222].mxu0 %v11700_v7 }
 0xea2   : > { %7810 = vmatpush1.bf16.msra.mxu1 %v12708_v63  ;;  %11110 = vmatpush3.bf16.msra.mxu0 %v12722_v53 }
 0xea3   : > { %7811 = vmatprep.subr.bf16.mxu1 %v17078_v19  ;;  %11111 = vmatprep.subr.bf16.mxu0 %v12723_v12 }
 0xea6   : > { %7812 = vmatpush1.bf16.msra.mxu1 %v12709_v1  ;;  %v12724_v1 = vld [vmem:[%s17102_s0 + $0x10] sm:$0xff]  }
 0xea7   : > { %7813 = vmatprep.subr.bf16.mxu1 %v17078_v19  ;;  %11112 = vmatpush3.bf16.msra.mxu0 %v12724_v1 }
 0xea8   : > { %11113 = vmatprep.subr.bf16.mxu0 %v12725_v9 }
 0xeaa   : > { %7814 = vmatpush1.bf16.msra.mxu1 %v12710_v22 }
 0xeab   : > { %7815 = vmatprep.subr.bf16.mxu1 %v17078_v19 }
 0xeae   : > { %7816 = vmatpush1.bf16.msra.mxu1 %v12711_v0  ;;  %v16430_v0 = vsel %vm7627_vm15, 1.0, %v17043_v42 }
 0xeaf   : > { %7817 = vmatprep.subr.bf16.mxu1 %v17078_v19 }
 0xeb2   : > { %7818 = vmatpush1.bf16.msra.mxu1 %v12712_v48  ;;  %v16433_v48 = vsel %vm7626_vm2, 1.0, %v17043_v42 }
 0xeb3   : > { %7819 = vmatprep.subr.bf16.mxu1 %v17078_v19 }
 0xeb6   : > { %7820 = vmatpush1.bf16.msra.mxu1 %v12713_v25 }
 0xeb7   : > { %7821 = vmatprep.subr.bf16.mxu1 %v17078_v19 }
 0xeba   : > { %7822 = vmatpush1.bf16.msra.mxu1 %v12714_v52 }
 0xebb   : > { %7823 = vmatprep.subr.bf16.mxu1 %v17078_v19 }
 0xebe   : > { %7824 = vmatpush1.bf16.msra.mxu1 %v12715_v40 }
 0xebf   : > { %7825 = vmatprep.subr.bf16.mxu1 %v17078_v19 }
 0xec2   : > { %7826 = vmatpush1.bf16.msra.mxu1 %v12716_v56 }
 0xec3   : > { %7827 = vmatprep.subr.bf16.mxu1 %v17078_v19 }
 0xec6   : > { %7828 = vmatpush1.bf16.msra.mxu1 %v12717_v58 }
 0xec7   : > { %7829 = vmatprep.subr.bf16.mxu1 %v17078_v19 }
 0xeca   : > { %7830 = vmatpush1.bf16.msra.mxu1 %v12718_v20  ;;  %v16440_v20 = vsel %vm7628_vm3, 1.0, %v17043_v42 }
 0xf70   : > { %v11735_v61 = vpop.f32.mrb[208].mxu1  ;;  %v11773_v16 = vpop.f32.mrb[220].mxu0 }
 0xf71   : > { %v7575_v51 = vmax.f32 %v11735_v61, %v11773_v16  ;;  %v7454_v4 = vpop.f32.mrb[209].mxu1  ;;  %v7555_v18 = vpop.f32.mrb[221].mxu0  ;;  %v16443_v61 = vsel %vm7629_vm4, 1.0, %v17043_v42 }
 0xf72   : > { %v7574_v41 = vmax.f32 %v7454_v4, %v7555_v18 }
 0xf73   : > { %v7651_v33 = vrot.slane %v7575_v51, 7  ;;  %v7663_v35 = vrot.slane %v7575_v51, 1 }
 0xf74   : > { %v7650_v6 = vrot.slane %v7574_v41, 7  ;;  %v7662_v30 = vrot.slane %v7574_v41, 1  ;;  %v11738_v11 = vpop.f32.mrb[210].mxu1  ;;  %v11776_v5 = vpop.f32.mrb[222].mxu0  ;;  %v12538_v29 = vpack.i.bf16 %v7575_v51, %v7574_v41 }
 0xf75   : > { %v7577_v26 = vmax.f32 %v11738_v11, %v11776_v5  ;;  %v7464_v15 = vpop.f32.mrb[211].mxu1  ;;  %v7565_v27 = vpop.f32.mrb[223].mxu0  ;;  %v12728_v11 = vld [vmem:[%s17102_s0 + $0x20] sm:$0xff]   ;;  %v12729_v5 = vld [vmem:[%s17102_s0 + $0x68] sm:$0xff]  }
 0xf76   : > { %v7656_v31 = vsel %vm2197_vm1, %v7650_v6, %v7651_v33  ;;  %v7668_v23 = vsel %vm2294_vm0, %v7662_v30, %v7663_v35  ;;  %v7576_v21 = vmax.f32 %v7464_v15, %v7565_v27  ;;  %12539 = vrot.lane.b32.xlu0 %v12538_v29, %s17105_s1  ;;  %v12730_v29 = vld [vmem:[%s17102_s0 + $0x28] sm:$0xff]   ;;  %v12732_v15 = vld [vmem:[%s17102_s0 + $0x30] sm:$0xff]   ;;  %v12733_v27 = vld [vmem:[%s17102_s0 + $0x78] sm:$0xff]  }
 0xf77   : > { %v7653_v13 = vrot.slane %v7577_v26, 7  ;;  %v7665_v54 = vrot.slane %v7577_v26, 1  ;;  %v7670_v37 = vmul.f32 %v16407_v50, %v7668_v23  ;;  %v7659_v52 = vmul.f32 %v16430_v0, %v7656_v31  ;;  %v12735_v31 = vld [vmem:[%s17102_s0 + $0x80] sm:$0xff]  }
 0xf78   : > { %v7652_v24 = vrot.slane %v7576_v21, 7  ;;  %v7664_v60 = vrot.slane %v7576_v21, 1  ;;  %v12543_v57 = vpack.i.bf16 %v7577_v26, %v7576_v21  ;;  %v12731_v26 = vld [vmem:[%s17102_s0 + $0x70] sm:$0xff]   ;;  %v10249_v23 = vld [vmem:[%s17106_s2] ss:$0 sm:$0xff]  ;;  %s17107_s2 = sld [smem:[#allocation36_spill]] }
 0xf79   : > { %v7657_v14 = vsel %vm2197_vm1, %v7653_v13, %v7650_v6  ;;  %v7669_v44 = vsel %vm2294_vm0, %v7665_v54, %v7662_v30  ;;  %v12726_v6 = vld [vmem:[%s17102_s0 + $0x18] sm:$0xff]   ;;  %v12727_v30 = vld [vmem:[%s17102_s0 + $0x60] sm:$0xff]  }
 0xf7a   : > { %v7654_v43 = vsel %vm2197_vm1, %v7652_v24, %v7653_v13  ;;  %v7655_v2 = vsel %vm2197_vm1, %v7651_v33, %v7652_v24  ;;  %v7666_v32 = vsel %vm2294_vm0, %v7664_v60, %v7665_v54  ;;  %12544 = vrot.lane.b32.xlu1 %v12543_v57, %s17105_s1  ;;  %v7667_v28 = vsel %vm2294_vm0, %v7663_v35, %v7664_v60 }
 0xf7b   : > { %v7672_v34 = vmul.f32 %v16398_v45, %v7666_v32  ;;  %v7673_v7 = vmul.f32 %v16394_v49, %v7669_v44  ;;  %v7671_v55 = vmul.f32 %v16410_v17, %v7667_v28  ;;  %v7658_v40 = vmul.f32 %v16433_v48, %v7657_v14  ;;  %11114 = vmatpush3.bf16.msra.mxu0 %v12726_v6 }
 0xf7c   : > { %v7660_v59 = vmul.f32 %v16440_v20, %v7655_v2  ;;  %v7661_v38 = vmul.f32 %v16443_v61, %v7654_v43  ;;  %11115 = vmatprep.subr.bf16.mxu0 %v12727_v30 }
 0xf7d   : > { %v7697_v63 = vpack.c.bf16 %v7673_v7, %v7672_v34  ;;  %v7695_v22 = vpack.c.bf16 %v7671_v55, %v7670_v37 }
 0xf7f   : > { %10262 = vmatprep.mubr.msk.bf16.mxu1 %vm4812_vm6, %v7695_v22  ;;  %11116 = vmatpush3.bf16.msra.mxu0 %v12728_v11  ;;  %v12736_v11 = vld [vmem:[%s17102_s0 + $0x88] sm:$0xff]  }
 0xf80   : > { %11117 = vmatprep.subr.bf16.mxu0 %v12729_v5 }
 0xf83   : > { %11118 = vmatpush3.bf16.msra.mxu0 %v12730_v29 }
 0xf84   : > { %11119 = vmatprep.subr.bf16.mxu0 %v12731_v26 }
 0xf87   : > { %11120 = vmatpush3.bf16.msra.mxu0 %v12732_v15  ;;  %v12737_v15 = vld [vmem:[%s17102_s0 + $0x90] sm:$0xff]  }
 0xf88   : > { %11121 = vmatprep.subr.bf16.mxu0 %v12733_v27  ;;  %v12738_v27 = vld [vmem:[%s17102_s0 + $0x98] sm:$0xff]  }
 0xf8b   : > { %11122 = vmatpush3.bf16.msra.mxu0 %v12734_v62  ;;  %v12739_v62 = vld [vmem:[%s17102_s0 + $0xa0] sm:$0xff]  }
 0xf8c   : > { %11777 = vmatprep.subr.bf16.mxu0 %v12735_v31 }
 0xfe8   : > { %v12540_v25 = vpop.permute.xlu0 %12539 }
 0xfe9   : > { %v12542_v56 = vunpack.i.h.bf16 %v12540_v25  ;;  %v12541_v58 = vunpack.i.l.bf16 %v12540_v25 }
 0xfeb   : > { %v7690_v16 = vsel %vm4812_vm6, %v7658_v40, %v12541_v58  ;;  %v7691_v8 = vsel %vm4812_vm6, %v7659_v52, %v12542_v56 }
 0xfec   : > { %v7694_v3 = vpack.c.bf16 %v7691_v8, %v7690_v16  ;;  %v12545_v51 = vpop.permute.xlu1 %12544 }
 0xfed   : > { %v12547_v4 = vunpack.i.h.bf16 %v12545_v51  ;;  %v12546_v18 = vunpack.i.l.bf16 %v12545_v51 }
 0xfee   : > { %7840 = vmatmul.mubr.bf16.vlgmr.msra.gmra.mrb[212].mxu1 %v7694_v3 }
 0xfef   : > { %10263 = vmatprep.mubr.msk.bf16.mxu1 %vm4812_vm6, %v7697_v63  ;;  %v7692_v41 = vsel %vm4812_vm6, %v7660_v59, %v12546_v18  ;;  %v7693_v33 = vsel %vm4812_vm6, %v7661_v38, %v12547_v4 }
 0xff0   : > { %v7696_v35 = vpack.c.bf16 %v7693_v33, %v7692_v41 }
 0xff6   : > { %7848 = vmatmul.mubr.bf16.gmra.mrb[216].mxu1 %v7696_v35 }
0x10c1   : > { %v7841_v21 = vpop.f32.mrb[212].mxu1 }
0x10c2   : > { %v7842_v39 = vadd.f32 %v10249_v23, %v7841_v21  ;;  %v7843_v46 = vpop.f32.mrb[213].mxu1  ;;  %v12742_v21 = vld [vmem:[%s17102_s0 + $0xb8] sm:$0xff]  }
0x10c3   : > { %v7844_v13 = vpop.f32.mrb[214].mxu1  ;;  %v12744_v46 = vld [vmem:[%s17107_s2] sm:$0xff]  }
0x10c4   : > { %v7856_v54 = vmax.f32 %v7842_v39, 0.0  ;;  %v7845_v47 = vadd.f32 %v10249_v23, %v7844_v13  ;;  %v7846_v24 = vpop.f32.mrb[215].mxu1  ;;  %v12743_v39 = vld [vmem:[%s17107_s2 + $0x40] sm:$0xff]  }
0x10c5   : > { %v12745_v13 = vld [vmem:[%s17107_s2 + $0x80] sm:$0xff]   ;;  %11145 = vmatprep.subr.bf16.mxu1 %v12743_v39  ;;  %v12747_v24 = vld [vmem:[%s17107_s2 + $0x8] sm:$0xff]  }
0x10c6   : > { %v7857_v60 = vmax.f32 %v7845_v47, 0.0  ;;  %v7860_v57 = vrot.slane %v7856_v54, 7  ;;  %v7872_v14 = vrot.slane %v7856_v54, 1  ;;  %v12748_v47 = vld [vmem:[%s17107_s2 + $0x88] sm:$0xff]   ;;  %11146 = vmatpush3.bf16.msra.mxu1 %v12744_v46 }
0x10c8   : > { %v7861_v44 = vrot.slane %v7857_v60, 7  ;;  %v7873_v53 = vrot.slane %v7857_v60, 1  ;;  %v7885_v43 = vpack.c.bf16 %v7857_v60, %v7856_v54  ;;  %v12746_v54 = vld [vmem:[%s17107_s2 + $0x48] sm:$0xff]   ;;  %v12749_v60 = vld [vmem:[%s17107_s2 + $0x50] sm:$0xff]  }
0x10c9   : > { %v7849_v2 = vpop.f32.mrb[216].mxu1  ;;  %11147 = vmatprep.subr.bf16.mxu1 %v12746_v54 }
0x10ca   : > { %v7866_v32 = vsel %vm2197_vm1, %v7860_v57, %v7861_v44  ;;  %v7850_v12 = vadd.f32 %v10249_v23, %v7849_v2  ;;  %v7851_v28 = vpop.f32.mrb[217].mxu1  ;;  %8121 = vmatprep.mubr.bf16.mxu0 %v7885_v43  ;;  %v7878_v34 = vsel %vm2294_vm0, %v7872_v14, %v7873_v53  ;;  %11148 = vmatpush3.bf16.msra.mxu1 %v12747_v24  ;;  %v12753_v43 = vld [vmem:[%s17107_s2 + $0x18] sm:$0xff]   ;;  %v12755_v2 = vld [vmem:[%s17107_s2 + $0x60] sm:$0xff]  }
0x10cb   : > { %v7852_v7 = vpop.f32.mrb[218].mxu1  ;;  %v7869_v16 = vmul.f32 %v16430_v0, %v7866_v32  ;;  %v7880_v9 = vmul.f32 %v16407_v50, %v7878_v34  ;;  %11149 = vmatprep.subr.bf16.mxu1 %v12749_v60  ;;  %v12756_v32 = vld [vmem:[%s17107_s2 + $0x20] sm:$0xff]   ;;  %v12758_v28 = vld [vmem:[%s17107_s2 + $0x68] sm:$0xff]  }
0x10cc   : > { %v7858_v37 = vmax.f32 %v7850_v12, 0.0  ;;  %v7853_v55 = vadd.f32 %v10249_v23, %v7852_v7  ;;  %v7854_v63 = vpop.f32.mrb[219].mxu1  ;;  %v12741_v23 = vld [vmem:[%s17102_s0 + $0xb0] sm:$0xff]   ;;  %v12757_v12 = vld [vmem:[%s17107_s2 + $0xa0] sm:$0xff]   ;;  %v12759_v34 = vld [vmem:[%s17107_s2 + $0x28] sm:$0xff]  }
0x10cd   : > { %v12760_v7 = vld [vmem:[%s17107_s2 + $0xa8] sm:$0xff]   ;;  %v12763_v63 = vld [vmem:[%s17107_s2 + $0xb0] sm:$0xff]  }
0x10ce   : > { %v7862_v1 = vrot.slane %v7858_v37, 7  ;;  %v7874_v22 = vrot.slane %v7858_v37, 1  ;;  %v7859_v25 = vmax.f32 %v7853_v55, 0.0  ;;  %v12762_v55 = vld [vmem:[%s17107_s2 + $0x30] sm:$0xff]  }
0x10d0   : > { %v7863_v52 = vrot.slane %v7859_v25, 7  ;;  %v7875_v40 = vrot.slane %v7859_v25, 1  ;;  %v7888_v56 = vpack.c.bf16 %v7859_v25, %v7858_v37  ;;  %v7865_v58 = vsel %vm2197_vm1, %v7861_v44, %v7862_v1  ;;  %v12752_v44 = vld [vmem:[%s17107_s2 + $0x58] sm:$0xff]   ;;  %v12761_v37 = vld [vmem:[%s17107_s2 + $0x70] sm:$0xff]  }
0x10d1   : > { %v7870_v8 = vmul.f32 %v16440_v20, %v7865_v58  ;;  %v7877_v3 = vsel %vm2294_vm0, %v7873_v53, %v7874_v22  ;;  %v12754_v53 = vld [vmem:[%s17107_s2 + $0x98] sm:$0xff]  }
0x10d2   : > { %v7867_v51 = vsel %vm2197_vm1, %v7863_v52, %v7860_v57  ;;  %v7876_v4 = vsel %vm2294_vm0, %v7874_v22, %v7875_v40  ;;  %v7879_v18 = vsel %vm2294_vm0, %v7875_v40, %v7872_v14  ;;  %v7864_v59 = vsel %vm2197_vm1, %v7862_v1, %v7863_v52  ;;  %v12751_v57 = vld [vmem:[%s17107_s2 + $0x90] sm:$0xff]   ;;  %v12764_v1 = vld [vmem:[%s17107_s2 + $0x78] sm:$0xff]  }
0x10d3   : > { %v7868_v38 = vmul.f32 %v16433_v48, %v7867_v51  ;;  %v7882_v41 = vmul.f32 %v16398_v45, %v7876_v4  ;;  %v7883_v33 = vmul.f32 %v16394_v49, %v7879_v18  ;;  %v7871_v35 = vmul.f32 %v16443_v61, %v7864_v59  ;;  %v12750_v14 = vld [vmem:[%s17107_s2 + $0x10] sm:$0xff]   ;;  %v12766_v22 = vld [vmem:[%s17107_s2 + $0xb8] sm:$0xff]  }
0x10d4   : > { %v7881_v6 = vmul.f32 %v16410_v17, %v7877_v3  ;;  %11150 = vmatpush3.bf16.msra.mxu1 %v12750_v14  ;;  %v12765_v25 = vld [vmem:[%s17107_s2 + $0x38] sm:$0xff]   ;;  %s17110_s2 = sld [smem:[#allocation39_spill]] }
0x10d5   : > { %v7884_v30 = vpack.c.bf16 %v7869_v16, %v7868_v38  ;;  %v7887_v5 = vpack.c.bf16 %v7871_v35, %v7870_v8  ;;  %v7889_v29 = vpack.c.bf16 %v7883_v33, %v7882_v41  ;;  %11151 = vmatprep.subr.bf16.mxu1 %v12752_v44 }
0x10d6   : > { %v7886_v26 = vpack.c.bf16 %v7881_v6, %v7880_v9 }
0x10d7   : > { %8122 = vmatmul.mubr.bf16.vlgmr.msra.gmra.mrb[224].mxu0 %v7884_v30 }
0x10d8   : > { %11778 = vmatpush3.bf16.msra.mxu0 %v12735_v31  ;;  %8129 = vmatprep.mubr.bf16.mxu0 %v7888_v56  ;;  %v12740_v31 = vld [vmem:[%s17102_s0 + $0xa8] sm:$0xff]   ;;  %s17108_s0 = sld [smem:[#allocation35_spill]] }
0x10d9   : > { %11779 = vmatprep.subr.bf16.mxu0 %v12736_v11  ;;  %11152 = vmatpush3.bf16.msra.mxu1 %v12753_v43 }
0x10da   : > { %11153 = vmatprep.subr.bf16.mxu1 %v12755_v2 }
0x10dc   : > { %11780 = vmatpush3.bf16.msra.mxu0 %v12736_v11 }
0x10dd   : > { %11781 = vmatprep.subr.bf16.mxu0 %v12737_v15  ;;  %11154 = vmatpush3.bf16.msra.mxu1 %v12756_v32 }
0x10de   : > { %11155 = vmatprep.subr.bf16.mxu1 %v12758_v28  ;;  %v10264_v41 = vld [vmem:[%s17108_s0] ss:$0 sm:$0xff]  ;;  %s17109_s0 = sld [smem:[#allocation37_spill]] }
0x10df   : > { %8130 = vmatmul.mubr.bf16.gmra.mrb[228].mxu0 %v7887_v5 }
0x10e0   : > { %11782 = vmatpush3.bf16.msra.mxu0 %v12737_v15  ;;  %11793 = vmatprep.mubr.bf16.mxu0 %v7886_v26 }
0x10e1   : > { %11783 = vmatprep.subr.bf16.mxu0 %v12738_v27  ;;  %11156 = vmatpush3.bf16.msra.mxu1 %v12759_v34 }
0x10e2   : > { %11157 = vmatprep.subr.bf16.mxu1 %v12761_v37 }
0x10e4   : > { %11784 = vmatpush3.bf16.msra.mxu0 %v12738_v27 }
0x10e5   : > { %11785 = vmatprep.subr.bf16.mxu0 %v12739_v62  ;;  %11158 = vmatpush3.bf16.msra.mxu1 %v12762_v55 }
0x10e6   : > { %11159 = vmatprep.subr.bf16.mxu1 %v12764_v1 }
0x10e8   : > { %11786 = vmatpush3.bf16.msra.mxu0 %v12739_v62 }
0x10e9   : > { %11787 = vmatprep.subr.bf16.mxu0 %v12740_v31  ;;  %11160 = vmatpush3.bf16.msra.mxu1 %v12765_v25 }
0x10ec   : > { %11788 = vmatpush3.bf16.msra.mxu0 %v12740_v31 }
0x10ed   : > { %11789 = vmatprep.subr.bf16.mxu0 %v12741_v23 }
0x10f0   : > { %11790 = vmatpush3.bf16.msra.mxu0 %v12741_v23 }
0x10f1   : > { %11791 = vmatprep.subr.bf16.mxu0 %v12742_v21 }
0x10f4   : > { %11792 = vmatpush3.bf16.msra.mxu0 %v12742_v21 }
0x10f5   : > { %11797 = vmatprep.subr.bf16.mxu0 %v12745_v13 }
0x10f7   : > { %11794 = vmatmul.mubr.bf16.vlgmr.msra.gmra.mrb[232].mxu0 %v7889_v29 }
0x10f8   : > { %11798 = vmatpush3.bf16.msra.mxu0 %v12745_v13 }
0x10f9   : > { %11799 = vmatprep.subr.bf16.mxu0 %v12748_v47 }
0x10fc   : > { %11800 = vmatpush3.bf16.msra.mxu0 %v12748_v47 }
0x10fd   : > { %11801 = vmatprep.subr.bf16.mxu0 %v12751_v57 }
0x1100   : > { %11802 = vmatpush3.bf16.msra.mxu0 %v12751_v57 }
0x1101   : > { %11803 = vmatprep.subr.bf16.mxu0 %v12754_v53 }
0x1104   : > { %11804 = vmatpush3.bf16.msra.mxu0 %v12754_v53 }
0x1105   : > { %11805 = vmatprep.subr.bf16.mxu0 %v12757_v12 }
0x1108   : > { %11806 = vmatpush3.bf16.msra.mxu0 %v12757_v12 }
0x1109   : > { %11807 = vmatprep.subr.bf16.mxu0 %v12760_v7 }
0x110c   : > { %11808 = vmatpush3.bf16.msra.mxu0 %v12760_v7 }
0x110d   : > { %11809 = vmatprep.subr.bf16.mxu0 %v12763_v63 }
0x1110   : > { %11810 = vmatpush3.bf16.msra.mxu0 %v12763_v63 }
0x1111   : > { %11811 = vmatprep.subr.bf16.mxu0 %v12766_v22 }
0x1114   : > { %11812 = vmatpush3.bf16.msra.mxu0 %v12766_v22 }
0x11aa   : > { %v11123_v52 = vpop.f32.mrb[224].mxu0 }
0x11ab   : > { %v11124_v40 = vpop.f32.mrb[225].mxu0 }
0x11ac   : > { %v11125_v56 = vadd.f32 %v11124_v40, %v11123_v52  ;;  %v11126_v58 = vpop.f32.mrb[226].mxu0 }
0x11ad   : > { %v11127_v16 = vpop.f32.mrb[227].mxu0 }
0x11ae   : > { %v11128_v8 = vadd.f32 %v11127_v16, %v11126_v58  ;;  %v8124_v9 = vadd.f32 %v11125_v56, %v10264_v41  ;;  %v8711_v16 = vld [vmem:[%s17110_s2 + $0x10] sm:$0xff] }
0x11b0   : > { %v8127_v26 = vadd.f32 %v11128_v8, %v10264_v41 }
0x11b2   : > { %v11129_v3 = vpop.f32.mrb[228].mxu0 }
0x11b3   : > { %v11130_v51 = vpop.f32.mrb[229].mxu0 }
0x11b4   : > { %v11131_v4 = vadd.f32 %v11130_v51, %v11129_v3  ;;  %v11132_v18 = vpop.f32.mrb[230].mxu0  ;;  %v8713_v3 = vld [vmem:[%s17110_s2 + $0x20] sm:$0xff]  ;;  %v8714_v51 = vld [vmem:[%s17110_s2 + $0x28] sm:$0xff] }
0x11b5   : > { %v11133_v59 = vpop.f32.mrb[231].mxu0 }
0x11b6   : > { %v11134_v38 = vadd.f32 %v11133_v59, %v11132_v18  ;;  %v8132_v33 = vadd.f32 %v11131_v4, %v10264_v41  ;;  %v12295_v4 = vpack.c.bf16 %v8714_v51, %v8713_v3  ;;  %v8715_v18 = vld [vmem:[%s17110_s2 + $0x30] sm:$0xff]  ;;  %v8716_v59 = vld [vmem:[%s17110_s2 + $0x38] sm:$0xff] }
0x11b8   : > { %v8135_v11 = vadd.f32 %v11134_v38, %v10264_v41  ;;  %v12299_v38 = vpack.c.bf16 %v8716_v59, %v8715_v18  ;;  %v8717_v41 = vld [vmem:[%s17110_s2 + $0x40] sm:$0xff] }
0x11ca   : > { %v11795_v35 = vpop.f32.mrb[232].mxu0 }
0x11cb   : > { %v8181_v6 = vadd.f32 %v11795_v35, %v8132_v33  ;;  %v8172_v30 = vpop.f32.mrb[233].mxu0  ;;  %v8718_v33 = vld [vmem:[%s17110_s2 + $0x48] sm:$0xff] }
0x11cc   : > { %v8173_v5 = vadd.f32 %v8172_v30, %v8124_v9  ;;  %v11796_v29 = vpop.f32.mrb[234].mxu0  ;;  %v12303_v35 = vpack.c.bf16 %v8718_v33, %v8717_v41  ;;  %v8719_v9 = vld [vmem:[%s17110_s2 + $0x50] sm:$0xff]  ;;  %v8535_v41 = vld [vmem:[%s17109_s0 + $0x8] sm:$0xff] }
0x11cd   : > { %v8189_v15 = vmax.f32 %v8181_v6, 0.0  ;;  %v8184_v27 = vadd.f32 %v11796_v29, %v8135_v11  ;;  %v8175_v62 = vpop.f32.mrb[235].mxu0  ;;  %v8720_v6 = vld [vmem:[%s17110_s2 + $0x58] sm:$0xff]  ;;  %v8721_v11 = vld [vmem:[%s17110_s2 + $0x60] sm:$0xff] }
0x11ce   : > { %v8187_v31 = vmax.f32 %v8173_v5, 0.0  ;;  %v8176_v23 = vadd.f32 %v8175_v62, %v8127_v26  ;;  %v12307_v30 = vpack.c.bf16 %v8720_v6, %v8719_v9  ;;  %v8722_v5 = vld [vmem:[%s17110_s2 + $0x68] sm:$0xff]  ;;  %v8723_v26 = vld [vmem:[%s17110_s2 + $0x70] sm:$0xff] }
0x11cf   : > { %v8190_v21 = vmax.f32 %v8184_v27, 0.0  ;;  %v8193_v39 = vrot.slane %v8189_v15, 7  ;;  %v8205_v47 = vrot.slane %v8189_v15, 1  ;;  %v12311_v29 = vpack.c.bf16 %v8722_v5, %v8721_v11 }
0x11d0   : > { %v8191_v46 = vrot.slane %v8187_v31, 7  ;;  %v8203_v13 = vrot.slane %v8187_v31, 1  ;;  %v8188_v54 = vmax.f32 %v8176_v23, 0.0 }
0x11d1   : > { %v8194_v24 = vrot.slane %v8190_v21, 7  ;;  %v8206_v60 = vrot.slane %v8190_v21, 1  ;;  %v8219_v57 = vpack.c.bf16 %v8190_v21, %v8189_v15  ;;  %v8724_v15 = vld [vmem:[%s17110_s2 + $0x78] sm:$0xff]  ;;  %v10289_v21 = vld [vmem:[#allocation2] ss:$0 sm:$0xff] }
0x11d2   : > { %v8192_v14 = vrot.slane %v8188_v54, 7  ;;  %v8204_v44 = vrot.slane %v8188_v54, 1  ;;  %v8216_v53 = vpack.c.bf16 %v8188_v54, %v8187_v31  ;;  %v12315_v27 = vpack.c.bf16 %v8724_v15, %v8723_v26 }
0x11d3   : > { %v8198_v43 = vsel %vm2197_vm1, %v8194_v24, %v8191_v46  ;;  %v8207_v2 = vsel %vm2294_vm0, %v8205_v47, %v8206_v60  ;;  %v8210_v32 = vsel %vm2294_vm0, %v8206_v60, %v8203_v13  ;;  %v8195_v12 = vsel %vm2197_vm1, %v8193_v39, %v8194_v24 }
0x11d4   : > { %v8199_v28 = vmul.f32 %v16433_v48, %v8198_v43  ;;  %v8197_v34 = vsel %vm2197_vm1, %v8191_v46, %v8192_v14  ;;  %8452 = vmatprep.mubr.bf16.mxu1 %v8216_v53  ;;  %v8208_v7 = vsel %vm2294_vm0, %v8204_v44, %v8205_v47  ;;  %v8209_v37 = vsel %vm2294_vm0, %v8203_v13, %v8204_v44 }
0x11d5   : > { %v8200_v55 = vmul.f32 %v16430_v0, %v8197_v34  ;;  %v8211_v63 = vmul.f32 %v16407_v50, %v8209_v37  ;;  %v8212_v1 = vmul.f32 %v16410_v17, %v8208_v7  ;;  %v8213_v22 = vmul.f32 %v16398_v45, %v8207_v2  ;;  %v8709_v45 = vld [vmem:[%s17110_s2] sm:$0xff] }
0x11d6   : > { %v8214_v48 = vmul.f32 %v16394_v49, %v8210_v32  ;;  %v8196_v25 = vsel %vm2197_vm1, %v8192_v14, %v8193_v39  ;;  %v8202_v52 = vmul.f32 %v16443_v61, %v8195_v12  ;;  %v8534_v49 = vld [vmem:[%s17109_s0] sm:$0xff]  ;;  %v8710_v61 = vld [vmem:[%s17110_s2 + $0x8] sm:$0xff]  ;;  %s17112_s0 = sld [smem:[#allocation40_spill]] }
0x11d7   : > { %v8215_v40 = vpack.c.bf16 %v8200_v55, %v8199_v28  ;;  %v8217_v56 = vpack.c.bf16 %v8212_v1, %v8211_v63  ;;  %v8201_v50 = vmul.f32 %v16440_v20, %v8196_v25  ;;  %v12287_v58 = vpack.c.bf16 %v8710_v61, %v8709_v45  ;;  %v8712_v20 = vld [vmem:[%s17110_s2 + $0x18] sm:$0xff]  ;;  %s17111_s2 = sld [smem:[#allocation38_spill]] }
0x11d8   : > { %v8220_v0 = vpack.c.bf16 %v8214_v48, %v8213_v22  ;;  %v12291_v8 = vpack.c.bf16 %v8712_v20, %v8711_v16 }
0x11d9   : > { %8453 = vmatmul.mubr.bf16.vlgmr.msra.gmra.mrb[220].mxu1 %v8215_v40  ;;  %11813 = vmatprep.mubr.bf16.mxu0 %v8217_v56  ;;  %v8218_v17 = vpack.c.bf16 %v8202_v52, %v8201_v50 }
0x11da   : > { %8460 = vmatprep.mubr.bf16.mxu1 %v8219_v57  ;;  %11814 = vmatmul.mubr.bf16.vlgmr.msra.gmra.mrb[236].mxu0 %v8220_v0 }
0x11db   : > { %12288 = vmatprep.subr.bf16.mxu0 %v12287_v58 }
0x11dc   : > { %12290 = vmatpush3.bf16.msra.mxu0 %v12287_v58 }
0x11dd   : > { %12292 = vmatprep.subr.bf16.mxu0 %v12291_v8  ;;  %v8618_v3 = vld [vmem:[%s17111_s2] sm:$0xff]  ;;  %v8619_v51 = vld [vmem:[%s17111_s2 + $0x8] sm:$0xff]  ;;  %v8620_v59 = vld [vmem:[%s17111_s2 + $0x10] sm:$0xff] }
0x11de   : > { %v12255_v18 = vpack.c.bf16 %v8619_v51, %v8618_v3  ;;  %v8623_v9 = vld [vmem:[%s17111_s2 + $0x28] sm:$0xff]  ;;  %v8625_v11 = vld [vmem:[%s17111_s2 + $0x38] sm:$0xff] }
0x11df   : > { %v8627_v26 = vld [vmem:[%s17111_s2 + $0x48] sm:$0xff] }
0x11e0   : > { %12294 = vmatpush3.bf16.msra.mxu0 %v12291_v8 }
0x11e1   : > { %8461 = vmatmul.mubr.bf16.gmra.mrb[224].mxu1 %v8218_v17  ;;  %12296 = vmatprep.subr.bf16.mxu0 %v12295_v4 }
0x11e2   : > { %11825 = vmatprep.mubr.msk.f32.mxu1 %vm8536_vm5, %v8534_v49 }
0x11e4   : > { %12298 = vmatpush3.bf16.msra.mxu0 %v12295_v4 }
0x11e5   : > { %12300 = vmatprep.subr.bf16.mxu0 %v12299_v38 }
0x11e8   : > { %12302 = vmatpush3.bf16.msra.mxu0 %v12299_v38  ;;  %v8621_v38 = vld [vmem:[%s17111_s2 + $0x18] sm:$0xff] }
0x11e9   : > { %12304 = vmatprep.subr.bf16.mxu0 %v12303_v35  ;;  %v12259_v33 = vpack.c.bf16 %v8621_v38, %v8620_v59 }
0x11ec   : > { %12306 = vmatpush3.bf16.msra.mxu0 %v12303_v35  ;;  %v8622_v35 = vld [vmem:[%s17111_s2 + $0x20] sm:$0xff] }
0x11ed   : > { %12308 = vmatprep.subr.bf16.mxu0 %v12307_v30  ;;  %v12263_v6 = vpack.c.bf16 %v8623_v9, %v8622_v35 }
0x11f0   : > { %12310 = vmatpush3.bf16.msra.mxu0 %v12307_v30  ;;  %v8624_v30 = vld [vmem:[%s17111_s2 + $0x30] sm:$0xff] }
0x11f1   : > { %12312 = vmatprep.subr.bf16.mxu0 %v12311_v29  ;;  %v12267_v5 = vpack.c.bf16 %v8625_v11, %v8624_v30 }
0x11f4   : > { %12314 = vmatpush3.bf16.msra.mxu0 %v12311_v29  ;;  %v8626_v29 = vld [vmem:[%s17111_s2 + $0x40] sm:$0xff] }
0x11f5   : > { %12316 = vmatprep.subr.bf16.mxu0 %v12315_v27  ;;  %v12271_v15 = vpack.c.bf16 %v8627_v26, %v8626_v29 }
0x11f8   : > { %12318 = vmatpush3.bf16.msra.mxu0 %v12315_v27  ;;  %v8628_v27 = vld [vmem:[%s17111_s2 + $0x50] sm:$0xff] }
0x11f9   : > { %9141 = vmatprep.subr.bf16.mxu0 %v17078_v19 }
0x12ac   : > { %v11161_v62 = vpop.f32.mrb[220].mxu1 }
0x12ad   : > { %v11162_v31 = vpop.f32.mrb[221].mxu1  ;;  %v11815_v23 = vpop.f32.mrb[236].mxu0 }
0x12ae   : > { %v11163_v39 = vadd.f32 %v11162_v31, %v11161_v62  ;;  %v11164_v46 = vpop.f32.mrb[222].mxu1  ;;  %v8503_v13 = vpop.f32.mrb[237].mxu0  ;;  %v8629_v62 = vld [vmem:[%s17111_s2 + $0x58] sm:$0xff] }
0x12af   : > { %v11165_v54 = vpop.f32.mrb[223].mxu1  ;;  %v11816_v47 = vpop.f32.mrb[238].mxu0  ;;  %v12275_v31 = vpack.c.bf16 %v8629_v62, %v8628_v27 }
0x12b0   : > { %v8455_v24 = vadd.f32 %v11163_v39, %v10289_v21  ;;  %v11166_v60 = vadd.f32 %v11165_v54, %v11164_v46  ;;  %v8506_v57 = vpop.f32.mrb[239].mxu0  ;;  %v8632_v46 = vld [vmem:[%s17111_s2 + $0x70] sm:$0xff] }
0x12b2   : > { %v8504_v14 = vadd.f32 %v8503_v13, %v8455_v24  ;;  %v8458_v44 = vadd.f32 %v11166_v60, %v10289_v21  ;;  %v8633_v13 = vld [vmem:[%s17111_s2 + $0x78] sm:$0xff]  ;;  %v12767_v60 = vld [vmem:[%s17112_s0] sm:$0xff]  }
0x12b3   : > { %v12283_v54 = vpack.c.bf16 %v8633_v13, %v8632_v46 }
0x12b4   : > { %v8518_v53 = vmax.f32 %v8504_v14, 0.0  ;;  %v8507_v43 = vadd.f32 %v8506_v57, %v8458_v44  ;;  %v11167_v2 = vpop.f32.mrb[224].mxu1  ;;  %v12768_v57 = vld [vmem:[%s17112_s0 + $0x8] sm:$0xff]   ;;  %v12769_v14 = vld [vmem:[%s17112_s0 + $0x10] sm:$0xff]   ;;  %v12770_v44 = vld [vmem:[%s17112_s0 + $0x18] sm:$0xff]  }
0x12b5   : > { %v11168_v32 = vpop.f32.mrb[225].mxu1 }
0x12b6   : > { %v8519_v12 = vmax.f32 %v8507_v43, 0.0  ;;  %v11169_v28 = vadd.f32 %v11168_v32, %v11167_v2  ;;  %v11170_v34 = vpop.f32.mrb[226].mxu1  ;;  %v8522_v37 = vrot.slane %v8518_v53, 1  ;;  %v12772_v43 = vld [vmem:[%s17112_s0 + $0x28] sm:$0xff]   ;;  %v12773_v2 = vld [vmem:[%s17112_s0 + $0x30] sm:$0xff]   ;;  %v12774_v32 = vld [vmem:[%s17112_s0 + $0x38] sm:$0xff]  }
0x12b7   : > { %v11171_v7 = vpop.f32.mrb[227].mxu1 }
0x12b8   : > { %v8523_v55 = vrot.slane %v8519_v12, 1  ;;  %v8463_v63 = vadd.f32 %v11169_v28, %v10289_v21  ;;  %v11172_v1 = vadd.f32 %v11171_v7, %v11170_v34  ;;  %v12776_v28 = vld [vmem:[%s17112_s0 + $0x48] sm:$0xff]   ;;  %v12777_v34 = vld [vmem:[%s17112_s0 + $0x50] sm:$0xff]   ;;  %v8806_v7 = vand.u32 1, %v13502_v10 }
0x12ba   : > { %v8512_v22 = vadd.f32 %v11815_v23, %v8463_v63  ;;  %v8466_v48 = vadd.f32 %v11172_v1, %v10289_v21  ;;  %v8528_v25 = vsel %vm2294_vm0, %v8522_v37, %v8523_v55  ;;  %v8630_v23 = vld [vmem:[%s17111_s2 + $0x60] sm:$0xff]  ;;  %v8631_v21 = vld [vmem:[%s17111_s2 + $0x68] sm:$0xff]  ;;  %vm8832_vm7 = vcmp.ne.s32.totalorder %v8806_v7, 1  ;;  %s17117_s2 = sld [smem:[#allocation45_spill]] }
0x12bb   : > { %v8530_v52 = vmax.f32 %v8518_v53, %v8528_v25  ;;  %v12279_v39 = vpack.c.bf16 %v8631_v21, %v8630_v23  ;;  %v12771_v53 = vld [vmem:[%s17112_s0 + $0x20] sm:$0xff]   ;;  %vm8826_vm9 = vcmp.ne.s32.totalorder %v8806_v7, 0 }
0x12bc   : > { %v8520_v40 = vmax.f32 %v8512_v22, 0.0  ;;  %v8515_v56 = vadd.f32 %v11816_v47, %v8466_v48  ;;  %v16635_v51 = vsel %vm8826_vm9, 1.0, %v17043_v42 }
0x12be   : > { %v8524_v50 = vrot.slane %v8520_v40, 1  ;;  %v8521_v0 = vmax.f32 %v8515_v56, 0.0 }
0x12c0   : > { %v8525_v17 = vrot.slane %v8521_v0, 1  ;;  %v8527_v49 = vsel %vm2294_vm0, %v8523_v55, %v8524_v50  ;;  %v8813_v55 = vand.u32 1, %v15080_v36 }
0x12c1   : > { %v8531_v45 = vmax.f32 %v8519_v12, %v8527_v49  ;;  %v12775_v12 = vld [vmem:[%s17112_s0 + $0x40] sm:$0xff]  }
0x12c2   : > { %v8526_v61 = vsel %vm2294_vm0, %v8524_v50, %v8525_v17  ;;  %v8529_v58 = vsel %vm2294_vm0, %v8525_v17, %v8522_v37  ;;  %v12778_v37 = vld [vmem:[%s17112_s0 + $0x58] sm:$0xff]   ;;  %vm8833_vm8 = vcmp.ne.s32.totalorder %v8813_v55, 1  ;;  %v16617_v50 = vsel %vm8832_vm7, 1.0, %v17043_v42  ;;  %s17113_s0 = sld [smem:[#allocation41_spill]] }
0x12c3   : > { %v12247_v16 = vpack.c.bf16 %v8531_v45, %v8530_v52  ;;  %v8532_v20 = vmax.f32 %v8520_v40, %v8526_v61  ;;  %v8533_v8 = vmax.f32 %v8521_v0, %v8529_v58  ;;  %v16620_v36 = vsel %vm8833_vm8, 1.0, %v17043_v42 }
0x12c4   : > { %vm8827_vm10 = vcmp.ne.s32.totalorder %v8813_v55, 0 }
0x12c5   : > { %12248 = vmatprep.subr.bf16.mxu1 %v12247_v16  ;;  %v12251_v4 = vpack.c.bf16 %v8533_v8, %v8532_v20 }
0x12c6   : > { %12250 = vmatpush3.bf16.msra.mxu1 %v12247_v16 }
0x12c7   : > { %12252 = vmatprep.subr.bf16.mxu1 %v12251_v4 }
0x12c8   : > { %v12779_v30 = vld [vmem:[%s17113_s0] sm:$0xff]   ;;  %v12780_v11 = vld [vmem:[%s17113_s0 + $0x8] sm:$0xff]   ;;  %v12782_v29 = vld [vmem:[%s17113_s0 + $0x18] sm:$0xff]  }
0x12c9   : > { %v12783_v26 = vld [vmem:[%s17113_s0 + $0x20] sm:$0xff]   ;;  %v12785_v27 = vld [vmem:[%s17113_s0 + $0x30] sm:$0xff]   ;;  %v12786_v62 = vld [vmem:[%s17113_s0 + $0x38] sm:$0xff]  }
0x12ca   : > { %12254 = vmatpush3.bf16.msra.mxu1 %v12251_v4  ;;  %v16638_v4 = vsel %vm8827_vm10, 1.0, %v17043_v42  ;;  %v12788_v23 = vld [vmem:[%s17113_s0 + $0x48] sm:$0xff]   ;;  %v12789_v21 = vld [vmem:[%s17113_s0 + $0x50] sm:$0xff]   ;;  %v12790_v46 = vld [vmem:[%s17113_s0 + $0x58] sm:$0xff]  }
0x12cb   : > { %12256 = vmatprep.subr.bf16.mxu1 %v12255_v18 }
0x12cd   : > { %11826 = vmatmul.mubr.msk.f32.vlgmr.msra.gmra.mrb[228].mxu1 %vm8536_vm5, %v8535_v41 }
0x12ce   : > { %12258 = vmatpush3.bf16.msra.mxu1 %v12255_v18 }
0x12cf   : > { %12260 = vmatprep.subr.bf16.mxu1 %v12259_v33 }
0x12d2   : > { %12262 = vmatpush3.bf16.msra.mxu1 %v12259_v33 }
0x12d3   : > { %12264 = vmatprep.subr.bf16.mxu1 %v12263_v6 }
0x12d6   : > { %12266 = vmatpush3.bf16.msra.mxu1 %v12263_v6 }
0x12d7   : > { %12268 = vmatprep.subr.bf16.mxu1 %v12267_v5 }
0x12da   : > { %12270 = vmatpush3.bf16.msra.mxu1 %v12267_v5  ;;  %v12781_v5 = vld [vmem:[%s17113_s0 + $0x10] sm:$0xff]  }
0x12db   : > { %12272 = vmatprep.subr.bf16.mxu1 %v12271_v15 }
0x12de   : > { %12274 = vmatpush3.bf16.msra.mxu1 %v12271_v15  ;;  %v12784_v15 = vld [vmem:[%s17113_s0 + $0x28] sm:$0xff]  }
0x12df   : > { %12276 = vmatprep.subr.bf16.mxu1 %v12275_v31 }
0x12e2   : > { %12278 = vmatpush3.bf16.msra.mxu1 %v12275_v31  ;;  %v12787_v31 = vld [vmem:[%s17113_s0 + $0x40] sm:$0xff]   ;;  %s17114_s0 = sld [smem:[#allocation42_spill]] }
0x12e3   : > { %12280 = vmatprep.subr.bf16.mxu1 %v12279_v39 }
0x12e6   : > { %12282 = vmatpush3.bf16.msra.mxu1 %v12279_v39  ;;  %v10320_v39 = vld [vmem:[#allocation4] ss:$0 sm:$0xff] }
0x12e7   : > { %12284 = vmatprep.subr.bf16.mxu1 %v12283_v54 }
0x12ea   : > { %12286 = vmatpush3.bf16.msra.mxu1 %v12283_v54 }
0x12eb   : > { %8968 = vmatprep.subr.bf16.mxu1 %v17078_v19 }
0x13a0   : > { %v11827_v47 = vpop.f32.mrb[228].mxu1 }
0x13a1   : > { %v8609_v24 = vpop.f32.mrb[229].mxu1 }
0x13a2   : > { %11860 = vmatprep.mubr.f32.mxu1 %v8609_v24  ;;  %11895 = vmatprep.mubr.f32.mxu0 %v8609_v24 }
0x13a3   : > { %11861 = vmatmul.mubr.f32.vlgmr.msra.gmra.mrb[230].mxu1 %v11827_v47  ;;  %11896 = vmatmul.mubr.f32.vlgmr.msra.gmra.mrb[240].mxu0 %v11827_v47 }
0x13a4   : > { %8969 = vmatpush1.bf16.msra.mxu1 %v12767_v60  ;;  %9142 = vmatpush1.bf16.msra.mxu0 %v12779_v30 }
0x13a5   : > { %8970 = vmatprep.subr.bf16.mxu1 %v17078_v19  ;;  %9143 = vmatprep.subr.bf16.mxu0 %v17078_v19 }
0x13a8   : > { %8971 = vmatpush1.bf16.msra.mxu1 %v12768_v57  ;;  %9144 = vmatpush1.bf16.msra.mxu0 %v12780_v11 }
0x13a9   : > { %8972 = vmatprep.subr.bf16.mxu1 %v17078_v19  ;;  %9145 = vmatprep.subr.bf16.mxu0 %v17078_v19 }
0x13ac   : > { %8973 = vmatpush1.bf16.msra.mxu1 %v12769_v14  ;;  %9146 = vmatpush1.bf16.msra.mxu0 %v12781_v5 }
0x13ad   : > { %8974 = vmatprep.subr.bf16.mxu1 %v17078_v19  ;;  %9147 = vmatprep.subr.bf16.mxu0 %v17078_v19 }
0x13b0   : > { %8975 = vmatpush1.bf16.msra.mxu1 %v12770_v44  ;;  %9148 = vmatpush1.bf16.msra.mxu0 %v12782_v29 }
0x13b1   : > { %8976 = vmatprep.subr.bf16.mxu1 %v17078_v19  ;;  %9149 = vmatprep.subr.bf16.mxu0 %v17078_v19 }
0x13b4   : > { %8977 = vmatpush1.bf16.msra.mxu1 %v12771_v53  ;;  %9150 = vmatpush1.bf16.msra.mxu0 %v12783_v26 }
0x13b5   : > { %8978 = vmatprep.subr.bf16.mxu1 %v17078_v19  ;;  %9151 = vmatprep.subr.bf16.mxu0 %v17078_v19 }
0x13b8   : > { %8979 = vmatpush1.bf16.msra.mxu1 %v12772_v43  ;;  %9152 = vmatpush1.bf16.msra.mxu0 %v12784_v15 }
0x13b9   : > { %8980 = vmatprep.subr.bf16.mxu1 %v17078_v19  ;;  %9153 = vmatprep.subr.bf16.mxu0 %v17078_v19 }
0x13bc   : > { %8981 = vmatpush1.bf16.msra.mxu1 %v12773_v2  ;;  %9154 = vmatpush1.bf16.msra.mxu0 %v12785_v27 }
0x13bd   : > { %8982 = vmatprep.subr.bf16.mxu1 %v17078_v19  ;;  %9155 = vmatprep.subr.bf16.mxu0 %v17078_v19 }
0x13c0   : > { %8983 = vmatpush1.bf16.msra.mxu1 %v12774_v32  ;;  %9156 = vmatpush1.bf16.msra.mxu0 %v12786_v62 }
0x13c1   : > { %8984 = vmatprep.subr.bf16.mxu1 %v17078_v19  ;;  %9157 = vmatprep.subr.bf16.mxu0 %v17078_v19 }
0x13c4   : > { %8985 = vmatpush1.bf16.msra.mxu1 %v12775_v12  ;;  %9158 = vmatpush1.bf16.msra.mxu0 %v12787_v31 }
0x13c5   : > { %8986 = vmatprep.subr.bf16.mxu1 %v17078_v19  ;;  %9159 = vmatprep.subr.bf16.mxu0 %v17078_v19 }
0x13c8   : > { %8987 = vmatpush1.bf16.msra.mxu1 %v12776_v28  ;;  %9160 = vmatpush1.bf16.msra.mxu0 %v12788_v23 }
0x13c9   : > { %8988 = vmatprep.subr.bf16.mxu1 %v17078_v19  ;;  %9161 = vmatprep.subr.bf16.mxu0 %v17078_v19 }
0x13cc   : > { %8989 = vmatpush1.bf16.msra.mxu1 %v12777_v34  ;;  %9162 = vmatpush1.bf16.msra.mxu0 %v12789_v21 }
0x13cd   : > { %8990 = vmatprep.subr.bf16.mxu1 %v17078_v19  ;;  %9163 = vmatprep.subr.bf16.mxu0 %v17078_v19 }
0x13d0   : > { %8991 = vmatpush1.bf16.msra.mxu1 %v12778_v37  ;;  %9164 = vmatpush1.bf16.msra.mxu0 %v12790_v46 }
0x13d1   : > { %9314 = vmatprep.subr.bf16.mxu1 %v17078_v19 }
0x1476   : > { %v11862_v63 = vpop.f32.mrb[230].mxu1  ;;  %v11897_v1 = vpop.f32.mrb[240].mxu0 }
0x1477   : > { %v8801_v22 = vmax.f32 %v11862_v63, %v11897_v1  ;;  %v8700_v48 = vpop.f32.mrb[231].mxu1  ;;  %v8791_v25 = vpop.f32.mrb[241].mxu0 }
0x1478   : > { %v8800_v52 = vmax.f32 %v8700_v48, %v8791_v25 }
0x1479   : > { %v8839_v40 = vrot.slane %v8801_v22, 7  ;;  %v8845_v56 = vrot.slane %v8801_v22, 1 }
0x147a   : > { %v8838_v0 = vrot.slane %v8800_v52, 7  ;;  %v8844_v17 = vrot.slane %v8800_v52, 1  ;;  %v12548_v49 = vpack.i.bf16 %v8801_v22, %v8800_v52 }
0x147c   : > { %v8840_v45 = vsel %vm2197_vm1, %v8838_v0, %v8839_v40  ;;  %v8841_v61 = vsel %vm2197_vm1, %v8839_v40, %v8838_v0  ;;  %v8846_v58 = vsel %vm2294_vm0, %v8844_v17, %v8845_v56  ;;  %v8847_v16 = vsel %vm2294_vm0, %v8845_v56, %v8844_v17  ;;  %12549 = vrot.lane.b32.xlu0 %v12548_v49, %s17105_s1  ;;  %v12791_v49 = vld [vmem:[%s17114_s0] sm:$0xff]  }
0x147d   : > { %v8848_v20 = vmul.f32 %v16617_v50, %v8846_v58  ;;  %v8849_v8 = vmul.f32 %v16620_v36, %v8847_v16  ;;  %v8842_v59 = vmul.f32 %v16635_v51, %v8841_v61  ;;  %v8843_v38 = vmul.f32 %v16638_v4, %v8840_v45  ;;  %v12792_v45 = vld [vmem:[%s17114_s0 + $0x8] sm:$0xff]   ;;  %v12793_v61 = vld [vmem:[%s17114_s0 + $0x10] sm:$0xff]   ;;  %v12794_v58 = vld [vmem:[%s17114_s0 + $0x18] sm:$0xff]  }
0x147e   : > { %v12795_v16 = vld [vmem:[%s17114_s0 + $0x20] sm:$0xff]  }
0x147f   : > { %v8861_v3 = vpack.c.bf16 %v8849_v8, %v8848_v20  ;;  %v12796_v20 = vld [vmem:[%s17114_s0 + $0x28] sm:$0xff]   ;;  %v12797_v8 = vld [vmem:[%s17114_s0 + $0x30] sm:$0xff]  }
0x1481   : > { %10333 = vmatprep.mubr.msk.bf16.mxu1 %vm4812_vm6, %v8861_v3  ;;  %v12798_v3 = vld [vmem:[%s17114_s0 + $0x38] sm:$0xff]  }
0x14ee   : > { %v12550_v18 = vpop.permute.xlu0 %12549 }
0x14ef   : > { %v12552_v41 = vunpack.i.h.bf16 %v12550_v18  ;;  %v12551_v33 = vunpack.i.l.bf16 %v12550_v18  ;;  %v12799_v18 = vld [vmem:[%s17114_s0 + $0x40] sm:$0xff]  }
0x14f1   : > { %v8858_v35 = vsel %vm4812_vm6, %v8842_v59, %v12551_v33  ;;  %v8859_v9 = vsel %vm4812_vm6, %v8843_v38, %v12552_v41  ;;  %v12800_v59 = vld [vmem:[%s17114_s0 + $0x48] sm:$0xff]   ;;  %v12801_v38 = vld [vmem:[%s17114_s0 + $0x50] sm:$0xff]   ;;  %v10334_v41 = vld [vmem:[#allocation6] ss:$0 sm:$0xff] }
0x14f2   : > { %v8860_v6 = vpack.c.bf16 %v8859_v9, %v8858_v35  ;;  %v12802_v33 = vld [vmem:[%s17114_s0 + $0x58] sm:$0xff]   ;;  %s17116_s0 = sld [smem:[#allocation43_spill]] }
0x14f4   : > { %9001 = vmatmul.mubr.bf16.vlgmr.msra.gmra.mrb[232].mxu1 %v8860_v6 }
0x14f5   : > { %9315 = vmatpush1.bf16.msra.mxu1 %v12791_v49 }
0x14f6   : > { %9316 = vmatprep.subr.bf16.mxu1 %v17078_v19 }
0x14f9   : > { %9317 = vmatpush1.bf16.msra.mxu1 %v12792_v45 }
0x14fa   : > { %9318 = vmatprep.subr.bf16.mxu1 %v17078_v19 }
0x14fd   : > { %9319 = vmatpush1.bf16.msra.mxu1 %v12793_v61 }
0x14fe   : > { %9320 = vmatprep.subr.bf16.mxu1 %v17078_v19 }
0x1501   : > { %9321 = vmatpush1.bf16.msra.mxu1 %v12794_v58 }
0x1502   : > { %9322 = vmatprep.subr.bf16.mxu1 %v17078_v19 }
0x1505   : > { %9323 = vmatpush1.bf16.msra.mxu1 %v12795_v16 }
0x1506   : > { %9324 = vmatprep.subr.bf16.mxu1 %v17078_v19 }
0x1509   : > { %9325 = vmatpush1.bf16.msra.mxu1 %v12796_v20 }
0x150a   : > { %9326 = vmatprep.subr.bf16.mxu1 %v17078_v19 }
0x150d   : > { %9327 = vmatpush1.bf16.msra.mxu1 %v12797_v8 }
0x150e   : > { %9328 = vmatprep.subr.bf16.mxu1 %v17078_v19 }
0x1511   : > { %9329 = vmatpush1.bf16.msra.mxu1 %v12798_v3 }
0x1512   : > { %9330 = vmatprep.subr.bf16.mxu1 %v17078_v19 }
0x1515   : > { %9331 = vmatpush1.bf16.msra.mxu1 %v12799_v18  ;;  %v9519_v18 = vld [vmem:[%s17117_s2] sm:$0xff] }
0x1516   : > { %9332 = vmatprep.subr.bf16.mxu1 %v17078_v19 }
0x1519   : > { %9333 = vmatpush1.bf16.msra.mxu1 %v12800_v59  ;;  %v9520_v59 = vld [vmem:[%s17117_s2 + $0x8] sm:$0xff] }
0x151a   : > { %9334 = vmatprep.subr.bf16.mxu1 %v17078_v19 }
0x151d   : > { %9335 = vmatpush1.bf16.msra.mxu1 %v12801_v38  ;;  %v12335_v38 = vpack.c.bf16 %v9520_v59, %v9519_v18 }
0x151e   : > { %9336 = vmatprep.subr.bf16.mxu1 %v17078_v19 }
0x1521   : > { %9337 = vmatpush1.bf16.msra.mxu1 %v12802_v33  ;;  %v9522_v33 = vld [vmem:[%s17117_s2 + $0x18] sm:$0xff] }
0x1522   : > { %11943 = vmatprep.subr.bf16.mxu1 %v17043_v42 }
0x15c7   : > { %v9002_v13 = vpop.f32.mrb[232].mxu1 }
0x15c8   : > { %v9003_v54 = vadd.f32 %v10320_v39, %v9002_v13  ;;  %v9004_v47 = vpop.f32.mrb[233].mxu1 }
0x15c9   : > { %v9005_v24 = vpop.f32.mrb[234].mxu1 }
0x15ca   : > { %v9009_v60 = vmax.f32 %v9003_v54, 0.0  ;;  %v9006_v57 = vadd.f32 %v10320_v39, %v9005_v24  ;;  %v9007_v14 = vpop.f32.mrb[235].mxu1 }
0x15cc   : > { %v9010_v44 = vmax.f32 %v9006_v57, 0.0  ;;  %v9011_v53 = vrot.slane %v9009_v60, 7  ;;  %v9017_v43 = vrot.slane %v9009_v60, 1 }
0x15ce   : > { %v9012_v2 = vrot.slane %v9010_v44, 7  ;;  %v9018_v32 = vrot.slane %v9010_v44, 1  ;;  %v12553_v12 = vpack.i.bf16 %v9010_v44, %v9009_v60 }
0x15d0   : > { %v9013_v28 = vsel %vm2197_vm1, %v9011_v53, %v9012_v2  ;;  %v9014_v34 = vsel %vm2197_vm1, %v9012_v2, %v9011_v53  ;;  %v9019_v7 = vsel %vm2294_vm0, %v9017_v43, %v9018_v32  ;;  %v9020_v37 = vsel %vm2294_vm0, %v9018_v32, %v9017_v43  ;;  %12554 = vrot.lane.b32.xlu1 %v12553_v12, %s17105_s1 }
0x15d1   : > { %v9021_v55 = vmul.f32 %v16617_v50, %v9019_v7  ;;  %v9022_v63 = vmul.f32 %v16620_v36, %v9020_v37  ;;  %v9015_v52 = vmul.f32 %v16635_v51, %v9014_v34  ;;  %v9016_v40 = vmul.f32 %v16638_v4, %v9013_v28 }
0x15d2   : > { %v13091_v32 = vmov 0.0|0.0  }
0x15d3   : > { %v9034_v1 = vpack.c.bf16 %v9022_v63, %v9021_v55  ;;  %12319 = vmatprep.subr.bf16.mxu0 %v13091_v32 }
0x15d5   : > { %10347 = vmatprep.mubr.msk.bf16.mxu0 %vm4812_vm6, %v9034_v1 }
0x1642   : > { %v12555_v22 = vpop.permute.xlu1 %12554 }
0x1643   : > { %v12557_v48 = vunpack.i.h.bf16 %v12555_v22  ;;  %v12556_v25 = vunpack.i.l.bf16 %v12555_v22 }
0x1645   : > { %v9031_v56 = vsel %vm4812_vm6, %v9015_v52, %v12556_v25  ;;  %v9032_v0 = vsel %vm4812_vm6, %v9016_v40, %v12557_v48 }
0x1646   : > { %v9033_v17 = vpack.c.bf16 %v9032_v0, %v9031_v56  ;;  %v9363_v0 = vld [vmem:[%s17116_s0] sm:$0xff]  ;;  %s17118_s0 = sld [smem:[#allocation46_spill]] }
0x1648   : > { %9174 = vmatmul.mubr.bf16.vlgmr.msra.gmra.mrb[244].mxu0 %v9033_v17 }
0x171b   : > { %v9175_v35 = vpop.f32.mrb[244].mxu0 }
0x171c   : > { %v9176_v9 = vadd.f32 %v10334_v41, %v9175_v35  ;;  %v9177_v6 = vpop.f32.mrb[245].mxu0 }
0x171d   : > { %v9178_v30 = vpop.f32.mrb[246].mxu0 }
0x171e   : > { %v9182_v11 = vmax.f32 %v9176_v9, 0.0  ;;  %v9179_v5 = vadd.f32 %v10334_v41, %v9178_v30  ;;  %v9180_v29 = vpop.f32.mrb[247].mxu0  ;;  %v9521_v41 = vld [vmem:[%s17117_s2 + $0x10] sm:$0xff]  ;;  %v9523_v30 = vld [vmem:[%s17117_s2 + $0x20] sm:$0xff] }
0x171f   : > { %v12338_v6 = vpack.c.bf16 %v9522_v33, %v9521_v41  ;;  %v9525_v29 = vld [vmem:[%s17117_s2 + $0x30] sm:$0xff] }
0x1720   : > { %v9183_v26 = vmax.f32 %v9179_v5, 0.0  ;;  %v9184_v15 = vrot.slane %v9182_v11, 7  ;;  %v9190_v27 = vrot.slane %v9182_v11, 1 }
0x1722   : > { %v9185_v62 = vrot.slane %v9183_v26, 7  ;;  %v9191_v31 = vrot.slane %v9183_v26, 1  ;;  %v12558_v23 = vpack.i.bf16 %v9183_v26, %v9182_v11  ;;  %v9524_v11 = vld [vmem:[%s17117_s2 + $0x28] sm:$0xff]  ;;  %v9526_v26 = vld [vmem:[%s17117_s2 + $0x38] sm:$0xff] }
0x1723   : > { %v12341_v5 = vpack.c.bf16 %v9524_v11, %v9523_v30 }
0x1724   : > { %v9186_v19 = vsel %vm2197_vm1, %v9184_v15, %v9185_v62  ;;  %v9187_v21 = vsel %vm2197_vm1, %v9185_v62, %v9184_v15  ;;  %v9192_v39 = vsel %vm2294_vm0, %v9190_v27, %v9191_v31  ;;  %v9193_v46 = vsel %vm2294_vm0, %v9191_v31, %v9190_v27  ;;  %12559 = vrot.lane.b32.xlu0 %v12558_v23, %s17105_s1  ;;  %s17115_s1 = sld [smem:[#allocation44_spill]]  ;;  %v12803_v27 = vld [vmem:[%s17118_s0] sm:$0xff]   ;;  %v12804_v62 = vld [vmem:[%s17118_s0 + $0x8] sm:$0xff]   ;;  %s10025_s0 = sshll.u32 %s17123_s7, 3 }
0x1725   : > { %v9194_v13 = vmul.f32 %v16617_v50, %v9192_v39  ;;  %v9195_v54 = vmul.f32 %v16620_v36, %v9193_v46  ;;  %v9188_v14 = vmul.f32 %v16635_v51, %v9187_v21  ;;  %v9189_v44 = vmul.f32 %v16638_v4, %v9186_v19  ;;  %v10348_v50 = vld [vmem:[#allocation7] ss:$0 sm:$0xff] }
0x1726   : > { %vm13092_vm1 = vmmov 0   ;;  %v12344_v15 = vpack.c.bf16 %v9526_v26, %v9525_v29 }
0x1727   : > { %v9207_v47 = vpack.c.bf16 %v9195_v54, %v9194_v13  ;;  %11902 = vmatprep.mubr.msk.f32.mxu0 %vm13092_vm1, %v17043_v42 }
0x1729   : > { %10361 = vmatprep.mubr.msk.bf16.mxu1 %vm4812_vm6, %v9207_v47 }
0x172a   : > { %v9438_v52 = vld [vmem:[%s17115_s1] sm:$0xff]  ;;  %v9439_v40 = vld [vmem:[%s17115_s1 + $0x8] sm:$0xff]  ;;  %v9440_v49 = vld [vmem:[%s17115_s1 + $0x10] sm:$0xff] }
0x172b   : > { %v12323_v17 = vpack.c.bf16 %v9439_v40, %v9438_v52  ;;  %v9441_v45 = vld [vmem:[%s17115_s1 + $0x18] sm:$0xff]  ;;  %v9442_v61 = vld [vmem:[%s17115_s1 + $0x20] sm:$0xff]  ;;  %v9443_v58 = vld [vmem:[%s17115_s1 + $0x28] sm:$0xff] }
0x172c   : > { %v12326_v10 = vpack.c.bf16 %v9441_v45, %v9440_v49  ;;  %v12329_v16 = vpack.c.bf16 %v9443_v58, %v9442_v61  ;;  %v9444_v20 = vld [vmem:[%s17115_s1 + $0x30] sm:$0xff]  ;;  %v9445_v8 = vld [vmem:[%s17115_s1 + $0x38] sm:$0xff]  ;;  %s17119_s1 = sld [smem:[#allocation47_spill]] }
0x172d   : > { %v12332_v3 = vpack.c.bf16 %v9445_v8, %v9444_v20 }
0x1732   : > { %v12805_v31 = vld [vmem:[%s17119_s1] sm:$0xff]   ;;  %v12806_v23 = vld [vmem:[%s17119_s1 + $0x8] sm:$0xff]   ;;  %v12807_v47 = vld [vmem:[%s17119_s1 + $0x10] sm:$0xff]  }
0x1796   : > { %v12560_v24 = vpop.permute.xlu0 %12559 }
0x1797   : > { %v12562_v60 = vunpack.i.h.bf16 %v12560_v24  ;;  %v12561_v57 = vunpack.i.l.bf16 %v12560_v24  ;;  %v12808_v24 = vld [vmem:[%s17119_s1 + $0x18] sm:$0xff]   ;;  %s1522_s1 = scalar_lea.vmem %s13341_s30, %s10025_s0 }
0x1799   : > { %v9204_v53 = vsel %vm4812_vm6, %v9188_v14, %v12561_v57  ;;  %v9205_v43 = vsel %vm4812_vm6, %v9189_v44, %v12562_v60  ;;  %v12809_v60 = vld [vmem:[%s13331_s14] sm:$0xff]   ;;  %v12810_v57 = vld [vmem:[%s13331_s14 + $0x8] sm:$0xff]  }
0x179a   : > { %v9206_v2 = vpack.c.bf16 %v9205_v43, %v9204_v53  ;;  %v10365_v14 = vld [vmem:[#allocation9] ss:$0 sm:$0xff] }
0x179c   : > { %9347 = vmatmul.mubr.bf16.vlgmr.msra.gmra.mrb[236].mxu1 %v9206_v2 }
0x179d   : > { %11947 = vmatprep.mubr.msk.bf16.mxu1 %vm13092_vm1, %v17043_v42  ;;  %11944 = vmatpush3.bf16.msra.mxu1 %v12803_v27 }
0x179e   : > { %11945 = vmatprep.subr.bf16.mxu1 %v17043_v42 }
0x17a1   : > { %11946 = vmatpush3.bf16.msra.mxu1 %v12804_v62 }
0x17a2   : > { %11963 = vmatprep.subr.bf16.mxu1 %v17043_v42 }
0x186f   : > { %v9348_v36 = vpop.f32.mrb[236].mxu1 }
0x1870   : > { %v9349_v51 = vadd.f32 %v10348_v50, %v9348_v36  ;;  %v9350_v4 = vpop.f32.mrb[237].mxu1 }
0x1871   : > { %v9351_v12 = vpop.f32.mrb[238].mxu1  ;;  %v12812_v4 = vld [vmem:[%s13331_s14 + $0x18] sm:$0xff]  }
0x1872   : > { %v9355_v28 = vmax.f32 %v9349_v51, 0.0  ;;  %v9352_v34 = vadd.f32 %v10348_v50, %v9351_v12  ;;  %v9353_v7 = vpop.f32.mrb[239].mxu1  ;;  %v12811_v51 = vld [vmem:[%s13331_s14 + $0x10] sm:$0xff]   ;;  %v10369_v12 = vld [vmem:[#allocation10] ss:$0 sm:$0xff] }
0x1874   : > { %v9356_v37 = vmax.f32 %v9352_v34, 0.0  ;;  %v9357_v55 = vrot.slane %v9355_v28, 1 }
0x1876   : > { %v9358_v63 = vrot.slane %v9356_v37, 1 }
0x1878   : > { %v9359_v1 = vsel %vm2294_vm0, %v9357_v55, %v9358_v63  ;;  %v9360_v22 = vsel %vm2294_vm0, %v9358_v63, %v9357_v55 }
0x1879   : > { %v9361_v48 = vmax.f32 %v9355_v28, %v9359_v1  ;;  %v9362_v25 = vmax.f32 %v9356_v37, %v9360_v22  ;;  %v10375_v22 = vld [vmem:[#allocation12] ss:$0 sm:$0xff] }
0x187b   : > { %v12320_v56 = vpack.c.bf16 %v9362_v25, %v9361_v48 }
0x187d   : > { %12321 = vmatpush3.bf16.msra.mxu0 %v12320_v56 }
0x187e   : > { %12322 = vmatprep.subr.bf16.mxu0 %v13091_v32 }
0x1880   : > { %11903 = vmatmul.mubr.msk.f32.vlgmr.msra.gmra.mrb[242].mxu0 %vm9364_vm11, %v9363_v0 }
0x1881   : > { %12324 = vmatpush3.bf16.msra.mxu0 %v12323_v17  ;;  %11921 = vmatprep.mubr.msk.f32.mxu0 %vm13092_vm1, %v17043_v42 }
0x1882   : > { %12325 = vmatprep.subr.bf16.mxu0 %v13091_v32 }
0x1885   : > { %12327 = vmatpush3.bf16.msra.mxu0 %v12326_v10 }
0x1886   : > { %12328 = vmatprep.subr.bf16.mxu0 %v13091_v32 }
0x1889   : > { %12330 = vmatpush3.bf16.msra.mxu0 %v12329_v16 }
0x188a   : > { %12331 = vmatprep.subr.bf16.mxu0 %v13091_v32 }
0x188d   : > { %12333 = vmatpush3.bf16.msra.mxu0 %v12332_v3 }
0x188e   : > { %12334 = vmatprep.subr.bf16.mxu0 %v13091_v32 }
0x1953   : > { %v9434_v35 = vpop.f32.mrb[242].mxu0 }
0x1954   : > { %11922 = vmatmul.mubr.msk.f32.vlgmr.msra.gmra.mrb[248].mxu0 %vm4812_vm6, %v9434_v35  ;;  %v11904_v9 = vpop.f32.mrb[243].mxu0 }
0x1955   : > { %12336 = vmatpush3.bf16.msra.mxu0 %v12335_v38  ;;  %11940 = vmatprep.mubr.msk.f32.mxu0 %vm13092_vm1, %v17043_v42 }
0x1956   : > { %12337 = vmatprep.subr.bf16.mxu0 %v13091_v32 }
0x1959   : > { %12339 = vmatpush3.bf16.msra.mxu0 %v12338_v6 }
0x195a   : > { %12340 = vmatprep.subr.bf16.mxu0 %v13091_v32 }
0x195d   : > { %12342 = vmatpush3.bf16.msra.mxu0 %v12341_v5 }
0x195e   : > { %12343 = vmatprep.subr.bf16.mxu0 %v13091_v32 }
0x1961   : > { %12345 = vmatpush3.bf16.msra.mxu0 %v12344_v15 }
0x1962   : > { %11951 = vmatprep.subr.bf16.mxu0 %v17043_v42 }
0x1964   : > { %11941 = vmatmul.mubr.msk.f32.vlgmr.msra.gmra.mrb[250].mxu0 %vm4812_vm6, %v9434_v35 }
0x1965   : > { %11959 = vmatprep.mubr.msk.bf16.mxu0 %vm13092_vm1, %v17043_v42  ;;  %11952 = vmatpush3.bf16.msra.mxu0 %v12805_v31 }
0x1966   : > { %11953 = vmatprep.subr.bf16.mxu0 %v17043_v42 }
0x1969   : > { %11954 = vmatpush3.bf16.msra.mxu0 %v12806_v23 }
0x196a   : > { %11955 = vmatprep.subr.bf16.mxu0 %v17043_v42 }
0x196d   : > { %11956 = vmatpush3.bf16.msra.mxu0 %v12807_v47 }
0x196e   : > { %11957 = vmatprep.subr.bf16.mxu0 %v17043_v42 }
0x1971   : > { %11958 = vmatpush3.bf16.msra.mxu0 %v12808_v24 }
0x1a27   : > { %v9515_v19 = vpop.f32.mrb[248].mxu0 }
0x1a28   : > { %v11923_v21 = vpop.f32.mrb[249].mxu0 }
0x1a37   : > { %v9593_v39 = vpop.f32.mrb[250].mxu0 }
0x1a38   : > { %v9597_v46 = vmax.f32 %v9515_v19, %v9593_v39  ;;  %v11942_v13 = vpop.f32.mrb[251].mxu0 }
0x1a3a   : > { %v9598_v54 = vpack.c.bf16 %v9597_v46, %v9597_v46 }
0x1a3c   : > { %11948 = vmatmul.mubr.msk.bf16.vlgmr.msra.gmra.mrb[240].mxu1 %vm8536_vm5, %v9598_v54 }
0x1a3d   : > { %11971 = vmatprep.mubr.msk.bf16.mxu1 %vm13092_vm1, %v17043_v42  ;;  %11964 = vmatpush3.bf16.msra.mxu1 %v12809_v60 }
0x1a3e   : > { %11965 = vmatprep.subr.bf16.mxu1 %v17043_v42 }
0x1a41   : > { %11966 = vmatpush3.bf16.msra.mxu1 %v12810_v57 }
0x1a42   : > { %11967 = vmatprep.subr.bf16.mxu1 %v17043_v42 }
0x1a45   : > { %11968 = vmatpush3.bf16.msra.mxu1 %v12811_v51 }
0x1a46   : > { %11969 = vmatprep.subr.bf16.mxu1 %v17043_v42 }
0x1a49   : > { %11970 = vmatpush3.bf16.msra.mxu1 %v12812_v4 }
0x1b0f   : > { %v9659_v44 = vpop.f32.mrb[240].mxu1 }
0x1b10   : > { %v9660_v53 = vadd.f32 %v10365_v14, %v9659_v44  ;;  %v11949_v43 = vpop.f32.mrb[241].mxu1 }
0x1b11   : > { %v9662_v2 = vpop.f32.mrb[242].mxu1 }
0x1b12   : > { %v9665_v32 = vmax.f32 %v9660_v53, 0.0  ;;  %v11950_v50 = vpop.f32.mrb[243].mxu1 }
0x1b14   : > { %v9666_v36 = vpack.c.bf16 %v9665_v32, %v9665_v32 }
0x1b16   : > { %11960 = vmatmul.mubr.msk.bf16.vlgmr.msra.gmra.mrb[252].mxu0 %vm4812_vm6, %v9666_v36 }
0x1be9   : > { %v9743_v28 = vpop.f32.mrb[252].mxu0 }
0x1bea   : > { %v9744_v34 = vadd.f32 %v10369_v12, %v9743_v28  ;;  %v11961_v7 = vpop.f32.mrb[253].mxu0 }
0x1beb   : > { %v9746_v37 = vpop.f32.mrb[254].mxu0 }
0x1bec   : > { %v9749_v55 = vmax.f32 %v9744_v34, 0.0  ;;  %v11962_v63 = vpop.f32.mrb[255].mxu0 }
0x1bee   : > { %v9750_v1 = vpack.c.bf16 %v9749_v55, %v9749_v55 }
0x1bf0   : > { %11972 = vmatmul.mubr.msk.bf16.vlgmr.msra.gmra.mrb[244].mxu1 %vm4812_vm6, %v9750_v1 }
0x1cc3   : > { %v9827_v48 = vpop.f32.mrb[244].mxu1 }
0x1cc4   : > { %v9828_v25 = vadd.f32 %v10375_v22, %v9827_v48  ;;  %v11973_v52 = vpop.f32.mrb[245].mxu1 }
0x1cc5   : > { %v9830_v42 = vpop.f32.mrb[246].mxu1 }
0x1cc6   : > { %9833 = vst [vmem:[%s1522_s1] sm:$0xff] %v9828_v25  ;;  %v11974_v40 = vpop.f32.mrb[247].mxu1 }
0x1cc7 PF: > { %s111_s28 = sadd.s32 1, %s13031_s28  }
0x1cc8   : > { %p108_p8 = scmp.ge.s32.totalorder %s111_s28, 4  }
0x1cca   :  { %110 = sbr.rel (!%p108_p8) target bundleno = 93 (0x5d), region = 319 }
0x1cd1   :  { %9853 = vsyncpa [#allocation3], 1 }
0x1cd2   :  { %9855 = vsyncpa [#allocation3 + $0x1], 1 }
0x1cd3   :  { %9856 = vsyncpa [#allocation5], 1 }
0x1cd4   :  { %9857 = vsyncpa [#allocation8], 1 }
0x1cd5   :  { %9858 = vsyncpa [#allocation11], 1 }

</bundles_post_ra>
